<compile_context>
chip_gen: v7x
topology: tpu7x:2x2x1
jax: 0.10.0
libtpu: 0.0.40
codegen_flags: <defaults>
</compile_context>

<pallas_src>
import functools

import jax
import jax.numpy as jnp
from jax.experimental import pallas as pl
from jax.experimental.pallas import tpu as pltpu

LAYER_1 = 1600
LAYER_2 = 320
BN_EPS = 1e-5


def _round_up(n, m):
    return ((n + m - 1) // m) * m


def _bn_train(h, gamma, beta):
    """BatchNorm1d, training mode (batch stats, biased var), single stats sweep.

    var = E[h^2] - mean^2 (clamped at 0); scale/shift folded so the normalize
    is one mul+add pass over h.  Padded lanes have gamma=0 -> output exactly 0.
    """
    inv_n = 1.0 / h.shape[0]
    s = jnp.sum(h, axis=0, keepdims=True)
    ss = jnp.sum(h * h, axis=0, keepdims=True)
    mu = s * inv_n
    var = jnp.maximum(ss * inv_n - mu * mu, 0.0)
    scale = jax.lax.rsqrt(var + BN_EPS) * gamma
    shift = beta - mu * scale
    return h * scale + shift


def encoder_kernel(
    prelu_ref,                       # SMEM [2] f32 (PReLU alphas)
    x_ref,                           # VMEM [B, Dk]    bf16
    w1_ref, g1_ref, beta1_ref,       # VMEM [Dk, L1p] bf16, [1, L1p] f32 x2
    w2_hbm, g2_ref, beta2_ref,       # HBM  [L1p, L2p] bf16, VMEM [1, L2p] f32 x2
    wh_hbm, bh_ref,                  # HBM  [L2p, H]   bf16, VMEM [1, H] f32
    out_ref,                         # VMEM [B, H] f32 (mean | log_var slab)
    w2_vmem, wh_vmem, sem,           # scratch: VMEM buffers + DMA semaphores
):
    # Kick off the big weight DMAs immediately so they overlap layer-1 compute.
    w2_cp = pltpu.make_async_copy(w2_hbm, w2_vmem, sem.at[0])
    wh_cp = pltpu.make_async_copy(wh_hbm, wh_vmem, sem.at[1])
    w2_cp.start()
    wh_cp.start()

    # Hoist PReLU scalar reads before any DMA wait (wait breaks SMEM forwarding).
    a1 = prelu_ref[0]
    a2 = prelu_ref[1]

    # ---- Layer 1: Linear (bias cancelled by BN mean) -> BN -> PReLU ----
    h = jnp.dot(x_ref[...], w1_ref[...], preferred_element_type=jnp.float32)
    h = _bn_train(h, g1_ref[...], beta1_ref[...])
    h = jnp.where(h >= 0, h, a1 * h).astype(jnp.bfloat16)

    # ---- Layer 2: Linear -> BN -> PReLU (wait for w2 only here) ----
    w2_cp.wait()
    h = jnp.dot(h, w2_vmem[...], preferred_element_type=jnp.float32)
    h = _bn_train(h, g2_ref[...], beta2_ref[...])
    h = jnp.where(h >= 0, h, a2 * h).astype(jnp.bfloat16)

    # ---- Fused mean / log_var heads (single matmul, lane-dense 128-wide slab)
    wh_cp.wait()
    out_ref[...] = (
        jnp.dot(h, wh_vmem[...], preferred_element_type=jnp.float32)
        + bh_ref[...]
    )


def init_params(key, input_dim, z_dim):
    """Synthetic params stored pre-padded to lane/sublane-friendly sizes.

    Weights stored transposed as [in, out] in bf16.  BN gamma is 0 in padded
    lanes and padded weight rows are 0, so padded lanes stay exactly 0.
    Linear biases b1/b2 are intentionally absent (no-ops under training BN).
    """
    Dk = _round_up(max(input_dim, 1), 16)       # bf16 sublane packing only
    L1p = _round_up(LAYER_1, 128)               # 1664
    L2p = _round_up(LAYER_2, 128)               # 384
    H = max(128, _round_up(2 * z_dim, 128))     # fused head slab width

    k1, k2, k3, k4 = jax.random.split(key, 4)

    def padded_lin(k, din, dout, rows, cols):
        w = jax.random.normal(k, (din, dout), jnp.float32) / jnp.sqrt(din)
        return jnp.zeros((rows, cols), jnp.float32).at[:din, :dout].set(w)

    p = {}
    p["w1"] = padded_lin(k1, input_dim, LAYER_1, Dk, L1p).astype(jnp.bfloat16)
    p["g1"] = jnp.zeros((1, L1p), jnp.float32).at[:, :LAYER_1].set(1.0)
    p["beta1"] = jnp.zeros((1, L1p), jnp.float32)

    p["w2"] = padded_lin(k2, LAYER_1, LAYER_2, L1p, L2p).astype(jnp.bfloat16)
    p["g2"] = jnp.zeros((1, L2p), jnp.float32).at[:, :LAYER_2].set(1.0)
    p["beta2"] = jnp.zeros((1, L2p), jnp.float32)

    # Fused head weight: mean in cols [0:z_dim], log_var in cols [z_dim:2*z_dim].
    wh = jnp.zeros((L2p, H), jnp.float32)
    wh = wh.at[:LAYER_2, 0:z_dim].set(
        jax.random.normal(k3, (LAYER_2, z_dim), jnp.float32) / jnp.sqrt(LAYER_2))
    wh = wh.at[:LAYER_2, z_dim:2 * z_dim].set(
        jax.random.normal(k4, (LAYER_2, z_dim), jnp.float32) / jnp.sqrt(LAYER_2))
    p["wh"] = wh.astype(jnp.bfloat16)
    p["bh"] = jnp.zeros((1, H), jnp.float32)

    # PReLU alphas (torch default init = 0.25), one scalar per PReLU layer.
    p["prelu"] = jnp.full((2,), 0.25, jnp.float32)
    return p


@functools.partial(jax.jit, static_argnames=("input_dim", "z_dim"))
def dense_encoder_forward(x, params, *, input_dim, z_dim):
    B = x.shape[0]
    Dk, L1p = params["w1"].shape
    L2p = params["w2"].shape[1]
    H = params["wh"].shape[1]

    # Only pad the input K dim to the bf16 sublane multiple (usually a no-op).
    if input_dim == Dk:
        x_p = x.astype(jnp.bfloat16)
    else:
        x_p = jnp.zeros((B, Dk), jnp.bfloat16).at[:, :input_dim].set(
            x.astype(jnp.bfloat16))

    vmem = pl.BlockSpec(memory_space=pltpu.MemorySpace.VMEM)
    smem = pl.BlockSpec(memory_space=pltpu.MemorySpace.SMEM)
    hbm = pl.BlockSpec(memory_space=pl.ANY)   # manual DMA inside the kernel

    in_specs = [
        smem,                 # prelu
        vmem,                 # x
        vmem, vmem, vmem,     # w1, g1, beta1
        hbm, vmem, vmem,      # w2 (HBM), g2, beta2
        hbm, vmem,            # wh (HBM), bh
    ]

    # Tight scoped-VMEM request: auto-DMA'd inputs (double-buffered), the
    # manual-DMA scratch, the output and the live activations, with headroom.
    est = (
        2 * (2 * B * Dk + 2 * Dk * L1p + 4 * 2 * L1p + 4 * 2 * L2p + 4 * H)
        + 2 * L1p * L2p + 2 * L2p * H
        + 2 * 4 * B * H
        + 4 * B * L1p + 2 * B * L1p + 4 * B * L2p + 2 * B * L2p + 4 * B * H
    )
    vmem_limit = int(min(32 << 20, max(8 << 20, 3 * est)))

    out = pl.pallas_call(
        encoder_kernel,
        out_shape=jax.ShapeDtypeStruct((B, H), jnp.float32),
        in_specs=in_specs,
        out_specs=vmem,
        scratch_shapes=[
            pltpu.VMEM((L1p, L2p), jnp.bfloat16),   # w2 landing buffer
            pltpu.VMEM((L2p, H), jnp.bfloat16),     # head-weight landing buffer
            pltpu.SemaphoreType.DMA((2,)),
        ],
        compiler_params=pltpu.CompilerParams(vmem_limit_bytes=vmem_limit),
    )(
        params["prelu"], x_p,
        params["w1"], params["g1"], params["beta1"],
        params["w2"], params["g2"], params["beta2"],
        params["wh"], params["bh"],
    )

    mean = out[:, :z_dim]
    log_var = out[:, z_dim:2 * z_dim]
    return mean, log_var


if __name__ == "__main__":
    # B=128 fills the MXU M dimension and gives meaningful training-mode BN
    # statistics while keeping the whole batch resident in VMEM.
    B, INPUT_DIM, Z_DIM = 128, 32, 8

    key = jax.random.PRNGKey(0)
    k_x, k_p = jax.random.split(key)

    x = jax.random.normal(k_x, (B, INPUT_DIM), jnp.float32)
    params = init_params(k_p, INPUT_DIM, Z_DIM)

    mean, log_var = dense_encoder_forward(x, params, input_dim=INPUT_DIM, z_dim=Z_DIM)
    jax.block_until_ready((mean, log_var))

    assert mean.shape == (B, Z_DIM)
    assert log_var.shape == (B, Z_DIM)
    print("KERNEL_OK")
</pallas_src>

<mosaic_0001>
module attributes {stable_mosaic.version = 11 : i64} {
  func.func @encoder_kernel(%arg0: memref<2xf32, #tpu.memory_space<smem>>, %arg1: memref<128x32xbf16, #tpu.memory_space<vmem>>, %arg2: memref<32x1664xbf16, #tpu.memory_space<vmem>>, %arg3: memref<1x1664xf32, #tpu.memory_space<vmem>>, %arg4: memref<1x1664xf32, #tpu.memory_space<vmem>>, %arg5: memref<1664x384xbf16, #tpu.memory_space<any>>, %arg6: memref<1x384xf32, #tpu.memory_space<vmem>>, %arg7: memref<1x384xf32, #tpu.memory_space<vmem>>, %arg8: memref<384x128xbf16, #tpu.memory_space<any>>, %arg9: memref<1x128xf32, #tpu.memory_space<vmem>>, %arg10: memref<128x128xf32, #tpu.memory_space<vmem>>, %arg11: memref<1664x384xbf16, #tpu.memory_space<vmem>>, %arg12: memref<384x128xbf16, #tpu.memory_space<vmem>>, %arg13: memref<2x!tpu.dma_semaphore, #tpu.memory_space<semaphore_mem>>) attributes {dimension_semantics = [], scalar_prefetch = 0 : i64, scratch_operands = 3 : i64, tpu.core_type = #tpu.core_type<tc>} {
    %c0_i32 = arith.constant 0 : i32
    %0 = tpu.memref_slice %arg13[%c0_i32] : memref<2x!tpu.dma_semaphore, #tpu.memory_space<semaphore_mem>> -> memref<1x!tpu.dma_semaphore, #tpu.memory_space<semaphore_mem>>
    %1 = tpu.memref_squeeze %0 : memref<1x!tpu.dma_semaphore, #tpu.memory_space<semaphore_mem>> -> memref<!tpu.dma_semaphore, #tpu.memory_space<semaphore_mem>>
    tpu.enqueue_dma source(%arg5 : memref<1664x384xbf16, #tpu.memory_space<any>>) target(%arg11 : memref<1664x384xbf16, #tpu.memory_space<vmem>>) target_semaphore(%1 : memref<!tpu.dma_semaphore, #tpu.memory_space<semaphore_mem>>)
    %c1_i32 = arith.constant 1 : i32
    %2 = tpu.memref_slice %arg13[%c1_i32] : memref<2x!tpu.dma_semaphore, #tpu.memory_space<semaphore_mem>> -> memref<1x!tpu.dma_semaphore, #tpu.memory_space<semaphore_mem>>
    %3 = tpu.memref_squeeze %2 : memref<1x!tpu.dma_semaphore, #tpu.memory_space<semaphore_mem>> -> memref<!tpu.dma_semaphore, #tpu.memory_space<semaphore_mem>>
    tpu.enqueue_dma source(%arg8 : memref<384x128xbf16, #tpu.memory_space<any>>) target(%arg12 : memref<384x128xbf16, #tpu.memory_space<vmem>>) target_semaphore(%3 : memref<!tpu.dma_semaphore, #tpu.memory_space<semaphore_mem>>)
    %c0 = arith.constant 0 : index
    %4 = memref.load %arg0[%c0] : memref<2xf32, #tpu.memory_space<smem>>
    %c1 = arith.constant 1 : index
    %5 = memref.load %arg0[%c1] : memref<2xf32, #tpu.memory_space<smem>>
    %c0_0 = arith.constant 0 : index
    %c0_1 = arith.constant 0 : index
    %6 = vector.load %arg1[%c0_0, %c0_1] : memref<128x32xbf16, #tpu.memory_space<vmem>>, vector<128x32xbf16>
    %c0_2 = arith.constant 0 : index
    %c0_3 = arith.constant 0 : index
    %7 = vector.load %arg2[%c0_2, %c0_3] : memref<32x1664xbf16, #tpu.memory_space<vmem>>, vector<32x1664xbf16>
    %cst = arith.constant dense<0.000000e+00> : vector<128x1664xf32>
    %8 = tpu.matmul %6, %7, %cst {dimension_numbers = #tpu.dot_dimension_numbers<[1], [0], [0], [1], [0, 0, 1, 1], [], []>} : vector<128x32xbf16>, vector<32x1664xbf16>, vector<128x1664xf32> -> vector<128x1664xf32>
    %c0_4 = arith.constant 0 : index
    %c0_5 = arith.constant 0 : index
    %9 = vector.load %arg3[%c0_4, %c0_5] : memref<1x1664xf32, #tpu.memory_space<vmem>>, vector<1x1664xf32>
    %c0_6 = arith.constant 0 : index
    %c0_7 = arith.constant 0 : index
    %10 = vector.load %arg4[%c0_6, %c0_7] : memref<1x1664xf32, #tpu.memory_space<vmem>>, vector<1x1664xf32>
    %cst_8 = arith.constant dense<0.000000e+00> : vector<1664xf32>
    %11 = vector.multi_reduction <add>, %8, %cst_8 [0] : vector<128x1664xf32> to vector<1664xf32>
    %12 = vector.shape_cast %11 : vector<1664xf32> to vector<1x1664xf32>
    %13 = arith.mulf %8, %8 : vector<128x1664xf32>
    %cst_9 = arith.constant dense<0.000000e+00> : vector<1664xf32>
    %14 = vector.multi_reduction <add>, %13, %cst_9 [0] : vector<128x1664xf32> to vector<1664xf32>
    %15 = vector.shape_cast %14 : vector<1664xf32> to vector<1x1664xf32>
    %cst_10 = arith.constant 7.812500e-03 : f32
    %16 = vector.broadcast %cst_10 : f32 to vector<1x1664xf32>
    %17 = arith.mulf %12, %16 : vector<1x1664xf32>
    %cst_11 = arith.constant 7.812500e-03 : f32
    %18 = vector.broadcast %cst_11 : f32 to vector<1x1664xf32>
    %19 = arith.mulf %15, %18 : vector<1x1664xf32>
    %20 = arith.mulf %17, %17 : vector<1x1664xf32>
    %21 = arith.subf %19, %20 : vector<1x1664xf32>
    %cst_12 = arith.constant 0.000000e+00 : f32
    %22 = vector.broadcast %cst_12 : f32 to vector<1x1664xf32>
    %23 = arith.maximumf %21, %22 : vector<1x1664xf32>
    %cst_13 = arith.constant 9.99999974E-6 : f32
    %24 = vector.broadcast %cst_13 : f32 to vector<1x1664xf32>
    %25 = arith.addf %23, %24 : vector<1x1664xf32>
    %26 = math.rsqrt %25 : vector<1x1664xf32>
    %27 = arith.mulf %26, %9 : vector<1x1664xf32>
    %28 = arith.mulf %17, %27 : vector<1x1664xf32>
    %29 = arith.subf %10, %28 : vector<1x1664xf32>
    %30 = vector.broadcast %27 : vector<1x1664xf32> to vector<128x1664xf32>
    %31 = arith.mulf %8, %30 : vector<128x1664xf32>
    %32 = vector.broadcast %29 : vector<1x1664xf32> to vector<128x1664xf32>
    %33 = arith.addf %31, %32 : vector<128x1664xf32>
    %cst_14 = arith.constant 0.000000e+00 : f32
    %34 = vector.broadcast %cst_14 : f32 to vector<128x1664xf32>
    %35 = arith.cmpf oge, %33, %34 : vector<128x1664xf32>
    %36 = vector.broadcast %4 : f32 to vector<128x1664xf32>
    %37 = arith.mulf %36, %33 : vector<128x1664xf32>
    %38 = arith.select %35, %33, %37 : vector<128x1664xi1>, vector<128x1664xf32>
    %39 = arith.truncf %38 : vector<128x1664xf32> to vector<128x1664xbf16>
    %c0_i32_15 = arith.constant 0 : i32
    %40 = tpu.memref_slice %arg13[%c0_i32_15] : memref<2x!tpu.dma_semaphore, #tpu.memory_space<semaphore_mem>> -> memref<1x!tpu.dma_semaphore, #tpu.memory_space<semaphore_mem>>
    %41 = tpu.memref_squeeze %40 : memref<1x!tpu.dma_semaphore, #tpu.memory_space<semaphore_mem>> -> memref<!tpu.dma_semaphore, #tpu.memory_space<semaphore_mem>>
    tpu.wait_dma2 semaphore(%41 : memref<!tpu.dma_semaphore, #tpu.memory_space<semaphore_mem>>) src(%arg5 : memref<1664x384xbf16, #tpu.memory_space<any>>) dst(%arg11 : memref<1664x384xbf16, #tpu.memory_space<vmem>>)
    %c0_16 = arith.constant 0 : index
    %c0_17 = arith.constant 0 : index
    %42 = vector.load %arg11[%c0_16, %c0_17] : memref<1664x384xbf16, #tpu.memory_space<vmem>>, vector<1664x384xbf16>
    %cst_18 = arith.constant dense<0.000000e+00> : vector<128x384xf32>
    %43 = tpu.matmul %39, %42, %cst_18 {dimension_numbers = #tpu.dot_dimension_numbers<[1], [0], [0], [1], [0, 0, 1, 1], [], []>} : vector<128x1664xbf16>, vector<1664x384xbf16>, vector<128x384xf32> -> vector<128x384xf32>
    %c0_19 = arith.constant 0 : index
    %c0_20 = arith.constant 0 : index
    %44 = vector.load %arg6[%c0_19, %c0_20] : memref<1x384xf32, #tpu.memory_space<vmem>>, vector<1x384xf32>
    %c0_21 = arith.constant 0 : index
    %c0_22 = arith.constant 0 : index
    %45 = vector.load %arg7[%c0_21, %c0_22] : memref<1x384xf32, #tpu.memory_space<vmem>>, vector<1x384xf32>
    %cst_23 = arith.constant dense<0.000000e+00> : vector<384xf32>
    %46 = vector.multi_reduction <add>, %43, %cst_23 [0] : vector<128x384xf32> to vector<384xf32>
    %47 = vector.shape_cast %46 : vector<384xf32> to vector<1x384xf32>
    %48 = arith.mulf %43, %43 : vector<128x384xf32>
    %cst_24 = arith.constant dense<0.000000e+00> : vector<384xf32>
    %49 = vector.multi_reduction <add>, %48, %cst_24 [0] : vector<128x384xf32> to vector<384xf32>
    %50 = vector.shape_cast %49 : vector<384xf32> to vector<1x384xf32>
    %cst_25 = arith.constant 7.812500e-03 : f32
    %51 = vector.broadcast %cst_25 : f32 to vector<1x384xf32>
    %52 = arith.mulf %47, %51 : vector<1x384xf32>
    %cst_26 = arith.constant 7.812500e-03 : f32
    %53 = vector.broadcast %cst_26 : f32 to vector<1x384xf32>
    %54 = arith.mulf %50, %53 : vector<1x384xf32>
    %55 = arith.mulf %52, %52 : vector<1x384xf32>
    %56 = arith.subf %54, %55 : vector<1x384xf32>
    %cst_27 = arith.constant 0.000000e+00 : f32
    %57 = vector.broadcast %cst_27 : f32 to vector<1x384xf32>
    %58 = arith.maximumf %56, %57 : vector<1x384xf32>
    %cst_28 = arith.constant 9.99999974E-6 : f32
    %59 = vector.broadcast %cst_28 : f32 to vector<1x384xf32>
    %60 = arith.addf %58, %59 : vector<1x384xf32>
    %61 = math.rsqrt %60 : vector<1x384xf32>
    %62 = arith.mulf %61, %44 : vector<1x384xf32>
    %63 = arith.mulf %52, %62 : vector<1x384xf32>
    %64 = arith.subf %45, %63 : vector<1x384xf32>
    %65 = vector.broadcast %62 : vector<1x384xf32> to vector<128x384xf32>
    %66 = arith.mulf %43, %65 : vector<128x384xf32>
    %67 = vector.broadcast %64 : vector<1x384xf32> to vector<128x384xf32>
    %68 = arith.addf %66, %67 : vector<128x384xf32>
    %cst_29 = arith.constant 0.000000e+00 : f32
    %69 = vector.broadcast %cst_29 : f32 to vector<128x384xf32>
    %70 = arith.cmpf oge, %68, %69 : vector<128x384xf32>
    %71 = vector.broadcast %5 : f32 to vector<128x384xf32>
    %72 = arith.mulf %71, %68 : vector<128x384xf32>
    %73 = arith.select %70, %68, %72 : vector<128x384xi1>, vector<128x384xf32>
    %74 = arith.truncf %73 : vector<128x384xf32> to vector<128x384xbf16>
    %c1_i32_30 = arith.constant 1 : i32
    %75 = tpu.memref_slice %arg13[%c1_i32_30] : memref<2x!tpu.dma_semaphore, #tpu.memory_space<semaphore_mem>> -> memref<1x!tpu.dma_semaphore, #tpu.memory_space<semaphore_mem>>
    %76 = tpu.memref_squeeze %75 : memref<1x!tpu.dma_semaphore, #tpu.memory_space<semaphore_mem>> -> memref<!tpu.dma_semaphore, #tpu.memory_space<semaphore_mem>>
    tpu.wait_dma2 semaphore(%76 : memref<!tpu.dma_semaphore, #tpu.memory_space<semaphore_mem>>) src(%arg8 : memref<384x128xbf16, #tpu.memory_space<any>>) dst(%arg12 : memref<384x128xbf16, #tpu.memory_space<vmem>>)
    %c0_31 = arith.constant 0 : index
    %c0_32 = arith.constant 0 : index
    %77 = vector.load %arg12[%c0_31, %c0_32] : memref<384x128xbf16, #tpu.memory_space<vmem>>, vector<384x128xbf16>
    %cst_33 = arith.constant dense<0.000000e+00> : vector<128x128xf32>
    %78 = tpu.matmul %74, %77, %cst_33 {dimension_numbers = #tpu.dot_dimension_numbers<[1], [0], [0], [1], [0, 0, 1, 1], [], []>} : vector<128x384xbf16>, vector<384x128xbf16>, vector<128x128xf32> -> vector<128x128xf32>
    %c0_34 = arith.constant 0 : index
    %c0_35 = arith.constant 0 : index
    %79 = vector.load %arg9[%c0_34, %c0_35] : memref<1x128xf32, #tpu.memory_space<vmem>>, vector<1x128xf32>
    %80 = vector.broadcast %79 : vector<1x128xf32> to vector<128x128xf32>
    %81 = arith.addf %78, %80 : vector<128x128xf32>
    %c0_36 = arith.constant 0 : index
    %c0_37 = arith.constant 0 : index
    %82 = vector.load %arg10[%c0_36, %c0_37] : memref<128x128xf32, #tpu.memory_space<vmem>>, vector<128x128xf32>
    tpu.vector_store %arg10[%c0_36, %c0_37], %81 {strides = array<i32>} : memref<128x128xf32, #tpu.memory_space<vmem>>, vector<128x128xf32>,
    return
  }
}

</mosaic_0001>

<bundles_post_ra>
// kernel: dense_encoder_forward.1
= control target key start
LH: loop header
LB: loop body
LE: loop exit
PB: predicated region body
PF: predicated region fallthrough
CT: control target
= control target key end

     0   :  { %15 = vsyncpa [#allocation7], 0  ;;  %s14566_s0 = inlined_call_operand.hbm [shape: f32[2], index: 0, kind: input, shape index: {}]   ;;  %s14567_s1 = inlined_call_operand.vmem [shape: bf16[128,32], index: 1, kind: input, shape index: {}]   ;;  %s14568_s2 = inlined_call_operand.hbm [shape: bf16[32,1664], index: 2, kind: input, shape index: {}]   ;;  %s14569_s3 = inlined_call_operand.hbm [shape: f32[1,1664], index: 3, kind: input, shape index: {}]   ;;  %s14570_s4 = inlined_call_operand.hbm [shape: f32[1,1664], index: 4, kind: input, shape index: {}]   ;;  %s14571_s5 = inlined_call_operand.hbm [shape: bf16[1664,384], index: 5, kind: input, shape index: {}]   ;;  %s14572_s6 = inlined_call_operand.hbm [shape: f32[1,384], index: 6, kind: input, shape index: {}]   ;;  %s14573_s7 = inlined_call_operand.hbm [shape: f32[1,384], index: 7, kind: input, shape index: {}]   ;;  %s14574_s8 = inlined_call_operand.hbm [shape: bf16[384,128], index: 8, kind: input, shape index: {}]   ;;  %s14575_s9 = inlined_call_operand.hbm [shape: f32[1,128], index: 9, kind: input, shape index: {}]   ;;  %s14576_s10 = inlined_call_operand.vmem [shape: f32[128,128], index: 10, kind: output, shape index: {}]  }
   0x1   :  { %16 = vsyncpa [#allocation6], 0 }
   0x2   :  { %17 = vsyncpa [#allocation10], 0 }
   0x3   :  { %18 = vsyncpa [#allocation13], 0 }
   0x4   :  { %19 = vsyncpa [#allocation16], 0  ;;  %s7229_s13 = smov [#allocation9]   ;;  %s7230_s15 = smov [#allocation12]  }
   0x5   :  { %s48_s14 = sshll.u32 %s7229_s13, 4  ;;  %s68_s16 = sshll.u32 %s7230_s15, 4  ;;  %s49_s14 = int_to_ptr.vmem [resolvable:$true] %s48_s14  ;;  %s69_s16 = int_to_ptr.vmem [resolvable:$true] %s68_s16 }
   0x6   :  { %s7051_s19 = scalar_lea.hbm %s14569_s3, 208 }
   0x7   :  { %p7052_p0 = scmp.ne.s32.totalorder %s14569_s3, %s7051_s19  ;;  %p7055_p1 = scmp.lt.u32.totalorder %s7051_s19, %s14569_s3 }
   0x9   :  { %p7057_p2 = pnand %p7055_p1, %p7052_p0 }
   0xb   :  { %7060 = shalt.err (!%p7057_p2)
}
   0xc   :  { %s7061_s24 = scalar_lea.vmem %s49_s14, 208  ;;  %s7065_s25 = scalar_lea.vmem %s49_s14, 224 }
   0xd   :  { %p7062_p3 = scmp.ne.s32.totalorder %s49_s14, %s7061_s24  ;;  %p7066_p4 = scmp.lt.s32.totalorder %s49_s14, %s49_s14 }
   0xe   :  { %p7067_p5 = scmp.lt.s32.totalorder %s7065_s25, %s7061_s24 }
  0x10   :  { %p7068_p6 = por %p7067_p5, %p7066_p4 }
  0x12   :  { %p7069_p7 = pnand %p7068_p6, %p7062_p3 }
  0x14   :  { %7072 = shalt.err (!%p7069_p7)
}
  0x15   :  { %51 = dma.hbm_to_vmem [thread:$0]  %s14569_s3, 208, %s49_s14, [#allocation10]  }
  0x16   :  { %s7073_s30 = scalar_lea.hbm %s14572_s6, 48 }
  0x17   :  { %p7074_p8 = scmp.ne.s32.totalorder %s14572_s6, %s7073_s30  ;;  %p7077_p9 = scmp.lt.u32.totalorder %s7073_s30, %s14572_s6 }
  0x19   :  { %p7079_p10 = pnand %p7077_p9, %p7074_p8 }
  0x1b   :  { %7082 = shalt.err (!%p7079_p10)
}
  0x1c   :  { %s7083_s17 = scalar_lea.vmem %s69_s16, 48  ;;  %s7087_s18 = scalar_lea.vmem %s69_s16, 64 }
  0x1d   :  { %p7084_p11 = scmp.ne.s32.totalorder %s69_s16, %s7083_s17  ;;  %p7088_p12 = scmp.lt.s32.totalorder %s69_s16, %s69_s16 }
  0x1e   :  { %p7089_p13 = scmp.lt.s32.totalorder %s7087_s18, %s7083_s17 }
  0x20   :  { %p7090_p0 = por %p7089_p13, %p7088_p12 }
  0x22   :  { %p7091_p1 = pnand %p7090_p0, %p7084_p11 }
  0x24   :  { %7094 = shalt.err (!%p7091_p1)
}
  0x25   :  { %71 = dma.hbm_to_vmem [thread:$0]  %s14572_s6, 48, %s69_s16, [#allocation13]  }
  0x26   :  { %s7095_s21 = scalar_lea.hbm %s14566_s0, 16 }
  0x27   :  { %p7096_p2 = scmp.ne.s32.totalorder %s14566_s0, %s7095_s21  ;;  %p7099_p3 = scmp.lt.u32.totalorder %s7095_s21, %s14566_s0 }
  0x29   :  { %p7101_p4 = pnand %p7099_p3, %p7096_p2 }
  0x2b   :  { %7104 = shalt.err (!%p7101_p4)
}
  0x2c   :  { %s7231_s26 = smov [#allocation5]   ;;  %s7232_s6 = smov [#allocation8]  }
  0x2d   :  { %27 = dma.hbm_to_smem %s14566_s0, 16, %s7231_s26, [#allocation7]  }
  0x2e   :  { %s35_s16 = sshll.u32 %s7232_s6, 4  ;;  %s7105_s11 = scalar_lea.hbm %s14568_s2, 3328  ;;  %s36_s16 = int_to_ptr.vmem [resolvable:$true] %s35_s16 }
  0x2f   :  { %p7106_p5 = scmp.ne.s32.totalorder %s14568_s2, %s7105_s11  ;;  %p7109_p6 = scmp.lt.u32.totalorder %s7105_s11, %s14568_s2 }
  0x31   :  { %p7111_p7 = pnand %p7109_p6, %p7106_p5 }
  0x33   :  { %7114 = shalt.err (!%p7111_p7)
}
  0x34   :  { %s7115_s18 = scalar_lea.vmem %s36_s16, 3328  ;;  %p7120_p9 = scmp.lt.s32.totalorder %s36_s16, %s36_s16 }
  0x35   :  { %p7116_p8 = scmp.ne.s32.totalorder %s36_s16, %s7115_s18  ;;  %p7121_p10 = scmp.lt.s32.totalorder %s7115_s18, %s7115_s18 }
  0x37   :  { %p7122_p11 = por %p7121_p10, %p7120_p9 }
  0x39   :  { %p7123_p12 = pnand %p7122_p11, %p7116_p8 }
  0x3b   :  { %7126 = shalt.err (!%p7123_p12)
}
  0x3c   :  { %s7233_s0 = smov 832   ;;  %s7234_s3 = smov 52  }
  0x3d   :  { %41 = dma.hbm_to_vmem [thread:$0]  %s14568_s2, 3328, %s36_s16, [#allocation6], %s7233_s0, %s7233_s0, %s7234_s3  }
  0x3e   :  { %s7235_s20 = smov [#allocation11]   ;;  %s7236_s22 = smov [#allocation14]  }
  0x3f   :  { %s58_s21 = sshll.u32 %s7235_s20, 4  ;;  %s78_s23 = sshll.u32 %s7236_s22, 4  ;;  %s59_s21 = int_to_ptr.vmem [resolvable:$true] %s58_s21  ;;  %s79_s23 = int_to_ptr.vmem [resolvable:$true] %s78_s23 }
  0x40   :  { %s7127_s26 = scalar_lea.hbm %s14570_s4, 208 }
  0x41   :  { %p7128_p13 = scmp.ne.s32.totalorder %s14570_s4, %s7127_s26  ;;  %p7131_p0 = scmp.lt.u32.totalorder %s7127_s26, %s14570_s4 }
  0x43   :  { %p7133_p1 = pnand %p7131_p0, %p7128_p13 }
  0x45   :  { %7136 = shalt.err (!%p7133_p1)
}
  0x46   :  { %s7137_s2 = scalar_lea.vmem %s59_s21, 208  ;;  %s7141_s16 = scalar_lea.vmem %s59_s21, 224 }
  0x47   :  { %p7138_p2 = scmp.ne.s32.totalorder %s59_s21, %s7137_s2  ;;  %p7142_p3 = scmp.lt.s32.totalorder %s59_s21, %s59_s21 }
  0x48   :  { %p7143_p4 = scmp.lt.s32.totalorder %s7141_s16, %s7137_s2 }
  0x4a   :  { %p7144_p5 = por %p7143_p4, %p7142_p3 }
  0x4c   :  { %p7145_p6 = pnand %p7144_p5, %p7138_p2 }
  0x4e   :  { %7148 = shalt.err (!%p7145_p6)
}
  0x4f   :  { %61 = dma.hbm_to_vmem [thread:$0]  %s14570_s4, 208, %s59_s21, [#allocation10]  }
  0x50   :  { %s7149_s15 = scalar_lea.hbm %s14573_s7, 48 }
  0x51   :  { %p7150_p7 = scmp.ne.s32.totalorder %s14573_s7, %s7149_s15  ;;  %p7153_p8 = scmp.lt.u32.totalorder %s7149_s15, %s14573_s7 }
  0x53   :  { %p7155_p9 = pnand %p7153_p8, %p7150_p7 }
  0x55   :  { %7158 = shalt.err (!%p7155_p9)
}
  0x56   :  { %s7159_s14 = scalar_lea.vmem %s79_s23, 48  ;;  %s7163_s19 = scalar_lea.vmem %s79_s23, 64 }
  0x57   :  { %p7160_p10 = scmp.ne.s32.totalorder %s79_s23, %s7159_s14  ;;  %p7164_p11 = scmp.lt.s32.totalorder %s79_s23, %s79_s23 }
  0x58   :  { %p7165_p12 = scmp.lt.s32.totalorder %s7163_s19, %s7159_s14 }
  0x5a   :  { %p7166_p13 = por %p7165_p12, %p7164_p11 }
  0x5c   :  { %p7167_p0 = pnand %p7166_p13, %p7160_p10 }
  0x5e   :  { %7170 = shalt.err (!%p7167_p0)
}
  0x5f   :  { %81 = dma.hbm_to_vmem [thread:$0]  %s14573_s7, 48, %s79_s23, [#allocation13]  }
  0x60   :  { %s7237_s21 = smov [#allocation15]   ;;  %s7171_s26 = scalar_lea.hbm %s14575_s9, 16 }
  0x61   :  { %s88_s22 = sshll.u32 %s7237_s21, 4  ;;  %p7172_p1 = scmp.ne.s32.totalorder %s14575_s9, %s7171_s26  ;;  %s89_s22 = int_to_ptr.vmem [resolvable:$true] %s88_s22 }
  0x62   :  { %p7175_p2 = scmp.lt.u32.totalorder %s7171_s26, %s14575_s9 }
  0x64   :  { %p7177_p3 = pnand %p7175_p2, %p7172_p1 }
  0x66   :  { %7180 = shalt.err (!%p7177_p3)
}
  0x67   :  { %s7181_s2 = scalar_lea.vmem %s89_s22, 16  ;;  %s7185_s7 = scalar_lea.vmem %s89_s22, 32 }
  0x68   :  { %p7182_p4 = scmp.ne.s32.totalorder %s89_s22, %s7181_s2  ;;  %p7186_p5 = scmp.lt.s32.totalorder %s89_s22, %s89_s22 }
  0x69   :  { %p7187_p6 = scmp.lt.s32.totalorder %s7185_s7, %s7181_s2 }
  0x6b   :  { %p7188_p7 = por %p7187_p6, %p7186_p5 }
  0x6d   :  { %p7189_p8 = pnand %p7188_p7, %p7182_p4 }
  0x6f   :  { %7192 = shalt.err (!%p7189_p8)
}
  0x70   :  { %91 = dma.hbm_to_vmem [thread:$0]  %s14575_s9, 16, %s89_s22, [#allocation16]  }
  0x71   :  { %7215 = dma.done.wait [#allocation7], 16  }
  0x72   :  { %7216 = vsyncadd [#allocation7], 4294967280 }
  0x73   :  { %7217 = dma.done.wait [#allocation6], 3328  }
  0x74   :  { %7218 = vsyncadd [#allocation6], 4294963968 }
  0x75   :  { %7219 = dma.done.wait [#allocation10], 416  }
  0x76   :  { %7220 = vsyncadd [#allocation10], 4294966880 }
  0x77   :  { %7221 = dma.done.wait [#allocation13], 96  }
  0x78   :  { %7222 = vsyncadd [#allocation13], 4294967200 }
  0x79   :  { %7223 = dma.done.wait [#allocation16], 16  }
  0x7a   :  { %7224 = vsyncadd [#allocation16], 4294967280 }
  0x7b   :  { %113 = sfence }
  0x7c   :  { %s119_s30 = sld [smem:[#allocation0]]   ;;  %s7238_s11 = smov [#allocation2]   ;;  %v14577_v0 = vmov 0   ;;  %vm380_vm0 = vcmask 261120  }
  0x7d   :  { %s7390_s12 = sshll.u32 %s7238_s11, 4  ;;  %437 = vmatprep.mubr.bf16.mxu0 %v14577_v0  ;;  %497 = vmatprep.mubr.bf16.mxu1 %v14577_v0  ;;  %s7240_s9 = smov 384   ;;  %s128_s12 = int_to_ptr.vmem [resolvable:$true] %s7390_s12 }
  0x7e   :  { %131 = sst [smem:[#allocation18]] %s7240_s9  ;;  %s7241_s13 = smov 3  }
  0x7f   :  { %133 = sst [smem:[#allocation18 + $0x1]] %s7240_s9  ;;  %s7242_s15 = smov 64  }
  0x80   :  { %135 = sst [smem:[#allocation18 + $0x2]] %s7241_s13  ;;  %s7243_s18 = smov 128  }
  0x81   :  { %137 = sst [smem:[#allocation18 + $0x3]] %s7242_s15  ;;  %s7244_s3 = smov 2  }
  0x82   :  { %s6084_s17 = sshll.u32 %s119_s30, 26  ;;  %139 = sst [smem:[#allocation18 + $0x4]] %s7243_s18 }
  0x83   :  { %s6085_s0 = sadd.s32 134217728, %s6084_s17  ;;  %141 = sst [smem:[#allocation18 + $0x5]] %s7244_s3 }
  0x84   :  { %s7245_s14 = smov 192   ;;  %145 = sst [smem:[#allocation18 + $0x7]] %s7242_s15 }
  0x85   :  { %143 = sst [smem:[#allocation18 + $0x6]] %s7245_s14  ;;  %s7246_s19 = smov 4  }
  0x86   :  { %147 = sst [smem:[#allocation18 + $0x8]] %s7246_s19  ;;  %s7247_s4 = smov [#allocation4]  }
  0x87   :  { %s7248_s20 = smov [#allocation17]   ;;  %s7250_s15 = smov [#allocation3]  }
  0x88   :  { %149 = dma.general %s14571_s5, 39936, %s128_s12, %s7247_s4, %s7248_s20, [#allocation18], %s6085_s0, 0  }
  0x89   :  { %s7398_s24 = sld [smem:[#allocation5 + $0x1]]  ;;  %v6972_v1 = vld [vmem:[#allocation8 + $0x4] ss:$52 sps:$4 sm:$0xff]   ;;  %v6974_v2 = vld [vmem:[#allocation8] ss:$52 sps:$4 sm:$0xff]   ;;  %v7419_v14 = vld [vmem:[%s14567_s1 + $0x8] sm:$0xff]  }
  0x8a   :  { %405 = vmatprep.subr.bf16.mxu0 %v6972_v1  ;;  %6754 = vmatprep.subr.bf16.mxu1 %v6972_v1  ;;  %v6975_v3 = vld [vmem:[#allocation8 + $0x6c] ss:$52 sps:$4 sm:$0xff]   ;;  %v6977_v4 = vld [vmem:[#allocation8 + $0x68] ss:$52 sps:$4 sm:$0xff]   ;;  %v7408_v6 = vld [vmem:[%s14567_s1 + $0x30] sm:$0xff]   ;;  %s158_s17 = sshll.u32 %s7250_s15, 4  ;;  %s159_s17 = int_to_ptr.vmem [resolvable:$true] %s158_s17 }
  0x8b   :  { %406 = vmatpush1.bf16.msra.mxu0 %v6974_v2  ;;  %6756 = vmatpush1.bf16.msra.mxu1 %v6974_v2  ;;  %v7403_v5 = vld [vmem:[%s14567_s1] sm:$0xff]   ;;  %v6980_v7 = vld [vmem:[#allocation8 + $0x8] ss:$52 sps:$4 sm:$0xff]   ;;  %v6996_v17 = vld [vmem:[#allocation8 + $0x78] ss:$52 sps:$4 sm:$0xff]   ;;  %s7193_s3 = scalar_lea.hbm %s14574_s8, 3072 }
  0x8c   :  { %407 = vmatprep.subr.bf16.mxu0 %v6975_v3  ;;  %6755 = vmatprep.subr.bf16.mxu1 %v6975_v3  ;;  %v6982_v8 = vld [vmem:[#allocation8 + $0xc] ss:$52 sps:$4 sm:$0xff]   ;;  %v6983_v9 = vld [vmem:[#allocation8 + $0x10] ss:$52 sps:$4 sm:$0xff]   ;;  %v6985_v10 = vld [vmem:[#allocation8 + $0x14] ss:$52 sps:$4 sm:$0xff]   ;;  %p7194_p9 = scmp.ne.s32.totalorder %s14574_s8, %s7193_s3  ;;  %p7197_p10 = scmp.lt.u32.totalorder %s7193_s3, %s14574_s8 }
  0x8d   :  { %v6990_v11 = vld [vmem:[#allocation8 + $0x74] ss:$52 sps:$4 sm:$0xff]   ;;  %v6988_v12 = vld [vmem:[#allocation8 + $0x70] ss:$52 sps:$4 sm:$0xff]   ;;  %v7424_v15 = vld [vmem:[%s14567_s1 + $0x38] sm:$0xff]  }
  0x8e   :  { %v6994_v13 = vld [vmem:[#allocation8 + $0x1c] ss:$52 sps:$4 sm:$0xff]   ;;  %v7006_v18 = vld [vmem:[#allocation8 + $0x24] ss:$52 sps:$4 sm:$0xff]   ;;  %v7001_v22 = vld [vmem:[#allocation8 + $0x80] ss:$52 sps:$4 sm:$0xff]   ;;  %p7199_p11 = pnand %p7197_p10, %p7194_p9 }
  0x8f   :  { %408 = vmatpush1.bf16.msra.mxu0 %v6977_v4  ;;  %6757 = vmatpush1.bf16.msra.mxu1 %v6977_v4  ;;  %v6998_v16 = vld [vmem:[#allocation8 + $0x7c] ss:$52 sps:$4 sm:$0xff]   ;;  %v6992_v20 = vld [vmem:[#allocation8 + $0x18] ss:$52 sps:$4 sm:$0xff]   ;;  %v7457_v25 = vld [vmem:[%s14567_s1 + $0x20] sm:$0xff]  }
  0x90   :  { %518 = vmatprep.subr.bf16.mxu1 %v6982_v8  ;;  %631 = vmatprep.subr.bf16.mxu0 %v6985_v10  ;;  %v7435_v19 = vld [vmem:[%s14567_s1 + $0x10] sm:$0xff]   ;;  %v7003_v21 = vld [vmem:[#allocation8 + $0x84] ss:$52 sps:$4 sm:$0xff]   ;;  %v7012_v23 = vld [vmem:[#allocation8 + $0x2c] ss:$52 sps:$4 sm:$0xff]  }
  0x91   :  { %v7446_v24 = vld [vmem:[%s14567_s1 + $0x18] sm:$0xff]   ;;  %v7468_v26 = vld [vmem:[%s14567_s1 + $0x28] sm:$0xff]   ;;  %v7004_v27 = vld [vmem:[#allocation8 + $0x20] ss:$52 sps:$4 sm:$0xff]   ;;  %s162_s1 = sld [smem:[#allocation5]] }
  0x92   :  { %6121 = vmatmul.mubr.msk.bf16.vlgmr.msra.gmra.mrb[0].mxu0 %vm380_vm0, %v7403_v5  ;;  %6127 = vmatmul.mubr.msk.bf16.vlgmr.msra.gmra.mrb[0].mxu1 %vm380_vm0, %v7408_v6  ;;  %v7009_v28 = vld [vmem:[#allocation8 + $0x8c] ss:$52 sps:$4 sm:$0xff]   ;;  %v7007_v29 = vld [vmem:[#allocation8 + $0x88] ss:$52 sps:$4 sm:$0xff]   ;;  %v7016_v30 = vld [vmem:[#allocation8 + $0x30] ss:$52 sps:$4 sm:$0xff]  }
  0x93   :  { %519 = vmatpush1.bf16.msra.mxu1 %v6980_v7  ;;  %632 = vmatpush1.bf16.msra.mxu0 %v6983_v9  ;;  %v7010_v31 = vld [vmem:[#allocation8 + $0x28] ss:$52 sps:$4 sm:$0xff]   ;;  %v7013_v33 = vld [vmem:[#allocation8 + $0x90] ss:$52 sps:$4 sm:$0xff]   ;;  %v7017_v34 = vld [vmem:[#allocation8 + $0x98] ss:$52 sps:$4 sm:$0xff]   ;;  %v2031_v7 = vlaneseq }
  0x94   :  { %447 = vmatprep.mubr.bf16.mxu0 %v14577_v0  ;;  %507 = vmatprep.mubr.bf16.mxu1 %v14577_v0  ;;  %v7015_v32 = vld [vmem:[#allocation8 + $0x94] ss:$52 sps:$4 sm:$0xff]  }
  0x95   :  { %520 = vmatprep.subr.bf16.mxu1 %v6990_v11  ;;  %633 = vmatprep.subr.bf16.mxu0 %v6998_v16 }
  0x97   :  { %521 = vmatpush1.bf16.msra.mxu1 %v6988_v12  ;;  %634 = vmatpush1.bf16.msra.mxu0 %v6996_v17 }
  0x98   :  { %744 = vmatprep.subr.bf16.mxu1 %v6994_v13  ;;  %857 = vmatprep.subr.bf16.mxu0 %v7006_v18 }
  0x9a   :  { %6122 = vmatmul.mubr.msk.bf16.gmra.mrb[4].mxu0 %vm380_vm0, %v7419_v14  ;;  %6128 = vmatmul.mubr.msk.bf16.gmra.mrb[4].mxu1 %vm380_vm0, %v7424_v15 }
  0x9b   :  { %457 = vmatprep.mubr.bf16.mxu0 %v14577_v0  ;;  %550 = vmatprep.mubr.bf16.mxu1 %v14577_v0 }
  0xa2   :  { %6123 = vmatmul.mubr.msk.bf16.gmra.mrb[8].mxu0 %vm380_vm0, %v7435_v19  ;;  %6129 = vmatmul.mubr.msk.bf16.vlgmr.msra.gmra.mrb[8].mxu1 %vm380_vm0, %v7403_v5 }
  0xa3   :  { %745 = vmatpush1.bf16.msra.mxu1 %v6992_v20  ;;  %467 = vmatprep.mubr.bf16.mxu0 %v14577_v0 }
  0xa4   :  { %560 = vmatprep.mubr.bf16.mxu1 %v14577_v0  ;;  %746 = vmatprep.subr.bf16.mxu1 %v7003_v21  ;;  %v7249_v21 = vmov 1966171168  }
  0xa7   :  { %747 = vmatpush1.bf16.msra.mxu1 %v7001_v22  ;;  %v2140_v22 = vunpack.c.l.s4 %v7249_v21 }
  0xa8   :  { %970 = vmatprep.subr.bf16.mxu1 %v7012_v23 }
  0xaa   :  { %6124 = vmatmul.mubr.msk.bf16.gmra.mrb[12].mxu0 %vm380_vm0, %v7446_v24  ;;  %6130 = vmatmul.mubr.msk.bf16.gmra.mrb[12].mxu1 %vm380_vm0, %v7419_v14 }
  0xab   :  { %477 = vmatprep.mubr.bf16.mxu0 %v14577_v0  ;;  %570 = vmatprep.mubr.bf16.mxu1 %v14577_v0 }
  0xb2   :  { %6125 = vmatmul.mubr.msk.bf16.gmra.mrb[16].mxu0 %vm380_vm0, %v7457_v25  ;;  %6131 = vmatmul.mubr.msk.bf16.gmra.mrb[16].mxu1 %vm380_vm0, %v7435_v19 }
  0xb3   :  { %487 = vmatprep.mubr.bf16.mxu0 %v14577_v0  ;;  %580 = vmatprep.mubr.bf16.mxu1 %v14577_v0 }
  0xba   :  { %6126 = vmatmul.mubr.msk.bf16.gmra.mrb[20].mxu0 %vm380_vm0, %v7468_v26  ;;  %6132 = vmatmul.mubr.msk.bf16.gmra.mrb[20].mxu1 %vm380_vm0, %v7446_v24 }
  0xbb   :  { %590 = vmatprep.mubr.bf16.mxu1 %v14577_v0  ;;  %663 = vmatprep.mubr.bf16.mxu0 %v14577_v0 }
  0xc2   :  { %6133 = vmatmul.mubr.msk.bf16.gmra.mrb[24].mxu1 %vm380_vm0, %v7457_v25  ;;  %6137 = vmatmul.mubr.msk.bf16.vlgmr.msra.gmra.mrb[24].mxu0 %vm380_vm0, %v7403_v5 }
  0xc3   :  { %858 = vmatpush1.bf16.msra.mxu0 %v7004_v27  ;;  %600 = vmatprep.mubr.bf16.mxu1 %v14577_v0 }
  0xc4   :  { %673 = vmatprep.mubr.bf16.mxu0 %v14577_v0  ;;  %859 = vmatprep.subr.bf16.mxu0 %v7009_v28 }
  0xc7   :  { %860 = vmatpush1.bf16.msra.mxu0 %v7007_v29 }
  0xc8   :  { %6670 = vmatprep.subr.bf16.mxu0 %v7016_v30 }
  0xca   :  { %6134 = vmatmul.mubr.msk.bf16.gmra.mrb[28].mxu1 %vm380_vm0, %v7468_v26  ;;  %6138 = vmatmul.mubr.msk.bf16.gmra.mrb[28].mxu0 %vm380_vm0, %v7419_v14 }
  0xcb   :  { %610 = vmatprep.mubr.bf16.mxu1 %v14577_v0  ;;  %683 = vmatprep.mubr.bf16.mxu0 %v14577_v0 }
  0xd2   :  { %6135 = vmatmul.mubr.msk.bf16.gmra.mrb[32].mxu1 %vm380_vm0, %v7408_v6  ;;  %6139 = vmatmul.mubr.msk.bf16.gmra.mrb[32].mxu0 %vm380_vm0, %v7435_v19 }
  0xd3   :  { %620 = vmatprep.mubr.bf16.mxu1 %v14577_v0  ;;  %693 = vmatprep.mubr.bf16.mxu0 %v14577_v0 }
  0xda   :  { %6136 = vmatmul.mubr.msk.bf16.gmra.mrb[36].mxu1 %vm380_vm0, %v7424_v15  ;;  %6140 = vmatmul.mubr.msk.bf16.gmra.mrb[36].mxu0 %vm380_vm0, %v7446_v24 }
  0xdb   :  { %703 = vmatprep.mubr.bf16.mxu0 %v14577_v0  ;;  %776 = vmatprep.mubr.bf16.mxu1 %v14577_v0 }
  0xe2   :  { %6141 = vmatmul.mubr.msk.bf16.gmra.mrb[40].mxu0 %vm380_vm0, %v7457_v25  ;;  %6145 = vmatmul.mubr.msk.bf16.vlgmr.msra.gmra.mrb[40].mxu1 %vm380_vm0, %v7403_v5 }
  0xe3   :  { %971 = vmatpush1.bf16.msra.mxu1 %v7010_v31  ;;  %713 = vmatprep.mubr.bf16.mxu0 %v14577_v0 }
  0xe4   :  { %786 = vmatprep.mubr.bf16.mxu1 %v14577_v0  ;;  %972 = vmatprep.subr.bf16.mxu1 %v7015_v32 }
  0xe7   :  { %973 = vmatpush1.bf16.msra.mxu1 %v7013_v33 }
  0xea   :  { %6142 = vmatmul.mubr.msk.bf16.gmra.mrb[44].mxu0 %vm380_vm0, %v7468_v26  ;;  %6146 = vmatmul.mubr.msk.bf16.gmra.mrb[44].mxu1 %vm380_vm0, %v7419_v14 }
  0xeb   :  { %723 = vmatprep.mubr.bf16.mxu0 %v14577_v0  ;;  %796 = vmatprep.mubr.bf16.mxu1 %v14577_v0 }
  0xf2   :  { %6143 = vmatmul.mubr.msk.bf16.gmra.mrb[48].mxu0 %vm380_vm0, %v7408_v6  ;;  %6147 = vmatmul.mubr.msk.bf16.gmra.mrb[48].mxu1 %vm380_vm0, %v7435_v19 }
  0xf3   :  { %733 = vmatprep.mubr.bf16.mxu0 %v14577_v0  ;;  %806 = vmatprep.mubr.bf16.mxu1 %v14577_v0 }
  0xfa   :  { %6144 = vmatmul.mubr.msk.bf16.gmra.mrb[52].mxu0 %vm380_vm0, %v7424_v15  ;;  %6148 = vmatmul.mubr.msk.bf16.gmra.mrb[52].mxu1 %vm380_vm0, %v7446_v24 }
  0xfb   :  { %816 = vmatprep.mubr.bf16.mxu1 %v14577_v0  ;;  %889 = vmatprep.mubr.bf16.mxu0 %v14577_v0 }
 0x102   :  { %6149 = vmatmul.mubr.msk.bf16.gmra.mrb[56].mxu1 %vm380_vm0, %v7457_v25  ;;  %6153 = vmatmul.mubr.msk.bf16.vlgmr.msra.gmra.mrb[56].mxu0 %vm380_vm0, %v7403_v5 }
 0x103   :  { %6671 = vmatpush3.bf16.msra.mxu0 %v7016_v30  ;;  %826 = vmatprep.mubr.bf16.mxu1 %v14577_v0 }
 0x104   :  { %899 = vmatprep.mubr.bf16.mxu0 %v14577_v0  ;;  %6672 = vmatprep.subr.bf16.mxu0 %v7017_v34 }
 0x107   :  { %6673 = vmatpush3.bf16.msra.mxu0 %v7017_v34 }
 0x10a   :  { %6150 = vmatmul.mubr.msk.bf16.gmra.mrb[60].mxu1 %vm380_vm0, %v7468_v26  ;;  %6154 = vmatmul.mubr.msk.bf16.gmra.mrb[60].mxu0 %vm380_vm0, %v7419_v14 }
 0x10b   :  { %836 = vmatprep.mubr.bf16.mxu1 %v14577_v0  ;;  %909 = vmatprep.mubr.bf16.mxu0 %v14577_v0 }
 0x112   :  { %6151 = vmatmul.mubr.msk.bf16.gmra.mrb[64].mxu1 %vm380_vm0, %v7408_v6  ;;  %6155 = vmatmul.mubr.msk.bf16.gmra.mrb[64].mxu0 %vm380_vm0, %v7435_v19 }
 0x113   :  { %846 = vmatprep.mubr.bf16.mxu1 %v14577_v0  ;;  %919 = vmatprep.mubr.bf16.mxu0 %v14577_v0 }
 0x11a   :  { %6152 = vmatmul.mubr.msk.bf16.gmra.mrb[68].mxu1 %vm380_vm0, %v7424_v15  ;;  %6156 = vmatmul.mubr.msk.bf16.gmra.mrb[68].mxu0 %vm380_vm0, %v7446_v24 }
 0x11b   :  { %929 = vmatprep.mubr.bf16.mxu0 %v14577_v0  ;;  %1002 = vmatprep.mubr.bf16.mxu1 %v14577_v0 }
 0x122   :  { %6157 = vmatmul.mubr.msk.bf16.gmra.mrb[72].mxu0 %vm380_vm0, %v7457_v25  ;;  %6161 = vmatmul.mubr.msk.bf16.vlgmr.msra.gmra.mrb[72].mxu1 %vm380_vm0, %v7403_v5 }
 0x123   :  { %939 = vmatprep.mubr.bf16.mxu0 %v14577_v0  ;;  %1012 = vmatprep.mubr.bf16.mxu1 %v14577_v0 }
 0x12a   :  { %6158 = vmatmul.mubr.msk.bf16.gmra.mrb[76].mxu0 %vm380_vm0, %v7468_v26  ;;  %6162 = vmatmul.mubr.msk.bf16.gmra.mrb[76].mxu1 %vm380_vm0, %v7419_v14 }
 0x12b   :  { %949 = vmatprep.mubr.bf16.mxu0 %v14577_v0  ;;  %1022 = vmatprep.mubr.bf16.mxu1 %v14577_v0 }
 0x132   :  { %6159 = vmatmul.mubr.msk.bf16.gmra.mrb[80].mxu0 %vm380_vm0, %v7408_v6  ;;  %6163 = vmatmul.mubr.msk.bf16.gmra.mrb[80].mxu1 %vm380_vm0, %v7435_v19 }
 0x133   :  { %959 = vmatprep.mubr.bf16.mxu0 %v14577_v0  ;;  %1032 = vmatprep.mubr.bf16.mxu1 %v14577_v0 }
 0x13a   :  { %6160 = vmatmul.mubr.msk.bf16.gmra.mrb[84].mxu0 %vm380_vm0, %v7424_v15  ;;  %6164 = vmatmul.mubr.msk.bf16.gmra.mrb[84].mxu1 %vm380_vm0, %v7446_v24 }
 0x13b   :  { %1042 = vmatprep.mubr.bf16.mxu1 %v14577_v0  ;;  %6674 = vmatprep.mubr.msk.bf16.mxu0 %vm380_vm0, %v7403_v5 }
 0x142   :  { %6165 = vmatmul.mubr.msk.bf16.gmra.mrb[88].mxu1 %vm380_vm0, %v7457_v25  ;;  %6675 = vmatmul.mubr.msk.bf16.vlgmr.msra.gmra.mrb[88].mxu0 %vm380_vm0, %v7419_v14 }
 0x143   :  { %1052 = vmatprep.mubr.bf16.mxu1 %v14577_v0  ;;  %6678 = vmatprep.mubr.msk.bf16.mxu0 %vm380_vm0, %v7435_v19 }
 0x14a   :  { %6166 = vmatmul.mubr.msk.bf16.gmra.mrb[92].mxu1 %vm380_vm0, %v7468_v26  ;;  %6679 = vmatmul.mubr.msk.bf16.gmra.mrb[92].mxu0 %vm380_vm0, %v7446_v24 }
 0x14b   :  { %1062 = vmatprep.mubr.bf16.mxu1 %v14577_v0  ;;  %6682 = vmatprep.mubr.msk.bf16.mxu0 %vm380_vm0, %v7457_v25 }
 0x152   :  { %6167 = vmatmul.mubr.msk.bf16.gmra.mrb[96].mxu1 %vm380_vm0, %v7408_v6  ;;  %6683 = vmatmul.mubr.msk.bf16.gmra.mrb[96].mxu0 %vm380_vm0, %v7468_v26 }
 0x153   :  { %1072 = vmatprep.mubr.bf16.mxu1 %v14577_v0  ;;  %6686 = vmatprep.mubr.msk.bf16.mxu0 %vm380_vm0, %v7408_v6 }
 0x15a   :  { %6168 = vmatmul.mubr.msk.bf16.gmra.mrb[100].mxu1 %vm380_vm0, %v7424_v15  ;;  %6687 = vmatmul.mubr.msk.bf16.gmra.mrb[100].mxu0 %vm380_vm0, %v7424_v15  ;;  %v7665_v15 = vshrl.u32 %v2031_v7, 7 }
 0x15c   :  { %15053 = vst [vmem:[#allocation36_spill] sm:$0xff] %v7665_v15 }
 0x165   :  { %v7598_v35 = vpop.f32.mrb[0].mxu0  ;;  %v7600_v36 = vpop.f32.mrb[0].mxu1 }
 0x166   :  { %v7602_v37 = vpop.f32.mrb[1].mxu0  ;;  %v7604_v38 = vpop.f32.mrb[1].mxu1  ;;  %v1457_v41 = vmul.f32 %v7598_v35, %v7598_v35 }
 0x167   :  { %15047 = vst [vmem:[#allocation30_spill] sm:$0xff] %v7604_v38  ;;  %v7606_v39 = vpop.f32.mrb[2].mxu0  ;;  %v7608_v40 = vpop.f32.mrb[2].mxu1  ;;  %v1458_v46 = vmul.f32 %v7602_v37, %v7602_v37 }
 0x168   :  { %v1184_v42 = vadd.f32 %v7606_v39, %v7598_v35  ;;  %v1470_v43 = vmul.f32 %v7606_v39, %v7606_v39  ;;  %v7616_v44 = vpop.f32.mrb[3].mxu0  ;;  %v7618_v45 = vpop.f32.mrb[3].mxu1 }
 0x169   :  { %15048 = vst [vmem:[#allocation31_spill] sm:$0xff] %v7618_v45  ;;  %v1205_v47 = vadd.f32 %v7616_v44, %v7602_v37  ;;  %v1471_v48 = vmul.f32 %v7616_v44, %v7616_v44 }
 0x16a   :  { %v1665_v49 = vadd.f32 %v1470_v43, %v1457_v41 }
 0x16b   :  { %v1686_v50 = vadd.f32 %v1471_v48, %v1458_v46 }
 0x16d   :  { %v7626_v51 = vpop.f32.mrb[4].mxu0  ;;  %v7628_v52 = vpop.f32.mrb[4].mxu1 }
 0x16e   :  { %v1185_v53 = vadd.f32 %v1184_v42, %v7626_v51  ;;  %v1483_v54 = vmul.f32 %v7626_v51, %v7626_v51  ;;  %v7633_v55 = vpop.f32.mrb[5].mxu0  ;;  %v7635_v56 = vpop.f32.mrb[5].mxu1 }
 0x16f   :  { %15049 = vst [vmem:[#allocation32_spill] sm:$0xff] %v7635_v56  ;;  %v1206_v57 = vadd.f32 %v1205_v47, %v7633_v55  ;;  %v1484_v58 = vmul.f32 %v7633_v55, %v7633_v55  ;;  %v7640_v59 = vpop.f32.mrb[6].mxu0  ;;  %v7642_v60 = vpop.f32.mrb[6].mxu1 }
 0x170   :  { %v1666_v61 = vadd.f32 %v1665_v49, %v1483_v54  ;;  %v1186_v62 = vadd.f32 %v1185_v53, %v7640_v59  ;;  %v1496_v63 = vmul.f32 %v7640_v59, %v7640_v59  ;;  %v7647_v1 = vpop.f32.mrb[7].mxu0  ;;  %v7649_v2 = vpop.f32.mrb[7].mxu1  ;;  %v7704_v53 = vsub.s32 1, %v7665_v15 }
 0x171   :  { %15050 = vst [vmem:[#allocation33_spill] sm:$0xff] %v7649_v2  ;;  %v1687_v3 = vadd.f32 %v1686_v50, %v1484_v58  ;;  %v1207_v4 = vadd.f32 %v1206_v57, %v7647_v1  ;;  %v1497_v5 = vmul.f32 %v7647_v1, %v7647_v1  ;;  %v7701_v50 = vsub.s32 0, %v7665_v15 }
 0x172   :  { %v1667_v6 = vadd.f32 %v1666_v61, %v1496_v63  ;;  %15058 = vst [vmem:[#allocation41_spill] sm:$0xff] %v7704_v53  ;;  %v2141_v54 = vunpack.c.0.s8 %v2140_v22 }
 0x173   :  { %v1688_v8 = vadd.f32 %v1687_v3, %v1497_v5  ;;  %15057 = vst [vmem:[#allocation40_spill] sm:$0xff] %v7701_v50 }
 0x175   :  { %v7654_v9 = vpop.f32.mrb[8].mxu0  ;;  %v7656_v10 = vpop.f32.mrb[8].mxu1 }
 0x176   :  { %15051 = vst [vmem:[#allocation34_spill] sm:$0xff] %v7656_v10  ;;  %v1187_v11 = vadd.f32 %v1186_v62, %v7654_v9  ;;  %v1509_v12 = vmul.f32 %v7654_v9, %v7654_v9  ;;  %v7661_v13 = vpop.f32.mrb[9].mxu0  ;;  %v7663_v14 = vpop.f32.mrb[9].mxu1  ;;  %v1459_v16 = vmul.f32 %v7656_v10, %v7656_v10 }
 0x177   :  { %15052 = vst [vmem:[#allocation35_spill] sm:$0xff] %v7663_v14  ;;  %v1208_v17 = vadd.f32 %v1207_v4, %v7661_v13  ;;  %v1510_v18 = vmul.f32 %v7661_v13, %v7661_v13  ;;  %v7672_v19 = vpop.f32.mrb[10].mxu0  ;;  %v7674_v20 = vpop.f32.mrb[10].mxu1  ;;  %v1460_v33 = vmul.f32 %v7663_v14, %v7663_v14 }
 0x178   :  { %15054 = vst [vmem:[#allocation37_spill] sm:$0xff] %v7674_v20  ;;  %v1668_v23 = vadd.f32 %v1667_v6, %v1509_v12  ;;  %v1188_v24 = vadd.f32 %v1187_v11, %v7672_v19  ;;  %v1522_v25 = vmul.f32 %v7672_v19, %v7672_v19  ;;  %v1226_v26 = vadd.f32 %v7674_v20, %v7656_v10  ;;  %v7681_v27 = vpop.f32.mrb[11].mxu0  ;;  %v7683_v28 = vpop.f32.mrb[11].mxu1 }
 0x179   :  { %15055 = vst [vmem:[#allocation38_spill] sm:$0xff] %v7683_v28  ;;  %v1689_v29 = vadd.f32 %v1688_v8, %v1510_v18  ;;  %v1472_v30 = vmul.f32 %v7674_v20, %v7674_v20  ;;  %v1209_v31 = vadd.f32 %v1208_v17, %v7681_v27  ;;  %v1523_v32 = vmul.f32 %v7681_v27, %v7681_v27 }
 0x17a   :  { %v1669_v34 = vadd.f32 %v1668_v23, %v1522_v25  ;;  %v1247_v41 = vadd.f32 %v7683_v28, %v7663_v14  ;;  %v1473_v42 = vmul.f32 %v7683_v28, %v7683_v28 }
 0x17b   :  { %v1707_v43 = vadd.f32 %v1472_v30, %v1459_v16  ;;  %v1690_v46 = vadd.f32 %v1689_v29, %v1523_v32  ;;  %v7736_v29 = vld [vmem:[#allocation9] sm:$0xff] }
 0x17c   :  { %v1728_v47 = vadd.f32 %v1473_v42, %v1460_v33 }
 0x17d   :  { %v7696_v48 = vpop.f32.mrb[12].mxu0  ;;  %v7698_v49 = vpop.f32.mrb[12].mxu1 }
 0x17e   :  { %15056 = vst [vmem:[#allocation39_spill] sm:$0xff] %v7698_v49  ;;  %v1189_v57 = vadd.f32 %v1188_v24, %v7696_v48  ;;  %v1535_v58 = vmul.f32 %v7696_v48, %v7696_v48  ;;  %v1227_v61 = vadd.f32 %v1226_v26, %v7698_v49  ;;  %v1485_v62 = vmul.f32 %v7698_v49, %v7698_v49  ;;  %v7712_v63 = vpop.f32.mrb[13].mxu0  ;;  %v7714_v3 = vpop.f32.mrb[13].mxu1 }
 0x17f   :  { %15059 = vst [vmem:[#allocation42_spill] sm:$0xff] %v7714_v3  ;;  %v1210_v4 = vadd.f32 %v1209_v31, %v7712_v63  ;;  %v1536_v5 = vmul.f32 %v7712_v63, %v7712_v63  ;;  %v1248_v6 = vadd.f32 %v1247_v41, %v7714_v3  ;;  %v1486_v7 = vmul.f32 %v7714_v3, %v7714_v3  ;;  %v7722_v8 = vpop.f32.mrb[14].mxu0  ;;  %v7724_v11 = vpop.f32.mrb[14].mxu1 }
 0x180   :  { %15060 = vst [vmem:[#allocation43_spill] sm:$0xff] %v7724_v11  ;;  %v1670_v12 = vadd.f32 %v1669_v34, %v1535_v58  ;;  %v1708_v16 = vadd.f32 %v1707_v43, %v1485_v62  ;;  %v1190_v17 = vadd.f32 %v1189_v57, %v7722_v8  ;;  %v1548_v18 = vmul.f32 %v7722_v8, %v7722_v8  ;;  %v7729_v21 = vpop.f32.mrb[15].mxu0  ;;  %v7731_v22 = vpop.f32.mrb[15].mxu1 }
 0x181   :  { %15061 = vst [vmem:[#allocation44_spill] sm:$0xff] %v7731_v22  ;;  %v1691_v23 = vadd.f32 %v1690_v46, %v1536_v5  ;;  %v1729_v24 = vadd.f32 %v1728_v47, %v1486_v7  ;;  %v1228_v25 = vadd.f32 %v1227_v61, %v7724_v11  ;;  %v1498_v26 = vmul.f32 %v7724_v11, %v7724_v11 }
 0x182   :  { %v1671_v30 = vadd.f32 %v1670_v12, %v1548_v18  ;;  %v1211_v31 = vadd.f32 %v1210_v4, %v7729_v21  ;;  %v1549_v32 = vmul.f32 %v7729_v21, %v7729_v21  ;;  %v1249_v33 = vadd.f32 %v1248_v6, %v7731_v22 }
 0x183   :  { %v1709_v34 = vadd.f32 %v1708_v16, %v1498_v26  ;;  %v1499_v41 = vmul.f32 %v7731_v22, %v7731_v22  ;;  %v7753_v61 = vsub.s32 2, %v7665_v15  ;;  %v7756_v62 = vsub.s32 3, %v7665_v15 }
 0x184   :  { %v1692_v42 = vadd.f32 %v1691_v23, %v1549_v32  ;;  %v7759_v4 = vsub.s32 %v2141_v54, %v7665_v15 }
 0x185   :  { %v1730_v47 = vadd.f32 %v1729_v24, %v1499_v41  ;;  %v7748_v57 = vpop.f32.mrb[16].mxu0  ;;  %v7750_v58 = vpop.f32.mrb[16].mxu1  ;;  %15063 = vst [vmem:[#allocation46_spill] sm:$0xff] %v7753_v61  ;;  %15064 = vst [vmem:[#allocation47_spill] sm:$0xff] %v7756_v62 }
 0x186   :  { %15062 = vst [vmem:[#allocation45_spill] sm:$0xff] %v7750_v58  ;;  %15065 = vst [vmem:[#allocation48_spill] sm:$0xff] %v7759_v4  ;;  %v1191_v5 = vadd.f32 %v1190_v17, %v7748_v57  ;;  %v1561_v6 = vmul.f32 %v7748_v57, %v7748_v57  ;;  %v1229_v7 = vadd.f32 %v1228_v25, %v7750_v58  ;;  %v7767_v16 = vpop.f32.mrb[17].mxu0  ;;  %v7769_v18 = vpop.f32.mrb[17].mxu1 }
 0x187   :  { %v1511_v12 = vmul.f32 %v7750_v58, %v7750_v58  ;;  %15066 = vst [vmem:[#allocation49_spill] sm:$0xff] %v7767_v16  ;;  %15067 = vst [vmem:[#allocation50_spill] sm:$0xff] %v7769_v18  ;;  %v1212_v23 = vadd.f32 %v1211_v31, %v7767_v16  ;;  %v1562_v54 = vmul.f32 %v7767_v16, %v7767_v16  ;;  %v7777_v26 = vpop.f32.mrb[18].mxu0  ;;  %v7779_v25 = vpop.f32.mrb[18].mxu1 }
 0x188   :  { %v1250_v24 = vadd.f32 %v1249_v33, %v7769_v18  ;;  %v1512_v17 = vmul.f32 %v7769_v18, %v7769_v18  ;;  %15068 = vst [vmem:[#allocation51_spill] sm:$0xff] %v7779_v25  ;;  %v1672_v32 = vadd.f32 %v1671_v30, %v1561_v6  ;;  %v1192_v0 = vadd.f32 %v1191_v5, %v7777_v26  ;;  %v7784_v31 = vpop.f32.mrb[19].mxu0  ;;  %v7786_v43 = vpop.f32.mrb[19].mxu1 }
 0x189   :  { %v1710_v41 = vadd.f32 %v1709_v34, %v1511_v12  ;;  %v1574_v46 = vmul.f32 %v7777_v26, %v7777_v26  ;;  %15069 = vst [vmem:[#allocation52_spill] sm:$0xff] %v7784_v31  ;;  %15070 = vst [vmem:[#allocation53_spill] sm:$0xff] %v7786_v43  ;;  %v1693_v22 = vadd.f32 %v1692_v42, %v1562_v54 }
 0x18a   :  { %v1731_v33 = vadd.f32 %v1730_v47, %v1512_v17  ;;  %v1230_v3 = vadd.f32 %v1229_v7, %v7779_v25  ;;  %v1524_v18 = vmul.f32 %v7779_v25, %v7779_v25  ;;  %v1213_v30 = vadd.f32 %v1212_v23, %v7784_v31 }
 0x18b   :  { %v1673_v28 = vadd.f32 %v1672_v32, %v1574_v46  ;;  %v1575_v34 = vmul.f32 %v7784_v31, %v7784_v31  ;;  %v1251_v5 = vadd.f32 %v1250_v24, %v7786_v43  ;;  %v1525_v12 = vmul.f32 %v7786_v43, %v7786_v43 }
 0x18c   :  { %v1711_v6 = vadd.f32 %v1710_v41, %v1524_v18  ;;  %v1613_v46 = vmul.f32 %v7600_v36, %v7600_v36  ;;  %v1614_v7 = vmul.f32 %v7604_v38, %v7604_v38  ;;  %v1626_v23 = vmul.f32 %v7608_v40, %v7608_v40 }
 0x18d   :  { %v1694_v54 = vadd.f32 %v1693_v22, %v1575_v34  ;;  %v1627_v18 = vmul.f32 %v7618_v45, %v7618_v45  ;;  %v1639_v24 = vmul.f32 %v7628_v52, %v7628_v52  ;;  %v1732_v17 = vadd.f32 %v1731_v33, %v1525_v12  ;;  %v7811_v32 = vpop.f32.mrb[20].mxu0  ;;  %v7813_v41 = vpop.f32.mrb[20].mxu1 }
 0x18e   :  { %15071 = vst [vmem:[#allocation54_spill] sm:$0xff] %v7813_v41  ;;  %v7816_v47 = vsub.s32 4, %v7665_v15  ;;  %v1193_v42 = vadd.f32 %v1192_v0, %v7811_v32  ;;  %v1587_v43 = vmul.f32 %v7811_v32, %v7811_v32  ;;  %v1231_v22 = vadd.f32 %v1230_v3, %v7813_v41  ;;  %v7824_v14 = vpop.f32.mrb[21].mxu0  ;;  %v7826_v33 = vpop.f32.mrb[21].mxu1 }
 0x18f   :  { %v1537_v34 = vmul.f32 %v7813_v41, %v7813_v41  ;;  %15073 = vst [vmem:[#allocation56_spill] sm:$0xff] %v7824_v14  ;;  %15074 = vst [vmem:[#allocation57_spill] sm:$0xff] %v7826_v33  ;;  %v1214_v12 = vadd.f32 %v1213_v30, %v7824_v14  ;;  %v1588_v15 = vmul.f32 %v7824_v14, %v7824_v14  ;;  %v7834_v58 = vpop.f32.mrb[22].mxu0  ;;  %v7836_v3 = vpop.f32.mrb[22].mxu1 }
 0x190   :  { %15072 = vst [vmem:[#allocation55_spill] sm:$0xff] %v7816_v47  ;;  %v1252_v25 = vadd.f32 %v1251_v5, %v7826_v33  ;;  %v1538_v0 = vmul.f32 %v7826_v33, %v7826_v33  ;;  %15075 = vst [vmem:[#allocation58_spill] sm:$0xff] %v7836_v3  ;;  %v1674_v11 = vadd.f32 %v1673_v28, %v1587_v43  ;;  %v7841_v30 = vpop.f32.mrb[23].mxu0  ;;  %v7843_v10 = vpop.f32.mrb[23].mxu1 }
 0x191   :  { %v1712_v41 = vadd.f32 %v1711_v6, %v1537_v34  ;;  %v1194_v49 = vadd.f32 %v1193_v42, %v7834_v58  ;;  %v1600_v20 = vmul.f32 %v7834_v58, %v7834_v58  ;;  %15076 = vst [vmem:[#allocation59_spill] sm:$0xff] %v7841_v30  ;;  %15077 = vst [vmem:[#allocation60_spill] sm:$0xff] %v7843_v10 }
 0x192   :  { %v1695_v62 = vadd.f32 %v1694_v54, %v1588_v15  ;;  %v1733_v5 = vadd.f32 %v1732_v17, %v1538_v0  ;;  %v1232_v61 = vadd.f32 %v1231_v22, %v7836_v3  ;;  %v1550_v33 = vmul.f32 %v7836_v3, %v7836_v3 }
 0x193   :  { %v1195_v4 = vadd.f32 %v1194_v49, %v7600_v36  ;;  %v1675_v28 = vadd.f32 %v1674_v11, %v1600_v20  ;;  %v1215_v43 = vadd.f32 %v1214_v12, %v7841_v30  ;;  %v1601_v6 = vmul.f32 %v7841_v30, %v7841_v30 }
 0x194   :  { %v1640_v42 = vmul.f32 %v7635_v56, %v7635_v56  ;;  %v1713_v34 = vadd.f32 %v1712_v41, %v1550_v33  ;;  %v1253_v15 = vadd.f32 %v1252_v25, %v7843_v10  ;;  %v1551_v54 = vmul.f32 %v7843_v10, %v7843_v10 }
 0x195   :  { %v1196_v17 = vadd.f32 %v1195_v4, %v7608_v40  ;;  %v1676_v22 = vadd.f32 %v1675_v28, %v1613_v46  ;;  %v1216_v49 = vadd.f32 %v1215_v43, %v7604_v38  ;;  %v1696_v20 = vadd.f32 %v1695_v62, %v1601_v6  ;;  %v7863_v3 = vpop.f32.mrb[24].mxu1  ;;  %v7865_v41 = vpop.f32.mrb[24].mxu0 }
 0x196   :  { %v1652_v11 = vmul.f32 %v7642_v60, %v7642_v60  ;;  %v1653_v12 = vmul.f32 %v7649_v2, %v7649_v2  ;;  %v1734_v0 = vadd.f32 %v1733_v5, %v1551_v54  ;;  %15078 = vst [vmem:[#allocation61_spill] sm:$0xff] %v7863_v3  ;;  %15079 = vst [vmem:[#allocation62_spill] sm:$0xff] %v7865_v41  ;;  %v7871_v28 = vpop.f32.mrb[25].mxu1  ;;  %v7873_v43 = vpop.f32.mrb[25].mxu0 }
 0x197   :  { %v1197_v4 = vadd.f32 %v1196_v17, %v7628_v52  ;;  %v1677_v46 = vadd.f32 %v1676_v22, %v1626_v23  ;;  %v1217_v33 = vadd.f32 %v1216_v49, %v7618_v45  ;;  %v1697_v62 = vadd.f32 %v1696_v20, %v1614_v7  ;;  %15080 = vst [vmem:[#allocation63_spill] sm:$0xff] %v7871_v28  ;;  %v7881_v47 = vpop.f32.mrb[26].mxu1  ;;  %v7883_v23 = vpop.f32.mrb[26].mxu0 }
 0x198   :  { %15081 = vst [vmem:[#allocation64_spill] sm:$0xff] %v7873_v43  ;;  %v1233_v6 = vadd.f32 %v1232_v61, %v7863_v3  ;;  %v1563_v5 = vmul.f32 %v7863_v3, %v7863_v3  ;;  %v1461_v54 = vmul.f32 %v7865_v41, %v7865_v41  ;;  %v1254_v25 = vadd.f32 %v1253_v15, %v7871_v28  ;;  %v7887_v20 = vpop.f32.mrb[27].mxu1  ;;  %v7889_v61 = vpop.f32.mrb[27].mxu0 }
 0x199   :  { %15082 = vst [vmem:[#allocation65_spill] sm:$0xff] %v7881_v47  ;;  %15083 = vst [vmem:[#allocation66_spill] sm:$0xff] %v7883_v23  ;;  %v1198_v7 = vadd.f32 %v1197_v4, %v7642_v60  ;;  %v1678_v17 = vadd.f32 %v1677_v46, %v1639_v24  ;;  %v1218_v22 = vadd.f32 %v1217_v33, %v7635_v56 }
 0x19a   :  { %v1698_v49 = vadd.f32 %v1697_v62, %v1627_v18  ;;  %15084 = vst [vmem:[#allocation67_spill] sm:$0xff] %v7887_v20  ;;  %15085 = vst [vmem:[#allocation68_spill] sm:$0xff] %v7889_v61  ;;  %v1714_v10 = vadd.f32 %v1713_v34, %v1563_v5  ;;  %v1564_v3 = vmul.f32 %v7871_v28, %v7871_v28 }
 0x19b   :  { %v1462_v15 = vmul.f32 %v7873_v43, %v7873_v43  ;;  %v1234_v45 = vadd.f32 %v1233_v6, %v7881_v47  ;;  %v1199_v38 = vrot.slane %v1198_v7, 4  ;;  %v1679_v30 = vadd.f32 %v1678_v17, %v1652_v11 }
 0x19c   :  { %v1219_v24 = vadd.f32 %v1218_v22, %v7649_v2  ;;  %v1699_v4 = vadd.f32 %v1698_v49, %v1640_v42  ;;  %v1735_v46 = vadd.f32 %v1734_v0, %v1564_v3  ;;  %v1576_v18 = vmul.f32 %v7881_v47, %v7881_v47 }
 0x19d   :  { %v1268_v34 = vadd.f32 %v7883_v23, %v7865_v41  ;;  %v1474_v33 = vmul.f32 %v7883_v23, %v7883_v23  ;;  %v1200_v62 = vadd.f32 %v1199_v38, %v1198_v7  ;;  %v1680_v5 = vrot.slane %v1679_v30, 4  ;;  %v7906_v42 = vpop.f32.mrb[28].mxu1  ;;  %v7908_v0 = vpop.f32.mrb[28].mxu0 }
 0x19e   :  { %v1220_v28 = vrot.slane %v1219_v24, 4  ;;  %v1700_v56 = vadd.f32 %v1699_v4, %v1653_v12  ;;  %v1715_v6 = vadd.f32 %v1714_v10, %v1576_v18  ;;  %v1255_v11 = vadd.f32 %v1254_v25, %v7887_v20  ;;  %15086 = vst [vmem:[#allocation69_spill] sm:$0xff] %v7906_v42  ;;  %15087 = vst [vmem:[#allocation70_spill] sm:$0xff] %v7908_v0  ;;  %v7910_v23 = vpop.f32.mrb[29].mxu1  ;;  %v7912_v38 = vpop.f32.mrb[29].mxu0 }
 0x19f   :  { %v1749_v14 = vadd.f32 %v1474_v33, %v1461_v54  ;;  %v1577_v3 = vmul.f32 %v7887_v20, %v7887_v20  ;;  %v1201_v17 = vrot.slane %v1200_v62, 2  ;;  %v1681_v22 = vadd.f32 %v1680_v5, %v1679_v30  ;;  %15088 = vst [vmem:[#allocation71_spill] sm:$0xff] %v7910_v23  ;;  %15089 = vst [vmem:[#allocation72_spill] sm:$0xff] %v7912_v38  ;;  %v7919_v7 = vpop.f32.mrb[30].mxu1  ;;  %v7921_v4 = vpop.f32.mrb[30].mxu0 }
 0x1a0   :  { %v1221_v49 = vadd.f32 %v1220_v28, %v1219_v24  ;;  %v1701_v41 = vrot.slane %v1700_v56, 4  ;;  %v1289_v10 = vadd.f32 %v7889_v61, %v7873_v43  ;;  %v1475_v25 = vmul.f32 %v7889_v61, %v7889_v61  ;;  %15090 = vst [vmem:[#allocation73_spill] sm:$0xff] %v7921_v4  ;;  %v7923_v33 = vpop.f32.mrb[31].mxu1  ;;  %v7925_v5 = vpop.f32.mrb[31].mxu0 }
 0x1a1   :  { %v1736_v12 = vadd.f32 %v1735_v46, %v1577_v3  ;;  %v1235_v54 = vadd.f32 %v1234_v45, %v7906_v42  ;;  %v1202_v30 = vadd.f32 %v1201_v17, %v1200_v62  ;;  %v1682_v28 = vrot.slane %v1681_v22, 2  ;;  %15091 = vst [vmem:[#allocation74_spill] sm:$0xff] %v7923_v33  ;;  %15092 = vst [vmem:[#allocation75_spill] sm:$0xff] %v7925_v5 }
 0x1a2   :  { %v1222_v24 = vrot.slane %v1221_v49, 2  ;;  %v1702_v18 = vadd.f32 %v1701_v41, %v1700_v56  ;;  %v1770_v46 = vadd.f32 %v1475_v25, %v1462_v15  ;;  %v1589_v3 = vmul.f32 %v7906_v42, %v7906_v42 }
 0x1a3   :  { %v1269_v61 = vadd.f32 %v1268_v34, %v7908_v0  ;;  %v1487_v45 = vmul.f32 %v7908_v0, %v7908_v0  ;;  %v1203_v43 = vrot.slane %v1202_v30, 1  ;;  %v1683_v20 = vadd.f32 %v1682_v28, %v1681_v22 }
 0x1a4   :  { %v1223_v47 = vadd.f32 %v1222_v24, %v1221_v49  ;;  %v1703_v62 = vrot.slane %v1702_v18, 2  ;;  %v1716_v17 = vadd.f32 %v1715_v6, %v1589_v3  ;;  %v1256_v56 = vadd.f32 %v1255_v11, %v7910_v23 }
 0x1a5   :  { %v1750_v2 = vadd.f32 %v1749_v14, %v1487_v45  ;;  %v1590_v41 = vmul.f32 %v7910_v23, %v7910_v23  ;;  %v1204_v15 = vadd.f32 %v1203_v43, %v1202_v30  ;;  %v1684_v25 = vrot.slane %v1683_v20, 1  ;;  %v7939_v49 = vpop.f32.mrb[32].mxu1  ;;  %v7941_v14 = vpop.f32.mrb[32].mxu0 }
 0x1a6   :  { %v1224_v31 = vrot.slane %v1223_v47, 1  ;;  %v1704_v42 = vadd.f32 %v1703_v62, %v1702_v18  ;;  %v1290_v34 = vadd.f32 %v1289_v10, %v7912_v38  ;;  %v1488_v0 = vmul.f32 %v7912_v38, %v7912_v38  ;;  %15093 = vst [vmem:[#allocation76_spill] sm:$0xff] %v7941_v14  ;;  %v7945_v30 = vpop.f32.mrb[33].mxu1  ;;  %v7947_v24 = vpop.f32.mrb[33].mxu0 }
 0x1a7   :  { %v1737_v16 = vadd.f32 %v1736_v12, %v1590_v41  ;;  %v1236_v22 = vadd.f32 %v1235_v54, %v7919_v7  ;;  %v1685_v6 = vadd.f32 %v1684_v25, %v1683_v20  ;;  %v7943_v11 = vmul.f32 0.0078125, %v1204_v15  ;;  %15094 = vst [vmem:[#allocation77_spill] sm:$0xff] %v7945_v30  ;;  %15095 = vst [vmem:[#allocation78_spill] sm:$0xff] %v7947_v24  ;;  %v7954_v3 = vpop.f32.mrb[34].mxu1  ;;  %v7956_v20 = vpop.f32.mrb[34].mxu0 }
 0x1a8   :  { %v1225_v28 = vadd.f32 %v1224_v31, %v1223_v47  ;;  %v1705_v43 = vrot.slane %v1704_v42, 1  ;;  %v1771_v12 = vadd.f32 %v1770_v46, %v1488_v0  ;;  %v1602_v10 = vmul.f32 %v7919_v7, %v7919_v7  ;;  %15096 = vst [vmem:[#allocation79_spill] sm:$0xff] %v7954_v3  ;;  %15097 = vst [vmem:[#allocation80_spill] sm:$0xff] %v7956_v20  ;;  %v7962_v0 = vpop.f32.mrb[35].mxu1  ;;  %v7964_v46 = vpop.f32.mrb[35].mxu0 }
 0x1a9   :  { %v1270_v18 = vadd.f32 %v1269_v61, %v7921_v4  ;;  %v1500_v54 = vmul.f32 %v7921_v4, %v7921_v4  ;;  %v1951_v45 = vmul.f32 0.0078125, %v1685_v6  ;;  %v1964_v31 = vmul.f32 %v7943_v11, %v7943_v11  ;;  %15098 = vst [vmem:[#allocation81_spill] sm:$0xff] %v7962_v0  ;;  %15099 = vst [vmem:[#allocation82_spill] sm:$0xff] %v7964_v46 }
 0x1aa   :  { %v1706_v47 = vadd.f32 %v1705_v43, %v1704_v42  ;;  %v7960_v62 = vmul.f32 0.0078125, %v1225_v28  ;;  %v1717_v41 = vadd.f32 %v1716_v17, %v1602_v10  ;;  %v1257_v15 = vadd.f32 %v1256_v56, %v7923_v33 }
 0x1ab   :  { %v1751_v61 = vadd.f32 %v1750_v2, %v1500_v54  ;;  %v1603_v25 = vmul.f32 %v7923_v33, %v7923_v33  ;;  %v1977_v38 = vsub.f32 %v1951_v45, %v1964_v31  ;;  %v1291_v42 = vadd.f32 %v1290_v34, %v7925_v5 }
 0x1ac   :  { %v1952_v4 = vmul.f32 0.0078125, %v1706_v47  ;;  %v1965_v6 = vmul.f32 %v7960_v62, %v7960_v62  ;;  %v1501_v43 = vmul.f32 %v7925_v5, %v7925_v5  ;;  %v1237_v23 = vadd.f32 %v1236_v22, %v7939_v49 }
 0x1ad   :  { %v1738_v28 = vadd.f32 %v1737_v16, %v1603_v25  ;;  %v1615_v2 = vmul.f32 %v7939_v49, %v7939_v49  ;;  %v1990_v17 = vmax.f32 %v1977_v38, 0.0  ;;  %v1271_v10 = vadd.f32 %v1270_v18, %v7941_v14  ;;  %v7983_v47 = vpop.f32.mrb[36].mxu1  ;;  %v7985_v22 = vpop.f32.mrb[36].mxu0 }
 0x1ae   :  { %v1978_v56 = vsub.f32 %v1952_v4, %v1965_v6  ;;  %v1513_v54 = vmul.f32 %v7941_v14, %v7941_v14  ;;  %v1772_v45 = vadd.f32 %v1771_v12, %v1501_v43  ;;  %v1258_v34 = vadd.f32 %v1257_v15, %v7945_v30  ;;  %15100 = vst [vmem:[#allocation83_spill] sm:$0xff] %v7983_v47  ;;  %v7988_v18 = vpop.f32.mrb[37].mxu1  ;;  %v7990_v6 = vpop.f32.mrb[37].mxu0 }
 0x1af   :  { %v1718_v31 = vadd.f32 %v1717_v41, %v1615_v2  ;;  %v1616_v16 = vmul.f32 %v7945_v30, %v7945_v30  ;;  %15101 = vst [vmem:[#allocation84_spill] sm:$0xff] %v7985_v22  ;;  %v2003_v25 = vadd.f32 1e-05, %v1990_v17  ;;  %v1292_v4 = vadd.f32 %v1291_v42, %v7947_v24  ;;  %15102 = vst [vmem:[#allocation85_spill] sm:$0xff] %v7988_v18  ;;  %v7997_v2 = vpop.f32.mrb[38].mxu1  ;;  %v7999_v17 = vpop.f32.mrb[38].mxu0 }
 0x1b0   :  { %v1991_v5 = vmax.f32 %v1978_v56, 0.0  ;;  %v1752_v38 = vadd.f32 %v1751_v61, %v1513_v54  ;;  %15103 = vst [vmem:[#allocation86_spill] sm:$0xff] %v7990_v6  ;;  %v1514_v41 = vmul.f32 %v7947_v24, %v7947_v24  ;;  %v1238_v15 = vadd.f32 %v1237_v23, %v7954_v3  ;;  %15104 = vst [vmem:[#allocation87_spill] sm:$0xff] %v7997_v2  ;;  %v8006_v54 = vpop.f32.mrb[39].mxu0 }
 0x1b1   :  { %v1739_v12 = vadd.f32 %v1738_v28, %v1616_v16  ;;  %v1628_v43 = vmul.f32 %v7954_v3, %v7954_v3  ;;  %15105 = vst [vmem:[#allocation88_spill] sm:$0xff] %v7999_v17  ;;  %7018 = vrsqrt.f32 %v2003_v25  ;;  %v1272_v42 = vadd.f32 %v1271_v10, %v7956_v20  ;;  %v8004_v28 = vpop.f32.mrb[39].mxu1  ;;  %15107 = vst [vmem:[#allocation90_spill] sm:$0xff] %v8006_v54 }
 0x1b2   :  { %v2004_v61 = vadd.f32 1e-05, %v1991_v5  ;;  %v1526_v56 = vmul.f32 %v7956_v20, %v7956_v20  ;;  %15106 = vst [vmem:[#allocation89_spill] sm:$0xff] %v8004_v28  ;;  %v1773_v16 = vadd.f32 %v1772_v45, %v1514_v41  ;;  %v1259_v24 = vadd.f32 %v1258_v34, %v7962_v0 }
 0x1b3   :  { %v1719_v23 = vadd.f32 %v1718_v31, %v1628_v43  ;;  %v1629_v14 = vmul.f32 %v7962_v0, %v7962_v0  ;;  %v1293_v5 = vadd.f32 %v1292_v4, %v7964_v46  ;;  %v1527_v10 = vmul.f32 %v7964_v46, %v7964_v46 }
 0x1b4   :  { %7020 = vrsqrt.f32 %v2004_v61  ;;  %v1753_v30 = vadd.f32 %v1752_v38, %v1526_v56  ;;  %v1239_v20 = vadd.f32 %v1238_v15, %v7983_v47  ;;  %v1641_v33 = vmul.f32 %v7983_v47, %v7983_v47 }
 0x1b5   :  { %v1740_v25 = vadd.f32 %v1739_v12, %v1629_v14  ;;  %v1273_v45 = vadd.f32 %v1272_v42, %v7985_v22  ;;  %v1774_v31 = vadd.f32 %v1773_v16, %v1527_v10  ;;  %v1539_v34 = vmul.f32 %v7985_v22, %v7985_v22  ;;  %v8027_v15 = vpop.f32.mrb[40].mxu0  ;;  %v8029_v61 = vpop.f32.mrb[40].mxu1 }
 0x1b6   :  { %v1260_v41 = vadd.f32 %v1259_v24, %v7988_v18  ;;  %v1642_v38 = vmul.f32 %v7988_v18, %v7988_v18  ;;  %v1720_v4 = vadd.f32 %v1719_v23, %v1641_v33  ;;  %v1294_v43 = vadd.f32 %v1293_v5, %v7990_v6  ;;  %15108 = vst [vmem:[#allocation91_spill] sm:$0xff] %v8029_v61  ;;  %v8034_v10 = vpop.f32.mrb[41].mxu0  ;;  %v8036_v33 = vpop.f32.mrb[41].mxu1 }
 0x1b7   :  { %v1540_v14 = vmul.f32 %v7990_v6, %v7990_v6  ;;  %v1240_v12 = vadd.f32 %v1239_v20, %v7997_v2  ;;  %v1754_v42 = vadd.f32 %v1753_v30, %v1539_v34  ;;  %v1654_v24 = vmul.f32 %v7997_v2, %v7997_v2  ;;  %15109 = vst [vmem:[#allocation92_spill] sm:$0xff] %v8034_v10  ;;  %v8041_v46 = vpop.f32.mrb[42].mxu0  ;;  %v8043_v30 = vpop.f32.mrb[42].mxu1 }
 0x1b8   :  { %v1741_v56 = vadd.f32 %v1740_v25, %v1642_v38  ;;  %v1274_v16 = vadd.f32 %v1273_v45, %v7999_v17  ;;  %15110 = vst [vmem:[#allocation93_spill] sm:$0xff] %v8036_v33  ;;  %v1552_v20 = vmul.f32 %v7999_v17, %v7999_v17  ;;  %v1261_v6 = vadd.f32 %v1260_v41, %v8004_v28 }
 0x1b9   :  { %v1775_v23 = vadd.f32 %v1774_v31, %v1540_v14  ;;  %v1241_v5 = vrot.slane %v1240_v12, 4  ;;  %15111 = vst [vmem:[#allocation94_spill] sm:$0xff] %v8043_v30  ;;  %v1721_v25 = vadd.f32 %v1720_v4, %v1654_v24  ;;  %v1655_v34 = vmul.f32 %v8004_v28, %v8004_v28  ;;  %v8050_v31 = vpop.f32.mrb[43].mxu0  ;;  %v8052_v14 = vpop.f32.mrb[43].mxu1 }
 0x1ba   :  { %v1295_v45 = vadd.f32 %v1294_v43, %v8006_v54  ;;  %v1553_v38 = vmul.f32 %v8006_v54, %v8006_v54  ;;  %15112 = vst [vmem:[#allocation95_spill] sm:$0xff] %v8050_v31  ;;  %15113 = vst [vmem:[#allocation96_spill] sm:$0xff] %v8052_v14  ;;  %v1755_v22 = vadd.f32 %v1754_v42, %v1552_v20  ;;  %v1262_v41 = vrot.slane %v1261_v6, 4 }
 0x1bb   :  { %v1242_v17 = vadd.f32 %v1241_v5, %v1240_v12  ;;  %v8055_v18 = vadd.f32 %v1274_v16, %v8027_v15  ;;  %v7019_v0 = vpop.eup %7018  ;;  %v1722_v4 = vrot.slane %v1721_v25, 4  ;;  %v1742_v24 = vadd.f32 %v1741_v56, %v1655_v34 }
 0x1bc   :  { %v1776_v2 = vadd.f32 %v1775_v23, %v1553_v38  ;;  %v1565_v43 = vmul.f32 %v8027_v15, %v8027_v15  ;;  %v15114_v54 = vrot.slane %v7736_v29, %v7701_v50  ;;  %v1263_v3 = vadd.f32 %v1262_v41, %v1261_v6 }
 0x1bd   :  { %v1243_v47 = vrot.slane %v1242_v17, 2  ;;  %v8064_v12 = vmul.f32 %v8029_v61, %v8029_v61  ;;  %v1723_v16 = vadd.f32 %v1722_v4, %v1721_v25  ;;  %v1743_v5 = vrot.slane %v1742_v24, 4  ;;  %v8078_v38 = vpop.f32.mrb[44].mxu0  ;;  %v8080_v41 = vpop.f32.mrb[44].mxu1 }
 0x1be   :  { %v2096_v28 = vmul.f32 %v7019_v0, %v15114_v54  ;;  %v7021_v42 = vpop.eup %7020  ;;  %v8066_v20 = vadd.f32 %v1755_v22, %v1565_v43  ;;  %v8069_v56 = vadd.f32 %v1295_v45, %v8034_v10  ;;  %v15115_v0 = vrot.slane %v7736_v29, %v7704_v53  ;;  %15116 = vst [vmem:[#allocation97_spill] sm:$0xff] %v8080_v41  ;;  %v8084_v43 = vpop.f32.mrb[45].mxu0 }
 0x1bf   :  { %v1244_v54 = vadd.f32 %v1243_v47, %v1242_v17  ;;  %v1724_v25 = vrot.slane %v1723_v16, 2  ;;  %v1264_v22 = vrot.slane %v1263_v3, 2  ;;  %v1744_v4 = vadd.f32 %v1743_v5, %v1742_v24  ;;  %15117 = vst [vmem:[#allocation98_spill] sm:$0xff] %v8084_v43  ;;  %v8100_v24 = vpop.f32.mrb[46].mxu0 }
 0x1c0   :  { %v8072_v23 = vmul.f32 %v2096_v28, %v7943_v11  ;;  %v2230_v34 = vrot.slane %v2096_v28, %v7701_v50  ;;  %v2097_v6 = vmul.f32 %v7021_v42, %v15115_v0  ;;  %v1566_v45 = vmul.f32 %v8034_v10, %v8034_v10  ;;  %v8086_v11 = vpop.f32.mrb[45].mxu1  ;;  %v15235_v10 = vld [vmem:[#allocation50_spill] sm:$0xff] }
 0x1c1   :  { %15118 = vst [vmem:[#allocation99_spill] sm:$0xff] %v8086_v11  ;;  %v8102_v5 = vpop.f32.mrb[46].mxu1 }
 0x1c2   :  { %v8089_v28 = vmul.f32 %v2230_v34, %v7598_v35  ;;  %v8092_v42 = vmul.f32 %v2230_v34, %v7606_v39  ;;  %v8095_v47 = vmul.f32 %v2230_v34, %v7626_v51  ;;  %v8098_v17 = vmul.f32 %v2230_v34, %v7640_v59  ;;  %15123 = vst [vmem:[#allocation104_spill] sm:$0xff] %v8102_v5  ;;  %v8116_v51 = vpop.f32.mrb[47].mxu0  ;;  %v8118_v59 = vpop.f32.mrb[47].mxu1 }
 0x1c3   :  { %v8105_v0 = vmul.f32 %v2230_v34, %v7654_v9  ;;  %v8108_v53 = vmul.f32 %v2230_v34, %v7672_v19  ;;  %v8111_v35 = vmul.f32 %v2230_v34, %v7696_v48  ;;  %v8114_v39 = vmul.f32 %v2230_v34, %v7722_v8  ;;  %15128 = vst [vmem:[#allocation109_spill] sm:$0xff] %v8116_v51 }
 0x1c4   :  { %15119 = vst [vmem:[#allocation100_spill] sm:$0xff] %v8089_v28  ;;  %15120 = vst [vmem:[#allocation101_spill] sm:$0xff] %v8092_v42  ;;  %v8127_v9 = vmul.f32 %v2230_v34, %v7811_v32  ;;  %v8130_v19 = vmul.f32 %v2230_v34, %v7834_v58  ;;  %v8133_v48 = vmul.f32 %v2230_v34, %v7600_v36 }
 0x1c5   :  { %15121 = vst [vmem:[#allocation102_spill] sm:$0xff] %v8095_v47  ;;  %15122 = vst [vmem:[#allocation103_spill] sm:$0xff] %v8098_v17  ;;  %v8121_v17 = vmul.f32 %v2230_v34, %v7748_v57  ;;  %v8124_v47 = vmul.f32 %v2230_v34, %v7777_v26  ;;  %v8136_v8 = vmul.f32 %v2230_v34, %v7608_v40 }
 0x1c6   :  { %15124 = vst [vmem:[#allocation105_spill] sm:$0xff] %v8105_v0  ;;  %15125 = vst [vmem:[#allocation106_spill] sm:$0xff] %v8108_v53  ;;  %v8142_v57 = vmul.f32 %v2230_v34, %v7642_v60  ;;  %v2110_v26 = vmul.f32 %v2097_v6, %v7960_v62  ;;  %v2234_v32 = vrot.slane %v2097_v6, %v7701_v50  ;;  %v15149_v6 = vld [vmem:[#allocation49_spill] sm:$0xff] }
 0x1c7   :  { %15126 = vst [vmem:[#allocation107_spill] sm:$0xff] %v8111_v35  ;;  %15127 = vst [vmem:[#allocation108_spill] sm:$0xff] %v8114_v39  ;;  %v8139_v39 = vmul.f32 %v2230_v34, %v7628_v52  ;;  %v1265_v58 = vadd.f32 %v1264_v22, %v1263_v3  ;;  %v1464_v36 = vmul.f32 %v8036_v33, %v8036_v33  ;;  %v8160_v34 = vpop.f32.mrb[48].mxu0  ;;  %v8162_v3 = vpop.f32.mrb[48].mxu1  ;;  %v15151_v22 = vld [vmem:[#allocation52_spill] sm:$0xff] }
 0x1c8   :  { %15129 = vst [vmem:[#allocation110_spill] sm:$0xff] %v8118_v59  ;;  %15130 = vst [vmem:[#allocation111_spill] sm:$0xff] %v8121_v17  ;;  %v1777_v17 = vadd.f32 %v1776_v2, %v1566_v45  ;;  %v8149_v40 = vmul.f32 %v2234_v32, %v7602_v37  ;;  %v8152_v52 = vmul.f32 %v2234_v32, %v7616_v44 }
 0x1c9   :  { %15131 = vst [vmem:[#allocation112_spill] sm:$0xff] %v8124_v47  ;;  %15132 = vst [vmem:[#allocation113_spill] sm:$0xff] %v8127_v9  ;;  %v1245_v9 = vrot.slane %v1244_v54, 1  ;;  %v1725_v47 = vadd.f32 %v1724_v25, %v1723_v16  ;;  %v8155_v60 = vmul.f32 %v2234_v32, %v7633_v55  ;;  %v8158_v62 = vmul.f32 %v2234_v32, %v7647_v1  ;;  %v8176_v55 = vpop.f32.mrb[49].mxu0  ;;  %v8178_v1 = vpop.f32.mrb[49].mxu1 }
 0x1ca   :  { %15133 = vst [vmem:[#allocation114_spill] sm:$0xff] %v8130_v19  ;;  %15134 = vst [vmem:[#allocation115_spill] sm:$0xff] %v8133_v48  ;;  %v1745_v19 = vrot.slane %v1744_v4, 2  ;;  %v8165_v2 = vmul.f32 %v2234_v32, %v7661_v13  ;;  %v8168_v16 = vmul.f32 %v2234_v32, %v7681_v27  ;;  %v8171_v37 = vmul.f32 %v2234_v32, %v7712_v63  ;;  %v15153_v13 = vld [vmem:[#allocation56_spill] sm:$0xff]  ;;  %v15155_v27 = vld [vmem:[#allocation59_spill] sm:$0xff]  ;;  %v8192_v63 = vpop.f32.mrb[50].mxu0 }
 0x1cb   :  { %15135 = vst [vmem:[#allocation116_spill] sm:$0xff] %v8136_v8  ;;  %15136 = vst [vmem:[#allocation117_spill] sm:$0xff] %v8139_v39  ;;  %v8174_v44 = vmul.f32 %v2234_v32, %v7729_v21  ;;  %v8181_v25 = vmul.f32 %v2234_v32, %v15149_v6  ;;  %v8184_v45 = vmul.f32 %v2234_v32, %v15151_v22  ;;  %v8194_v21 = vpop.f32.mrb[50].mxu1  ;;  %v15159_v8 = vld [vmem:[#allocation30_spill] sm:$0xff]  ;;  %v15163_v6 = vld [vmem:[#allocation32_spill] sm:$0xff]  ;;  %v1266_v35 = vrot.slane %v1265_v58, 1 }
 0x1cc   :  { %15137 = vst [vmem:[#allocation118_spill] sm:$0xff] %v8142_v57  ;;  %15138 = vst [vmem:[#allocation119_spill] sm:$0xff] %v8149_v40  ;;  %v8187_v57 = vmul.f32 %v2234_v32, %v15153_v13  ;;  %v8190_v39 = vmul.f32 %v2234_v32, %v15155_v27  ;;  %v8197_v48 = vmul.f32 %v2234_v32, %v15159_v8  ;;  %v15165_v22 = vld [vmem:[#allocation33_spill] sm:$0xff]  ;;  %v8208_v13 = vpop.f32.mrb[51].mxu0  ;;  %v8210_v27 = vpop.f32.mrb[51].mxu1 }
 0x1cd   :  { %15139 = vst [vmem:[#allocation120_spill] sm:$0xff] %v8152_v52  ;;  %15140 = vst [vmem:[#allocation121_spill] sm:$0xff] %v8155_v60  ;;  %v2135_v8 = vcombine.low %v8072_v23, %v2110_v26  ;;  %v1476_v23 = vmul.f32 %v8043_v30, %v8043_v30  ;;  %v1591_v0 = vmul.f32 %v8078_v38, %v8078_v38 }
 0x1ce   :  { %15141 = vst [vmem:[#allocation122_spill] sm:$0xff] %v8158_v62  ;;  %15142 = vst [vmem:[#allocation123_spill] sm:$0xff] %v8162_v3  ;;  %v1604_v28 = vmul.f32 %v8100_v24, %v8100_v24 }
 0x1cf   :  { %15143 = vst [vmem:[#allocation124_spill] sm:$0xff] %v8165_v2  ;;  %15144 = vst [vmem:[#allocation125_spill] sm:$0xff] %v8168_v16  ;;  %v1746_v16 = vadd.f32 %v1745_v19, %v1744_v4 }
 0x1d0   :  { %15145 = vst [vmem:[#allocation126_spill] sm:$0xff] %v8171_v37  ;;  %15146 = vst [vmem:[#allocation127_spill] sm:$0xff] %v8174_v44  ;;  %v15161_v44 = vld [vmem:[#allocation31_spill] sm:$0xff] }
 0x1d1   :  { %15147 = vst [vmem:[#allocation128_spill] sm:$0xff] %v8176_v55  ;;  %15148 = vst [vmem:[#allocation129_spill] sm:$0xff] %v8178_v1  ;;  %v8200_v37 = vmul.f32 %v2234_v32, %v15161_v44  ;;  %v1276_v44 = vadd.f32 %v8055_v18, %v8041_v46  ;;  %v1297_v18 = vadd.f32 %v8069_v56, %v8050_v31 }
 0x1d2   :  { %15150 = vst [vmem:[#allocation49_spill] sm:$0xff] %v8181_v25  ;;  %15152 = vst [vmem:[#allocation52_spill] sm:$0xff] %v8184_v45  ;;  %v8203_v25 = vmul.f32 %v2234_v32, %v15163_v6  ;;  %v8206_v45 = vmul.f32 %v2234_v32, %v15165_v22  ;;  %v1578_v6 = vmul.f32 %v8041_v46, %v8041_v46 }
 0x1d3   :  { %15154 = vst [vmem:[#allocation56_spill] sm:$0xff] %v8187_v57  ;;  %15156 = vst [vmem:[#allocation59_spill] sm:$0xff] %v8190_v39  ;;  %v1246_v39 = vadd.f32 %v1245_v9, %v1244_v54  ;;  %v1726_v57 = vrot.slane %v1725_v47, 1  ;;  %v1310_v32 = vadd.f32 %v8043_v30, %v8029_v61  ;;  %v15169_v54 = vld [vmem:[#allocation48_spill] sm:$0xff]  ;;  %v1477_v56 = vmul.f32 %v8052_v14, %v8052_v14 }
 0x1d4   :  { %15157 = vst [vmem:[#allocation130_spill] sm:$0xff] %v8192_v63  ;;  %15158 = vst [vmem:[#allocation131_spill] sm:$0xff] %v8194_v21  ;;  %v8222_v9 = vrot.slane %v2135_v8, %v15169_v54  ;;  %v1757_v4 = vadd.f32 %v8066_v20, %v1578_v6  ;;  %v1579_v20 = vmul.f32 %v8050_v31, %v8050_v31 }
 0x1d5   :  { %15160 = vst [vmem:[#allocation30_spill] sm:$0xff] %v8197_v48  ;;  %15162 = vst [vmem:[#allocation31_spill] sm:$0xff] %v8200_v37  ;;  %v1727_v22 = vadd.f32 %v1726_v57, %v1725_v47  ;;  %v1747_v37 = vrot.slane %v1746_v16, 1  ;;  %v8235_v57 = vpop.f32.mrb[52].mxu1  ;;  %v1331_v8 = vadd.f32 %v8052_v14, %v8036_v33  ;;  %v1812_v2 = vadd.f32 %v1477_v56, %v1464_v36 }
 0x1d6   :  { %15164 = vst [vmem:[#allocation32_spill] sm:$0xff] %v8203_v25  ;;  %15166 = vst [vmem:[#allocation33_spill] sm:$0xff] %v8206_v45  ;;  %v8219_v45 = vmul.f32 0.0078125, %v1246_v39  ;;  %v1267_v25 = vadd.f32 %v1266_v35, %v1265_v58  ;;  %v8233_v35 = vpop.f32.mrb[52].mxu0  ;;  %v1791_v58 = vadd.f32 %v1476_v23, %v8064_v12  ;;  %v1277_v12 = vadd.f32 %v1276_v44, %v8078_v38 }
 0x1d7   :  { %15167 = vst [vmem:[#allocation132_spill] sm:$0xff] %v8208_v13  ;;  %15168 = vst [vmem:[#allocation133_spill] sm:$0xff] %v8210_v27  ;;  %v1953_v19 = vmul.f32 0.0078125, %v1727_v22  ;;  %v1748_v47 = vadd.f32 %v1747_v37, %v1746_v16  ;;  %v8244_v6 = vpop.f32.mrb[53].mxu0  ;;  %v8246_v16 = vpop.f32.mrb[53].mxu1  ;;  %v1778_v53 = vadd.f32 %v1777_v17, %v1579_v20  ;;  %v1311_v62 = vadd.f32 %v1310_v32, %v8080_v41 }
 0x1d8   :  { %15170 = vst [vmem:[#allocation134_spill] sm:$0xff] %v8222_v9  ;;  %v1966_v26 = vmul.f32 %v8219_v45, %v8219_v45  ;;  %v8231_v39 = vmul.f32 0.0078125, %v1267_v25  ;;  %15171 = vst [vmem:[#allocation135_spill] sm:$0xff] %v8233_v35  ;;  %v8251_v23 = vpop.f32.mrb[54].mxu0  ;;  %v8253_v48 = vpop.f32.mrb[54].mxu1  ;;  %v1489_v44 = vmul.f32 %v8080_v41, %v8080_v41  ;;  %v1298_v52 = vadd.f32 %v1297_v18, %v8084_v43 }
 0x1d9   :  { %15172 = vst [vmem:[#allocation136_spill] sm:$0xff] %v8235_v57  ;;  %15173 = vst [vmem:[#allocation137_spill] sm:$0xff] %v8244_v6  ;;  %v1954_v25 = vmul.f32 0.0078125, %v1748_v47  ;;  %v8258_v60 = vpop.f32.mrb[55].mxu0  ;;  %v1758_v42 = vadd.f32 %v1757_v4, %v1591_v0  ;;  %v1592_v17 = vmul.f32 %v8084_v43, %v8084_v43  ;;  %v1332_v36 = vadd.f32 %v1331_v8, %v8086_v11  ;;  %v15199_v43 = vld [vmem:[#allocation43_spill] sm:$0xff] }
 0x1da   :  { %15174 = vst [vmem:[#allocation138_spill] sm:$0xff] %v8246_v16  ;;  %v1979_v37 = vsub.f32 %v1953_v19, %v1966_v26  ;;  %v1967_v22 = vmul.f32 %v8231_v39, %v8231_v39  ;;  %15175 = vst [vmem:[#allocation139_spill] sm:$0xff] %v8251_v23  ;;  %v8260_v19 = vpop.f32.mrb[55].mxu1  ;;  %v1490_v32 = vmul.f32 %v8086_v11, %v8086_v11 }
 0x1db   :  { %15176 = vst [vmem:[#allocation140_spill] sm:$0xff] %v8253_v48  ;;  %15177 = vst [vmem:[#allocation141_spill] sm:$0xff] %v8258_v60  ;;  %v1792_v40 = vadd.f32 %v1791_v58, %v1489_v44  ;;  %v1312_v0 = vadd.f32 %v1311_v62, %v8102_v5  ;;  %v1502_v18 = vmul.f32 %v8102_v5, %v8102_v5  ;;  %v8277_v11 = vpop.f32.mrb[56].mxu1 }
 0x1dc   :  { %15178 = vst [vmem:[#allocation142_spill] sm:$0xff] %v8260_v19  ;;  %v1992_v26 = vmax.f32 %v1979_v37, 0.0  ;;  %v1980_v47 = vsub.f32 %v1954_v25, %v1967_v22  ;;  %v1278_v37 = vadd.f32 %v1277_v12, %v8100_v24  ;;  %v1779_v25 = vadd.f32 %v1778_v53, %v1592_v17  ;;  %15179 = vst [vmem:[#allocation143_spill] sm:$0xff] %v8277_v11  ;;  %v8286_v12 = vpop.f32.mrb[57].mxu1 }
 0x1dd   :  { %v1813_v22 = vadd.f32 %v1812_v2, %v1490_v32  ;;  %v1299_v8 = vadd.f32 %v1298_v52, %v8116_v51  ;;  %v1759_v58 = vadd.f32 %v1758_v42, %v1604_v28  ;;  %v1605_v53 = vmul.f32 %v8116_v51, %v8116_v51  ;;  %15181 = vst [vmem:[#allocation145_spill] sm:$0xff] %v8286_v12  ;;  %v8293_v28 = vpop.f32.mrb[58].mxu1 }
 0x1de   :  { %v2005_v20 = vadd.f32 1e-05, %v1992_v26  ;;  %v1993_v56 = vmax.f32 %v1980_v47, 0.0  ;;  %v8279_v26 = vpop.f32.mrb[56].mxu0  ;;  %v1333_v2 = vadd.f32 %v1332_v36, %v8118_v59  ;;  %v1503_v62 = vmul.f32 %v8118_v59, %v8118_v59  ;;  %v8300_v59 = vpop.f32.mrb[59].mxu1 }
 0x1df   :  { %15180 = vst [vmem:[#allocation144_spill] sm:$0xff] %v8279_v26  ;;  %v8288_v47 = vpop.f32.mrb[57].mxu0  ;;  %v1793_v44 = vadd.f32 %v1792_v40, %v1502_v18  ;;  %v1279_v52 = vadd.f32 %v1278_v37, %v8160_v34  ;;  %v1617_v17 = vmul.f32 %v8160_v34, %v8160_v34  ;;  %v1780_v32 = vadd.f32 %v1779_v25, %v1605_v53 }
 0x1e0   :  { %7022 = vrsqrt.f32 %v2005_v20  ;;  %v2006_v4 = vadd.f32 1e-05, %v1993_v56  ;;  %15182 = vst [vmem:[#allocation146_spill] sm:$0xff] %v8288_v47  ;;  %v8295_v42 = vpop.f32.mrb[58].mxu0  ;;  %v1814_v36 = vadd.f32 %v1813_v22, %v1503_v62  ;;  %v1313_v20 = vadd.f32 %v1312_v0, %v8162_v3 }
 0x1e1   :  { %15183 = vst [vmem:[#allocation147_spill] sm:$0xff] %v8295_v42  ;;  %v1515_v56 = vmul.f32 %v8162_v3, %v8162_v3  ;;  %v1760_v40 = vadd.f32 %v1759_v58, %v1617_v17  ;;  %v1300_v37 = vadd.f32 %v1299_v8, %v8176_v55  ;;  %v1618_v18 = vmul.f32 %v8176_v55, %v8176_v55 }
 0x1e2   :  { %7024 = vrsqrt.f32 %v2006_v4  ;;  %v8302_v4 = vpop.f32.mrb[59].mxu0  ;;  %v1334_v14 = vadd.f32 %v1333_v2, %v8178_v1  ;;  %v1516_v25 = vmul.f32 %v8178_v1, %v8178_v1  ;;  %v1280_v22 = vadd.f32 %v1279_v52, %v8192_v63 }
 0x1e3   :  { %15184 = vst [vmem:[#allocation148_spill] sm:$0xff] %v8302_v4  ;;  %v1794_v33 = vadd.f32 %v1793_v44, %v1515_v56  ;;  %v1630_v0 = vmul.f32 %v8192_v63, %v8192_v63  ;;  %v1781_v53 = vadd.f32 %v1780_v32, %v1618_v18  ;;  %v1314_v62 = vadd.f32 %v1313_v20, %v8194_v21  ;;  %v8325_v18 = vpop.f32.mrb[60].mxu1  ;;  %v8327_v1 = vpop.f32.mrb[60].mxu0 }
 0x1e4   :  { %v1528_v8 = vmul.f32 %v8194_v21, %v8194_v21  ;;  %v1301_v58 = vadd.f32 %v1300_v37, %v8208_v13  ;;  %v1815_v17 = vadd.f32 %v1814_v36, %v1516_v25  ;;  %v1631_v2 = vmul.f32 %v8208_v13, %v8208_v13  ;;  %15185 = vst [vmem:[#allocation149_spill] sm:$0xff] %v8327_v1  ;;  %v8335_v25 = vpop.f32.mrb[61].mxu0  ;;  %v15193_v13 = vld [vmem:[#allocation34_spill] sm:$0xff] }
 0x1e5   :  { %v1761_v3 = vadd.f32 %v1760_v40, %v1630_v0  ;;  %v1335_v44 = vadd.f32 %v1334_v14, %v8210_v27  ;;  %v1529_v52 = vmul.f32 %v8210_v27, %v8210_v27  ;;  %v1281_v32 = vadd.f32 %v1280_v22, %v8233_v35  ;;  %v8333_v14 = vpop.f32.mrb[61].mxu1  ;;  %15186 = vst [vmem:[#allocation150_spill] sm:$0xff] %v8335_v25 }
 0x1e6   :  { %v1795_v56 = vadd.f32 %v1794_v33, %v1528_v8  ;;  %v1643_v20 = vmul.f32 %v8233_v35, %v8233_v35  ;;  %v1782_v36 = vadd.f32 %v1781_v53, %v1631_v2  ;;  %v1315_v40 = vadd.f32 %v1314_v62, %v8235_v57  ;;  %v8340_v53 = vpop.f32.mrb[62].mxu1  ;;  %v8342_v62 = vpop.f32.mrb[62].mxu0  ;;  %v15188_v2 = vld [vmem:[#allocation46_spill] sm:$0xff] }
 0x1e7   :  { %v1541_v37 = vmul.f32 %v8235_v57, %v8235_v57  ;;  %v1302_v33 = vadd.f32 %v1301_v58, %v8244_v6  ;;  %v1816_v0 = vadd.f32 %v1815_v17, %v1529_v52  ;;  %v1644_v27 = vmul.f32 %v8244_v6, %v8244_v6  ;;  %15187 = vst [vmem:[#allocation151_spill] sm:$0xff] %v8342_v62  ;;  %v8352_v52 = vpop.f32.mrb[63].mxu0 }
 0x1e8   :  { %v1762_v8 = vadd.f32 %v1761_v3, %v1643_v20  ;;  %v1336_v21 = vadd.f32 %v1335_v44, %v8246_v16  ;;  %v15189_v57 = vrot.slane %v7736_v29, %v15188_v2  ;;  %v1542_v41 = vmul.f32 %v8246_v16, %v8246_v16  ;;  %v8350_v3 = vpop.f32.mrb[63].mxu1  ;;  %15190 = vst [vmem:[#allocation152_spill] sm:$0xff] %v8352_v52 }
 0x1e9   :  { %v1796_v5 = vadd.f32 %v1795_v56, %v1541_v37  ;;  %v1282_v17 = vadd.f32 %v1281_v32, %v8251_v23  ;;  %v8354_v44 = vadd.f32 %v1782_v36, %v1644_v27  ;;  %v1656_v30 = vmul.f32 %v8251_v23, %v8251_v23  ;;  %v15191_v37 = vld [vmem:[#allocation47_spill] sm:$0xff] }
 0x1ea   :  { %v7023_v22 = vpop.eup %7022  ;;  %v8359_v61 = vadd.f32 %v1315_v40, %v8253_v48  ;;  %v8368_v16 = vadd.f32 %v1816_v0, %v1542_v41  ;;  %v1303_v40 = vadd.f32 %v1302_v33, %v8258_v60  ;;  %v15201_v41 = vld [vmem:[#allocation45_spill] sm:$0xff]  ;;  %v1580_v35 = vmul.f32 %v8293_v28, %v8293_v28 }
 0x1eb   :  { %v2098_v58 = vmul.f32 %v7023_v22, %v15189_v57  ;;  %v1554_v57 = vmul.f32 %v8253_v48, %v8253_v48  ;;  %v15192_v22 = vrot.slane %v7736_v29, %v15191_v37  ;;  %v1283_v27 = vrot.slane %v1282_v17, 4  ;;  %v15195_v48 = vld [vmem:[#allocation37_spill] sm:$0xff] }
 0x1ec   :  { %v7025_v20 = vpop.eup %7024  ;;  %v1763_v36 = vadd.f32 %v1762_v8, %v1656_v30  ;;  %v15203_v30 = vld [vmem:[#allocation51_spill] sm:$0xff]  ;;  %v15205_v8 = vld [vmem:[#allocation54_spill] sm:$0xff] }
 0x1ed   :  { %v2111_v56 = vmul.f32 %v2098_v58, %v8219_v45  ;;  %v2238_v32 = vrot.slane %v2098_v58, %v7701_v50  ;;  %v2099_v2 = vmul.f32 %v7025_v20, %v15192_v22  ;;  %v8370_v6 = vadd.f32 %v1796_v5, %v1554_v57  ;;  %v15197_v45 = vld [vmem:[#allocation39_spill] sm:$0xff]  ;;  %v8399_v57 = vpop.f32.mrb[64].mxu0  ;;  %v15210_v22 = vld [vmem:[#allocation61_spill] sm:$0xff] }
 0x1ee   :  { %15209 = vst [vmem:[#allocation153_spill] sm:$0xff] %v8399_v57 }
 0x1ef   :  { %v8374_v55 = vmul.f32 %v2238_v32, %v15193_v13  ;;  %v8377_v51 = vmul.f32 %v2238_v32, %v15195_v48  ;;  %v8380_v58 = vmul.f32 %v2238_v32, %v15197_v45  ;;  %v8383_v37 = vmul.f32 %v2238_v32, %v15199_v43  ;;  %v15207_v13 = vld [vmem:[#allocation58_spill] sm:$0xff]  ;;  %v8397_v48 = vpop.f32.mrb[64].mxu1  ;;  %v15212_v43 = vld [vmem:[#allocation65_spill] sm:$0xff] }
 0x1f0   :  { %v8386_v0 = vmul.f32 %v2238_v32, %v15201_v41  ;;  %v8389_v5 = vmul.f32 %v2238_v32, %v15203_v30  ;;  %v8392_v33 = vmul.f32 %v2238_v32, %v15205_v8  ;;  %v8395_v20 = vmul.f32 %v2238_v32, %v15207_v13  ;;  %v15214_v41 = vld [vmem:[#allocation69_spill] sm:$0xff]  ;;  %v8413_v8 = vpop.f32.mrb[65].mxu1  ;;  %v8415_v13 = vpop.f32.mrb[65].mxu0 }
 0x1f1   :  { %15194 = vst [vmem:[#allocation34_spill] sm:$0xff] %v8374_v55  ;;  %15196 = vst [vmem:[#allocation37_spill] sm:$0xff] %v8377_v51  ;;  %v8402_v45 = vmul.f32 %v2238_v32, %v15210_v22  ;;  %v8411_v30 = vmul.f32 %v2238_v32, %v7919_v7  ;;  %v15221_v22 = vld [vmem:[#allocation83_spill] sm:$0xff]  ;;  %v8431_v7 = vpop.f32.mrb[66].mxu0  ;;  %v15233_v55 = vld [vmem:[#allocation44_spill] sm:$0xff] }
 0x1f2   :  { %15198 = vst [vmem:[#allocation39_spill] sm:$0xff] %v8380_v58  ;;  %15200 = vst [vmem:[#allocation43_spill] sm:$0xff] %v8383_v37  ;;  %v8405_v37 = vmul.f32 %v2238_v32, %v15212_v43  ;;  %v15223_v43 = vld [vmem:[#allocation87_spill] sm:$0xff]  ;;  %v1284_v58 = vadd.f32 %v1283_v27, %v1282_v17  ;;  %v15231_v27 = vld [vmem:[#allocation42_spill] sm:$0xff] }
 0x1f3   :  { %15202 = vst [vmem:[#allocation45_spill] sm:$0xff] %v8386_v0  ;;  %15204 = vst [vmem:[#allocation51_spill] sm:$0xff] %v8389_v5  ;;  %v8408_v0 = vmul.f32 %v2238_v32, %v15214_v41  ;;  %v8429_v41 = vpop.f32.mrb[66].mxu1 }
 0x1f4   :  { %15206 = vst [vmem:[#allocation54_spill] sm:$0xff] %v8392_v33  ;;  %15208 = vst [vmem:[#allocation58_spill] sm:$0xff] %v8395_v20  ;;  %v8418_v20 = vmul.f32 %v2238_v32, %v7939_v49  ;;  %v15219_v33 = vld [vmem:[#allocation79_spill] sm:$0xff]  ;;  %v1764_v49 = vrot.slane %v1763_v36, 4 }
 0x1f5   :  { %15211 = vst [vmem:[#allocation61_spill] sm:$0xff] %v8402_v45  ;;  %15213 = vst [vmem:[#allocation65_spill] sm:$0xff] %v8405_v37  ;;  %v8421_v5 = vmul.f32 %v2238_v32, %v15219_v33  ;;  %v8424_v45 = vmul.f32 %v2238_v32, %v15221_v22  ;;  %v8427_v37 = vmul.f32 %v2238_v32, %v15223_v43  ;;  %v8437_v33 = vpop.f32.mrb[67].mxu0 }
 0x1f6   :  { %15215 = vst [vmem:[#allocation69_spill] sm:$0xff] %v8408_v0  ;;  %15216 = vst [vmem:[#allocation154_spill] sm:$0xff] %v8411_v30  ;;  %v2112_v30 = vmul.f32 %v2099_v2, %v8231_v39  ;;  %v2242_v0 = vrot.slane %v2099_v2, %v7701_v50  ;;  %v1657_v22 = vmul.f32 %v8258_v60, %v8258_v60  ;;  %v15229_v2 = vld [vmem:[#allocation38_spill] sm:$0xff] }
 0x1f7   :  { %15217 = vst [vmem:[#allocation155_spill] sm:$0xff] %v8415_v13  ;;  %15218 = vst [vmem:[#allocation156_spill] sm:$0xff] %v8418_v20  ;;  %v8435_v20 = vpop.f32.mrb[67].mxu1  ;;  %v1337_v32 = vadd.f32 %v1336_v21, %v8260_v19  ;;  %v1555_v43 = vmul.f32 %v8260_v19, %v8260_v19  ;;  %v15237_v21 = vld [vmem:[#allocation53_spill] sm:$0xff] }
 0x1f8   :  { %15220 = vst [vmem:[#allocation79_spill] sm:$0xff] %v8421_v5  ;;  %15222 = vst [vmem:[#allocation83_spill] sm:$0xff] %v8424_v45  ;;  %v1304_v5 = vrot.slane %v1303_v40, 4  ;;  %v15227_v45 = vld [vmem:[#allocation35_spill] sm:$0xff]  ;;  %v8448_v17 = vmul.f32 %v2242_v0, %v15229_v2  ;;  %v8451_v51 = vmul.f32 %v2242_v0, %v15231_v27  ;;  %v8454_v31 = vmul.f32 %v2242_v0, %v15233_v55  ;;  %v15239_v19 = vld [vmem:[#allocation57_spill] sm:$0xff] }
 0x1f9   :  { %15224 = vst [vmem:[#allocation87_spill] sm:$0xff] %v8427_v37  ;;  %15225 = vst [vmem:[#allocation157_spill] sm:$0xff] %v8431_v7  ;;  %v2136_v37 = vcombine.low %v2111_v56, %v2112_v30  ;;  %v8445_v39 = vmul.f32 %v2242_v0, %v15227_v45  ;;  %v8457_v60 = vmul.f32 %v2242_v0, %v15235_v10  ;;  %v15242_v30 = vld [vmem:[#allocation60_spill] sm:$0xff]  ;;  %v15244_v27 = vld [vmem:[#allocation63_spill] sm:$0xff] }
 0x1fa   :  { %15226 = vst [vmem:[#allocation158_spill] sm:$0xff] %v8437_v33  ;;  %15230 = vst [vmem:[#allocation38_spill] sm:$0xff] %v8448_v17  ;;  %v8460_v23 = vmul.f32 %v2242_v0, %v15237_v21  ;;  %v8463_v56 = vmul.f32 %v2242_v0, %v15239_v19  ;;  %v8469_v2 = vmul.f32 %v2242_v0, %v15242_v30  ;;  %v15246_v55 = vld [vmem:[#allocation67_spill] sm:$0xff]  ;;  %v15250_v21 = vld [vmem:[#allocation74_spill] sm:$0xff]  ;;  %v8489_v30 = vpop.f32.mrb[68].mxu1 }
 0x1fb   :  { %15228 = vst [vmem:[#allocation35_spill] sm:$0xff] %v8445_v39  ;;  %15232 = vst [vmem:[#allocation42_spill] sm:$0xff] %v8451_v51  ;;  %v8466_v45 = vrot.slane %v2136_v37, %v15169_v54  ;;  %v8472_v51 = vmul.f32 %v2242_v0, %v15244_v27  ;;  %v15248_v10 = vld [vmem:[#allocation71_spill] sm:$0xff]  ;;  %v15252_v19 = vld [vmem:[#allocation77_spill] sm:$0xff] }
 0x1fc   :  { %15234 = vst [vmem:[#allocation44_spill] sm:$0xff] %v8454_v31  ;;  %15236 = vst [vmem:[#allocation50_spill] sm:$0xff] %v8457_v60  ;;  %v8475_v31 = vmul.f32 %v2242_v0, %v15246_v55  ;;  %v8478_v60 = vmul.f32 %v2242_v0, %v15248_v10  ;;  %v15254_v37 = vld [vmem:[#allocation81_spill] sm:$0xff] }
 0x1fd   :  { %15238 = vst [vmem:[#allocation53_spill] sm:$0xff] %v8460_v23  ;;  %15240 = vst [vmem:[#allocation57_spill] sm:$0xff] %v8463_v56  ;;  %v8481_v23 = vmul.f32 %v2242_v0, %v15250_v21  ;;  %v8484_v56 = vmul.f32 %v2242_v0, %v15252_v19  ;;  %v8487_v17 = vmul.f32 %v2242_v0, %v15254_v37  ;;  %v15257_v55 = vld [vmem:[#allocation85_spill] sm:$0xff]  ;;  %v1285_v21 = vrot.slane %v1284_v58, 2 }
 0x1fe   :  { %15241 = vst [vmem:[#allocation159_spill] sm:$0xff] %v8466_v45  ;;  %15243 = vst [vmem:[#allocation60_spill] sm:$0xff] %v8469_v2  ;;  %v8491_v2 = vpop.f32.mrb[68].mxu0  ;;  %v15259_v10 = vld [vmem:[#allocation89_spill] sm:$0xff]  ;;  %v1765_v37 = vadd.f32 %v1764_v49, %v1763_v36  ;;  %v1466_v45 = vmul.f32 %v8288_v47, %v8288_v47 }
 0x1ff   :  { %15245 = vst [vmem:[#allocation63_spill] sm:$0xff] %v8472_v51  ;;  %15247 = vst [vmem:[#allocation67_spill] sm:$0xff] %v8475_v31  ;;  %v8496_v31 = vmul.f32 %v2242_v0, %v15257_v55  ;;  %v8503_v19 = vpop.f32.mrb[69].mxu0  ;;  %v1818_v51 = vadd.f32 %v8368_v16, %v1555_v43  ;;  %v1286_v55 = vadd.f32 %v1285_v21, %v1284_v58 }
 0x200   :  { %15249 = vst [vmem:[#allocation71_spill] sm:$0xff] %v8478_v60  ;;  %15251 = vst [vmem:[#allocation74_spill] sm:$0xff] %v8481_v23  ;;  %v8499_v60 = vmul.f32 %v2242_v0, %v15259_v10  ;;  %v8501_v23 = vpop.f32.mrb[69].mxu1  ;;  %v8509_v27 = vpop.f32.mrb[70].mxu0  ;;  %v1317_v0 = vadd.f32 %v8359_v61, %v8277_v11  ;;  %v1567_v10 = vmul.f32 %v8277_v11, %v8277_v11  ;;  %v1766_v36 = vrot.slane %v1765_v37, 2 }
 0x201   :  { %15253 = vst [vmem:[#allocation77_spill] sm:$0xff] %v8484_v56  ;;  %15255 = vst [vmem:[#allocation81_spill] sm:$0xff] %v8487_v17  ;;  %v1305_v17 = vadd.f32 %v1304_v5, %v1303_v40  ;;  %v1784_v56 = vadd.f32 %v8354_v44, %v1657_v22  ;;  %v8507_v39 = vpop.f32.mrb[70].mxu1  ;;  %v1465_v16 = vmul.f32 %v8279_v26, %v8279_v26  ;;  %v1287_v5 = vrot.slane %v1286_v55, 1 }
 0x202   :  { %15256 = vst [vmem:[#allocation160_spill] sm:$0xff] %v8491_v2  ;;  %15258 = vst [vmem:[#allocation85_spill] sm:$0xff] %v8496_v31  ;;  %v15263_v31 = vld [vmem:[#allocation36_spill] sm:$0xff]  ;;  %v1798_v49 = vadd.f32 %v8370_v6, %v1567_v10  ;;  %v1338_v58 = vadd.f32 %v1337_v32, %v8286_v12  ;;  %v1568_v22 = vmul.f32 %v8286_v12, %v8286_v12 }
 0x203   :  { %15260 = vst [vmem:[#allocation89_spill] sm:$0xff] %v8499_v60  ;;  %15261 = vst [vmem:[#allocation161_spill] sm:$0xff] %v8503_v19  ;;  %v8516_v60 = vpop.f32.mrb[71].mxu1  ;;  %v1306_v40 = vrot.slane %v1305_v17, 2  ;;  %v1785_v44 = vrot.slane %v1784_v56, 4  ;;  %v1767_v61 = vadd.f32 %v1766_v36, %v1765_v37  ;;  %v1288_v11 = vadd.f32 %v1287_v5, %v1286_v55 }
 0x204   :  { %15262 = vst [vmem:[#allocation162_spill] sm:$0xff] %v8509_v27  ;;  %v1819_v9 = vadd.f32 %v1818_v51, %v1568_v22  ;;  %v1318_v54 = vadd.f32 %v1317_v0, %v8293_v28  ;;  %v1352_v32 = vadd.f32 %v8295_v42, %v8279_v26  ;;  %v1339_v37 = vadd.f32 %v1338_v58, %v8300_v59 }
 0x205   :  { %v1307_v43 = vadd.f32 %v1306_v40, %v1305_v17  ;;  %v1786_v21 = vadd.f32 %v1785_v44, %v1784_v56  ;;  %v1768_v63 = vrot.slane %v1767_v61, 1  ;;  %v8531_v12 = vmul.f32 0.0078125, %v1288_v11 }
 0x206   :  { %v1799_v17 = vadd.f32 %v1798_v49, %v1580_v35  ;;  %v1478_v56 = vmul.f32 %v8295_v42, %v8295_v42  ;;  %v1581_v36 = vmul.f32 %v8300_v59, %v8300_v59  ;;  %v1373_v11 = vadd.f32 %v8302_v4, %v8288_v47  ;;  %v15289_v42 = vld [vmem:[#allocation64_spill] sm:$0xff] }
 0x207   :  { %v1308_v6 = vrot.slane %v1307_v43, 1  ;;  %v1787_v10 = vrot.slane %v1786_v21, 2  ;;  %v1769_v51 = vadd.f32 %v1768_v63, %v1767_v61  ;;  %v1968_v40 = vmul.f32 %v8531_v12, %v8531_v12 }
 0x208   :  { %v1833_v44 = vadd.f32 %v1478_v56, %v1465_v16  ;;  %v1479_v35 = vmul.f32 %v8302_v4, %v8302_v4  ;;  %v1820_v63 = vadd.f32 %v1819_v9, %v1581_v36  ;;  %v1319_v61 = vadd.f32 %v1318_v54, %v8325_v18 }
 0x209   :  { %v1309_v55 = vadd.f32 %v1308_v6, %v1307_v43  ;;  %v1788_v0 = vadd.f32 %v1787_v10, %v1786_v21  ;;  %v1955_v5 = vmul.f32 0.0078125, %v1769_v51  ;;  %v1593_v43 = vmul.f32 %v8325_v18, %v8325_v18 }
 0x20a   :  { %v1854_v58 = vadd.f32 %v1479_v35, %v1466_v45  ;;  %v1353_v21 = vadd.f32 %v1352_v32, %v8327_v1  ;;  %v1491_v56 = vmul.f32 %v8327_v1, %v8327_v1  ;;  %v1594_v9 = vmul.f32 %v8333_v14, %v8333_v14 }
 0x20b   :  { %v1789_v49 = vrot.slane %v1788_v0, 1  ;;  %v8544_v22 = vmul.f32 0.0078125, %v1309_v55  ;;  %v1981_v16 = vsub.f32 %v1955_v5, %v1968_v40  ;;  %v1800_v51 = vadd.f32 %v1799_v17, %v1593_v43 }
 0x20c   :  { %v1340_v55 = vadd.f32 %v1339_v37, %v8333_v14  ;;  %v1374_v54 = vadd.f32 %v1373_v11, %v8335_v25  ;;  %v1834_v35 = vadd.f32 %v1833_v44, %v1491_v56  ;;  %v1492_v32 = vmul.f32 %v8335_v25, %v8335_v25 }
 0x20d   :  { %v1790_v6 = vadd.f32 %v1789_v49, %v1788_v0  ;;  %v1969_v10 = vmul.f32 %v8544_v22, %v8544_v22  ;;  %v1994_v45 = vmax.f32 %v1981_v16, 0.0  ;;  %v1821_v0 = vadd.f32 %v1820_v63, %v1594_v9 }
 0x20e   :  { %v1320_v40 = vadd.f32 %v1319_v61, %v8340_v53  ;;  %v1606_v5 = vmul.f32 %v8340_v53, %v8340_v53  ;;  %v1354_v17 = vadd.f32 %v1353_v21, %v8342_v62  ;;  %v1855_v43 = vadd.f32 %v1854_v58, %v1492_v32 }
 0x20f   :  { %v1956_v36 = vmul.f32 0.0078125, %v1790_v6  ;;  %v2007_v37 = vadd.f32 1e-05, %v1994_v45  ;;  %v1504_v11 = vmul.f32 %v8342_v62, %v8342_v62  ;;  %v1341_v44 = vadd.f32 %v1340_v55, %v8350_v3 }
 0x210   :  { %v1801_v16 = vadd.f32 %v1800_v51, %v1606_v5  ;;  %v1607_v6 = vmul.f32 %v8350_v3, %v8350_v3  ;;  %v1375_v63 = vadd.f32 %v1374_v54, %v8352_v52  ;;  %v1505_v21 = vmul.f32 %v8352_v52, %v8352_v52 }
 0x211   :  { %v1982_v49 = vsub.f32 %v1956_v36, %v1969_v10  ;;  %7026 = vrsqrt.f32 %v2007_v37  ;;  %v1835_v56 = vadd.f32 %v1834_v35, %v1504_v11  ;;  %v1321_v58 = vadd.f32 %v1320_v40, %v8397_v48 }
 0x212   :  { %v1822_v9 = vadd.f32 %v1821_v0, %v1607_v6  ;;  %v1619_v10 = vmul.f32 %v8397_v48, %v8397_v48  ;;  %v1355_v51 = vadd.f32 %v1354_v17, %v8399_v57  ;;  %v1856_v45 = vadd.f32 %v1855_v43, %v1505_v21 }
 0x213   :  { %v1995_v61 = vmax.f32 %v1982_v49, 0.0  ;;  %v1517_v36 = vmul.f32 %v8399_v57, %v8399_v57  ;;  %v1342_v54 = vadd.f32 %v1341_v44, %v8413_v8  ;;  %v1620_v35 = vmul.f32 %v8413_v8, %v8413_v8 }
 0x214   :  { %v1802_v32 = vadd.f32 %v1801_v16, %v1619_v10  ;;  %v1376_v0 = vadd.f32 %v1375_v63, %v8415_v13  ;;  %v1518_v40 = vmul.f32 %v8415_v13, %v8415_v13  ;;  %v1322_v17 = vadd.f32 %v1321_v58, %v8429_v41 }
 0x215   :  { %v2008_v55 = vadd.f32 1e-05, %v1995_v61  ;;  %v1836_v5 = vadd.f32 %v1835_v56, %v1517_v36  ;;  %v1632_v37 = vmul.f32 %v8429_v41, %v8429_v41  ;;  %v1823_v49 = vadd.f32 %v1822_v9, %v1620_v35 }
 0x216   :  { %v1857_v43 = vadd.f32 %v1856_v45, %v1518_v40  ;;  %v1356_v11 = vadd.f32 %v1355_v51, %v8431_v7  ;;  %v1530_v16 = vmul.f32 %v8431_v7, %v8431_v7  ;;  %v1343_v6 = vadd.f32 %v1342_v54, %v8435_v20 }
 0x217   :  { %7028 = vrsqrt.f32 %v2008_v55  ;;  %v1803_v44 = vadd.f32 %v1802_v32, %v1632_v37  ;;  %v1633_v63 = vmul.f32 %v8435_v20, %v8435_v20  ;;  %v1377_v61 = vadd.f32 %v1376_v0, %v8437_v33 }
 0x218   :  { %v1837_v56 = vadd.f32 %v1836_v5, %v1530_v16  ;;  %v1531_v21 = vmul.f32 %v8437_v33, %v8437_v33  ;;  %v1323_v9 = vadd.f32 %v1322_v17, %v8489_v30  ;;  %v1645_v58 = vmul.f32 %v8489_v30, %v8489_v30 }
 0x219   :  { %v1824_v10 = vadd.f32 %v1823_v49, %v1633_v63  ;;  %v1357_v51 = vadd.f32 %v1356_v11, %v8491_v2  ;;  %v1543_v55 = vmul.f32 %v8491_v2, %v8491_v2  ;;  %v1344_v45 = vadd.f32 %v1343_v6, %v8501_v23  ;;  %v15264_v49 = vld [vmem:[#allocation55_spill] sm:$0xff] }
 0x21a   :  { %v1858_v36 = vadd.f32 %v1857_v43, %v1531_v21  ;;  %v1804_v54 = vadd.f32 %v1803_v44, %v1645_v58  ;;  %v1646_v32 = vmul.f32 %v8501_v23, %v8501_v23  ;;  %v8606_v35 = vadd.f32 %v1377_v61, %v8503_v19  ;;  %v8627_v58 = vld [vmem:[#allocation9] sm:$0xff] }
 0x21b   :  { %v7027_v0 = vpop.eup %7026  ;;  %v1838_v40 = vadd.f32 %v1837_v56, %v1543_v55  ;;  %v1544_v5 = vmul.f32 %v8503_v19, %v8503_v19  ;;  %v1324_v17 = vadd.f32 %v1323_v9, %v8507_v39  ;;  %v1658_v37 = vmul.f32 %v8507_v39, %v8507_v39 }
 0x21c   :  { %v15265_v43 = vrot.slane %v7736_v29, %v15264_v49  ;;  %v1825_v16 = vadd.f32 %v1824_v10, %v1646_v32  ;;  %v8617_v44 = vadd.f32 %v1357_v51, %v8509_v27  ;;  %v1556_v56 = vmul.f32 %v8509_v27, %v8509_v27 }
 0x21d   :  { %v8619_v6 = vadd.f32 %v1858_v36, %v1544_v5  ;;  %v1325_v63 = vrot.slane %v1324_v17, 4  ;;  %v1805_v61 = vadd.f32 %v1804_v54, %v1658_v37  ;;  %v15266_v29 = vsub.s32 5, %v15263_v31  ;;  %v15268_v37 = vld [vmem:[#allocation66_spill] sm:$0xff] }
 0x21e   :  { %v2100_v11 = vmul.f32 %v7027_v0, %v15265_v43  ;;  %v1345_v51 = vadd.f32 %v1344_v45, %v8516_v60  ;;  %v8633_v54 = vadd.f32 %v1838_v40, %v1556_v56  ;;  %v1659_v0 = vmul.f32 %v8516_v60, %v8516_v60  ;;  %v15271_v45 = vld [vmem:[#allocation76_spill] sm:$0xff] }
 0x21f   :  { %v2054_v10 = vrot.slane %v8627_v58, %v15266_v29  ;;  %v1326_v36 = vadd.f32 %v1325_v63, %v1324_v17  ;;  %v1806_v32 = vrot.slane %v1805_v61, 4  ;;  %v15270_v29 = vld [vmem:[#allocation73_spill] sm:$0xff]  ;;  %v15272_v40 = vld [vmem:[#allocation80_spill] sm:$0xff] }
 0x220   :  { %v8624_v21 = vmul.f32 %v2100_v11, %v8531_v12  ;;  %v2246_v9 = vrot.slane %v2100_v11, %v7701_v50  ;;  %v15267_v12 = vld [vmem:[#allocation62_spill] sm:$0xff]  ;;  %v15274_v56 = vld [vmem:[#allocation84_spill] sm:$0xff]  ;;  %v1826_v7 = vadd.f32 %v1825_v16, %v1659_v0 }
 0x221   :  { %v7029_v55 = vpop.eup %7028  ;;  %v15269_v11 = vld [vmem:[#allocation70_spill] sm:$0xff]  ;;  %v1327_v27 = vrot.slane %v1326_v36, 2  ;;  %v1807_v2 = vadd.f32 %v1806_v32, %v1805_v61  ;;  %v15291_v61 = vld [vmem:[#allocation72_spill] sm:$0xff] }
 0x222   :  { %v8638_v5 = vmul.f32 %v2246_v9, %v15267_v12  ;;  %v8641_v43 = vmul.f32 %v2246_v9, %v15268_v37  ;;  %v8644_v19 = vmul.f32 %v2246_v9, %v15269_v11  ;;  %v8647_v33 = vmul.f32 %v2246_v9, %v15270_v29  ;;  %v15276_v12 = vld [vmem:[#allocation88_spill] sm:$0xff]  ;;  %v15293_v0 = vld [vmem:[#allocation78_spill] sm:$0xff] }
 0x223   :  { %v8650_v17 = vmul.f32 %v2246_v9, %v15271_v45  ;;  %v8653_v63 = vmul.f32 %v2246_v9, %v15272_v40  ;;  %v8656_v13 = vmul.f32 %v2246_v9, %v15274_v56  ;;  %v8659_v52 = vmul.f32 %v2246_v9, %v15276_v12  ;;  %v15283_v56 = vld [vmem:[#allocation130_spill] sm:$0xff]  ;;  %v15285_v12 = vld [vmem:[#allocation135_spill] sm:$0xff] }
 0x224   :  { %v8662_v37 = vmul.f32 %v2246_v9, %v8027_v15  ;;  %v8665_v11 = vmul.f32 %v2246_v9, %v8041_v46  ;;  %v8668_v29 = vmul.f32 %v2246_v9, %v8078_v38  ;;  %v8671_v45 = vmul.f32 %v2246_v9, %v8100_v24  ;;  %v15287_v15 = vld [vmem:[#allocation139_spill] sm:$0xff] }
 0x225   :  { %15273 = vst [vmem:[#allocation36_spill] sm:$0xff] %v8653_v63  ;;  %15275 = vst [vmem:[#allocation62_spill] sm:$0xff] %v8656_v13  ;;  %v8674_v40 = vmul.f32 %v2246_v9, %v8160_v34  ;;  %v8677_v25 = vmul.f32 %v2246_v9, %v15283_v56  ;;  %v8680_v4 = vmul.f32 %v2246_v9, %v15285_v12  ;;  %v1346_v38 = vrot.slane %v1345_v51, 4  ;;  %v15356_v13 = vld [vmem:[#allocation143_spill] sm:$0xff] }
 0x226   :  { %15277 = vst [vmem:[#allocation66_spill] sm:$0xff] %v8659_v52  ;;  %15278 = vst [vmem:[#allocation70_spill] sm:$0xff] %v8662_v37  ;;  %v8683_v47 = vmul.f32 %v2246_v9, %v15287_v15  ;;  %v2101_v46 = vmul.f32 %v7029_v55, %v2054_v10  ;;  %v1328_v57 = vadd.f32 %v1327_v27, %v1326_v36  ;;  %v1808_v62 = vrot.slane %v1807_v2, 2  ;;  %v15290_v10 = vld [vmem:[#allocation68_spill] sm:$0xff]  ;;  %v15296_v15 = vld [vmem:[#allocation86_spill] sm:$0xff] }
 0x227   :  { %15279 = vst [vmem:[#allocation73_spill] sm:$0xff] %v8665_v11  ;;  %15280 = vst [vmem:[#allocation76_spill] sm:$0xff] %v8668_v29  ;;  %v1347_v56 = vadd.f32 %v1346_v38, %v1345_v51  ;;  %v1827_v1 = vrot.slane %v1826_v7, 4  ;;  %v15294_v51 = vld [vmem:[#allocation82_spill] sm:$0xff]  ;;  %v15352_v52 = vld [vmem:[#allocation140_spill] sm:$0xff] }
 0x228   :  { %15281 = vst [vmem:[#allocation80_spill] sm:$0xff] %v8671_v45  ;;  %15282 = vst [vmem:[#allocation84_spill] sm:$0xff] %v8674_v40  ;;  %v8686_v24 = vmul.f32 %v2101_v46, %v8544_v22  ;;  %v2250_v34 = vrot.slane %v2101_v46, %v7701_v50  ;;  %v15292_v22 = vld [vmem:[#allocation75_spill] sm:$0xff] }
 0x229   :  { %15284 = vst [vmem:[#allocation88_spill] sm:$0xff] %v8677_v25  ;;  %15286 = vst [vmem:[#allocation130_spill] sm:$0xff] %v8680_v4  ;;  %v1348_v11 = vrot.slane %v1347_v56, 2 }
 0x22a   :  { %15288 = vst [vmem:[#allocation135_spill] sm:$0xff] %v8683_v47  ;;  %v8692_v9 = vmul.f32 %v2250_v34, %v15289_v42  ;;  %v8695_v55 = vmul.f32 %v2250_v34, %v15290_v10  ;;  %v8698_v16 = vmul.f32 %v2250_v34, %v15291_v61  ;;  %v8701_v32 = vmul.f32 %v2250_v34, %v15292_v22  ;;  %v15298_v42 = vld [vmem:[#allocation90_spill] sm:$0xff]  ;;  %v15300_v10 = vld [vmem:[#allocation92_spill] sm:$0xff]  ;;  %v15302_v61 = vld [vmem:[#allocation95_spill] sm:$0xff] }
 0x22b   :  { %v8704_v27 = vmul.f32 %v2250_v34, %v15293_v0  ;;  %v8707_v36 = vmul.f32 %v2250_v34, %v15294_v51  ;;  %v8710_v46 = vmul.f32 %v2250_v34, %v15296_v15  ;;  %v8713_v38 = vmul.f32 %v2250_v34, %v15298_v42  ;;  %v15304_v22 = vld [vmem:[#allocation98_spill] sm:$0xff]  ;;  %v15306_v0 = vld [vmem:[#allocation109_spill] sm:$0xff]  ;;  %v15308_v51 = vld [vmem:[#allocation128_spill] sm:$0xff] }
 0x22c   :  { %v8716_v12 = vmul.f32 %v2250_v34, %v15300_v10  ;;  %v8719_v26 = vmul.f32 %v2250_v34, %v15302_v61  ;;  %v8722_v47 = vmul.f32 %v2250_v34, %v15304_v22  ;;  %v8725_v4 = vmul.f32 %v2250_v34, %v15306_v0  ;;  %v15310_v15 = vld [vmem:[#allocation132_spill] sm:$0xff]  ;;  %v15312_v42 = vld [vmem:[#allocation137_spill] sm:$0xff] }
 0x22d   :  { %15295 = vst [vmem:[#allocation139_spill] sm:$0xff] %v8707_v36  ;;  %15297 = vst [vmem:[#allocation64_spill] sm:$0xff] %v8710_v46  ;;  %v8728_v25 = vmul.f32 %v2250_v34, %v15308_v51  ;;  %v8731_v40 = vmul.f32 %v2250_v34, %v15310_v15  ;;  %v8734_v45 = vmul.f32 %v2250_v34, %v15312_v42  ;;  %v15314_v10 = vld [vmem:[#allocation141_spill] sm:$0xff]  ;;  %v1329_v61 = vrot.slane %v1328_v57, 1 }
 0x22e   :  { %15299 = vst [vmem:[#allocation68_spill] sm:$0xff] %v8713_v38  ;;  %15301 = vst [vmem:[#allocation72_spill] sm:$0xff] %v8716_v12  ;;  %v8737_v29 = vmul.f32 %v2250_v34, %v15314_v10  ;;  %v1828_v22 = vadd.f32 %v1827_v1, %v1826_v7  ;;  %v1349_v0 = vadd.f32 %v1348_v11, %v1347_v56  ;;  %v8743_v10 = vpop.f32.mrb[71].mxu0 }
 0x22f   :  { %15303 = vst [vmem:[#allocation75_spill] sm:$0xff] %v8719_v26  ;;  %15305 = vst [vmem:[#allocation78_spill] sm:$0xff] %v8722_v47  ;;  %v1809_v26 = vadd.f32 %v1808_v62, %v1807_v2  ;;  %v1330_v47 = vadd.f32 %v1329_v61, %v1328_v57  ;;  %v1379_v1 = vadd.f32 %v8606_v35, %v8743_v10  ;;  %v8754_v11 = vpop.f32.mrb[72].mxu0 }
 0x230   :  { %15307 = vst [vmem:[#allocation82_spill] sm:$0xff] %v8725_v4  ;;  %15309 = vst [vmem:[#allocation86_spill] sm:$0xff] %v8728_v25  ;;  %v1829_v4 = vrot.slane %v1828_v22, 2  ;;  %v1350_v25 = vrot.slane %v1349_v0, 1  ;;  %v1557_v57 = vmul.f32 %v8743_v10, %v8743_v10  ;;  %v8763_v61 = vpop.f32.mrb[73].mxu0 }
 0x231   :  { %15311 = vst [vmem:[#allocation90_spill] sm:$0xff] %v8731_v40  ;;  %15313 = vst [vmem:[#allocation92_spill] sm:$0xff] %v8734_v45  ;;  %v1810_v12 = vrot.slane %v1809_v26, 1  ;;  %v8739_v51 = vmul.f32 0.0078125, %v1330_v47 }
 0x232   :  { %15315 = vst [vmem:[#allocation95_spill] sm:$0xff] %v8737_v29  ;;  %v1830_v15 = vadd.f32 %v1829_v4, %v1828_v22  ;;  %v1351_v45 = vadd.f32 %v1350_v25, %v1349_v0  ;;  %15316 = vst [vmem:[#allocation98_spill] sm:$0xff] %v8743_v10  ;;  %v1860_v4 = vadd.f32 %v8619_v6, %v1557_v57 }
 0x233   :  { %v1811_v37 = vadd.f32 %v1810_v12, %v1809_v26  ;;  %v1970_v42 = vmul.f32 %v8739_v51, %v8739_v51  ;;  %15317 = vst [vmem:[#allocation109_spill] sm:$0xff] %v8754_v11  ;;  %v1359_v12 = vadd.f32 %v8617_v44, %v8754_v11  ;;  %15319 = vst [vmem:[#allocation132_spill] sm:$0xff] %v8763_v61 }
 0x234   :  { %v1831_v34 = vrot.slane %v1830_v15, 1  ;;  %v8749_v47 = vmul.f32 0.0078125, %v1351_v45  ;;  %v1569_v45 = vmul.f32 %v8754_v11, %v8754_v11  ;;  %v1380_v0 = vadd.f32 %v1379_v1, %v8763_v61 }
 0x235   :  { %v1957_v40 = vmul.f32 0.0078125, %v1811_v37 }
 0x236   :  { %v1832_v26 = vadd.f32 %v1831_v34, %v1830_v15  ;;  %v1971_v25 = vmul.f32 %v8749_v47, %v8749_v47  ;;  %v1570_v15 = vmul.f32 %v8763_v61, %v8763_v61 }
 0x237   :  { %v1983_v62 = vsub.f32 %v1957_v40, %v1970_v42  ;;  %v8756_v40 = vpop.f32.mrb[72].mxu1  ;;  %v8772_v42 = vpop.f32.mrb[74].mxu0 }
 0x238   :  { %v1958_v2 = vmul.f32 0.0078125, %v1832_v26  ;;  %15318 = vst [vmem:[#allocation128_spill] sm:$0xff] %v8756_v40  ;;  %v8765_v6 = vpop.f32.mrb[73].mxu1  ;;  %v1467_v22 = vmul.f32 %v8756_v40, %v8756_v40  ;;  %15321 = vst [vmem:[#allocation141_spill] sm:$0xff] %v8772_v42  ;;  %v1360_v57 = vadd.f32 %v1359_v12, %v8772_v42  ;;  %v1582_v26 = vmul.f32 %v8772_v42, %v8772_v42 }
 0x239   :  { %v1996_v7 = vmax.f32 %v1983_v62, 0.0  ;;  %15320 = vst [vmem:[#allocation137_spill] sm:$0xff] %v8765_v6  ;;  %v8774_v34 = vpop.f32.mrb[74].mxu1  ;;  %v1840_v62 = vadd.f32 %v8633_v54, %v1569_v45  ;;  %v1861_v1 = vadd.f32 %v1860_v4, %v1570_v15  ;;  %v1468_v61 = vmul.f32 %v8765_v6, %v8765_v6 }
 0x23a   :  { %v1984_v56 = vsub.f32 %v1958_v2, %v1971_v25  ;;  %15322 = vst [vmem:[#allocation163_spill] sm:$0xff] %v8774_v34  ;;  %v8782_v2 = vpop.f32.mrb[75].mxu1  ;;  %v1394_v25 = vadd.f32 %v8774_v34, %v8756_v40 }
 0x23b   :  { %v2009_v37 = vadd.f32 1e-05, %v1996_v7  ;;  %v8780_v7 = vpop.f32.mrb[75].mxu0  ;;  %15324 = vst [vmem:[#allocation165_spill] sm:$0xff] %v8782_v2  ;;  %v1841_v54 = vadd.f32 %v1840_v62, %v1582_v26  ;;  %v1415_v45 = vadd.f32 %v8782_v2, %v8765_v6  ;;  %v1481_v15 = vmul.f32 %v8782_v2, %v8782_v2 }
 0x23c   :  { %v1997_v44 = vmax.f32 %v1984_v56, 0.0  ;;  %15323 = vst [vmem:[#allocation164_spill] sm:$0xff] %v8780_v7  ;;  %v1381_v56 = vadd.f32 %v1380_v0, %v8780_v7  ;;  %v1583_v12 = vmul.f32 %v8780_v7, %v8780_v7  ;;  %v8801_v26 = vpop.f32.mrb[76].mxu0  ;;  %v8803_v7 = vpop.f32.mrb[76].mxu1 }
 0x23d   :  { %7030 = vrsqrt.f32 %v2009_v37  ;;  %v1480_v37 = vmul.f32 %v8774_v34, %v8774_v34  ;;  %v15325_v34 = vsub.s32 6, %v15263_v31  ;;  %v1896_v62 = vadd.f32 %v1481_v15, %v1468_v61  ;;  %15326 = vst [vmem:[#allocation166_spill] sm:$0xff] %v8801_v26  ;;  %15327 = vst [vmem:[#allocation167_spill] sm:$0xff] %v8803_v7 }
 0x23e   :  { %v2010_v35 = vadd.f32 1e-05, %v1997_v44  ;;  %v1862_v40 = vadd.f32 %v1861_v1, %v1583_v12  ;;  %v1361_v10 = vadd.f32 %v1360_v57, %v8801_v26  ;;  %v1493_v1 = vmul.f32 %v8803_v7, %v8803_v7  ;;  %v8811_v12 = vpop.f32.mrb[77].mxu0 }
 0x23f   :  { %v1875_v4 = vadd.f32 %v1480_v37, %v1467_v22  ;;  %v2058_v0 = vrot.slane %v8627_v58, %v15325_v34  ;;  %v1595_v22 = vmul.f32 %v8801_v26, %v8801_v26  ;;  %v1395_v37 = vadd.f32 %v1394_v25, %v8803_v7  ;;  %15328 = vst [vmem:[#allocation168_spill] sm:$0xff] %v8811_v12  ;;  %v8821_v44 = vpop.f32.mrb[78].mxu0 }
 0x240   :  { %7032 = vrsqrt.f32 %v2010_v35  ;;  %v8813_v35 = vpop.f32.mrb[77].mxu1  ;;  %v1382_v61 = vadd.f32 %v1381_v56, %v8811_v12  ;;  %v1596_v34 = vmul.f32 %v8811_v12, %v8811_v12  ;;  %15330 = vst [vmem:[#allocation170_spill] sm:$0xff] %v8821_v44  ;;  %v1362_v7 = vadd.f32 %v1361_v10, %v8821_v44  ;;  %v8828_v56 = vpop.f32.mrb[79].mxu0 }
 0x241   :  { %15329 = vst [vmem:[#allocation169_spill] sm:$0xff] %v8813_v35  ;;  %v1416_v15 = vadd.f32 %v1415_v45, %v8813_v35  ;;  %v1494_v57 = vmul.f32 %v8813_v35, %v8813_v35  ;;  %v8823_v25 = vpop.f32.mrb[78].mxu1  ;;  %v1842_v2 = vadd.f32 %v1841_v54, %v1595_v22  ;;  %v1876_v6 = vadd.f32 %v1875_v4, %v1493_v1 }
 0x242   :  { %15331 = vst [vmem:[#allocation171_spill] sm:$0xff] %v8823_v25  ;;  %v1608_v26 = vmul.f32 %v8821_v44, %v8821_v44  ;;  %15332 = vst [vmem:[#allocation172_spill] sm:$0xff] %v8828_v56  ;;  %v8830_v42 = vpop.f32.mrb[79].mxu1  ;;  %v1863_v45 = vadd.f32 %v1862_v40, %v1596_v34  ;;  %v1396_v35 = vadd.f32 %v1395_v37, %v8823_v25  ;;  %v15334_v34 = vld [vmem:[#allocation48_spill] sm:$0xff] }
 0x243   :  { %15333 = vst [vmem:[#allocation173_spill] sm:$0xff] %v8830_v42  ;;  %v1897_v11 = vadd.f32 %v1896_v62, %v1494_v57  ;;  %v1506_v29 = vmul.f32 %v8823_v25, %v8823_v25  ;;  %v1383_v4 = vadd.f32 %v1382_v61, %v8828_v56  ;;  %v1609_v10 = vmul.f32 %v8828_v56, %v8828_v56  ;;  %v15335_v57 = vld [vmem:[#allocation134_spill] sm:$0xff]  ;;  %v15349_v25 = vld [vmem:[#allocation131_spill] sm:$0xff]  ;;  %v15350_v56 = vld [vmem:[#allocation136_spill] sm:$0xff] }
 0x244   :  { %v1843_v54 = vadd.f32 %v1842_v2, %v1608_v26  ;;  %v1417_v1 = vadd.f32 %v1416_v15, %v8830_v42  ;;  %v1507_v44 = vmul.f32 %v8830_v42, %v8830_v42  ;;  %v8862_v15 = vpop.f32.mrb[80].mxu1 }
 0x245   :  { %v1877_v22 = vadd.f32 %v1876_v6, %v1506_v29  ;;  %v1864_v37 = vadd.f32 %v1863_v45, %v1609_v10  ;;  %v15338_v29 = vcombine.low %v8624_v21, %v8686_v24  ;;  %v15342_v45 = vld [vmem:[#allocation91_spill] sm:$0xff]  ;;  %v15345_v24 = vld [vmem:[#allocation104_spill] sm:$0xff] }
 0x247   :  { %v7031_v12 = vpop.eup %7030  ;;  %v8853_v6 = vrot.slane %v15338_v29, %v15334_v34 }
 0x248   :  { %v2102_v38 = vmul.f32 %v7031_v12, %v2058_v0  ;;  %v15336_v0 = vld [vmem:[#allocation159_spill] sm:$0xff]  ;;  %v15339_v12 = vsub.s32 7, %v15263_v31 }
 0x249   :  { %v15337_v2 = vcombine.low %v15335_v57, %v15336_v0  ;;  %15341 = vst [vmem:[#allocation159_spill] sm:$0xff] %v8862_v15  ;;  %v15343_v57 = vld [vmem:[#allocation94_spill] sm:$0xff] }
 0x24a   :  { %v2115_v40 = vmul.f32 %v2102_v38, %v8739_v51  ;;  %v2254_v62 = vrot.slane %v2102_v38, %v7701_v50  ;;  %v2062_v61 = vrot.slane %v8627_v58, %v15339_v12  ;;  %v8858_v51 = vadd.f32 %v1897_v11, %v1507_v44  ;;  %v8860_v38 = vpop.f32.mrb[80].mxu0  ;;  %v8878_v58 = vpop.f32.mrb[81].mxu1  ;;  %v15348_v44 = vld [vmem:[#allocation123_spill] sm:$0xff] }
 0x24b   :  { %v8847_v26 = vrot.slane %v15337_v2, %v15334_v34  ;;  %15340 = vst [vmem:[#allocation134_spill] sm:$0xff] %v8860_v38  ;;  %v15344_v2 = vld [vmem:[#allocation97_spill] sm:$0xff]  ;;  %v8876_v42 = vpop.f32.mrb[81].mxu0  ;;  %15347 = vst [vmem:[#allocation94_spill] sm:$0xff] %v8878_v58  ;;  %v7033_v11 = vpop.eup %7032 }
 0x24c   :  { %v8865_v10 = vmul.f32 %v2254_v62, %v15342_v45  ;;  %v8868_v0 = vmul.f32 %v2254_v62, %v15343_v57  ;;  %v8871_v21 = vmul.f32 %v2254_v62, %v15344_v2  ;;  %v8874_v29 = vmul.f32 %v2254_v62, %v15345_v24  ;;  %15346 = vst [vmem:[#allocation91_spill] sm:$0xff] %v8876_v42  ;;  %v8892_v46 = vpop.f32.mrb[82].mxu0  ;;  %v8894_v24 = vpop.f32.mrb[82].mxu1 }
 0x24d   :  { %v8881_v12 = vmul.f32 %v2254_v62, %v15348_v44  ;;  %v8884_v45 = vmul.f32 %v2254_v62, %v15349_v25  ;;  %v8887_v57 = vmul.f32 %v2254_v62, %v15350_v56  ;;  %v8890_v2 = vmul.f32 %v2254_v62, %v15352_v52  ;;  %15354 = vst [vmem:[#allocation123_spill] sm:$0xff] %v8892_v46  ;;  %v8908_v56 = vpop.f32.mrb[83].mxu0  ;;  %v8910_v52 = vpop.f32.mrb[83].mxu1 }
 0x24e   :  { %15355 = vst [vmem:[#allocation131_spill] sm:$0xff] %v8894_v24  ;;  %v8897_v36 = vmul.f32 %v2254_v62, %v15356_v13  ;;  %v8900_v63 = vmul.f32 %v2254_v62, %v8293_v28  ;;  %v8903_v44 = vmul.f32 %v2254_v62, %v8325_v18  ;;  %v8906_v25 = vmul.f32 %v2254_v62, %v8340_v53 }
 0x24f   :  { %15351 = vst [vmem:[#allocation97_spill] sm:$0xff] %v8887_v57  ;;  %15353 = vst [vmem:[#allocation104_spill] sm:$0xff] %v8890_v2  ;;  %v8913_v2 = vmul.f32 %v2254_v62, %v8397_v48  ;;  %v8916_v57 = vmul.f32 %v2254_v62, %v8429_v41  ;;  %v8919_v13 = vmul.f32 %v2254_v62, %v8489_v30 }
 0x250   :  { %15357 = vst [vmem:[#allocation136_spill] sm:$0xff] %v8897_v36  ;;  %15358 = vst [vmem:[#allocation140_spill] sm:$0xff] %v8900_v63  ;;  %v8922_v28 = vmul.f32 %v2254_v62, %v8507_v39  ;;  %v2103_v18 = vmul.f32 %v7033_v11, %v2062_v61  ;;  %v1363_v53 = vadd.f32 %v1362_v7, %v8860_v38  ;;  %v15379_v63 = vld [vmem:[#allocation145_spill] sm:$0xff] }
 0x251   :  { %15359 = vst [vmem:[#allocation143_spill] sm:$0xff] %v8903_v44  ;;  %15360 = vst [vmem:[#allocation174_spill] sm:$0xff] %v8906_v25  ;;  %v1621_v25 = vmul.f32 %v8860_v38, %v8860_v38  ;;  %v1397_v44 = vadd.f32 %v1396_v35, %v8862_v15  ;;  %v1519_v48 = vmul.f32 %v8862_v15, %v8862_v15  ;;  %v8941_v15 = vpop.f32.mrb[84].mxu0 }
 0x252   :  { %15361 = vst [vmem:[#allocation175_spill] sm:$0xff] %v8908_v56  ;;  %15362 = vst [vmem:[#allocation176_spill] sm:$0xff] %v8910_v52  ;;  %v1384_v41 = vadd.f32 %v1383_v4, %v8876_v42  ;;  %v1622_v30 = vmul.f32 %v8876_v42, %v8876_v42  ;;  %v2116_v39 = vmul.f32 %v2103_v18, %v8749_v47  ;;  %v8943_v42 = vpop.f32.mrb[84].mxu1 }
 0x253   :  { %15363 = vst [vmem:[#allocation177_spill] sm:$0xff] %v8913_v2  ;;  %15364 = vst [vmem:[#allocation178_spill] sm:$0xff] %v8916_v57  ;;  %v2258_v62 = vrot.slane %v2103_v18, %v7701_v50  ;;  %v1844_v7 = vadd.f32 %v1843_v54, %v1621_v25  ;;  %v1520_v61 = vmul.f32 %v8878_v58, %v8878_v58  ;;  %v15370_v57 = vld [vmem:[#allocation96_spill] sm:$0xff]  ;;  %v15371_v54 = vld [vmem:[#allocation99_spill] sm:$0xff] }
 0x254   :  { %15365 = vst [vmem:[#allocation179_spill] sm:$0xff] %v8919_v13  ;;  %15366 = vst [vmem:[#allocation180_spill] sm:$0xff] %v8922_v28  ;;  %v1418_v13 = vadd.f32 %v1417_v1, %v8878_v58  ;;  %v1878_v11 = vadd.f32 %v1877_v22, %v1519_v48  ;;  %v1865_v35 = vadd.f32 %v1864_v37, %v1622_v30  ;;  %v15369_v28 = vld [vmem:[#allocation93_spill] sm:$0xff]  ;;  %v8952_v22 = vpop.f32.mrb[85].mxu0  ;;  %v8954_v37 = vpop.f32.mrb[85].mxu1 }
 0x255   :  { %v1364_v38 = vadd.f32 %v1363_v53, %v8892_v46  ;;  %v1634_v4 = vmul.f32 %v8892_v46, %v8892_v46  ;;  %15367 = vst [vmem:[#allocation181_spill] sm:$0xff] %v8941_v15  ;;  %15368 = vst [vmem:[#allocation182_spill] sm:$0xff] %v8943_v42  ;;  %v2138_v1 = vcombine.low %v2115_v40, %v2116_v39  ;;  %v15374_v53 = vld [vmem:[#allocation110_spill] sm:$0xff]  ;;  %v15375_v30 = vld [vmem:[#allocation129_spill] sm:$0xff] }
 0x256   :  { %v2286_v47 = vmul.f32 %v2258_v62, %v15369_v28  ;;  %v8947_v18 = vmul.f32 %v2258_v62, %v15370_v57  ;;  %v8950_v25 = vmul.f32 %v2258_v62, %v15371_v54  ;;  %15372 = vst [vmem:[#allocation93_spill] sm:$0xff] %v8952_v22  ;;  %15373 = vst [vmem:[#allocation96_spill] sm:$0xff] %v8954_v37  ;;  %v15376_v46 = vld [vmem:[#allocation133_spill] sm:$0xff]  ;;  %v15377_v28 = vld [vmem:[#allocation138_spill] sm:$0xff] }
 0x257   :  { %v8957_v48 = vmul.f32 %v2258_v62, %v15374_v53  ;;  %v8960_v58 = vmul.f32 %v2258_v62, %v15375_v30  ;;  %v8963_v40 = vmul.f32 %v2258_v62, %v15376_v46  ;;  %v8966_v39 = vmul.f32 %v2258_v62, %v15377_v28  ;;  %v15378_v54 = vld [vmem:[#allocation142_spill] sm:$0xff] }
 0x258   :  { %v2166_v57 = vrot.slane %v2138_v1, %v15334_v34  ;;  %v8970_v2 = vmul.f32 %v2258_v62, %v15378_v54  ;;  %v8973_v36 = vmul.f32 %v2258_v62, %v15379_v63  ;;  %v8976_v53 = vmul.f32 %v2258_v62, %v8300_v59 }
 0x259   :  { %v8979_v30 = vmul.f32 %v2258_v62, %v8333_v14  ;;  %v8982_v46 = vmul.f32 %v2258_v62, %v8350_v3  ;;  %v8985_v28 = vmul.f32 %v2258_v62, %v8413_v8  ;;  %v8988_v1 = vmul.f32 %v2258_v62, %v8435_v20 }
 0x25a   :  { %v2168_v54 = vcombine.low %v8853_v6, %v2166_v57  ;;  %v8992_v63 = vmul.f32 %v2258_v62, %v8501_v23  ;;  %v8995_v59 = vmul.f32 %v2258_v62, %v8516_v60  ;;  %v1899_v14 = vadd.f32 %v8858_v51, %v1520_v61  ;;  %v1182_v62 = vld [vmem:[#allocation11] sm:$0xff] }
 0x25b   :  { %15380 = vst [vmem:[#allocation99_spill] sm:$0xff] %v8979_v30  ;;  %15381 = vst [vmem:[#allocation110_spill] sm:$0xff] %v8985_v28  ;;  %v1845_v30 = vadd.f32 %v1844_v7, %v1634_v4  ;;  %v1398_v3 = vadd.f32 %v1397_v44, %v8894_v24  ;;  %v1532_v8 = vmul.f32 %v8894_v24, %v8894_v24  ;;  %v15398_v24 = vld [vmem:[#allocation34_spill] sm:$0xff] }
 0x25c   :  { %v1385_v28 = vadd.f32 %v1384_v41, %v8908_v56  ;;  %v2182_v20 = vrot.slane %v2168_v54, %v15334_v34  ;;  %v1635_v6 = vmul.f32 %v8908_v56, %v8908_v56  ;;  %v1419_v23 = vadd.f32 %v1418_v13, %v8910_v52 }
 0x25d   :  { %v1533_v60 = vmul.f32 %v8910_v52, %v8910_v52  ;;  %v1879_v51 = vadd.f32 %v1878_v11, %v1532_v8  ;;  %v9009_v7 = vadd.f32 %v1364_v38, %v8941_v15  ;;  %v1647_v44 = vmul.f32 %v8941_v15, %v8941_v15  ;;  %v15405_v15 = vld [vmem:[#allocation121_spill] sm:$0xff] }
 0x25e   :  { %v9014_v41 = vadd.f32 %v1398_v3, %v8943_v42  ;;  %v2183_v61 = vcombine.low %v8847_v26, %v2182_v20  ;;  %v1866_v4 = vadd.f32 %v1865_v35, %v1635_v6  ;;  %v1545_v13 = vmul.f32 %v8943_v42, %v8943_v42  ;;  %v15391_v20 = vld [vmem:[#allocation46_spill] sm:$0xff]  ;;  %v15392_v6 = vld [vmem:[#allocation47_spill] sm:$0xff] }
 0x25f   :  { %15382 = vst [vmem:[#allocation129_spill] sm:$0xff] %v9009_v7  ;;  %v9017_v57 = vadd.f32 %v1899_v14, %v1533_v60  ;;  %v9021_v54 = vadd.f32 %v1845_v30, %v1647_v44  ;;  %v9024_v11 = vadd.f32 %v1385_v28, %v8952_v22  ;;  %v1648_v38 = vmul.f32 %v8952_v22, %v8952_v22  ;;  %v15390_v14 = vld [vmem:[#allocation41_spill] sm:$0xff]  ;;  %v15397_v42 = vld [vmem:[#allocation119_spill] sm:$0xff] }
 0x260   :  { %15383 = vst [vmem:[#allocation133_spill] sm:$0xff] %v9014_v41  ;;  %v9029_v8 = vadd.f32 %v1419_v23, %v8954_v37  ;;  %v2225_v3 = vsub.f32 %v1182_v62, %v2183_v61  ;;  %v9031_v52 = vadd.f32 %v1879_v51, %v1545_v13  ;;  %v15393_v62 = vsub.s32 5, %v15263_v31  ;;  %v15413_v41 = vld [vmem:[#allocation124_spill] sm:$0xff]  ;;  %v15414_v7 = vld [vmem:[#allocation45_spill] sm:$0xff] }
 0x261   :  { %15384 = vst [vmem:[#allocation138_spill] sm:$0xff] %v9017_v57  ;;  %15385 = vst [vmem:[#allocation142_spill] sm:$0xff] %v9021_v54  ;;  %v9033_v26 = vadd.f32 %v1866_v4, %v1648_v38  ;;  %v15394_v44 = vsub.s32 6, %v15263_v31  ;;  %v15395_v4 = vsub.s32 7, %v15263_v31  ;;  %v15396_v38 = vld [vmem:[#allocation100_spill] sm:$0xff]  ;;  %v15416_v57 = vld [vmem:[#allocation50_spill] sm:$0xff] }
 0x262   :  { %15386 = vst [vmem:[#allocation145_spill] sm:$0xff] %v9024_v11  ;;  %15387 = vst [vmem:[#allocation183_spill] sm:$0xff] %v9029_v8  ;;  %v9036_v35 = vrot.slane %v2225_v3, %v7701_v50  ;;  %v9039_v30 = vrot.slane %v2225_v3, %v15390_v14  ;;  %v9042_v28 = vrot.slane %v2225_v3, %v15391_v20  ;;  %v15406_v14 = vld [vmem:[#allocation39_spill] sm:$0xff]  ;;  %v15407_v50 = vld [vmem:[#allocation42_spill] sm:$0xff] }
 0x263   :  { %15388 = vst [vmem:[#allocation184_spill] sm:$0xff] %v9031_v52  ;;  %15389 = vst [vmem:[#allocation185_spill] sm:$0xff] %v9033_v26  ;;  %v9045_v60 = vrot.slane %v2225_v3, %v15392_v6  ;;  %v9048_v23 = vrot.slane %v2225_v3, %v15264_v49  ;;  %v9052_v51 = vrot.slane %v2225_v3, %v15393_v62  ;;  %v15399_v6 = vld [vmem:[#allocation35_spill] sm:$0xff]  ;;  %v15409_v52 = vld [vmem:[#allocation122_spill] sm:$0xff] }
 0x264   :  { %v9056_v61 = vrot.slane %v2225_v3, %v15394_v44  ;;  %v9060_v13 = vrot.slane %v2225_v3, %v15395_v4  ;;  %v9064_v34 = vadd.f32 %v9036_v35, %v15396_v38  ;;  %v9068_v49 = vadd.f32 %v9039_v30, %v15397_v42  ;;  %v15408_v26 = vld [vmem:[#allocation103_spill] sm:$0xff]  ;;  %v15411_v54 = vld [vmem:[#allocation44_spill] sm:$0xff]  ;;  %v15412_v11 = vld [vmem:[#allocation105_spill] sm:$0xff] }
 0x265   :  { %v9072_v62 = vadd.f32 %v9042_v28, %v15398_v24  ;;  %v9076_v44 = vadd.f32 %v9045_v60, %v15399_v6  ;;  %v9080_v31 = vadd.f32 %v9048_v23, %v8638_v5  ;;  %v9084_v3 = vadd.f32 %v9052_v51, %v8692_v9  ;;  %v15400_v24 = vld [vmem:[#allocation101_spill] sm:$0xff]  ;;  %v15401_v6 = vld [vmem:[#allocation120_spill] sm:$0xff]  ;;  %v15403_v9 = vld [vmem:[#allocation38_spill] sm:$0xff] }
 0x266   :  { %v9088_v42 = vadd.f32 %v9056_v61, %v8865_v10  ;;  %v9091_v4 = vadd.f32 %v9060_v13, %v2286_v47  ;;  %v9095_v38 = vadd.f32 %v9036_v35, %v15400_v24  ;;  %v9099_v20 = vadd.f32 %v9039_v30, %v15401_v6  ;;  %v15402_v5 = vld [vmem:[#allocation37_spill] sm:$0xff]  ;;  %v15410_v8 = vld [vmem:[#allocation43_spill] sm:$0xff] }
 0x267   :  { %v9103_v22 = vadd.f32 %v9042_v28, %v15402_v5  ;;  %v9107_v56 = vadd.f32 %v9045_v60, %v15403_v9  ;;  %v9111_v10 = vadd.f32 %v9048_v23, %v8641_v43  ;;  %v9115_v47 = vadd.f32 %v9052_v51, %v8695_v55  ;;  %v15404_v5 = vld [vmem:[#allocation102_spill] sm:$0xff] }
 0x268   :  { %v9119_v24 = vadd.f32 %v9056_v61, %v8868_v0  ;;  %v9123_v6 = vadd.f32 %v9060_v13, %v8947_v18  ;;  %v9127_v9 = vadd.f32 %v9036_v35, %v15404_v5  ;;  %v9131_v43 = vadd.f32 %v9039_v30, %v15405_v15 }
 0x269   :  { %v9135_v55 = vadd.f32 %v9042_v28, %v15406_v14  ;;  %v9139_v0 = vadd.f32 %v9045_v60, %v15407_v50  ;;  %v9143_v18 = vadd.f32 %v9048_v23, %v8644_v19  ;;  %v9147_v5 = vadd.f32 %v9052_v51, %v8698_v16 }
 0x26a   :  { %v9151_v15 = vadd.f32 %v9056_v61, %v8871_v21  ;;  %v9155_v14 = vadd.f32 %v9060_v13, %v8950_v25  ;;  %v9159_v50 = vadd.f32 %v9036_v35, %v15408_v26  ;;  %v9163_v19 = vadd.f32 %v9039_v30, %v15409_v52 }
 0x26b   :  { %v9167_v16 = vadd.f32 %v9042_v28, %v15410_v8  ;;  %v9171_v21 = vadd.f32 %v9045_v60, %v15411_v54  ;;  %v9175_v25 = vadd.f32 %v9048_v23, %v8647_v33  ;;  %v9179_v26 = vadd.f32 %v9052_v51, %v8701_v32 }
 0x26c   :  { %v9183_v52 = vadd.f32 %v9056_v61, %v8874_v29  ;;  %v9187_v8 = vadd.f32 %v9060_v13, %v8957_v48  ;;  %v9191_v54 = vadd.f32 %v9036_v35, %v15412_v11  ;;  %v9195_v33 = vadd.f32 %v9039_v30, %v15413_v41 }
 0x26d   :  { %v9199_v32 = vadd.f32 %v9042_v28, %v15414_v7  ;;  %v9203_v29 = vadd.f32 %v9045_v60, %v15416_v57  ;;  %v9207_v48 = vadd.f32 %v9048_v23, %v8650_v17  ;;  %v9211_v11 = vadd.f32 %v9052_v51, %v8704_v27 }
 0x26e   :  { %v9215_v41 = vadd.f32 %v9056_v61, %v8881_v12  ;;  %v9219_v7 = vadd.f32 %v9060_v13, %v8960_v58  ;;  %vm2762_vm1 = vcmp.ge.f32.partialorder %v9064_v34, 0.0  ;;  %vm2763_vm2 = vcmp.ge.f32.partialorder %v9068_v49, 0.0 }
 0x26f   :  { %15415 = vst [vmem:[#allocation100_spill] sm:$0xff] %v9199_v32  ;;  %15417 = vst [vmem:[#allocation119_spill] sm:$0xff] %v9203_v29  ;;  %v15422_v32 = vld [vmem:[#allocation106_spill] sm:$0xff]  ;;  %v15423_v29 = vld [vmem:[#allocation125_spill] sm:$0xff]  ;;  %vm2764_vm3 = vcmp.ge.f32.partialorder %v9072_v62, 0.0  ;;  %vm2765_vm4 = vcmp.ge.f32.partialorder %v9076_v44, 0.0 }
 0x270   :  { %15418 = vst [vmem:[#allocation34_spill] sm:$0xff] %v9207_v48  ;;  %15419 = vst [vmem:[#allocation35_spill] sm:$0xff] %v9211_v11  ;;  %v9223_v57 = vadd.f32 %v9036_v35, %v15422_v32  ;;  %v9227_v17 = vadd.f32 %v9039_v30, %v15423_v29  ;;  %v15425_v48 = vld [vmem:[#allocation51_spill] sm:$0xff]  ;;  %v15427_v11 = vld [vmem:[#allocation53_spill] sm:$0xff]  ;;  %v9247_v29 = vadd.f32 %v9056_v61, %v8884_v45  ;;  %vm2766_vm5 = vcmp.ge.f32.partialorder %v9080_v31, 0.0 }
 0x271   :  { %15420 = vst [vmem:[#allocation101_spill] sm:$0xff] %v9215_v41  ;;  %15421 = vst [vmem:[#allocation120_spill] sm:$0xff] %v9219_v7  ;;  %v9231_v27 = vadd.f32 %v9042_v28, %v15425_v48  ;;  %v9235_v12 = vadd.f32 %v9045_v60, %v15427_v11  ;;  %v15429_v41 = vld [vmem:[#allocation36_spill] sm:$0xff]  ;;  %v15431_v7 = vld [vmem:[#allocation139_spill] sm:$0xff]  ;;  %v9251_v48 = vadd.f32 %v9060_v13, %v8963_v40  ;;  %vm2767_vm6 = vcmp.ge.f32.partialorder %v9084_v3, 0.0 }
 0x272   :  { %15424 = vst [vmem:[#allocation37_spill] sm:$0xff] %v9227_v17  ;;  %v9239_v58 = vadd.f32 %v9048_v23, %v15429_v41  ;;  %v9243_v32 = vadd.f32 %v9052_v51, %v15431_v7  ;;  %15433 = vst [vmem:[#allocation42_spill] sm:$0xff] %v9247_v29  ;;  %v15443_v29 = vld [vmem:[#allocation62_spill] sm:$0xff]  ;;  %vm2768_vm7 = vcmp.ge.f32.partialorder %v9088_v42, 0.0  ;;  %vm2769_vm8 = vcmp.ge.f32.partialorder %v9091_v4, 0.0 }
 0x273   :  { %15426 = vst [vmem:[#allocation38_spill] sm:$0xff] %v9231_v27  ;;  %15428 = vst [vmem:[#allocation102_spill] sm:$0xff] %v9235_v12  ;;  %v15435_v27 = vld [vmem:[#allocation107_spill] sm:$0xff]  ;;  %v15437_v12 = vld [vmem:[#allocation126_spill] sm:$0xff]  ;;  %v9271_v40 = vadd.f32 %v9048_v23, %v15443_v29  ;;  %vm2775_vm9 = vcmp.ge.f32.partialorder %v9095_v38, 0.0  ;;  %vm2776_vm10 = vcmp.ge.f32.partialorder %v9099_v20, 0.0 }
 0x274   :  { %15430 = vst [vmem:[#allocation121_spill] sm:$0xff] %v9239_v58  ;;  %15432 = vst [vmem:[#allocation39_spill] sm:$0xff] %v9243_v32  ;;  %v9255_v11 = vadd.f32 %v9036_v35, %v15435_v27  ;;  %v9259_v41 = vadd.f32 %v9039_v30, %v15437_v12  ;;  %v15439_v58 = vld [vmem:[#allocation54_spill] sm:$0xff]  ;;  %v15441_v32 = vld [vmem:[#allocation57_spill] sm:$0xff]  ;;  %vm2777_vm11 = vcmp.ge.f32.partialorder %v9103_v22, 0.0  ;;  %vm2778_vm12 = vcmp.ge.f32.partialorder %v9107_v56, 0.0 }
 0x275   :  { %15434 = vst [vmem:[#allocation103_spill] sm:$0xff] %v9251_v48  ;;  %v9263_v7 = vadd.f32 %v9042_v28, %v15439_v58  ;;  %v9267_v45 = vadd.f32 %v9045_v60, %v15441_v32  ;;  %15444 = vst [vmem:[#allocation124_spill] sm:$0xff] %v9271_v40  ;;  %v15445_v48 = vld [vmem:[#allocation64_spill] sm:$0xff]  ;;  %v9283_v58 = vadd.f32 %v9060_v13, %v8966_v39  ;;  %v15454_v40 = vld [vmem:[#allocation58_spill] sm:$0xff] }
 0x276   :  { %15436 = vst [vmem:[#allocation122_spill] sm:$0xff] %v9255_v11  ;;  %15438 = vst [vmem:[#allocation43_spill] sm:$0xff] %v9259_v41  ;;  %v9275_v27 = vadd.f32 %v9052_v51, %v15445_v48  ;;  %v15447_v11 = vld [vmem:[#allocation97_spill] sm:$0xff]  ;;  %v9295_v48 = vadd.f32 %v9042_v28, %v15454_v40  ;;  %v15459_v39 = vld [vmem:[#allocation66_spill] sm:$0xff]  ;;  %v9317_v40 = vadd.f32 %v9060_v13, %v8970_v2 }
 0x277   :  { %15440 = vst [vmem:[#allocation44_spill] sm:$0xff] %v9263_v7  ;;  %15442 = vst [vmem:[#allocation105_spill] sm:$0xff] %v9267_v45  ;;  %v9279_v12 = vadd.f32 %v9056_v61, %v15447_v11  ;;  %v15450_v7 = vld [vmem:[#allocation108_spill] sm:$0xff]  ;;  %v15452_v45 = vld [vmem:[#allocation127_spill] sm:$0xff] }
 0x278   :  { %15446 = vst [vmem:[#allocation45_spill] sm:$0xff] %v9275_v27  ;;  %15449 = vst [vmem:[#allocation106_spill] sm:$0xff] %v9283_v58  ;;  %v9287_v32 = vadd.f32 %v9036_v35, %v15450_v7  ;;  %v9291_v29 = vadd.f32 %v9039_v30, %v15452_v45  ;;  %v15456_v27 = vld [vmem:[#allocation60_spill] sm:$0xff]  ;;  %v9305_v58 = vadd.f32 %v9048_v23, %v15459_v39 }
 0x279   :  { %15448 = vst [vmem:[#allocation50_spill] sm:$0xff] %v9279_v12  ;;  %15455 = vst [vmem:[#allocation53_spill] sm:$0xff] %v9295_v48  ;;  %v9299_v11 = vadd.f32 %v9045_v60, %v15456_v27  ;;  %v9301_v12 = vpop.f32.mrb[86].mxu0  ;;  %v15461_v7 = vld [vmem:[#allocation68_spill] sm:$0xff]  ;;  %v15466_v27 = vld [vmem:[#allocation111_spill] sm:$0xff] }
 0x27a   :  { %15451 = vst [vmem:[#allocation125_spill] sm:$0xff] %v9287_v32  ;;  %15453 = vst [vmem:[#allocation51_spill] sm:$0xff] %v9291_v29  ;;  %v9309_v32 = vadd.f32 %v9052_v51, %v15461_v7  ;;  %v15463_v45 = vld [vmem:[#allocation104_spill] sm:$0xff] }
 0x27b   :  { %15457 = vst [vmem:[#allocation36_spill] sm:$0xff] %v9299_v11  ;;  %15458 = vst [vmem:[#allocation139_spill] sm:$0xff] %v9301_v12  ;;  %v9313_v29 = vadd.f32 %v9056_v61, %v15463_v45  ;;  %v9321_v11 = vadd.f32 %v9036_v35, %v15466_v27  ;;  %v15468_v12 = vld [vmem:[#allocation49_spill] sm:$0xff] }
 0x27c   :  { %15460 = vst [vmem:[#allocation107_spill] sm:$0xff] %v9305_v58  ;;  %15462 = vst [vmem:[#allocation126_spill] sm:$0xff] %v9309_v32  ;;  %v9325_v39 = vadd.f32 %v9039_v30, %v15468_v12  ;;  %v15470_v58 = vld [vmem:[#allocation61_spill] sm:$0xff]  ;;  %v15472_v32 = vld [vmem:[#allocation63_spill] sm:$0xff] }
 0x27d   :  { %15464 = vst [vmem:[#allocation54_spill] sm:$0xff] %v9313_v29  ;;  %15465 = vst [vmem:[#allocation57_spill] sm:$0xff] %v9317_v40  ;;  %v9329_v7 = vadd.f32 %v9042_v28, %v15470_v58  ;;  %v9333_v45 = vadd.f32 %v9045_v60, %v15472_v32  ;;  %v15474_v29 = vld [vmem:[#allocation70_spill] sm:$0xff]  ;;  %v15476_v40 = vld [vmem:[#allocation72_spill] sm:$0xff]  ;;  %v9349_v58 = vadd.f32 %v9060_v13, %v8973_v36 }
 0x27e   :  { %15467 = vst [vmem:[#allocation62_spill] sm:$0xff] %v9321_v11  ;;  %15469 = vst [vmem:[#allocation64_spill] sm:$0xff] %v9325_v39  ;;  %v9337_v2 = vadd.f32 %v9048_v23, %v15474_v29  ;;  %v9341_v27 = vadd.f32 %v9052_v51, %v15476_v40  ;;  %v15478_v11 = vld [vmem:[#allocation136_spill] sm:$0xff]  ;;  %v15490_v36 = vld [vmem:[#allocation73_spill] sm:$0xff] }
 0x27f   :  { %15471 = vst [vmem:[#allocation97_spill] sm:$0xff] %v9329_v7  ;;  %15473 = vst [vmem:[#allocation108_spill] sm:$0xff] %v9333_v45  ;;  %v9345_v12 = vadd.f32 %v9056_v61, %v15478_v11  ;;  %v15481_v7 = vld [vmem:[#allocation112_spill] sm:$0xff] }
 0x280   :  { %15475 = vst [vmem:[#allocation127_spill] sm:$0xff] %v9337_v2  ;;  %15477 = vst [vmem:[#allocation58_spill] sm:$0xff] %v9341_v27  ;;  %v9353_v32 = vadd.f32 %v9036_v35, %v15481_v7  ;;  %v15483_v45 = vld [vmem:[#allocation52_spill] sm:$0xff]  ;;  %v15485_v2 = vld [vmem:[#allocation65_spill] sm:$0xff] }
 0x281   :  { %15479 = vst [vmem:[#allocation60_spill] sm:$0xff] %v9345_v12  ;;  %15480 = vst [vmem:[#allocation66_spill] sm:$0xff] %v9349_v58  ;;  %v9357_v29 = vadd.f32 %v9039_v30, %v15483_v45  ;;  %v9361_v40 = vadd.f32 %v9042_v28, %v15485_v2  ;;  %v15487_v27 = vld [vmem:[#allocation67_spill] sm:$0xff]  ;;  %v9367_v12 = vpop.f32.mrb[86].mxu1  ;;  %v9371_v58 = vadd.f32 %v9048_v23, %v15490_v36  ;;  %v15494_v45 = vld [vmem:[#allocation140_spill] sm:$0xff] }
 0x282   :  { %15482 = vst [vmem:[#allocation68_spill] sm:$0xff] %v9353_v32  ;;  %v9365_v11 = vadd.f32 %v9045_v60, %v15487_v27  ;;  %15489 = vst [vmem:[#allocation61_spill] sm:$0xff] %v9367_v12  ;;  %v15492_v7 = vld [vmem:[#allocation75_spill] sm:$0xff]  ;;  %v9383_v2 = vadd.f32 %v9060_v13, %v8976_v53  ;;  %v9385_v27 = vpop.f32.mrb[87].mxu0  ;;  %v15500_v36 = vld [vmem:[#allocation56_spill] sm:$0xff] }
 0x283   :  { %15484 = vst [vmem:[#allocation104_spill] sm:$0xff] %v9357_v29  ;;  %15486 = vst [vmem:[#allocation111_spill] sm:$0xff] %v9361_v40  ;;  %v9375_v32 = vadd.f32 %v9052_v51, %v15492_v7  ;;  %v9379_v29 = vadd.f32 %v9056_v61, %v15494_v45  ;;  %v15502_v7 = vld [vmem:[#allocation69_spill] sm:$0xff]  ;;  %v15504_v45 = vld [vmem:[#allocation71_spill] sm:$0xff] }
 0x284   :  { %15488 = vst [vmem:[#allocation49_spill] sm:$0xff] %v9365_v11  ;;  %15491 = vst [vmem:[#allocation63_spill] sm:$0xff] %v9371_v58  ;;  %v15498_v11 = vld [vmem:[#allocation113_spill] sm:$0xff]  ;;  %v9393_v58 = vadd.f32 %v9039_v30, %v15500_v36  ;;  %v15506_v53 = vld [vmem:[#allocation76_spill] sm:$0xff] }
 0x285   :  { %15493 = vst [vmem:[#allocation70_spill] sm:$0xff] %v9375_v32  ;;  %15495 = vst [vmem:[#allocation72_spill] sm:$0xff] %v9379_v29  ;;  %v9389_v12 = vadd.f32 %v9036_v35, %v15498_v11  ;;  %v9397_v32 = vadd.f32 %v9042_v28, %v15502_v7  ;;  %v9401_v29 = vadd.f32 %v9045_v60, %v15504_v45 }
 0x286   :  { %15496 = vst [vmem:[#allocation136_spill] sm:$0xff] %v9383_v2  ;;  %15497 = vst [vmem:[#allocation112_spill] sm:$0xff] %v9385_v27  ;;  %v9405_v2 = vadd.f32 %v9048_v23, %v15506_v53  ;;  %v15508_v27 = vld [vmem:[#allocation78_spill] sm:$0xff] }
 0x287   :  { %15499 = vst [vmem:[#allocation52_spill] sm:$0xff] %v9389_v12  ;;  %15501 = vst [vmem:[#allocation65_spill] sm:$0xff] %v9393_v58  ;;  %v9409_v11 = vadd.f32 %v9052_v51, %v15508_v27  ;;  %v15510_v12 = vld [vmem:[#allocation143_spill] sm:$0xff] }
 0x288   :  { %15503 = vst [vmem:[#allocation67_spill] sm:$0xff] %v9397_v32  ;;  %15505 = vst [vmem:[#allocation73_spill] sm:$0xff] %v9401_v29  ;;  %v9413_v36 = vadd.f32 %v9056_v61, %v15510_v12  ;;  %v15512_v58 = vld [vmem:[#allocation99_spill] sm:$0xff]  ;;  %v15514_v32 = vld [vmem:[#allocation114_spill] sm:$0xff] }
 0x289   :  { %15507 = vst [vmem:[#allocation75_spill] sm:$0xff] %v9405_v2  ;;  %15509 = vst [vmem:[#allocation140_spill] sm:$0xff] %v9409_v11  ;;  %v9417_v7 = vadd.f32 %v9060_v13, %v15512_v58  ;;  %v9421_v45 = vadd.f32 %v9036_v35, %v15514_v32  ;;  %v15516_v29 = vld [vmem:[#allocation59_spill] sm:$0xff]  ;;  %v15518_v2 = vld [vmem:[#allocation154_spill] sm:$0xff] }
 0x28a   :  { %15511 = vst [vmem:[#allocation113_spill] sm:$0xff] %v9413_v36  ;;  %v9425_v53 = vadd.f32 %v9039_v30, %v15516_v29  ;;  %v9429_v27 = vadd.f32 %v9042_v28, %v15518_v2  ;;  %v15520_v11 = vld [vmem:[#allocation74_spill] sm:$0xff]  ;;  %v15522_v36 = vld [vmem:[#allocation80_spill] sm:$0xff]  ;;  %v9449_v2 = vadd.f32 %v9060_v13, %v8982_v46 }
 0x28b   :  { %15513 = vst [vmem:[#allocation56_spill] sm:$0xff] %v9417_v7  ;;  %15515 = vst [vmem:[#allocation69_spill] sm:$0xff] %v9421_v45  ;;  %v9433_v12 = vadd.f32 %v9045_v60, %v15520_v11  ;;  %v9437_v58 = vadd.f32 %v9048_v23, %v15522_v36  ;;  %v15524_v7 = vld [vmem:[#allocation82_spill] sm:$0xff]  ;;  %v15530_v11 = vld [vmem:[#allocation115_spill] sm:$0xff] }
 0x28c   :  { %15517 = vst [vmem:[#allocation71_spill] sm:$0xff] %v9425_v53  ;;  %15519 = vst [vmem:[#allocation76_spill] sm:$0xff] %v9429_v27  ;;  %v9441_v32 = vadd.f32 %v9052_v51, %v15524_v7  ;;  %v15526_v45 = vld [vmem:[#allocation174_spill] sm:$0xff]  ;;  %v9451_v27 = vpop.f32.mrb[87].mxu1  ;;  %v15534_v7 = vld [vmem:[#allocation156_spill] sm:$0xff] }
 0x28d   :  { %15521 = vst [vmem:[#allocation78_spill] sm:$0xff] %v9433_v12  ;;  %15523 = vst [vmem:[#allocation143_spill] sm:$0xff] %v9437_v58  ;;  %v9445_v29 = vadd.f32 %v9056_v61, %v15526_v45  ;;  %v9455_v12 = vadd.f32 %v9036_v35, %v15530_v11  ;;  %v15532_v36 = vld [vmem:[#allocation30_spill] sm:$0xff]  ;;  %v15536_v45 = vld [vmem:[#allocation77_spill] sm:$0xff] }
 0x28e   :  { %15525 = vst [vmem:[#allocation99_spill] sm:$0xff] %v9441_v32  ;;  %15528 = vst [vmem:[#allocation59_spill] sm:$0xff] %v9449_v2  ;;  %v9459_v58 = vadd.f32 %v9039_v30, %v15532_v36  ;;  %v9463_v32 = vadd.f32 %v9042_v28, %v15534_v7  ;;  %v15538_v46 = vld [vmem:[#allocation84_spill] sm:$0xff] }
 0x28f   :  { %15527 = vst [vmem:[#allocation114_spill] sm:$0xff] %v9445_v29  ;;  %15529 = vst [vmem:[#allocation154_spill] sm:$0xff] %v9451_v27  ;;  %v9467_v29 = vadd.f32 %v9045_v60, %v15536_v45  ;;  %v9471_v2 = vadd.f32 %v9048_v23, %v15538_v46  ;;  %v15540_v27 = vld [vmem:[#allocation86_spill] sm:$0xff] }
 0x290   :  { %15531 = vst [vmem:[#allocation74_spill] sm:$0xff] %v9455_v12  ;;  %15533 = vst [vmem:[#allocation80_spill] sm:$0xff] %v9459_v58  ;;  %v9475_v11 = vadd.f32 %v9052_v51, %v15540_v27  ;;  %v15542_v12 = vld [vmem:[#allocation177_spill] sm:$0xff]  ;;  %v15544_v58 = vld [vmem:[#allocation110_spill] sm:$0xff] }
 0x291   :  { %15535 = vst [vmem:[#allocation82_spill] sm:$0xff] %v9463_v32  ;;  %15537 = vst [vmem:[#allocation174_spill] sm:$0xff] %v9467_v29  ;;  %v9479_v36 = vadd.f32 %v9056_v61, %v15542_v12  ;;  %v9483_v7 = vadd.f32 %v9060_v13, %v15544_v58  ;;  %v15546_v32 = vld [vmem:[#allocation116_spill] sm:$0xff]  ;;  %v15548_v29 = vld [vmem:[#allocation31_spill] sm:$0xff] }
 0x292   :  { %15539 = vst [vmem:[#allocation115_spill] sm:$0xff] %v9471_v2  ;;  %15541 = vst [vmem:[#allocation30_spill] sm:$0xff] %v9475_v11  ;;  %v9487_v45 = vadd.f32 %v9036_v35, %v15546_v32  ;;  %v9491_v46 = vadd.f32 %v9039_v30, %v15548_v29  ;;  %v15550_v2 = vld [vmem:[#allocation79_spill] sm:$0xff]  ;;  %v15552_v11 = vld [vmem:[#allocation81_spill] sm:$0xff] }
 0x293   :  { %15543 = vst [vmem:[#allocation156_spill] sm:$0xff] %v9479_v36  ;;  %15545 = vst [vmem:[#allocation77_spill] sm:$0xff] %v9483_v7  ;;  %v9495_v27 = vadd.f32 %v9042_v28, %v15550_v2  ;;  %v9499_v12 = vadd.f32 %v9045_v60, %v15552_v11  ;;  %v15554_v36 = vld [vmem:[#allocation88_spill] sm:$0xff]  ;;  %v15556_v7 = vld [vmem:[#allocation90_spill] sm:$0xff]  ;;  %v9515_v2 = vadd.f32 %v9060_v13, %v8988_v1  ;;  %v9535_v1 = vpop.f32.mrb[88].mxu0 }
 0x294   :  { %15547 = vst [vmem:[#allocation84_spill] sm:$0xff] %v9487_v45  ;;  %15549 = vst [vmem:[#allocation86_spill] sm:$0xff] %v9491_v46  ;;  %v9503_v58 = vadd.f32 %v9048_v23, %v15554_v36  ;;  %v9507_v32 = vadd.f32 %v9052_v51, %v15556_v7  ;;  %v15558_v45 = vld [vmem:[#allocation178_spill] sm:$0xff] }
 0x295   :  { %15551 = vst [vmem:[#allocation177_spill] sm:$0xff] %v9495_v27  ;;  %15553 = vst [vmem:[#allocation110_spill] sm:$0xff] %v9499_v12  ;;  %v9511_v29 = vadd.f32 %v9056_v61, %v15558_v45  ;;  %v15561_v27 = vld [vmem:[#allocation117_spill] sm:$0xff]  ;;  %v15563_v12 = vld [vmem:[#allocation32_spill] sm:$0xff] }
 0x296   :  { %15555 = vst [vmem:[#allocation116_spill] sm:$0xff] %v9503_v58  ;;  %15557 = vst [vmem:[#allocation31_spill] sm:$0xff] %v9507_v32  ;;  %v9519_v11 = vadd.f32 %v9036_v35, %v15561_v27  ;;  %v9523_v36 = vadd.f32 %v9039_v30, %v15563_v12  ;;  %v15565_v58 = vld [vmem:[#allocation83_spill] sm:$0xff]  ;;  %v15567_v32 = vld [vmem:[#allocation85_spill] sm:$0xff] }
 0x297   :  { %15559 = vst [vmem:[#allocation79_spill] sm:$0xff] %v9511_v29  ;;  %15560 = vst [vmem:[#allocation81_spill] sm:$0xff] %v9515_v2  ;;  %v9527_v7 = vadd.f32 %v9042_v28, %v15565_v58  ;;  %v9531_v45 = vadd.f32 %v9045_v60, %v15567_v32  ;;  %v9533_v29 = vpop.f32.mrb[88].mxu1  ;;  %v15571_v2 = vld [vmem:[#allocation130_spill] sm:$0xff]  ;;  %v9551_v32 = vadd.f32 %v9060_v13, %v8992_v63 }
 0x298   :  { %15562 = vst [vmem:[#allocation88_spill] sm:$0xff] %v9519_v11  ;;  %15564 = vst [vmem:[#allocation90_spill] sm:$0xff] %v9523_v36  ;;  %v9539_v27 = vadd.f32 %v9048_v23, %v15571_v2  ;;  %v15573_v11 = vld [vmem:[#allocation92_spill] sm:$0xff]  ;;  %v15575_v36 = vld [vmem:[#allocation179_spill] sm:$0xff] }
 0x299   :  { %15566 = vst [vmem:[#allocation178_spill] sm:$0xff] %v9527_v7  ;;  %15568 = vst [vmem:[#allocation117_spill] sm:$0xff] %v9531_v45  ;;  %v9543_v12 = vadd.f32 %v9052_v51, %v15573_v11  ;;  %v9547_v58 = vadd.f32 %v9056_v61, %v15575_v36  ;;  %v9553_v45 = vpop.f32.mrb[89].mxu1 }
 0x29a   :  { %15569 = vst [vmem:[#allocation32_spill] sm:$0xff] %v9533_v29  ;;  %15570 = vst [vmem:[#allocation83_spill] sm:$0xff] %v9535_v1  ;;  %v9555_v29 = vpop.f32.mrb[89].mxu0  ;;  %v15580_v1 = vld [vmem:[#allocation118_spill] sm:$0xff] }
 0x29b   :  { %15572 = vst [vmem:[#allocation85_spill] sm:$0xff] %v9539_v27  ;;  %15574 = vst [vmem:[#allocation130_spill] sm:$0xff] %v9543_v12  ;;  %v9559_v2 = vadd.f32 %v9036_v35, %v15580_v1  ;;  %v15582_v27 = vld [vmem:[#allocation33_spill] sm:$0xff]  ;;  %v15584_v12 = vld [vmem:[#allocation87_spill] sm:$0xff] }
 0x29c   :  { %15576 = vst [vmem:[#allocation92_spill] sm:$0xff] %v9547_v58  ;;  %15577 = vst [vmem:[#allocation179_spill] sm:$0xff] %v9551_v32  ;;  %v9563_v11 = vadd.f32 %v9039_v30, %v15582_v27  ;;  %v9567_v36 = vadd.f32 %v9042_v28, %v15584_v12  ;;  %v15586_v58 = vld [vmem:[#allocation89_spill] sm:$0xff]  ;;  %v9573_v32 = vpop.f32.mrb[90].mxu1  ;;  %v15592_v1 = vld [vmem:[#allocation95_spill] sm:$0xff] }
 0x29d   :  { %15578 = vst [vmem:[#allocation186_spill] sm:$0xff] %v9553_v45  ;;  %15579 = vst [vmem:[#allocation187_spill] sm:$0xff] %v9555_v29  ;;  %v9571_v63 = vadd.f32 %v9045_v60, %v15586_v58  ;;  %v9575_v45 = vpop.f32.mrb[90].mxu0  ;;  %v15590_v29 = vld [vmem:[#allocation135_spill] sm:$0xff]  ;;  %v9583_v30 = vadd.f32 %v9052_v51, %v15592_v1  ;;  %v15594_v27 = vld [vmem:[#allocation180_spill] sm:$0xff]  ;;  %v9591_v60 = vadd.f32 %v9060_v13, %v8995_v59  ;;  %v9593_v12 = vpop.f32.mrb[91].mxu1 }
 0x29e   :  { %15581 = vst [vmem:[#allocation118_spill] sm:$0xff] %v9559_v2  ;;  %15583 = vst [vmem:[#allocation33_spill] sm:$0xff] %v9563_v11  ;;  %v9579_v35 = vadd.f32 %v9048_v23, %v15590_v29  ;;  %v9587_v28 = vadd.f32 %v9056_v61, %v15594_v27  ;;  %v9595_v58 = vpop.f32.mrb[91].mxu0 }
 0x29f   :  { %15585 = vst [vmem:[#allocation87_spill] sm:$0xff] %v9567_v36  ;;  %15587 = vst [vmem:[#allocation89_spill] sm:$0xff] %v9571_v63  ;;  %v9599_v23 = vpop.f32.mrb[92].mxu0 }
 0x2a0   :  { %15588 = vst [vmem:[#allocation188_spill] sm:$0xff] %v9573_v32  ;;  %15589 = vst [vmem:[#allocation189_spill] sm:$0xff] %v9575_v45  ;;  %v9597_v45 = vpop.f32.mrb[92].mxu1  ;;  %v9603_v51 = vpop.f32.mrb[93].mxu0 }
 0x2a1   :  { %15591 = vst [vmem:[#allocation135_spill] sm:$0xff] %v9579_v35  ;;  %15593 = vst [vmem:[#allocation95_spill] sm:$0xff] %v9583_v30  ;;  %v9601_v29 = vpop.f32.mrb[93].mxu1  ;;  %v9607_v61 = vpop.f32.mrb[94].mxu0 }
 0x2a2   :  { %15595 = vst [vmem:[#allocation180_spill] sm:$0xff] %v9587_v28  ;;  %15596 = vst [vmem:[#allocation190_spill] sm:$0xff] %v9591_v60  ;;  %v9605_v1 = vpop.f32.mrb[94].mxu1  ;;  %v9611_v59 = vpop.f32.mrb[95].mxu0 }
 0x2a3   :  { %15597 = vst [vmem:[#allocation191_spill] sm:$0xff] %v9593_v12  ;;  %15598 = vst [vmem:[#allocation192_spill] sm:$0xff] %v9595_v58  ;;  %v9609_v27 = vpop.f32.mrb[95].mxu1  ;;  %v9615_v12 = vpop.f32.mrb[96].mxu0 }
 0x2a4   :  { %15599 = vst [vmem:[#allocation193_spill] sm:$0xff] %v9597_v45  ;;  %15600 = vst [vmem:[#allocation194_spill] sm:$0xff] %v9599_v23  ;;  %v9613_v13 = vpop.f32.mrb[96].mxu1  ;;  %v9619_v45 = vpop.f32.mrb[97].mxu0 }
 0x2a5   :  { %15601 = vst [vmem:[#allocation195_spill] sm:$0xff] %v9601_v29  ;;  %15602 = vst [vmem:[#allocation196_spill] sm:$0xff] %v9603_v51  ;;  %v9617_v58 = vpop.f32.mrb[97].mxu1  ;;  %v9623_v29 = vpop.f32.mrb[98].mxu0 }
 0x2a6   :  { %15603 = vst [vmem:[#allocation197_spill] sm:$0xff] %v9605_v1  ;;  %15604 = vst [vmem:[#allocation198_spill] sm:$0xff] %v9607_v61  ;;  %v9621_v23 = vpop.f32.mrb[98].mxu1  ;;  %v9627_v1 = vpop.f32.mrb[99].mxu0 }
 0x2a7   :  { %15605 = vst [vmem:[#allocation199_spill] sm:$0xff] %v9609_v27  ;;  %15606 = vst [vmem:[#allocation200_spill] sm:$0xff] %v9611_v59  ;;  %v9625_v51 = vpop.f32.mrb[99].mxu1  ;;  %v9631_v27 = vpop.f32.mrb[100].mxu0 }
 0x2a8   :  { %15607 = vst [vmem:[#allocation201_spill] sm:$0xff] %v9613_v13  ;;  %15608 = vst [vmem:[#allocation202_spill] sm:$0xff] %v9615_v12  ;;  %v9629_v61 = vpop.f32.mrb[100].mxu1  ;;  %v9635_v12 = vpop.f32.mrb[101].mxu0 }
 0x2a9   :  { %15609 = vst [vmem:[#allocation203_spill] sm:$0xff] %v9617_v58  ;;  %15610 = vst [vmem:[#allocation204_spill] sm:$0xff] %v9619_v45  ;;  %v9633_v13 = vpop.f32.mrb[101].mxu1  ;;  %v9639_v45 = vpop.f32.mrb[102].mxu0 }
 0x2aa   :  { %15611 = vst [vmem:[#allocation205_spill] sm:$0xff] %v9621_v23  ;;  %15612 = vst [vmem:[#allocation206_spill] sm:$0xff] %v9623_v29  ;;  %v9637_v58 = vpop.f32.mrb[102].mxu1  ;;  %v9643_v29 = vstv %s162_s1 }
 0x2ab   :  { %15613 = vst [vmem:[#allocation207_spill] sm:$0xff] %v9625_v51  ;;  %15614 = vst [vmem:[#allocation208_spill] sm:$0xff] %v9627_v1  ;;  %v9641_v23 = vpop.f32.mrb[103].mxu1  ;;  %v9647_v1 = vmul.f32 %v8954_v37, %v8954_v37  ;;  %v9667_v37 = vmul.f32 %v9643_v29, %v9080_v31  ;;  %v9683_v51 = vmul.f32 %v9643_v29, %v9095_v38 }
 0x2ac   :  { %15615 = vst [vmem:[#allocation209_spill] sm:$0xff] %v9629_v61  ;;  %15616 = vst [vmem:[#allocation210_spill] sm:$0xff] %v9631_v27  ;;  %v9651_v27 = vmul.f32 %v9643_v29, %v9064_v34  ;;  %v9679_v61 = vmul.f32 %v9643_v29, %v9091_v4  ;;  %v9687_v59 = vmul.f32 %v9643_v29, %v9099_v20 }
 0x2ad   :  { %15617 = vst [vmem:[#allocation211_spill] sm:$0xff] %v9633_v13  ;;  %15618 = vst [vmem:[#allocation212_spill] sm:$0xff] %v9635_v12  ;;  %v9655_v13 = vmul.f32 %v9643_v29, %v9068_v49  ;;  %v9659_v12 = vmul.f32 %v9643_v29, %v9072_v62  ;;  %v9691_v32 = vmul.f32 %v9643_v29, %v9103_v22 }
 0x2ae   :  { %15619 = vst [vmem:[#allocation213_spill] sm:$0xff] %v9637_v58  ;;  %15620 = vst [vmem:[#allocation214_spill] sm:$0xff] %v9639_v45  ;;  %v9663_v45 = vmul.f32 %v9643_v29, %v9076_v44  ;;  %v9675_v58 = vmul.f32 %v9643_v29, %v9088_v42 }
 0x2af   :  { %15621 = vst [vmem:[#allocation215_spill] sm:$0xff] %v9641_v23  ;;  %15622 = vst [vmem:[#allocation216_spill] sm:$0xff] %v9643_v29  ;;  %v9671_v23 = vmul.f32 %v9643_v29, %v9084_v3 }
 0x2b0   :  { %15623 = vst [vmem:[#allocation217_spill] sm:$0xff] %v9647_v1  ;;  %15624 = vst [vmem:[#allocation218_spill] sm:$0xff] %v9651_v27  ;;  %v9695_v1 = vmul.f32 %v9643_v29, %v9107_v56 }
 0x2b1   :  { %15625 = vst [vmem:[#allocation219_spill] sm:$0xff] %v9655_v13  ;;  %15626 = vst [vmem:[#allocation220_spill] sm:$0xff] %v9659_v12 }
 0x2b2   :  { %15627 = vst [vmem:[#allocation221_spill] sm:$0xff] %v9663_v45  ;;  %15628 = vst [vmem:[#allocation222_spill] sm:$0xff] %v9667_v37 }
 0x2b3   :  { %15629 = vst [vmem:[#allocation223_spill] sm:$0xff] %v9671_v23  ;;  %15630 = vst [vmem:[#allocation224_spill] sm:$0xff] %v9675_v58  ;;  %v9697_v58 = vpop.f32.mrb[103].mxu0 }
 0x2b4   :  { %15631 = vst [vmem:[#allocation225_spill] sm:$0xff] %v9679_v61  ;;  %15632 = vst [vmem:[#allocation226_spill] sm:$0xff] %v9683_v51  ;;  %v9701_v61 = vmul.f32 %v9643_v29, %v9111_v10  ;;  %v9705_v51 = vmul.f32 %v9643_v29, %v9115_v47 }
 0x2b5   :  { %15633 = vst [vmem:[#allocation227_spill] sm:$0xff] %v9687_v59  ;;  %15634 = vst [vmem:[#allocation228_spill] sm:$0xff] %v9691_v32  ;;  %v9709_v59 = vmul.f32 %v9643_v29, %v9119_v24  ;;  %v9713_v32 = vmul.f32 %v9643_v29, %v9123_v6 }
 0x2b6   :  { %15635 = vst [vmem:[#allocation229_spill] sm:$0xff] %v9695_v1  ;;  %15636 = vst [vmem:[#allocation230_spill] sm:$0xff] %v9697_v58  ;;  %v9717_v1 = vmul.f32 %v9643_v29, %v9127_v9  ;;  %v9721_v58 = vmul.f32 %v9643_v29, %v9131_v43 }
 0x2b7   :  { %15637 = vst [vmem:[#allocation231_spill] sm:$0xff] %v9701_v61  ;;  %15638 = vst [vmem:[#allocation232_spill] sm:$0xff] %v9705_v51  ;;  %v9725_v61 = vmul.f32 %v9643_v29, %v9135_v55  ;;  %v9729_v51 = vmul.f32 %v9643_v29, %v9139_v0 }
 0x2b8   :  { %15639 = vst [vmem:[#allocation233_spill] sm:$0xff] %v9709_v59  ;;  %15640 = vst [vmem:[#allocation234_spill] sm:$0xff] %v9713_v32  ;;  %v9733_v59 = vmul.f32 %v9643_v29, %v9143_v18  ;;  %v9737_v32 = vmul.f32 %v9643_v29, %v9147_v5 }
 0x2b9   :  { %15641 = vst [vmem:[#allocation235_spill] sm:$0xff] %v9717_v1  ;;  %15642 = vst [vmem:[#allocation236_spill] sm:$0xff] %v9721_v58  ;;  %v9741_v1 = vmul.f32 %v9643_v29, %v9151_v15  ;;  %v9745_v58 = vmul.f32 %v9643_v29, %v9155_v14 }
 0x2ba   :  { %15643 = vst [vmem:[#allocation237_spill] sm:$0xff] %v9725_v61  ;;  %15644 = vst [vmem:[#allocation238_spill] sm:$0xff] %v9729_v51  ;;  %v9749_v61 = vmul.f32 %v9643_v29, %v9159_v50  ;;  %v9753_v51 = vmul.f32 %v9643_v29, %v9163_v19 }
 0x2bb   :  { %15645 = vst [vmem:[#allocation239_spill] sm:$0xff] %v9733_v59  ;;  %15646 = vst [vmem:[#allocation240_spill] sm:$0xff] %v9737_v32  ;;  %v9757_v59 = vmul.f32 %v9643_v29, %v9167_v16  ;;  %v9761_v32 = vmul.f32 %v9643_v29, %v9171_v21 }
 0x2bc   :  { %15647 = vst [vmem:[#allocation241_spill] sm:$0xff] %v9741_v1  ;;  %15648 = vst [vmem:[#allocation242_spill] sm:$0xff] %v9745_v58  ;;  %v9765_v1 = vmul.f32 %v9643_v29, %v9175_v25  ;;  %v9769_v58 = vmul.f32 %v9643_v29, %v9179_v26 }
 0x2bd   :  { %15649 = vst [vmem:[#allocation243_spill] sm:$0xff] %v9749_v61  ;;  %15650 = vst [vmem:[#allocation244_spill] sm:$0xff] %v9753_v51  ;;  %v9773_v61 = vmul.f32 %v9643_v29, %v9183_v52  ;;  %v9777_v51 = vmul.f32 %v9643_v29, %v9187_v8 }
 0x2be   :  { %15651 = vst [vmem:[#allocation245_spill] sm:$0xff] %v9757_v59  ;;  %15652 = vst [vmem:[#allocation246_spill] sm:$0xff] %v9761_v32  ;;  %v9781_v59 = vmul.f32 %v9643_v29, %v9191_v54  ;;  %v9785_v32 = vmul.f32 %v9643_v29, %v9195_v33 }
 0x2bf   :  { %15653 = vst [vmem:[#allocation247_spill] sm:$0xff] %v9765_v1  ;;  %15654 = vst [vmem:[#allocation248_spill] sm:$0xff] %v9769_v58  ;;  %v15659_v1 = vld [vmem:[#allocation100_spill] sm:$0xff]  ;;  %v15661_v58 = vld [vmem:[#allocation119_spill] sm:$0xff] }
 0x2c0   :  { %15655 = vst [vmem:[#allocation249_spill] sm:$0xff] %v9773_v61  ;;  %15656 = vst [vmem:[#allocation250_spill] sm:$0xff] %v9777_v51  ;;  %v9789_v23 = vmul.f32 %v9643_v29, %v15659_v1  ;;  %v9793_v37 = vmul.f32 %v9643_v29, %v15661_v58  ;;  %v15663_v61 = vld [vmem:[#allocation34_spill] sm:$0xff]  ;;  %v15665_v51 = vld [vmem:[#allocation35_spill] sm:$0xff] }
 0x2c1   :  { %15657 = vst [vmem:[#allocation251_spill] sm:$0xff] %v9781_v59  ;;  %15658 = vst [vmem:[#allocation252_spill] sm:$0xff] %v9785_v32  ;;  %v9797_v45 = vmul.f32 %v9643_v29, %v15663_v61  ;;  %v9801_v12 = vmul.f32 %v9643_v29, %v15665_v51  ;;  %v15667_v59 = vld [vmem:[#allocation101_spill] sm:$0xff]  ;;  %v15669_v32 = vld [vmem:[#allocation120_spill] sm:$0xff] }
 0x2c2   :  { %15660 = vst [vmem:[#allocation100_spill] sm:$0xff] %v9789_v23  ;;  %15662 = vst [vmem:[#allocation119_spill] sm:$0xff] %v9793_v37  ;;  %v9805_v13 = vmul.f32 %v9643_v29, %v15667_v59  ;;  %v9809_v27 = vmul.f32 %v9643_v29, %v15669_v32  ;;  %v9813_v23 = vmul.f32 %v9643_v29, %v9223_v57 }
 0x2c3   :  { %15664 = vst [vmem:[#allocation34_spill] sm:$0xff] %v9797_v45  ;;  %15666 = vst [vmem:[#allocation35_spill] sm:$0xff] %v9801_v12  ;;  %v9817_v37 = vmul.f32 %v9643_v29, %v9227_v17  ;;  %v15673_v45 = vld [vmem:[#allocation38_spill] sm:$0xff] }
 0x2c4   :  { %15668 = vst [vmem:[#allocation101_spill] sm:$0xff] %v9805_v13  ;;  %15670 = vst [vmem:[#allocation120_spill] sm:$0xff] %v9809_v27  ;;  %v9821_v60 = vmul.f32 %v9643_v29, %v15673_v45  ;;  %v15675_v12 = vld [vmem:[#allocation102_spill] sm:$0xff]  ;;  %v15677_v13 = vld [vmem:[#allocation121_spill] sm:$0xff] }
 0x2c5   :  { %15671 = vst [vmem:[#allocation253_spill] sm:$0xff] %v9813_v23  ;;  %15672 = vst [vmem:[#allocation254_spill] sm:$0xff] %v9817_v37  ;;  %v9825_v28 = vmul.f32 %v9643_v29, %v15675_v12  ;;  %v9829_v30 = vmul.f32 %v9643_v29, %v15677_v13  ;;  %v15679_v27 = vld [vmem:[#allocation39_spill] sm:$0xff]  ;;  %v15681_v23 = vld [vmem:[#allocation42_spill] sm:$0xff]  ;;  %vm2831_vm13 = vcmp.ge.f32.partialorder %v15677_v13, 0.0 }
 0x2c6   :  { %15674 = vst [vmem:[#allocation255_spill] sm:$0xff] %v9821_v60  ;;  %v9833_v35 = vmul.f32 %v9643_v29, %v15679_v27  ;;  %v9837_v17 = vmul.f32 %v9643_v29, %v15681_v23  ;;  %v15683_v37 = vld [vmem:[#allocation103_spill] sm:$0xff]  ;;  %v15685_v60 = vld [vmem:[#allocation122_spill] sm:$0xff] }
 0x2c7   :  { %15676 = vst [vmem:[#allocation256_spill] sm:$0xff] %v9825_v28  ;;  %15678 = vst [vmem:[#allocation121_spill] sm:$0xff] %v9829_v30  ;;  %v9841_v45 = vmul.f32 %v9643_v29, %v15683_v37  ;;  %v9845_v12 = vmul.f32 %v9643_v29, %v15685_v60  ;;  %v9849_v28 = vmul.f32 %v9643_v29, %v9259_v41  ;;  %v15688_v30 = vld [vmem:[#allocation44_spill] sm:$0xff] }
 0x2c8   :  { %15680 = vst [vmem:[#allocation257_spill] sm:$0xff] %v9833_v35  ;;  %15682 = vst [vmem:[#allocation258_spill] sm:$0xff] %v9837_v17  ;;  %v9853_v27 = vmul.f32 %v9643_v29, %v15688_v30  ;;  %v15690_v35 = vld [vmem:[#allocation105_spill] sm:$0xff]  ;;  %v15692_v17 = vld [vmem:[#allocation124_spill] sm:$0xff] }
 0x2c9   :  { %15684 = vst [vmem:[#allocation259_spill] sm:$0xff] %v9841_v45  ;;  %15686 = vst [vmem:[#allocation260_spill] sm:$0xff] %v9845_v12  ;;  %v9857_v23 = vmul.f32 %v9643_v29, %v15690_v35  ;;  %v9861_v37 = vmul.f32 %v9643_v29, %v15692_v17  ;;  %v15694_v45 = vld [vmem:[#allocation45_spill] sm:$0xff]  ;;  %v15696_v12 = vld [vmem:[#allocation50_spill] sm:$0xff] }
 0x2ca   :  { %15687 = vst [vmem:[#allocation261_spill] sm:$0xff] %v9849_v28  ;;  %15689 = vst [vmem:[#allocation262_spill] sm:$0xff] %v9853_v27  ;;  %v9865_v60 = vmul.f32 %v9643_v29, %v15694_v45  ;;  %v9869_v41 = vmul.f32 %v9643_v29, %v15696_v12  ;;  %v15698_v28 = vld [vmem:[#allocation106_spill] sm:$0xff]  ;;  %v15700_v27 = vld [vmem:[#allocation125_spill] sm:$0xff] }
 0x2cb   :  { %15691 = vst [vmem:[#allocation263_spill] sm:$0xff] %v9857_v23  ;;  %15693 = vst [vmem:[#allocation264_spill] sm:$0xff] %v9861_v37  ;;  %v9873_v30 = vmul.f32 %v9643_v29, %v15698_v28  ;;  %v9877_v35 = vmul.f32 %v9643_v29, %v15700_v27  ;;  %v15702_v23 = vld [vmem:[#allocation51_spill] sm:$0xff]  ;;  %v9885_v37 = vmul.f32 %v9643_v29, %v9295_v48 }
 0x2cc   :  { %15695 = vst [vmem:[#allocation45_spill] sm:$0xff] %v9865_v60  ;;  %15697 = vst [vmem:[#allocation265_spill] sm:$0xff] %v9869_v41  ;;  %v9881_v17 = vmul.f32 %v9643_v29, %v15702_v23  ;;  %v15705_v60 = vld [vmem:[#allocation36_spill] sm:$0xff]  ;;  %v15707_v41 = vld [vmem:[#allocation107_spill] sm:$0xff] }
 0x2cd   :  { %15699 = vst [vmem:[#allocation266_spill] sm:$0xff] %v9873_v30  ;;  %15701 = vst [vmem:[#allocation267_spill] sm:$0xff] %v9877_v35  ;;  %v9889_v12 = vmul.f32 %v9643_v29, %v15705_v60  ;;  %v9893_v28 = vmul.f32 %v9643_v29, %v15707_v41  ;;  %v15709_v30 = vld [vmem:[#allocation126_spill] sm:$0xff] }
 0x2ce   :  { %15703 = vst [vmem:[#allocation268_spill] sm:$0xff] %v9881_v17  ;;  %15704 = vst [vmem:[#allocation269_spill] sm:$0xff] %v9885_v37  ;;  %v9897_v27 = vmul.f32 %v9643_v29, %v15709_v30  ;;  %v15711_v35 = vld [vmem:[#allocation54_spill] sm:$0xff]  ;;  %v15713_v17 = vld [vmem:[#allocation57_spill] sm:$0xff] }
 0x2cf   :  { %15706 = vst [vmem:[#allocation270_spill] sm:$0xff] %v9889_v12  ;;  %15708 = vst [vmem:[#allocation107_spill] sm:$0xff] %v9893_v28  ;;  %v9901_v23 = vmul.f32 %v9643_v29, %v15711_v35  ;;  %v9905_v48 = vmul.f32 %v9643_v29, %v15713_v17  ;;  %v15715_v37 = vld [vmem:[#allocation62_spill] sm:$0xff]  ;;  %v9913_v12 = vmul.f32 %v9643_v29, %v9325_v39  ;;  %v15718_v28 = vld [vmem:[#allocation97_spill] sm:$0xff] }
 0x2d0   :  { %15710 = vst [vmem:[#allocation271_spill] sm:$0xff] %v9897_v27  ;;  %v9909_v60 = vmul.f32 %v9643_v29, %v15715_v37  ;;  %v9917_v30 = vmul.f32 %v9643_v29, %v15718_v28  ;;  %v15720_v27 = vld [vmem:[#allocation108_spill] sm:$0xff] }
 0x2d1   :  { %15712 = vst [vmem:[#allocation272_spill] sm:$0xff] %v9901_v23  ;;  %15714 = vst [vmem:[#allocation273_spill] sm:$0xff] %v9905_v48  ;;  %v9921_v35 = vmul.f32 %v9643_v29, %v15720_v27  ;;  %v15722_v23 = vld [vmem:[#allocation127_spill] sm:$0xff]  ;;  %v15724_v48 = vld [vmem:[#allocation58_spill] sm:$0xff] }
 0x2d2   :  { %15716 = vst [vmem:[#allocation274_spill] sm:$0xff] %v9909_v60  ;;  %15717 = vst [vmem:[#allocation275_spill] sm:$0xff] %v9913_v12  ;;  %v9925_v17 = vmul.f32 %v9643_v29, %v15722_v23  ;;  %v9929_v37 = vmul.f32 %v9643_v29, %v15724_v48  ;;  %v15726_v60 = vld [vmem:[#allocation60_spill] sm:$0xff]  ;;  %v15728_v12 = vld [vmem:[#allocation66_spill] sm:$0xff] }
 0x2d3   :  { %15719 = vst [vmem:[#allocation276_spill] sm:$0xff] %v9917_v30  ;;  %15721 = vst [vmem:[#allocation277_spill] sm:$0xff] %v9921_v35  ;;  %v9933_v39 = vmul.f32 %v9643_v29, %v15726_v60  ;;  %v9937_v28 = vmul.f32 %v9643_v29, %v15728_v12  ;;  %v15730_v30 = vld [vmem:[#allocation68_spill] sm:$0xff] }
 0x2d4   :  { %15723 = vst [vmem:[#allocation278_spill] sm:$0xff] %v9925_v17  ;;  %15725 = vst [vmem:[#allocation58_spill] sm:$0xff] %v9929_v37  ;;  %v9941_v27 = vmul.f32 %v9643_v29, %v15730_v30  ;;  %v15732_v35 = vld [vmem:[#allocation104_spill] sm:$0xff]  ;;  %v9949_v17 = vmul.f32 %v9643_v29, %v9361_v40  ;;  %v15735_v37 = vld [vmem:[#allocation49_spill] sm:$0xff] }
 0x2d5   :  { %15727 = vst [vmem:[#allocation279_spill] sm:$0xff] %v9933_v39  ;;  %15729 = vst [vmem:[#allocation280_spill] sm:$0xff] %v9937_v28  ;;  %v9945_v23 = vmul.f32 %v9643_v29, %v15732_v35  ;;  %v9953_v60 = vmul.f32 %v9643_v29, %v15735_v37  ;;  %v15737_v39 = vld [vmem:[#allocation63_spill] sm:$0xff]  ;;  %v15739_v28 = vld [vmem:[#allocation70_spill] sm:$0xff] }
 0x2d6   :  { %15731 = vst [vmem:[#allocation281_spill] sm:$0xff] %v9941_v27  ;;  %15734 = vst [vmem:[#allocation283_spill] sm:$0xff] %v9949_v17  ;;  %v9957_v12 = vmul.f32 %v9643_v29, %v15737_v39  ;;  %v9961_v30 = vmul.f32 %v9643_v29, %v15739_v28  ;;  %v15741_v27 = vld [vmem:[#allocation72_spill] sm:$0xff] }
 0x2d7   :  { %15733 = vst [vmem:[#allocation282_spill] sm:$0xff] %v9945_v23  ;;  %15736 = vst [vmem:[#allocation284_spill] sm:$0xff] %v9953_v60  ;;  %v9965_v35 = vmul.f32 %v9643_v29, %v15741_v27  ;;  %v15743_v23 = vld [vmem:[#allocation136_spill] sm:$0xff]  ;;  %v15747_v60 = vld [vmem:[#allocation65_spill] sm:$0xff] }
 0x2d8   :  { %15738 = vst [vmem:[#allocation285_spill] sm:$0xff] %v9957_v12  ;;  %15740 = vst [vmem:[#allocation286_spill] sm:$0xff] %v9961_v30  ;;  %v9969_v40 = vmul.f32 %v9643_v29, %v15743_v23  ;;  %v15745_v17 = vld [vmem:[#allocation52_spill] sm:$0xff]  ;;  %v9977_v39 = vmul.f32 %v9643_v29, %v15747_v60  ;;  %v15749_v12 = vld [vmem:[#allocation67_spill] sm:$0xff] }
 0x2d9   :  { %15742 = vst [vmem:[#allocation287_spill] sm:$0xff] %v9965_v35  ;;  %v9973_v37 = vmul.f32 %v9643_v29, %v15745_v17  ;;  %v9981_v28 = vmul.f32 %v9643_v29, %v15749_v12  ;;  %v15751_v30 = vld [vmem:[#allocation73_spill] sm:$0xff] }
 0x2da   :  { %15744 = vst [vmem:[#allocation136_spill] sm:$0xff] %v9969_v40  ;;  %15748 = vst [vmem:[#allocation65_spill] sm:$0xff] %v9977_v39  ;;  %v9985_v27 = vmul.f32 %v9643_v29, %v15751_v30  ;;  %v15755_v39 = vld [vmem:[#allocation140_spill] sm:$0xff] }
 0x2db   :  { %15746 = vst [vmem:[#allocation52_spill] sm:$0xff] %v9973_v37  ;;  %15750 = vst [vmem:[#allocation288_spill] sm:$0xff] %v9981_v28  ;;  %v15753_v37 = vld [vmem:[#allocation75_spill] sm:$0xff]  ;;  %v9997_v35 = vmul.f32 %v9643_v29, %v15755_v39  ;;  %v15757_v28 = vld [vmem:[#allocation113_spill] sm:$0xff] }
 0x2dc   :  { %15752 = vst [vmem:[#allocation289_spill] sm:$0xff] %v9985_v27  ;;  %v9993_v40 = vmul.f32 %v9643_v29, %v15753_v37  ;;  %v10001_v30 = vmul.f32 %v9643_v29, %v15757_v28  ;;  %v15759_v27 = vld [vmem:[#allocation56_spill] sm:$0xff] }
 0x2dd   :  { %15756 = vst [vmem:[#allocation290_spill] sm:$0xff] %v9997_v35  ;;  %v10005_v12 = vmul.f32 %v9643_v29, %v15759_v27  ;;  %v10017_v35 = vmul.f32 %v9643_v29, %v9425_v53 }
 0x2de   :  { %15754 = vst [vmem:[#allocation75_spill] sm:$0xff] %v9993_v40  ;;  %15758 = vst [vmem:[#allocation291_spill] sm:$0xff] %v10001_v30  ;;  %v15761_v40 = vld [vmem:[#allocation69_spill] sm:$0xff]  ;;  %v15764_v30 = vld [vmem:[#allocation76_spill] sm:$0xff] }
 0x2df   :  { %15760 = vst [vmem:[#allocation292_spill] sm:$0xff] %v10005_v12  ;;  %v10013_v39 = vmul.f32 %v9643_v29, %v15761_v40  ;;  %15763 = vst [vmem:[#allocation294_spill] sm:$0xff] %v10017_v35  ;;  %v10021_v27 = vmul.f32 %v9643_v29, %v15764_v30  ;;  %v15766_v12 = vld [vmem:[#allocation78_spill] sm:$0xff]  ;;  %v15770_v35 = vld [vmem:[#allocation99_spill] sm:$0xff] }
 0x2e0   :  { %v10025_v28 = vmul.f32 %v9643_v29, %v15766_v12  ;;  %v10037_v30 = vmul.f32 %v9643_v29, %v15770_v35 }
 0x2e1   :  { %15762 = vst [vmem:[#allocation293_spill] sm:$0xff] %v10013_v39  ;;  %15765 = vst [vmem:[#allocation295_spill] sm:$0xff] %v10021_v27  ;;  %v15768_v39 = vld [vmem:[#allocation143_spill] sm:$0xff]  ;;  %v15772_v27 = vld [vmem:[#allocation114_spill] sm:$0xff] }
 0x2e2   :  { %15767 = vst [vmem:[#allocation296_spill] sm:$0xff] %v10025_v28  ;;  %v10033_v53 = vmul.f32 %v9643_v29, %v15768_v39  ;;  %15771 = vst [vmem:[#allocation298_spill] sm:$0xff] %v10037_v30  ;;  %v10041_v12 = vmul.f32 %v9643_v29, %v15772_v27  ;;  %v15774_v28 = vld [vmem:[#allocation59_spill] sm:$0xff]  ;;  %v15778_v30 = vld [vmem:[#allocation80_spill] sm:$0xff] }
 0x2e3   :  { %v10045_v40 = vmul.f32 %v9643_v29, %v15774_v28  ;;  %v10057_v27 = vmul.f32 %v9643_v29, %v15778_v30 }
 0x2e4   :  { %15769 = vst [vmem:[#allocation297_spill] sm:$0xff] %v10033_v53  ;;  %15773 = vst [vmem:[#allocation299_spill] sm:$0xff] %v10041_v12  ;;  %v15776_v53 = vld [vmem:[#allocation74_spill] sm:$0xff] }
 0x2e5   :  { %15775 = vst [vmem:[#allocation300_spill] sm:$0xff] %v10045_v40  ;;  %v10053_v35 = vmul.f32 %v9643_v29, %v15776_v53  ;;  %15779 = vst [vmem:[#allocation302_spill] sm:$0xff] %v10057_v27  ;;  %v15780_v12 = vld [vmem:[#allocation82_spill] sm:$0xff] }
 0x2e6   :  { %v10061_v28 = vmul.f32 %v9643_v29, %v15780_v12  ;;  %v15782_v40 = vld [vmem:[#allocation174_spill] sm:$0xff] }
 0x2e7   :  { %15777 = vst [vmem:[#allocation301_spill] sm:$0xff] %v10053_v35  ;;  %v10065_v39 = vmul.f32 %v9643_v29, %v15782_v40  ;;  %v15784_v35 = vld [vmem:[#allocation115_spill] sm:$0xff]  ;;  %v15786_v27 = vld [vmem:[#allocation30_spill] sm:$0xff] }
 0x2e8   :  { %15781 = vst [vmem:[#allocation303_spill] sm:$0xff] %v10061_v28  ;;  %v10073_v30 = vmul.f32 %v9643_v29, %v15784_v35  ;;  %v10077_v12 = vmul.f32 %v9643_v29, %v15786_v27  ;;  %v15788_v28 = vld [vmem:[#allocation156_spill] sm:$0xff] }
 0x2e9   :  { %15783 = vst [vmem:[#allocation304_spill] sm:$0xff] %v10065_v39  ;;  %v10081_v40 = vmul.f32 %v9643_v29, %v15788_v28  ;;  %v15790_v39 = vld [vmem:[#allocation77_spill] sm:$0xff] }
 0x2ea   :  { %15785 = vst [vmem:[#allocation115_spill] sm:$0xff] %v10073_v30  ;;  %15787 = vst [vmem:[#allocation305_spill] sm:$0xff] %v10077_v12  ;;  %v10085_v53 = vmul.f32 %v9643_v29, %v15790_v39  ;;  %v15792_v30 = vld [vmem:[#allocation84_spill] sm:$0xff]  ;;  %v10097_v12 = vmul.f32 %v9643_v29, %v9491_v46 }
 0x2eb   :  { %15789 = vst [vmem:[#allocation306_spill] sm:$0xff] %v10081_v40  ;;  %v10093_v27 = vmul.f32 %v9643_v29, %v15792_v30  ;;  %v15795_v40 = vld [vmem:[#allocation177_spill] sm:$0xff] }
 0x2ec   :  { %15791 = vst [vmem:[#allocation307_spill] sm:$0xff] %v10085_v53  ;;  %15794 = vst [vmem:[#allocation309_spill] sm:$0xff] %v10097_v12  ;;  %v10101_v39 = vmul.f32 %v9643_v29, %v15795_v40  ;;  %v15797_v53 = vld [vmem:[#allocation110_spill] sm:$0xff]  ;;  %v15801_v12 = vld [vmem:[#allocation31_spill] sm:$0xff] }
 0x2ed   :  { %15793 = vst [vmem:[#allocation308_spill] sm:$0xff] %v10093_v27  ;;  %v10105_v28 = vmul.f32 %v9643_v29, %v15797_v53  ;;  %v15799_v27 = vld [vmem:[#allocation116_spill] sm:$0xff]  ;;  %v10117_v40 = vmul.f32 %v9643_v29, %v15801_v12 }
 0x2ee   :  { %15796 = vst [vmem:[#allocation310_spill] sm:$0xff] %v10101_v39  ;;  %v10113_v46 = vmul.f32 %v9643_v29, %v15799_v27  ;;  %v15803_v39 = vld [vmem:[#allocation79_spill] sm:$0xff]  ;;  %v15838_v27 = vld [vmem:[#allocation42_spill] sm:$0xff] }
 0x2ef   :  { %15798 = vst [vmem:[#allocation311_spill] sm:$0xff] %v10105_v28  ;;  %15802 = vst [vmem:[#allocation313_spill] sm:$0xff] %v10117_v40  ;;  %v10121_v53 = vmul.f32 %v9643_v29, %v15803_v39  ;;  %v15805_v28 = vld [vmem:[#allocation81_spill] sm:$0xff]  ;;  %v15809_v40 = vld [vmem:[#allocation90_spill] sm:$0xff] }
 0x2f0   :  { %15800 = vst [vmem:[#allocation312_spill] sm:$0xff] %v10113_v46  ;;  %v10125_v30 = vmul.f32 %v9643_v29, %v15805_v28  ;;  %v15807_v46 = vld [vmem:[#allocation88_spill] sm:$0xff]  ;;  %v10137_v39 = vmul.f32 %v9643_v29, %v15809_v40 }
 0x2f1   :  { %15804 = vst [vmem:[#allocation314_spill] sm:$0xff] %v10121_v53  ;;  %v10133_v12 = vmul.f32 %v9643_v29, %v15807_v46  ;;  %v10141_v53 = vmul.f32 %v9643_v29, %v9527_v7 }
 0x2f2   :  { %15806 = vst [vmem:[#allocation315_spill] sm:$0xff] %v10125_v30  ;;  %15810 = vst [vmem:[#allocation317_spill] sm:$0xff] %v10137_v39  ;;  %v15812_v30 = vld [vmem:[#allocation117_spill] sm:$0xff]  ;;  %v15816_v39 = vld [vmem:[#allocation130_spill] sm:$0xff] }
 0x2f3   :  { %15808 = vst [vmem:[#allocation316_spill] sm:$0xff] %v10133_v12  ;;  %15811 = vst [vmem:[#allocation318_spill] sm:$0xff] %v10141_v53  ;;  %v10145_v28 = vmul.f32 %v9643_v29, %v15812_v30  ;;  %v15814_v12 = vld [vmem:[#allocation85_spill] sm:$0xff]  ;;  %v10157_v7 = vmul.f32 %v9643_v29, %v15816_v39  ;;  %v15818_v53 = vld [vmem:[#allocation92_spill] sm:$0xff] }
 0x2f4   :  { %v10153_v40 = vmul.f32 %v9643_v29, %v15814_v12  ;;  %v10161_v30 = vmul.f32 %v9643_v29, %v15818_v53  ;;  %v15827_v53 = vld [vmem:[#allocation38_spill] sm:$0xff]  ;;  %v15837_v12 = vld [vmem:[#allocation39_spill] sm:$0xff] }
 0x2f5   :  { %15813 = vst [vmem:[#allocation319_spill] sm:$0xff] %v10145_v28  ;;  %15817 = vst [vmem:[#allocation321_spill] sm:$0xff] %v10157_v7  ;;  %v15820_v28 = vld [vmem:[#allocation179_spill] sm:$0xff]  ;;  %v10177_v7 = vmul.f32 %v9643_v29, %v9563_v11  ;;  %vm2832_vm14 = vcmp.ge.f32.partialorder %v15837_v12, 0.0 }
 0x2f6   :  { %15815 = vst [vmem:[#allocation320_spill] sm:$0xff] %v10153_v40  ;;  %15819 = vst [vmem:[#allocation322_spill] sm:$0xff] %v10161_v30  ;;  %v10165_v46 = vmul.f32 %v9643_v29, %v15820_v28  ;;  %v10173_v40 = vmul.f32 %v9643_v29, %v9559_v2  ;;  %v10181_v30 = vmul.f32 %v9643_v29, %v9567_v36  ;;  %v15826_v28 = vld [vmem:[#allocation37_spill] sm:$0xff]  ;;  %v15828_v2 = vld [vmem:[#allocation102_spill] sm:$0xff] }
 0x2f7   :  { %15823 = vst [vmem:[#allocation325_spill] sm:$0xff] %v10177_v7  ;;  %v15831_v7 = vld [vmem:[#allocation95_spill] sm:$0xff] }
 0x2f8   :  { %15821 = vst [vmem:[#allocation323_spill] sm:$0xff] %v10165_v46  ;;  %15822 = vst [vmem:[#allocation324_spill] sm:$0xff] %v10173_v40  ;;  %v10185_v46 = vmul.f32 %v9643_v29, %v9571_v63  ;;  %v15829_v40 = vld [vmem:[#allocation135_spill] sm:$0xff]  ;;  %v10197_v36 = vmul.f32 %v9643_v29, %v15831_v7 }
 0x2f9   :  { %15824 = vst [vmem:[#allocation326_spill] sm:$0xff] %v10181_v30  ;;  %v10193_v11 = vmul.f32 %v9643_v29, %v15829_v40  ;;  %v15833_v30 = vld [vmem:[#allocation180_spill] sm:$0xff]  ;;  %v15839_v40 = vld [vmem:[#allocation103_spill] sm:$0xff] }
 0x2fa   :  { %15825 = vst [vmem:[#allocation327_spill] sm:$0xff] %v10185_v46  ;;  %15832 = vst [vmem:[#allocation38_spill] sm:$0xff] %v10197_v36  ;;  %v10201_v63 = vmul.f32 %v9643_v29, %v15833_v30  ;;  %v15835_v46 = vld [vmem:[#allocation190_spill] sm:$0xff]  ;;  %v15842_v30 = vld [vmem:[#allocation219_spill] sm:$0xff] }
 0x2fb   :  { %15830 = vst [vmem:[#allocation37_spill] sm:$0xff] %v10193_v11  ;;  %v10205_v39 = vmul.f32 %v9643_v29, %v15835_v46  ;;  %v15840_v11 = vld [vmem:[#allocation218_spill] sm:$0xff]  ;;  %v10221_v29 = vsel %vm2763_vm2, %v9068_v49, %v15842_v30  ;;  %v15846_v46 = vld [vmem:[#allocation221_spill] sm:$0xff] }
 0x2fc   :  { %15834 = vst [vmem:[#allocation102_spill] sm:$0xff] %v10201_v63  ;;  %v10215_v36 = vsel %vm2762_vm1, %v9064_v34, %v15840_v11  ;;  %15843 = vst [vmem:[#allocation42_spill] sm:$0xff] %v10221_v29  ;;  %v10233_v7 = vsel %vm2765_vm4, %v9076_v44, %v15846_v46  ;;  %v15848_v34 = vld [vmem:[#allocation122_spill] sm:$0xff]  ;;  %v15849_v11 = vld [vmem:[#allocation43_spill] sm:$0xff]  ;;  %vm2845_vm4 = vcmp.ge.f32.partialorder %v15694_v45, 0.0 }
 0x2fd   :  { %15836 = vst [vmem:[#allocation328_spill] sm:$0xff] %v10205_v39  ;;  %15841 = vst [vmem:[#allocation39_spill] sm:$0xff] %v10215_v36  ;;  %v15844_v39 = vld [vmem:[#allocation220_spill] sm:$0xff]  ;;  %vm2840_vm1 = vcmp.ge.f32.partialorder %v15848_v34, 0.0  ;;  %vm2841_vm0 = vcmp.ge.f32.partialorder %v15849_v11, 0.0  ;;  %v15851_v49 = vld [vmem:[#allocation105_spill] sm:$0xff] }
 0x2fe   :  { %v10227_v63 = vsel %vm2764_vm3, %v9072_v62, %v15844_v39  ;;  %15847 = vst [vmem:[#allocation218_spill] sm:$0xff] %v10233_v7  ;;  %v15850_v36 = vld [vmem:[#allocation44_spill] sm:$0xff]  ;;  %vm2843_vm2 = vcmp.ge.f32.partialorder %v15851_v49, 0.0  ;;  %v15852_v30 = vld [vmem:[#allocation222_spill] sm:$0xff]  ;;  %v15854_v39 = vld [vmem:[#allocation223_spill] sm:$0xff] }
 0x2ff   :  { %15845 = vst [vmem:[#allocation103_spill] sm:$0xff] %v10227_v63  ;;  %vm2842_vm15 = vcmp.ge.f32.partialorder %v15850_v36, 0.0  ;;  %v10243_v62 = vsel %vm2766_vm5, %v9080_v31, %v15852_v30  ;;  %v10249_v44 = vsel %vm2767_vm6, %v9084_v3, %v15854_v39  ;;  %v15856_v46 = vld [vmem:[#allocation224_spill] sm:$0xff]  ;;  %v15858_v63 = vld [vmem:[#allocation225_spill] sm:$0xff]  ;;  %v15861_v30 = vld [vmem:[#allocation50_spill] sm:$0xff]  ;;  %vm15875_vm6 = vcmp.ge.f32.partialorder %v9111_v10, 0.0 }
 0x300   :  { %15853 = vst [vmem:[#allocation219_spill] sm:$0xff] %v10243_v62  ;;  %15855 = vst [vmem:[#allocation220_spill] sm:$0xff] %v10249_v44  ;;  %v10255_v7 = vsel %vm2768_vm7, %v9088_v42, %v15856_v46  ;;  %v10261_v29 = vsel %vm2769_vm8, %v9091_v4, %v15858_v63  ;;  %v15860_v31 = vld [vmem:[#allocation124_spill] sm:$0xff]  ;;  %vm2846_vm5 = vcmp.ge.f32.partialorder %v15861_v30, 0.0  ;;  %v15862_v3 = vld [vmem:[#allocation106_spill] sm:$0xff]  ;;  %vm15889_vm7 = vcmp.ge.f32.partialorder %v9127_v9, 0.0 }
 0x301   :  { %15857 = vst [vmem:[#allocation221_spill] sm:$0xff] %v10255_v7  ;;  %15859 = vst [vmem:[#allocation122_spill] sm:$0xff] %v10261_v29  ;;  %vm2844_vm3 = vcmp.ge.f32.partialorder %v15860_v31, 0.0  ;;  %v15863_v39 = vld [vmem:[#allocation226_spill] sm:$0xff]  ;;  %v15864_v46 = vld [vmem:[#allocation227_spill] sm:$0xff] }
 0x302   :  { %v10271_v42 = vsel %vm2775_vm9, %v9095_v38, %v15863_v39  ;;  %v10277_v4 = vsel %vm2776_vm10, %v9099_v20, %v15864_v46  ;;  %v15866_v63 = vld [vmem:[#allocation228_spill] sm:$0xff]  ;;  %v15868_v7 = vld [vmem:[#allocation229_spill] sm:$0xff]  ;;  %v15871_v39 = vld [vmem:[#allocation51_spill] sm:$0xff]  ;;  %vm15883_vm10 = vcmp.ge.f32.partialorder %v9123_v6, 0.0 }
 0x303   :  { %15865 = vst [vmem:[#allocation43_spill] sm:$0xff] %v10277_v4  ;;  %v10283_v29 = vsel %vm2777_vm11, %v9103_v22, %v15866_v63  ;;  %v10289_v44 = vsel %vm2778_vm12, %v9107_v56, %v15868_v7  ;;  %v15870_v38 = vld [vmem:[#allocation125_spill] sm:$0xff]  ;;  %v15873_v20 = vld [vmem:[#allocation36_spill] sm:$0xff]  ;;  %v15874_v46 = vld [vmem:[#allocation231_spill] sm:$0xff]  ;;  %vm15877_vm11 = vcmp.ge.f32.partialorder %v9115_v47, 0.0  ;;  %vm15880_vm12 = vcmp.ge.f32.partialorder %v9119_v24, 0.0 }
 0x304   :  { %15867 = vst [vmem:[#allocation44_spill] sm:$0xff] %v10283_v29  ;;  %15869 = vst [vmem:[#allocation105_spill] sm:$0xff] %v10289_v44  ;;  %v15872_v62 = vld [vmem:[#allocation53_spill] sm:$0xff]  ;;  %v10299_v22 = vsel %vm15875_vm6, %v9111_v10, %v15874_v46  ;;  %v15876_v63 = vld [vmem:[#allocation232_spill] sm:$0xff]  ;;  %vm15905_vm6 = vcmp.ge.f32.partialorder %v9143_v18, 0.0 }
 0x305   :  { %v10305_v56 = vsel %vm15877_vm11, %v9115_v47, %v15876_v63  ;;  %v15879_v7 = vld [vmem:[#allocation233_spill] sm:$0xff]  ;;  %v15882_v29 = vld [vmem:[#allocation234_spill] sm:$0xff]  ;;  %v15888_v63 = vld [vmem:[#allocation235_spill] sm:$0xff]  ;;  %vm15898_vm11 = vcmp.ge.f32.partialorder %v9139_v0, 0.0 }
 0x306   :  { %15878 = vst [vmem:[#allocation222_spill] sm:$0xff] %v10305_v56  ;;  %v10311_v44 = vsel %vm15880_vm12, %v9119_v24, %v15879_v7  ;;  %v10317_v4 = vsel %vm15883_vm10, %v9123_v6, %v15882_v29  ;;  %v15885_v10 = vld [vmem:[#allocation126_spill] sm:$0xff]  ;;  %v15887_v47 = vld [vmem:[#allocation57_spill] sm:$0xff]  ;;  %v10327_v24 = vsel %vm15889_vm7, %v9127_v9, %v15888_v63  ;;  %v15891_v7 = vld [vmem:[#allocation236_spill] sm:$0xff]  ;;  %vm15892_vm12 = vcmp.ge.f32.partialorder %v9131_v43, 0.0 }
 0x307   :  { %15881 = vst [vmem:[#allocation223_spill] sm:$0xff] %v10311_v44  ;;  %15884 = vst [vmem:[#allocation224_spill] sm:$0xff] %v10317_v4  ;;  %v15886_v46 = vld [vmem:[#allocation54_spill] sm:$0xff]  ;;  %v10333_v6 = vsel %vm15892_vm12, %v9131_v43, %v15891_v7  ;;  %v15894_v29 = vld [vmem:[#allocation237_spill] sm:$0xff]  ;;  %vm15895_vm10 = vcmp.ge.f32.partialorder %v9135_v55, 0.0  ;;  %vm15914_vm12 = vcmp.ge.f32.partialorder %v9155_v14, 0.0 }
 0x308   :  { %15890 = vst [vmem:[#allocation225_spill] sm:$0xff] %v10327_v24  ;;  %15893 = vst [vmem:[#allocation124_spill] sm:$0xff] %v10333_v6  ;;  %v10339_v4 = vsel %vm15895_vm10, %v9135_v55, %v15894_v29  ;;  %v15897_v44 = vld [vmem:[#allocation238_spill] sm:$0xff]  ;;  %v15901_v63 = vld [vmem:[#allocation64_spill] sm:$0xff]  ;;  %vm15908_vm10 = vcmp.ge.f32.partialorder %v9147_v5, 0.0  ;;  %vm15920_vm7 = vcmp.ge.f32.partialorder %v9159_v50, 0.0 }
 0x309   :  { %15896 = vst [vmem:[#allocation50_spill] sm:$0xff] %v10339_v4  ;;  %v10345_v56 = vsel %vm15898_vm11, %v9139_v0, %v15897_v44  ;;  %v15900_v9 = vld [vmem:[#allocation62_spill] sm:$0xff]  ;;  %v15902_v24 = vld [vmem:[#allocation97_spill] sm:$0xff]  ;;  %v15903_v43 = vld [vmem:[#allocation108_spill] sm:$0xff]  ;;  %vm15911_vm11 = vcmp.ge.f32.partialorder %v9151_v15, 0.0 }
 0x30a   :  { %15899 = vst [vmem:[#allocation106_spill] sm:$0xff] %v10345_v56  ;;  %v15904_v7 = vld [vmem:[#allocation239_spill] sm:$0xff]  ;;  %v15907_v29 = vld [vmem:[#allocation240_spill] sm:$0xff]  ;;  %v15910_v44 = vld [vmem:[#allocation241_spill] sm:$0xff] }
 0x30b   :  { %v10355_v55 = vsel %vm15905_vm6, %v9143_v18, %v15904_v7  ;;  %v10361_v0 = vsel %vm15908_vm10, %v9147_v5, %v15907_v29  ;;  %v10367_v56 = vsel %vm15911_vm11, %v9151_v15, %v15910_v44  ;;  %v15913_v4 = vld [vmem:[#allocation242_spill] sm:$0xff]  ;;  %v15916_v18 = vld [vmem:[#allocation127_spill] sm:$0xff]  ;;  %v15917_v7 = vld [vmem:[#allocation60_spill] sm:$0xff]  ;;  %vm15922_vm11 = vcmp.ge.f32.partialorder %v9163_v19, 0.0 }
 0x30c   :  { %15906 = vst [vmem:[#allocation226_spill] sm:$0xff] %v10355_v55  ;;  %15909 = vst [vmem:[#allocation227_spill] sm:$0xff] %v10361_v0  ;;  %v10373_v6 = vsel %vm15914_vm12, %v9155_v14, %v15913_v4  ;;  %v15918_v5 = vld [vmem:[#allocation66_spill] sm:$0xff]  ;;  %v15919_v29 = vld [vmem:[#allocation243_spill] sm:$0xff]  ;;  %vm15925_vm12 = vcmp.ge.f32.partialorder %v9167_v16, 0.0  ;;  %vm15928_vm10 = vcmp.ge.f32.partialorder %v9171_v21, 0.0 }
 0x30d   :  { %15912 = vst [vmem:[#allocation228_spill] sm:$0xff] %v10367_v56  ;;  %15915 = vst [vmem:[#allocation229_spill] sm:$0xff] %v10373_v6  ;;  %v10383_v15 = vsel %vm15920_vm7, %v9159_v50, %v15919_v29  ;;  %v15921_v44 = vld [vmem:[#allocation244_spill] sm:$0xff]  ;;  %v15924_v4 = vld [vmem:[#allocation245_spill] sm:$0xff]  ;;  %vm15935_vm6 = vcmp.ge.f32.partialorder %v9175_v25, 0.0  ;;  %vm15949_vm7 = vcmp.ge.f32.partialorder %v9191_v54, 0.0 }
 0x30e   :  { %v10389_v14 = vsel %vm15922_vm11, %v9163_v19, %v15921_v44  ;;  %v10395_v6 = vsel %vm15925_vm12, %v9167_v16, %v15924_v4  ;;  %v15927_v56 = vld [vmem:[#allocation246_spill] sm:$0xff]  ;;  %v15930_v50 = vld [vmem:[#allocation68_spill] sm:$0xff]  ;;  %v15932_v55 = vld [vmem:[#allocation111_spill] sm:$0xff]  ;;  %vm15938_vm12 = vcmp.ge.f32.partialorder %v9179_v26, 0.0  ;;  %vm15943_vm11 = vcmp.ge.f32.partialorder %v9187_v8, 0.0 }
 0x30f   :  { %15923 = vst [vmem:[#allocation125_spill] sm:$0xff] %v10389_v14  ;;  %15926 = vst [vmem:[#allocation51_spill] sm:$0xff] %v10395_v6  ;;  %v10401_v0 = vsel %vm15928_vm10, %v9171_v21, %v15927_v56  ;;  %v15931_v29 = vld [vmem:[#allocation104_spill] sm:$0xff]  ;;  %v15933_v19 = vld [vmem:[#allocation49_spill] sm:$0xff]  ;;  %vm15940_vm10 = vcmp.ge.f32.partialorder %v9183_v52, 0.0 }
 0x310   :  { %15929 = vst [vmem:[#allocation53_spill] sm:$0xff] %v10401_v0  ;;  %v15934_v44 = vld [vmem:[#allocation247_spill] sm:$0xff]  ;;  %v15937_v4 = vld [vmem:[#allocation248_spill] sm:$0xff]  ;;  %v15939_v56 = vld [vmem:[#allocation249_spill] sm:$0xff] }
 0x311   :  { %v10411_v16 = vsel %vm15935_vm6, %v9175_v25, %v15934_v44  ;;  %v10417_v21 = vsel %vm15938_vm12, %v9179_v26, %v15937_v4  ;;  %v10423_v0 = vsel %vm15940_vm10, %v9183_v52, %v15939_v56  ;;  %v15942_v6 = vld [vmem:[#allocation250_spill] sm:$0xff]  ;;  %v15945_v25 = vld [vmem:[#allocation63_spill] sm:$0xff]  ;;  %v15950_v4 = vld [vmem:[#allocation252_spill] sm:$0xff]  ;;  %vm15951_vm10 = vcmp.ge.f32.partialorder %v9195_v33, 0.0 }
 0x312   :  { %15936 = vst [vmem:[#allocation36_spill] sm:$0xff] %v10411_v16  ;;  %15941 = vst [vmem:[#allocation231_spill] sm:$0xff] %v10423_v0  ;;  %v10429_v14 = vsel %vm15943_vm11, %v9187_v8, %v15942_v6  ;;  %v15946_v44 = vld [vmem:[#allocation70_spill] sm:$0xff]  ;;  %v15947_v16 = vld [vmem:[#allocation72_spill] sm:$0xff]  ;;  %v10445_v8 = vsel %vm15951_vm10, %v9195_v33, %v15950_v4  ;;  %vm15953_vm11 = vcmp.ge.f32.partialorder %v15659_v1, 0.0  ;;  %vm15956_vm12 = vcmp.ge.f32.partialorder %v15661_v58, 0.0 }
 0x313   :  { %15944 = vst [vmem:[#allocation232_spill] sm:$0xff] %v10429_v14  ;;  %v15948_v26 = vld [vmem:[#allocation251_spill] sm:$0xff]  ;;  %v15952_v6 = vld [vmem:[#allocation100_spill] sm:$0xff]  ;;  %v15959_v33 = vld [vmem:[#allocation73_spill] sm:$0xff]  ;;  %vm15961_vm6 = vcmp.ge.f32.partialorder %v15663_v61, 0.0  ;;  %vm15970_vm10 = vcmp.ge.f32.partialorder %v15669_v32, 0.0 }
 0x314   :  { %v10439_v52 = vsel %vm15949_vm7, %v9191_v54, %v15948_v26  ;;  %v10451_v56 = vsel %vm15953_vm11, %v15659_v1, %v15952_v6  ;;  %v15955_v14 = vld [vmem:[#allocation119_spill] sm:$0xff]  ;;  %v15960_v26 = vld [vmem:[#allocation34_spill] sm:$0xff]  ;;  %vm15964_vm11 = vcmp.ge.f32.partialorder %v15665_v51, 0.0  ;;  %vm15976_vm7 = vcmp.ge.f32.partialorder %v9223_v57, 0.0 }
 0x315   :  { %15954 = vst [vmem:[#allocation233_spill] sm:$0xff] %v10451_v56  ;;  %v10457_v0 = vsel %vm15956_vm12, %v15661_v58, %v15955_v14  ;;  %v15958_v54 = vld [vmem:[#allocation67_spill] sm:$0xff]  ;;  %v10467_v1 = vsel %vm15961_vm6, %v15663_v61, %v15960_v26  ;;  %v15966_v14 = vld [vmem:[#allocation101_spill] sm:$0xff]  ;;  %vm15967_vm12 = vcmp.ge.f32.partialorder %v15667_v59, 0.0  ;;  %vm2896_vm6 = vcmp.ge.f32.partialorder %v15753_v37, 0.0  ;;  %v15972_v61 = vld [vmem:[#allocation140_spill] sm:$0xff] }
 0x316   :  { %15957 = vst [vmem:[#allocation234_spill] sm:$0xff] %v10457_v0  ;;  %15962 = vst [vmem:[#allocation126_spill] sm:$0xff] %v10467_v1  ;;  %v15963_v4 = vld [vmem:[#allocation35_spill] sm:$0xff]  ;;  %v10479_v6 = vsel %vm15967_vm12, %v15667_v59, %v15966_v14  ;;  %v15969_v0 = vld [vmem:[#allocation120_spill] sm:$0xff]  ;;  %vm15978_vm12 = vcmp.ge.f32.partialorder %v15826_v28, 0.0 }
 0x317   :  { %v10473_v58 = vsel %vm15964_vm11, %v15665_v51, %v15963_v4  ;;  %15968 = vst [vmem:[#allocation57_spill] sm:$0xff] %v10479_v6  ;;  %v10485_v56 = vsel %vm15970_vm10, %v15669_v32, %v15969_v0  ;;  %v15973_v26 = vld [vmem:[#allocation113_spill] sm:$0xff]  ;;  %v15974_v51 = vld [vmem:[#allocation56_spill] sm:$0xff]  ;;  %v15977_v14 = vld [vmem:[#allocation254_spill] sm:$0xff]  ;;  %vm15981_vm10 = vcmp.ge.f32.partialorder %v15827_v53, 0.0  ;;  %vm15984_vm11 = vcmp.ge.f32.partialorder %v15828_v2, 0.0 }
 0x318   :  { %15965 = vst [vmem:[#allocation54_spill] sm:$0xff] %v10473_v58  ;;  %15971 = vst [vmem:[#allocation235_spill] sm:$0xff] %v10485_v56  ;;  %v15975_v4 = vld [vmem:[#allocation253_spill] sm:$0xff]  ;;  %v10501_v32 = vsel %vm15978_vm12, %v15826_v28, %v15977_v14  ;;  %v15980_v0 = vld [vmem:[#allocation255_spill] sm:$0xff] }
 0x319   :  { %v10495_v59 = vsel %vm15976_vm7, %v9223_v57, %v15975_v4  ;;  %15979 = vst [vmem:[#allocation236_spill] sm:$0xff] %v10501_v32  ;;  %v10507_v56 = vsel %vm15981_vm10, %v15827_v53, %v15980_v0  ;;  %v15983_v6 = vld [vmem:[#allocation256_spill] sm:$0xff]  ;;  %v15986_v57 = vld [vmem:[#allocation69_spill] sm:$0xff]  ;;  %v15987_v4 = vld [vmem:[#allocation71_spill] sm:$0xff]  ;;  %vm15998_vm10 = vcmp.ge.f32.partialorder %v15839_v40, 0.0 }
 0x31a   :  { %15982 = vst [vmem:[#allocation237_spill] sm:$0xff] %v10507_v56  ;;  %v10513_v58 = vsel %vm15984_vm11, %v15828_v2, %v15983_v6  ;;  %vm2905_vm7 = vcmp.ge.f32.partialorder %v15986_v57, 0.0  ;;  %vm2906_vm8 = vcmp.ge.f32.partialorder %v15987_v4, 0.0  ;;  %v15988_v1 = vld [vmem:[#allocation76_spill] sm:$0xff]  ;;  %v15989_v28 = vld [vmem:[#allocation78_spill] sm:$0xff]  ;;  %v15990_v14 = vld [vmem:[#allocation121_spill] sm:$0xff] }
 0x31b   :  { %15985 = vst [vmem:[#allocation238_spill] sm:$0xff] %v10513_v58  ;;  %v10523_v53 = vsel %vm2831_vm13, %v15677_v13, %v15990_v14  ;;  %v15992_v0 = vld [vmem:[#allocation257_spill] sm:$0xff]  ;;  %v15994_v6 = vld [vmem:[#allocation258_spill] sm:$0xff]  ;;  %vm15995_vm11 = vcmp.ge.f32.partialorder %v15838_v27, 0.0  ;;  %v15997_v56 = vld [vmem:[#allocation259_spill] sm:$0xff] }
 0x31c   :  { %15991 = vst [vmem:[#allocation62_spill] sm:$0xff] %v10523_v53  ;;  %v10529_v2 = vsel %vm2832_vm14, %v15837_v12, %v15992_v0  ;;  %v10535_v58 = vsel %vm15995_vm11, %v15838_v27, %v15994_v6  ;;  %v10541_v32 = vsel %vm15998_vm10, %v15839_v40, %v15997_v56  ;;  %v16000_v13 = vld [vmem:[#allocation143_spill] sm:$0xff]  ;;  %v16002_v53 = vld [vmem:[#allocation114_spill] sm:$0xff]  ;;  %v16004_v0 = vld [vmem:[#allocation260_spill] sm:$0xff]  ;;  %vm16029_vm10 = vcmp.ge.f32.partialorder %v15870_v38, 0.0 }
 0x31d   :  { %15993 = vst [vmem:[#allocation64_spill] sm:$0xff] %v10529_v2  ;;  %15996 = vst [vmem:[#allocation97_spill] sm:$0xff] %v10535_v58  ;;  %vm2909_vm13 = vcmp.ge.f32.partialorder %v16000_v13, 0.0  ;;  %v16001_v14 = vld [vmem:[#allocation99_spill] sm:$0xff]  ;;  %vm2911_vm9 = vcmp.ge.f32.partialorder %v16002_v53, 0.0  ;;  %v10551_v27 = vsel %vm2840_vm1, %v15848_v34, %v16004_v0  ;;  %v16006_v6 = vld [vmem:[#allocation261_spill] sm:$0xff] }
 0x31e   :  { %15999 = vst [vmem:[#allocation108_spill] sm:$0xff] %v10541_v32  ;;  %vm2910_vm12 = vcmp.ge.f32.partialorder %v16001_v14, 0.0  ;;  %v16003_v12 = vld [vmem:[#allocation59_spill] sm:$0xff]  ;;  %16005 = vst [vmem:[#allocation239_spill] sm:$0xff] %v10551_v27  ;;  %v10557_v40 = vsel %vm2841_vm0, %v15849_v11, %v16006_v6  ;;  %v16008_v56 = vld [vmem:[#allocation262_spill] sm:$0xff] }
 0x31f   :  { %vm2912_vm14 = vcmp.ge.f32.partialorder %v16003_v12, 0.0  ;;  %16007 = vst [vmem:[#allocation240_spill] sm:$0xff] %v10557_v40  ;;  %v10563_v32 = vsel %vm2842_vm15, %v15850_v36, %v16008_v56  ;;  %v16010_v58 = vld [vmem:[#allocation263_spill] sm:$0xff]  ;;  %v16012_v34 = vld [vmem:[#allocation74_spill] sm:$0xff]  ;;  %v16013_v0 = vld [vmem:[#allocation80_spill] sm:$0xff]  ;;  %vm16023_vm15 = vcmp.ge.f32.partialorder %v15862_v3, 0.0 }
 0x320   :  { %16009 = vst [vmem:[#allocation241_spill] sm:$0xff] %v10563_v32  ;;  %v10569_v2 = vsel %vm2843_vm2, %v15851_v49, %v16010_v58  ;;  %vm2918_vm1 = vcmp.ge.f32.partialorder %v16012_v34, 0.0  ;;  %vm2919_vm11 = vcmp.ge.f32.partialorder %v16013_v0, 0.0  ;;  %v16014_v27 = vld [vmem:[#allocation82_spill] sm:$0xff]  ;;  %v16016_v6 = vld [vmem:[#allocation264_spill] sm:$0xff]  ;;  %v16018_v56 = vld [vmem:[#allocation45_spill] sm:$0xff] }
 0x321   :  { %16011 = vst [vmem:[#allocation242_spill] sm:$0xff] %v10569_v2  ;;  %v16015_v11 = vld [vmem:[#allocation174_spill] sm:$0xff]  ;;  %v10579_v36 = vsel %vm2844_vm3, %v15860_v31, %v16016_v6  ;;  %v10585_v49 = vsel %vm2845_vm4, %v15694_v45, %v16018_v56  ;;  %v16020_v58 = vld [vmem:[#allocation265_spill] sm:$0xff]  ;;  %v16026_v6 = vld [vmem:[#allocation156_spill] sm:$0xff]  ;;  %vm16037_vm4 = vcmp.ge.f32.partialorder %v15873_v20, 0.0  ;;  %vm16044_vm2 = vcmp.ge.f32.partialorder %v15707_v41, 0.0 }
 0x322   :  { %16017 = vst [vmem:[#allocation127_spill] sm:$0xff] %v10579_v36  ;;  %16019 = vst [vmem:[#allocation60_spill] sm:$0xff] %v10585_v49  ;;  %v10591_v2 = vsel %vm2846_vm5, %v15861_v30, %v16020_v58  ;;  %v16022_v32 = vld [vmem:[#allocation266_spill] sm:$0xff]  ;;  %v16027_v45 = vld [vmem:[#allocation77_spill] sm:$0xff]  ;;  %vm16031_vm5 = vcmp.ge.f32.partialorder %v15871_v39, 0.0 }
 0x323   :  { %16021 = vst [vmem:[#allocation66_spill] sm:$0xff] %v10591_v2  ;;  %v10597_v40 = vsel %vm16023_vm15, %v15862_v3, %v16022_v32  ;;  %v16025_v31 = vld [vmem:[#allocation30_spill] sm:$0xff]  ;;  %v16028_v56 = vld [vmem:[#allocation267_spill] sm:$0xff]  ;;  %v16030_v58 = vld [vmem:[#allocation268_spill] sm:$0xff]  ;;  %vm16034_vm15 = vcmp.ge.f32.partialorder %v15872_v62, 0.0 }
 0x324   :  { %16024 = vst [vmem:[#allocation243_spill] sm:$0xff] %v10597_v40  ;;  %v10607_v30 = vsel %vm16029_vm10, %v15870_v38, %v16028_v56  ;;  %v10613_v3 = vsel %vm16031_vm5, %v15871_v39, %v16030_v58  ;;  %v16033_v32 = vld [vmem:[#allocation269_spill] sm:$0xff]  ;;  %v16036_v2 = vld [vmem:[#allocation270_spill] sm:$0xff]  ;;  %v16039_v38 = vld [vmem:[#allocation84_spill] sm:$0xff]  ;;  %vm16053_vm5 = vcmp.ge.f32.partialorder %v15887_v47, 0.0  ;;  %vm16060_vm10 = vcmp.ge.f32.partialorder %v15900_v9, 0.0 }
 0x325   :  { %16032 = vst [vmem:[#allocation244_spill] sm:$0xff] %v10613_v3  ;;  %v10619_v40 = vsel %vm16034_vm15, %v15872_v62, %v16033_v32  ;;  %v10625_v49 = vsel %vm16037_vm4, %v15873_v20, %v16036_v2  ;;  %v16040_v56 = vld [vmem:[#allocation86_spill] sm:$0xff]  ;;  %v16041_v36 = vld [vmem:[#allocation177_spill] sm:$0xff]  ;;  %v16043_v58 = vld [vmem:[#allocation107_spill] sm:$0xff]  ;;  %vm16047_vm15 = vcmp.ge.f32.partialorder %v15885_v10, 0.0  ;;  %vm16050_vm4 = vcmp.ge.f32.partialorder %v15886_v46, 0.0 }
 0x326   :  { %16035 = vst [vmem:[#allocation245_spill] sm:$0xff] %v10619_v40  ;;  %16038 = vst [vmem:[#allocation246_spill] sm:$0xff] %v10625_v49  ;;  %v16042_v39 = vld [vmem:[#allocation110_spill] sm:$0xff]  ;;  %v10635_v62 = vsel %vm16044_vm2, %v15707_v41, %v16043_v58  ;;  %v16046_v32 = vld [vmem:[#allocation271_spill] sm:$0xff]  ;;  %vm16076_vm2 = vcmp.ge.f32.partialorder %v15916_v18, 0.0 }
 0x327   :  { %16045 = vst [vmem:[#allocation68_spill] sm:$0xff] %v10635_v62  ;;  %v10641_v20 = vsel %vm16047_vm15, %v15885_v10, %v16046_v32  ;;  %v16049_v2 = vld [vmem:[#allocation272_spill] sm:$0xff]  ;;  %v16052_v40 = vld [vmem:[#allocation273_spill] sm:$0xff]  ;;  %v16056_v58 = vld [vmem:[#allocation31_spill] sm:$0xff]  ;;  %vm16069_vm15 = vcmp.ge.f32.partialorder %v15903_v43, 0.0 }
 0x328   :  { %16048 = vst [vmem:[#allocation104_spill] sm:$0xff] %v10641_v20  ;;  %v10647_v49 = vsel %vm16050_vm4, %v15886_v46, %v16049_v2  ;;  %v10653_v3 = vsel %vm16053_vm5, %v15887_v47, %v16052_v40  ;;  %v16055_v41 = vld [vmem:[#allocation116_spill] sm:$0xff]  ;;  %v16057_v62 = vld [vmem:[#allocation79_spill] sm:$0xff]  ;;  %v16058_v10 = vld [vmem:[#allocation81_spill] sm:$0xff]  ;;  %vm16063_vm4 = vcmp.ge.f32.partialorder %v15901_v63, 0.0  ;;  %vm16066_vm5 = vcmp.ge.f32.partialorder %v15902_v24, 0.0 }
 0x329   :  { %16051 = vst [vmem:[#allocation111_spill] sm:$0xff] %v10647_v49  ;;  %16054 = vst [vmem:[#allocation49_spill] sm:$0xff] %v10653_v3  ;;  %v16059_v32 = vld [vmem:[#allocation274_spill] sm:$0xff]  ;;  %v16062_v2 = vld [vmem:[#allocation275_spill] sm:$0xff] }
 0x32a   :  { %v10663_v46 = vsel %vm16060_vm10, %v15900_v9, %v16059_v32  ;;  %v10669_v47 = vsel %vm16063_vm4, %v15901_v63, %v16062_v2  ;;  %v16065_v40 = vld [vmem:[#allocation276_spill] sm:$0xff]  ;;  %v16068_v49 = vld [vmem:[#allocation277_spill] sm:$0xff]  ;;  %v16072_v32 = vld [vmem:[#allocation90_spill] sm:$0xff]  ;;  %vm16085_vm4 = vcmp.ge.f32.partialorder %v15918_v5, 0.0  ;;  %vm16092_vm10 = vcmp.ge.f32.partialorder %v15930_v50, 0.0 }
 0x32b   :  { %16061 = vst [vmem:[#allocation247_spill] sm:$0xff] %v10663_v46  ;;  %16064 = vst [vmem:[#allocation248_spill] sm:$0xff] %v10669_v47  ;;  %v10675_v3 = vsel %vm16066_vm5, %v15902_v24, %v16065_v40  ;;  %v10681_v20 = vsel %vm16069_vm15, %v15903_v43, %v16068_v49  ;;  %v16071_v9 = vld [vmem:[#allocation88_spill] sm:$0xff]  ;;  %v16073_v46 = vld [vmem:[#allocation178_spill] sm:$0xff]  ;;  %vm16079_vm5 = vcmp.ge.f32.partialorder %v15724_v48, 0.0  ;;  %vm16082_vm15 = vcmp.ge.f32.partialorder %v15917_v7, 0.0 }
 0x32c   :  { %16067 = vst [vmem:[#allocation249_spill] sm:$0xff] %v10675_v3  ;;  %16070 = vst [vmem:[#allocation250_spill] sm:$0xff] %v10681_v20  ;;  %v16074_v63 = vld [vmem:[#allocation117_spill] sm:$0xff]  ;;  %v16075_v2 = vld [vmem:[#allocation278_spill] sm:$0xff] }
 0x32d   :  { %v10691_v24 = vsel %vm16076_vm2, %v15916_v18, %v16075_v2  ;;  %v16078_v40 = vld [vmem:[#allocation58_spill] sm:$0xff]  ;;  %v16081_v49 = vld [vmem:[#allocation279_spill] sm:$0xff]  ;;  %v16084_v3 = vld [vmem:[#allocation280_spill] sm:$0xff]  ;;  %vm16108_vm2 = vcmp.ge.f32.partialorder %v15945_v25, 0.0 }
 0x32e   :  { %16077 = vst [vmem:[#allocation63_spill] sm:$0xff] %v10691_v24  ;;  %v10697_v43 = vsel %vm16079_vm5, %v15724_v48, %v16078_v40  ;;  %v10703_v20 = vsel %vm16082_vm15, %v15917_v7, %v16081_v49  ;;  %v10709_v47 = vsel %vm16085_vm4, %v15918_v5, %v16084_v3  ;;  %v16087_v18 = vld [vmem:[#allocation85_spill] sm:$0xff]  ;;  %v16088_v2 = vld [vmem:[#allocation130_spill] sm:$0xff]  ;;  %v16089_v24 = vld [vmem:[#allocation92_spill] sm:$0xff]  ;;  %vm16095_vm15 = vcmp.ge.f32.partialorder %v15931_v29, 0.0 }
 0x32f   :  { %16080 = vst [vmem:[#allocation70_spill] sm:$0xff] %v10697_v43  ;;  %16083 = vst [vmem:[#allocation72_spill] sm:$0xff] %v10703_v20  ;;  %v16090_v48 = vld [vmem:[#allocation179_spill] sm:$0xff]  ;;  %v16091_v40 = vld [vmem:[#allocation281_spill] sm:$0xff]  ;;  %vm16098_vm4 = vcmp.ge.f32.partialorder %v15932_v55, 0.0  ;;  %vm16101_vm5 = vcmp.ge.f32.partialorder %v15933_v19, 0.0 }
 0x330   :  { %16086 = vst [vmem:[#allocation251_spill] sm:$0xff] %v10709_v47  ;;  %v10719_v7 = vsel %vm16092_vm10, %v15930_v50, %v16091_v40  ;;  %v16094_v49 = vld [vmem:[#allocation282_spill] sm:$0xff]  ;;  %v16097_v3 = vld [vmem:[#allocation283_spill] sm:$0xff]  ;;  %v16100_v20 = vld [vmem:[#allocation284_spill] sm:$0xff]  ;;  %vm16124_vm10 = vcmp.ge.f32.partialorder %v15745_v17, 0.0 }
 0x331   :  { %16093 = vst [vmem:[#allocation252_spill] sm:$0xff] %v10719_v7  ;;  %v10725_v5 = vsel %vm16095_vm15, %v15931_v29, %v16094_v49  ;;  %v10731_v47 = vsel %vm16098_vm4, %v15932_v55, %v16097_v3  ;;  %v10737_v43 = vsel %vm16101_vm5, %v15933_v19, %v16100_v20  ;;  %v16103_v50 = vld [vmem:[#allocation118_spill] sm:$0xff]  ;;  %v16104_v40 = vld [vmem:[#allocation33_spill] sm:$0xff]  ;;  %v16105_v7 = vld [vmem:[#allocation87_spill] sm:$0xff]  ;;  %vm16111_vm4 = vcmp.ge.f32.partialorder %v15946_v44, 0.0 }
 0x332   :  { %16096 = vst [vmem:[#allocation100_spill] sm:$0xff] %v10725_v5  ;;  %16099 = vst [vmem:[#allocation119_spill] sm:$0xff] %v10731_v47  ;;  %v16106_v29 = vld [vmem:[#allocation89_spill] sm:$0xff]  ;;  %v16110_v3 = vld [vmem:[#allocation286_spill] sm:$0xff]  ;;  %vm16114_vm5 = vcmp.ge.f32.partialorder %v15947_v16, 0.0  ;;  %vm16117_vm15 = vcmp.ge.f32.partialorder %v15743_v23, 0.0 }
 0x333   :  { %16102 = vst [vmem:[#allocation67_spill] sm:$0xff] %v10737_v43  ;;  %v16107_v49 = vld [vmem:[#allocation285_spill] sm:$0xff]  ;;  %v10753_v19 = vsel %vm16111_vm4, %v15946_v44, %v16110_v3  ;;  %v16113_v20 = vld [vmem:[#allocation287_spill] sm:$0xff]  ;;  %v16116_v47 = vld [vmem:[#allocation136_spill] sm:$0xff]  ;;  %vm16130_vm4 = vcmp.ge.f32.partialorder %v15959_v33, 0.0 }
 0x334   :  { %v10747_v55 = vsel %vm16108_vm2, %v15945_v25, %v16107_v49  ;;  %16112 = vst [vmem:[#allocation34_spill] sm:$0xff] %v10753_v19  ;;  %v10759_v43 = vsel %vm16114_vm5, %v15947_v16, %v16113_v20  ;;  %v10765_v5 = vsel %vm16117_vm15, %v15743_v23, %v16116_v47  ;;  %v16119_v25 = vld [vmem:[#allocation135_spill] sm:$0xff]  ;;  %v16122_v44 = vld [vmem:[#allocation190_spill] sm:$0xff]  ;;  %v16123_v3 = vld [vmem:[#allocation52_spill] sm:$0xff]  ;;  %vm16126_vm5 = vcmp.ge.f32.partialorder %v15747_v60, 0.0 }
 0x335   :  { %16109 = vst [vmem:[#allocation73_spill] sm:$0xff] %v10747_v55  ;;  %16115 = vst [vmem:[#allocation35_spill] sm:$0xff] %v10759_v43  ;;  %vm2961_vm2 = vcmp.ge.f32.partialorder %v16119_v25, 0.0  ;;  %v16120_v49 = vld [vmem:[#allocation95_spill] sm:$0xff]  ;;  %v16121_v55 = vld [vmem:[#allocation180_spill] sm:$0xff]  ;;  %v10775_v16 = vsel %vm16124_vm10, %v15745_v17, %v16123_v3  ;;  %vm16128_vm15 = vcmp.ge.f32.partialorder %v15958_v54, 0.0 }
 0x336   :  { %16118 = vst [vmem:[#allocation101_spill] sm:$0xff] %v10765_v5  ;;  %vm2962_vm3 = vcmp.ge.f32.partialorder %v16120_v49, 0.0  ;;  %vm2963_vm0 = vcmp.ge.f32.partialorder %v16121_v55, 0.0  ;;  %v16125_v20 = vld [vmem:[#allocation65_spill] sm:$0xff]  ;;  %v16127_v47 = vld [vmem:[#allocation288_spill] sm:$0xff]  ;;  %v16131_v17 = vld [vmem:[#allocation75_spill] sm:$0xff] }
 0x337   :  { %v10781_v23 = vsel %vm16126_vm5, %v15747_v60, %v16125_v20  ;;  %v10787_v5 = vsel %vm16128_vm15, %v15958_v54, %v16127_v47  ;;  %v16129_v43 = vld [vmem:[#allocation289_spill] sm:$0xff]  ;;  %v10799_v3 = vsel %vm2896_vm6, %v15753_v37, %v16131_v17  ;;  %v16132_v60 = vld [vmem:[#allocation290_spill] sm:$0xff]  ;;  %vm16133_vm10 = vcmp.ge.f32.partialorder %v15972_v61, 0.0  ;;  %v16134_v54 = vld [vmem:[#allocation291_spill] sm:$0xff] }
 0x338   :  { %v10793_v19 = vsel %vm16130_vm4, %v15959_v33, %v16129_v43  ;;  %v10805_v20 = vsel %vm16133_vm10, %v15972_v61, %v16132_v60  ;;  %vm16135_vm5 = vcmp.ge.f32.partialorder %v15973_v26, 0.0  ;;  %v16136_v33 = vld [vmem:[#allocation292_spill] sm:$0xff]  ;;  %vm16137_vm4 = vcmp.ge.f32.partialorder %v15974_v51, 0.0  ;;  %v16138_v37 = vld [vmem:[#allocation293_spill] sm:$0xff]  ;;  %v16139_v61 = vld [vmem:[#allocation294_spill] sm:$0xff] }
 0x339   :  { %v10811_v47 = vsel %vm16135_vm5, %v15973_v26, %v16134_v54  ;;  %v10817_v43 = vsel %vm16137_vm4, %v15974_v51, %v16136_v33  ;;  %v10823_v17 = vsel %vm2905_vm7, %v15986_v57, %v16138_v37  ;;  %v10829_v60 = vsel %vm2906_vm8, %v15987_v4, %v16139_v61  ;;  %v16140_v26 = vld [vmem:[#allocation295_spill] sm:$0xff]  ;;  %v16142_v51 = vld [vmem:[#allocation296_spill] sm:$0xff]  ;;  %v16144_v57 = vld [vmem:[#allocation297_spill] sm:$0xff] }
 0x33a   :  { %vm16141_vm6 = vcmp.ge.f32.partialorder %v15988_v1, 0.0  ;;  %vm16143_vm15 = vcmp.ge.f32.partialorder %v15989_v28, 0.0  ;;  %v10847_v37 = vsel %vm2909_vm13, %v16000_v13, %v16144_v57  ;;  %v16145_v4 = vld [vmem:[#allocation298_spill] sm:$0xff]  ;;  %v16148_v13 = vld [vmem:[#allocation301_spill] sm:$0xff]  ;;  %vm16151_vm8 = vcmp.ge.f32.partialorder %v16014_v27, 0.0 }
 0x33b   :  { %v10835_v54 = vsel %vm16141_vm6, %v15988_v1, %v16140_v26  ;;  %v10841_v33 = vsel %vm16143_vm15, %v15989_v28, %v16142_v51  ;;  %v10853_v61 = vsel %vm2910_vm12, %v16001_v14, %v16145_v4  ;;  %v16146_v1 = vld [vmem:[#allocation299_spill] sm:$0xff]  ;;  %v16147_v28 = vld [vmem:[#allocation300_spill] sm:$0xff]  ;;  %v10871_v57 = vsel %vm2918_vm1, %v16012_v34, %v16148_v13  ;;  %v16149_v14 = vld [vmem:[#allocation302_spill] sm:$0xff] }
 0x33c   :  { %v10859_v26 = vsel %vm2911_vm9, %v16002_v53, %v16146_v1  ;;  %v10865_v51 = vsel %vm2912_vm14, %v16003_v12, %v16147_v28  ;;  %v10877_v4 = vsel %vm2919_vm11, %v16013_v0, %v16149_v14  ;;  %v16150_v53 = vld [vmem:[#allocation303_spill] sm:$0xff]  ;;  %v16152_v12 = vld [vmem:[#allocation304_spill] sm:$0xff]  ;;  %vm16153_vm9 = vcmp.ge.f32.partialorder %v16015_v11, 0.0  ;;  %v16156_v0 = vld [vmem:[#allocation305_spill] sm:$0xff] }
 0x33d   :  { %v10883_v1 = vsel %vm16151_vm8, %v16014_v27, %v16150_v53  ;;  %v10889_v28 = vsel %vm16153_vm9, %v16015_v11, %v16152_v12  ;;  %v16154_v34 = vld [vmem:[#allocation115_spill] sm:$0xff]  ;;  %vm16155_vm7 = vcmp.ge.f32.partialorder %v15784_v35, 0.0  ;;  %vm16157_vm12 = vcmp.ge.f32.partialorder %v16025_v31, 0.0  ;;  %v16158_v27 = vld [vmem:[#allocation306_spill] sm:$0xff] }
 0x33e   :  { %v10895_v13 = vsel %vm16155_vm7, %v15784_v35, %v16154_v34  ;;  %v10901_v14 = vsel %vm16157_vm12, %v16025_v31, %v16156_v0  ;;  %vm16159_vm13 = vcmp.ge.f32.partialorder %v16026_v6, 0.0  ;;  %v16160_v11 = vld [vmem:[#allocation307_spill] sm:$0xff]  ;;  %vm16161_vm14 = vcmp.ge.f32.partialorder %v16027_v45, 0.0  ;;  %v16162_v35 = vld [vmem:[#allocation308_spill] sm:$0xff]  ;;  %v16164_v31 = vld [vmem:[#allocation309_spill] sm:$0xff] }
 0x33f   :  { %v10907_v53 = vsel %vm16159_vm13, %v16026_v6, %v16158_v27  ;;  %v10913_v12 = vsel %vm16161_vm14, %v16027_v45, %v16160_v11  ;;  %vm16163_vm1 = vcmp.ge.f32.partialorder %v16039_v38, 0.0  ;;  %vm16165_vm11 = vcmp.ge.f32.partialorder %v16040_v56, 0.0  ;;  %v16166_v6 = vld [vmem:[#allocation310_spill] sm:$0xff]  ;;  %v16168_v45 = vld [vmem:[#allocation311_spill] sm:$0xff] }
 0x340   :  { %v10919_v34 = vsel %vm16163_vm1, %v16039_v38, %v16162_v35  ;;  %v10925_v0 = vsel %vm16165_vm11, %v16040_v56, %v16164_v31  ;;  %vm16167_vm10 = vcmp.ge.f32.partialorder %v16041_v36, 0.0  ;;  %vm16169_vm5 = vcmp.ge.f32.partialorder %v16042_v39, 0.0  ;;  %v16170_v38 = vld [vmem:[#allocation312_spill] sm:$0xff]  ;;  %v16172_v56 = vld [vmem:[#allocation313_spill] sm:$0xff] }
 0x341   :  { %v10931_v27 = vsel %vm16167_vm10, %v16041_v36, %v16166_v6  ;;  %v10937_v11 = vsel %vm16169_vm5, %v16042_v39, %v16168_v45  ;;  %vm16171_vm4 = vcmp.ge.f32.partialorder %v16055_v41, 0.0  ;;  %vm16173_vm6 = vcmp.ge.f32.partialorder %v16056_v58, 0.0  ;;  %v16174_v36 = vld [vmem:[#allocation314_spill] sm:$0xff]  ;;  %v16176_v39 = vld [vmem:[#allocation315_spill] sm:$0xff] }
 0x342   :  { %v10943_v35 = vsel %vm16171_vm4, %v16055_v41, %v16170_v38  ;;  %v10949_v31 = vsel %vm16173_vm6, %v16056_v58, %v16172_v56  ;;  %vm16175_vm15 = vcmp.ge.f32.partialorder %v16057_v62, 0.0  ;;  %vm16177_vm8 = vcmp.ge.f32.partialorder %v16058_v10, 0.0  ;;  %v16178_v41 = vld [vmem:[#allocation316_spill] sm:$0xff]  ;;  %v16180_v58 = vld [vmem:[#allocation317_spill] sm:$0xff] }
 0x343   :  { %v10955_v6 = vsel %vm16175_vm15, %v16057_v62, %v16174_v36  ;;  %v10961_v45 = vsel %vm16177_vm8, %v16058_v10, %v16176_v39  ;;  %vm16179_vm9 = vcmp.ge.f32.partialorder %v16071_v9, 0.0  ;;  %vm16181_vm7 = vcmp.ge.f32.partialorder %v16072_v32, 0.0  ;;  %v16182_v62 = vld [vmem:[#allocation318_spill] sm:$0xff]  ;;  %v16184_v10 = vld [vmem:[#allocation319_spill] sm:$0xff] }
 0x344   :  { %v10967_v38 = vsel %vm16179_vm9, %v16071_v9, %v16178_v41  ;;  %v10973_v56 = vsel %vm16181_vm7, %v16072_v32, %v16180_v58  ;;  %vm16183_vm12 = vcmp.ge.f32.partialorder %v16073_v46, 0.0  ;;  %vm16185_vm13 = vcmp.ge.f32.partialorder %v16074_v63, 0.0  ;;  %v16186_v9 = vld [vmem:[#allocation320_spill] sm:$0xff]  ;;  %v16188_v32 = vld [vmem:[#allocation321_spill] sm:$0xff] }
 0x345   :  { %v10979_v36 = vsel %vm16183_vm12, %v16073_v46, %v16182_v62  ;;  %v10985_v39 = vsel %vm16185_vm13, %v16074_v63, %v16184_v10  ;;  %vm16187_vm14 = vcmp.ge.f32.partialorder %v16087_v18, 0.0  ;;  %vm16189_vm1 = vcmp.ge.f32.partialorder %v16088_v2, 0.0  ;;  %v16191_v46 = vld [vmem:[#allocation322_spill] sm:$0xff]  ;;  %v16194_v63 = vld [vmem:[#allocation323_spill] sm:$0xff] }
 0x346   :  { %v10991_v41 = vsel %vm16187_vm14, %v16087_v18, %v16186_v9  ;;  %v10997_v58 = vsel %vm16189_vm1, %v16088_v2, %v16188_v32  ;;  %vm16192_vm11 = vcmp.ge.f32.partialorder %v16089_v24, 0.0  ;;  %vm16195_vm10 = vcmp.ge.f32.partialorder %v16090_v48, 0.0  ;;  %v16197_v18 = vld [vmem:[#allocation324_spill] sm:$0xff]  ;;  %v16199_v2 = vld [vmem:[#allocation325_spill] sm:$0xff] }
 0x347   :  { %16190 = vst [vmem:[#allocation120_spill] sm:$0xff] %v10997_v58  ;;  %v11003_v62 = vsel %vm16192_vm11, %v16089_v24, %v16191_v46  ;;  %v11009_v10 = vsel %vm16195_vm10, %v16090_v48, %v16194_v63  ;;  %vm16198_vm5 = vcmp.ge.f32.partialorder %v16103_v50, 0.0  ;;  %vm16200_vm4 = vcmp.ge.f32.partialorder %v16104_v40, 0.0  ;;  %v16201_v24 = vld [vmem:[#allocation326_spill] sm:$0xff]  ;;  %v16203_v48 = vld [vmem:[#allocation327_spill] sm:$0xff] }
 0x348   :  { %16193 = vst [vmem:[#allocation140_spill] sm:$0xff] %v11003_v62  ;;  %16196 = vst [vmem:[#allocation113_spill] sm:$0xff] %v11009_v10  ;;  %v11015_v9 = vsel %vm16198_vm5, %v16103_v50, %v16197_v18  ;;  %v11021_v32 = vsel %vm16200_vm4, %v16104_v40, %v16199_v2  ;;  %vm16202_vm6 = vcmp.ge.f32.partialorder %v16105_v7, 0.0  ;;  %vm16204_vm15 = vcmp.ge.f32.partialorder %v16106_v29, 0.0  ;;  %v16205_v50 = vld [vmem:[#allocation37_spill] sm:$0xff]  ;;  %v16207_v40 = vld [vmem:[#allocation38_spill] sm:$0xff] }
 0x349   :  { %v11027_v46 = vsel %vm16202_vm6, %v16105_v7, %v16201_v24  ;;  %v11033_v63 = vsel %vm16204_vm15, %v16106_v29, %v16203_v48  ;;  %v11039_v18 = vsel %vm2961_vm2, %v16119_v25, %v16205_v50  ;;  %v11045_v2 = vsel %vm2962_vm3, %v16120_v49, %v16207_v40  ;;  %v16209_v7 = vld [vmem:[#allocation102_spill] sm:$0xff]  ;;  %v16211_v29 = vld [vmem:[#allocation328_spill] sm:$0xff]  ;;  %v16214_v25 = vld [vmem:[#allocation39_spill] sm:$0xff] }
 0x34a   :  { %16206 = vst [vmem:[#allocation56_spill] sm:$0xff] %v11039_v18  ;;  %16208 = vst [vmem:[#allocation253_spill] sm:$0xff] %v11045_v2  ;;  %v11051_v24 = vsel %vm2963_vm0, %v16121_v55, %v16209_v7  ;;  %vm16212_vm8 = vcmp.ge.f32.partialorder %v16122_v44, 0.0  ;;  %v11061_v50 = vpack.c.bf16 %v10271_v42, %v16214_v25  ;;  %v16216_v10 = vld [vmem:[#allocation42_spill] sm:$0xff]  ;;  %v16217_v62 = vld [vmem:[#allocation43_spill] sm:$0xff] }
 0x34b   :  { %16210 = vst [vmem:[#allocation254_spill] sm:$0xff] %v11051_v24  ;;  %v11057_v48 = vsel %vm16212_vm8, %v16122_v44, %v16211_v29  ;;  %v11065_v49 = vpack.c.bf16 %v16217_v62, %v16216_v10  ;;  %v16219_v40 = vld [vmem:[#allocation103_spill] sm:$0xff]  ;;  %v16220_v2 = vld [vmem:[#allocation44_spill] sm:$0xff]  ;;  %v16222_v55 = vld [vmem:[#allocation218_spill] sm:$0xff] }
 0x34c   :  { %16213 = vst [vmem:[#allocation255_spill] sm:$0xff] %v11057_v48  ;;  %16215 = vst [vmem:[#allocation256_spill] sm:$0xff] %v11061_v50  ;;  %v11069_v58 = vpack.c.bf16 %v16220_v2, %v16219_v40  ;;  %v16223_v7 = vld [vmem:[#allocation105_spill] sm:$0xff]  ;;  %v16225_v18 = vld [vmem:[#allocation219_spill] sm:$0xff] }
 0x34d   :  { %16218 = vst [vmem:[#allocation69_spill] sm:$0xff] %v11065_v49  ;;  %v11073_v24 = vpack.c.bf16 %v16223_v7, %v16222_v55  ;;  %v11077_v44 = vpack.c.bf16 %v10299_v22, %v16225_v18  ;;  %v16227_v29 = vld [vmem:[#allocation220_spill] sm:$0xff]  ;;  %v16228_v48 = vld [vmem:[#allocation222_spill] sm:$0xff]  ;;  %v16230_v25 = vld [vmem:[#allocation221_spill] sm:$0xff] }
 0x34e   :  { %16221 = vst [vmem:[#allocation71_spill] sm:$0xff] %v11069_v58  ;;  %v11081_v42 = vpack.c.bf16 %v16228_v48, %v16227_v29  ;;  %v16231_v50 = vld [vmem:[#allocation223_spill] sm:$0xff]  ;;  %v16233_v10 = vld [vmem:[#allocation122_spill] sm:$0xff]  ;;  %v16234_v49 = vld [vmem:[#allocation224_spill] sm:$0xff] }
 0x34f   :  { %16224 = vst [vmem:[#allocation76_spill] sm:$0xff] %v11073_v24  ;;  %16226 = vst [vmem:[#allocation78_spill] sm:$0xff] %v11077_v44  ;;  %v11085_v62 = vpack.c.bf16 %v16231_v50, %v16230_v25  ;;  %v11089_v2 = vpack.c.bf16 %v16234_v49, %v16233_v10  ;;  %v16236_v40 = vld [vmem:[#allocation225_spill] sm:$0xff]  ;;  %v16238_v7 = vld [vmem:[#allocation124_spill] sm:$0xff] }
 0x350   :  { %16229 = vst [vmem:[#allocation121_spill] sm:$0xff] %v11081_v42  ;;  %v11093_v55 = vpack.c.bf16 %v10383_v15, %v16236_v40  ;;  %v16239_v58 = vld [vmem:[#allocation125_spill] sm:$0xff]  ;;  %v16241_v18 = vld [vmem:[#allocation50_spill] sm:$0xff]  ;;  %v16242_v44 = vld [vmem:[#allocation51_spill] sm:$0xff] }
 0x351   :  { %16232 = vst [vmem:[#allocation257_spill] sm:$0xff] %v11085_v62  ;;  %16235 = vst [vmem:[#allocation258_spill] sm:$0xff] %v11089_v2  ;;  %v11097_v22 = vpack.c.bf16 %v16239_v58, %v16238_v7  ;;  %v11101_v48 = vpack.c.bf16 %v16242_v44, %v16241_v18  ;;  %v16244_v29 = vld [vmem:[#allocation106_spill] sm:$0xff]  ;;  %v16245_v42 = vld [vmem:[#allocation53_spill] sm:$0xff] }
 0x352   :  { %16237 = vst [vmem:[#allocation259_spill] sm:$0xff] %v11093_v55  ;;  %v11105_v50 = vpack.c.bf16 %v16245_v42, %v16244_v29  ;;  %v16247_v25 = vld [vmem:[#allocation226_spill] sm:$0xff]  ;;  %v16248_v62 = vld [vmem:[#allocation36_spill] sm:$0xff]  ;;  %v16250_v10 = vld [vmem:[#allocation227_spill] sm:$0xff]  ;;  %v11125_v42 = vpack.c.bf16 %v10495_v59, %v10439_v52 }
 0x353   :  { %16240 = vst [vmem:[#allocation143_spill] sm:$0xff] %v11097_v22  ;;  %16243 = vst [vmem:[#allocation99_spill] sm:$0xff] %v11101_v48  ;;  %v11109_v49 = vpack.c.bf16 %v16248_v62, %v16247_v25  ;;  %v11113_v15 = vpack.c.bf16 %v10417_v21, %v16250_v10  ;;  %v16252_v40 = vld [vmem:[#allocation228_spill] sm:$0xff]  ;;  %v16253_v2 = vld [vmem:[#allocation231_spill] sm:$0xff] }
 0x354   :  { %16246 = vst [vmem:[#allocation114_spill] sm:$0xff] %v11105_v50  ;;  %v11117_v58 = vpack.c.bf16 %v16253_v2, %v16252_v40  ;;  %v16255_v7 = vld [vmem:[#allocation229_spill] sm:$0xff]  ;;  %v16256_v24 = vld [vmem:[#allocation232_spill] sm:$0xff]  ;;  %16258 = vst [vmem:[#allocation263_spill] sm:$0xff] %v11125_v42 }
 0x355   :  { %16249 = vst [vmem:[#allocation59_spill] sm:$0xff] %v11109_v49  ;;  %16251 = vst [vmem:[#allocation260_spill] sm:$0xff] %v11113_v15  ;;  %v11121_v44 = vpack.c.bf16 %v16256_v24, %v16255_v7  ;;  %v16259_v18 = vld [vmem:[#allocation236_spill] sm:$0xff]  ;;  %v16261_v29 = vld [vmem:[#allocation233_spill] sm:$0xff] }
 0x356   :  { %16254 = vst [vmem:[#allocation261_spill] sm:$0xff] %v11117_v58  ;;  %v11129_v62 = vpack.c.bf16 %v16259_v18, %v10445_v8  ;;  %v16262_v25 = vld [vmem:[#allocation237_spill] sm:$0xff]  ;;  %v16264_v10 = vld [vmem:[#allocation234_spill] sm:$0xff]  ;;  %v16276_v18 = vld [vmem:[#allocation235_spill] sm:$0xff] }
 0x357   :  { %16257 = vst [vmem:[#allocation262_spill] sm:$0xff] %v11121_v44  ;;  %v11133_v21 = vpack.c.bf16 %v16262_v25, %v16261_v29  ;;  %v16265_v49 = vld [vmem:[#allocation238_spill] sm:$0xff]  ;;  %v16271_v44 = vld [vmem:[#allocation64_spill] sm:$0xff]  ;;  %v16273_v59 = vld [vmem:[#allocation57_spill] sm:$0xff] }
 0x358   :  { %16260 = vst [vmem:[#allocation74_spill] sm:$0xff] %v11129_v62  ;;  %v11137_v2 = vpack.c.bf16 %v16265_v49, %v16264_v10  ;;  %v16267_v40 = vld [vmem:[#allocation126_spill] sm:$0xff]  ;;  %v16274_v15 = vld [vmem:[#allocation97_spill] sm:$0xff]  ;;  %v16277_v48 = vld [vmem:[#allocation108_spill] sm:$0xff] }
 0x359   :  { %16263 = vst [vmem:[#allocation80_spill] sm:$0xff] %v11133_v21  ;;  %v16268_v58 = vld [vmem:[#allocation62_spill] sm:$0xff]  ;;  %v11149_v8 = vpack.c.bf16 %v16274_v15, %v16273_v59  ;;  %v11153_v29 = vpack.c.bf16 %v16277_v48, %v16276_v18  ;;  %v16279_v25 = vld [vmem:[#allocation239_spill] sm:$0xff]  ;;  %v16281_v10 = vld [vmem:[#allocation240_spill] sm:$0xff] }
 0x35a   :  { %16266 = vst [vmem:[#allocation82_spill] sm:$0xff] %v11137_v2  ;;  %v11141_v24 = vpack.c.bf16 %v16268_v58, %v16267_v40  ;;  %v16270_v7 = vld [vmem:[#allocation54_spill] sm:$0xff]  ;;  %v11157_v49 = vpack.c.bf16 %v10607_v30, %v16279_v25  ;;  %v16282_v21 = vld [vmem:[#allocation244_spill] sm:$0xff]  ;;  %v16284_v40 = vld [vmem:[#allocation241_spill] sm:$0xff] }
 0x35b   :  { %v11145_v52 = vpack.c.bf16 %v16271_v44, %v16270_v7  ;;  %16275 = vst [vmem:[#allocation45_spill] sm:$0xff] %v11149_v8  ;;  %16278 = vst [vmem:[#allocation265_spill] sm:$0xff] %v11153_v29  ;;  %v11161_v58 = vpack.c.bf16 %v16282_v21, %v16281_v10  ;;  %v16287_v7 = vld [vmem:[#allocation242_spill] sm:$0xff]  ;;  %v16290_v59 = vld [vmem:[#allocation127_spill] sm:$0xff] }
 0x35c   :  { %16269 = vst [vmem:[#allocation174_spill] sm:$0xff] %v11141_v24  ;;  %16280 = vst [vmem:[#allocation266_spill] sm:$0xff] %v11157_v49  ;;  %v16285_v24 = vld [vmem:[#allocation245_spill] sm:$0xff]  ;;  %v16291_v8 = vld [vmem:[#allocation68_spill] sm:$0xff] }
 0x35d   :  { %16272 = vst [vmem:[#allocation264_spill] sm:$0xff] %v11145_v52  ;;  %16283 = vst [vmem:[#allocation30_spill] sm:$0xff] %v11161_v58  ;;  %v11165_v44 = vpack.c.bf16 %v16285_v24, %v16284_v40  ;;  %v16288_v52 = vld [vmem:[#allocation246_spill] sm:$0xff]  ;;  %v11173_v48 = vpack.c.bf16 %v16291_v8, %v16290_v59  ;;  %v16293_v18 = vld [vmem:[#allocation60_spill] sm:$0xff] }
 0x35e   :  { %v11169_v15 = vpack.c.bf16 %v16288_v52, %v16287_v7  ;;  %v16294_v29 = vld [vmem:[#allocation104_spill] sm:$0xff]  ;;  %v16296_v25 = vld [vmem:[#allocation66_spill] sm:$0xff]  ;;  %v16297_v2 = vld [vmem:[#allocation111_spill] sm:$0xff] }
 0x35f   :  { %16286 = vst [vmem:[#allocation156_spill] sm:$0xff] %v11165_v44  ;;  %16292 = vst [vmem:[#allocation267_spill] sm:$0xff] %v11173_v48  ;;  %v11177_v30 = vpack.c.bf16 %v16294_v29, %v16293_v18  ;;  %v11181_v21 = vpack.c.bf16 %v16297_v2, %v16296_v25  ;;  %v16299_v10 = vld [vmem:[#allocation243_spill] sm:$0xff]  ;;  %v16300_v50 = vld [vmem:[#allocation49_spill] sm:$0xff] }
 0x360   :  { %16289 = vst [vmem:[#allocation77_spill] sm:$0xff] %v11169_v15  ;;  %v11185_v24 = vpack.c.bf16 %v16300_v50, %v16299_v10  ;;  %v16302_v40 = vld [vmem:[#allocation247_spill] sm:$0xff]  ;;  %v16303_v44 = vld [vmem:[#allocation252_spill] sm:$0xff]  ;;  %v16308_v59 = vld [vmem:[#allocation249_spill] sm:$0xff] }
 0x361   :  { %16295 = vst [vmem:[#allocation268_spill] sm:$0xff] %v11177_v30  ;;  %16298 = vst [vmem:[#allocation269_spill] sm:$0xff] %v11181_v21  ;;  %v11189_v52 = vpack.c.bf16 %v16303_v44, %v16302_v40  ;;  %v16305_v7 = vld [vmem:[#allocation248_spill] sm:$0xff]  ;;  %v16309_v48 = vld [vmem:[#allocation119_spill] sm:$0xff] }
 0x362   :  { %16301 = vst [vmem:[#allocation270_spill] sm:$0xff] %v11185_v24  ;;  %v16306_v15 = vld [vmem:[#allocation100_spill] sm:$0xff]  ;;  %v11197_v29 = vpack.c.bf16 %v16309_v48, %v16308_v59  ;;  %v16311_v18 = vld [vmem:[#allocation250_spill] sm:$0xff]  ;;  %v16312_v30 = vld [vmem:[#allocation67_spill] sm:$0xff] }
 0x363   :  { %16304 = vst [vmem:[#allocation84_spill] sm:$0xff] %v11189_v52  ;;  %v11193_v8 = vpack.c.bf16 %v16306_v15, %v16305_v7  ;;  %v11201_v2 = vpack.c.bf16 %v16312_v30, %v16311_v18  ;;  %v16314_v25 = vld [vmem:[#allocation63_spill] sm:$0xff]  ;;  %v16315_v21 = vld [vmem:[#allocation73_spill] sm:$0xff]  ;;  %v16317_v10 = vld [vmem:[#allocation70_spill] sm:$0xff]  ;;  %v11221_v30 = vpack.c.bf16 %v10823_v17, %v10775_v16  ;;  %v11241_v16 = vpack.c.bf16 %v10853_v61, %v10805_v20 }
 0x364   :  { %16310 = vst [vmem:[#allocation177_spill] sm:$0xff] %v11197_v29  ;;  %v11205_v50 = vpack.c.bf16 %v16315_v21, %v16314_v25  ;;  %v16318_v24 = vld [vmem:[#allocation34_spill] sm:$0xff]  ;;  %v16320_v40 = vld [vmem:[#allocation72_spill] sm:$0xff]  ;;  %v16321_v52 = vld [vmem:[#allocation35_spill] sm:$0xff]  ;;  %v11225_v21 = vpack.c.bf16 %v10829_v60, %v10781_v23  ;;  %v11245_v23 = vpack.c.bf16 %v10859_v26, %v10811_v47  ;;  %v11261_v20 = vpack.c.bf16 %v10931_v27, %v10883_v1 }
 0x365   :  { %16307 = vst [vmem:[#allocation86_spill] sm:$0xff] %v11193_v8  ;;  %16313 = vst [vmem:[#allocation110_spill] sm:$0xff] %v11201_v2  ;;  %v11209_v44 = vpack.c.bf16 %v16318_v24, %v16317_v10  ;;  %v11213_v15 = vpack.c.bf16 %v16321_v52, %v16320_v40  ;;  %v16323_v7 = vld [vmem:[#allocation251_spill] sm:$0xff]  ;;  %v16324_v8 = vld [vmem:[#allocation101_spill] sm:$0xff]  ;;  %v11229_v24 = vpack.c.bf16 %v10835_v54, %v10787_v5 }
 0x366   :  { %16316 = vst [vmem:[#allocation107_spill] sm:$0xff] %v11205_v50  ;;  %v11217_v48 = vpack.c.bf16 %v16324_v8, %v16323_v7  ;;  %16326 = vst [vmem:[#allocation116_spill] sm:$0xff] %v11221_v30  ;;  %v11233_v52 = vpack.c.bf16 %v10841_v33, %v10793_v19  ;;  %v11237_v8 = vpack.c.bf16 %v10847_v37, %v10799_v3  ;;  %v16349_v1 = vld [vmem:[#allocation253_spill] sm:$0xff]  ;;  %v16365_v18 = vld [vmem:[#allocation142_spill] sm:$0xff] }
 0x367   :  { %16319 = vst [vmem:[#allocation271_spill] sm:$0xff] %v11209_v44  ;;  %16322 = vst [vmem:[#allocation272_spill] sm:$0xff] %v11213_v15  ;;  %v11249_v5 = vpack.c.bf16 %v10865_v51, %v10817_v43  ;;  %v11253_v19 = vpack.c.bf16 %v10919_v34, %v10871_v57  ;;  %v11257_v3 = vpack.c.bf16 %v10925_v0, %v10877_v4  ;;  %v16346_v51 = vld [vmem:[#allocation56_spill] sm:$0xff]  ;;  %v16355_v34 = vld [vmem:[#allocation255_spill] sm:$0xff] }
 0x368   :  { %16325 = vst [vmem:[#allocation273_spill] sm:$0xff] %v11217_v48  ;;  %16327 = vst [vmem:[#allocation31_spill] sm:$0xff] %v11225_v21  ;;  %v11265_v47 = vpack.c.bf16 %v10937_v11, %v10889_v28  ;;  %v11269_v43 = vpack.c.bf16 %v10943_v35, %v10895_v13  ;;  %v11273_v17 = vpack.c.bf16 %v10949_v31, %v10901_v14  ;;  %v16348_v4 = vld [vmem:[#allocation120_spill] sm:$0xff]  ;;  %v16352_v14 = vld [vmem:[#allocation254_spill] sm:$0xff] }
 0x369   :  { %16328 = vst [vmem:[#allocation79_spill] sm:$0xff] %v11229_v24  ;;  %16329 = vst [vmem:[#allocation81_spill] sm:$0xff] %v11233_v52  ;;  %v11277_v60 = vpack.c.bf16 %v10955_v6, %v10907_v53  ;;  %v11281_v54 = vpack.c.bf16 %v10961_v45, %v10913_v12  ;;  %v11285_v33 = vpack.c.bf16 %v11015_v9, %v10967_v38  ;;  %v16351_v13 = vld [vmem:[#allocation140_spill] sm:$0xff]  ;;  %v16354_v12 = vld [vmem:[#allocation113_spill] sm:$0xff] }
 0x36a   :  { %16330 = vst [vmem:[#allocation274_spill] sm:$0xff] %v11237_v8  ;;  %16331 = vst [vmem:[#allocation275_spill] sm:$0xff] %v11241_v16  ;;  %v11289_v37 = vpack.c.bf16 %v11021_v32, %v10973_v56  ;;  %v11293_v61 = vpack.c.bf16 %v11027_v46, %v10979_v36  ;;  %v11297_v26 = vpack.c.bf16 %v11033_v63, %v10985_v39  ;;  %v16357_v27 = vld [vmem:[#allocation217_spill] sm:$0xff]  ;;  %v16358_v11 = vld [vmem:[#allocation138_spill] sm:$0xff] }
 0x36b   :  { %16332 = vst [vmem:[#allocation276_spill] sm:$0xff] %v11245_v23  ;;  %16333 = vst [vmem:[#allocation277_spill] sm:$0xff] %v11249_v5  ;;  %v11301_v57 = vpack.c.bf16 %v16346_v51, %v10991_v41  ;;  %v11305_v28 = vpack.c.bf16 %v16349_v1, %v16348_v4  ;;  %v11309_v53 = vpack.c.bf16 %v16352_v14, %v16351_v13  ;;  %v16359_v31 = vld [vmem:[#allocation139_spill] sm:$0xff]  ;;  %v16360_v6 = vld [vmem:[#allocation129_spill] sm:$0xff] }
 0x36c   :  { %16334 = vst [vmem:[#allocation88_spill] sm:$0xff] %v11253_v19  ;;  %16335 = vst [vmem:[#allocation90_spill] sm:$0xff] %v11257_v3  ;;  %v11313_v0 = vpack.c.bf16 %v16355_v34, %v16354_v12  ;;  %v1901_v35 = vadd.f32 %v16358_v11, %v16357_v27  ;;  %v1366_v45 = vadd.f32 %v16360_v6, %v16359_v31  ;;  %v16361_v56 = vld [vmem:[#allocation61_spill] sm:$0xff]  ;;  %v16363_v9 = vld [vmem:[#allocation112_spill] sm:$0xff] }
 0x36d   :  { %16336 = vst [vmem:[#allocation178_spill] sm:$0xff] %v11261_v20  ;;  %16337 = vst [vmem:[#allocation117_spill] sm:$0xff] %v11265_v47  ;;  %v1660_v38 = vmul.f32 %v16359_v31, %v16359_v31  ;;  %v16362_v36 = vld [vmem:[#allocation133_spill] sm:$0xff]  ;;  %v1558_v41 = vmul.f32 %v16361_v56, %v16361_v56  ;;  %v1661_v63 = vmul.f32 %v16363_v9, %v16363_v9  ;;  %v16366_v10 = vld [vmem:[#allocation154_spill] sm:$0xff] }
 0x36e   :  { %16338 = vst [vmem:[#allocation278_spill] sm:$0xff] %v11269_v43  ;;  %16339 = vst [vmem:[#allocation58_spill] sm:$0xff] %v11273_v17  ;;  %v1400_v39 = vadd.f32 %v16362_v36, %v16361_v56  ;;  %v16364_v32 = vld [vmem:[#allocation145_spill] sm:$0xff]  ;;  %v1367_v59 = vrot.slane %v1366_v45, 4  ;;  %v16367_v40 = vld [vmem:[#allocation183_spill] sm:$0xff]  ;;  %v1559_v12 = vmul.f32 %v16366_v10, %v16366_v10 }
 0x36f   :  { %16340 = vst [vmem:[#allocation279_spill] sm:$0xff] %v11277_v60  ;;  %16341 = vst [vmem:[#allocation280_spill] sm:$0xff] %v11281_v54  ;;  %v1387_v46 = vadd.f32 %v16364_v32, %v16363_v9  ;;  %v1847_v25 = vadd.f32 %v16365_v18, %v1660_v38  ;;  %v1421_v7 = vadd.f32 %v16367_v40, %v16366_v10  ;;  %v16368_v51 = vld [vmem:[#allocation184_spill] sm:$0xff]  ;;  %v16369_v13 = vld [vmem:[#allocation185_spill] sm:$0xff] }
 0x370   :  { %16342 = vst [vmem:[#allocation85_spill] sm:$0xff] %v11285_v33  ;;  %16343 = vst [vmem:[#allocation130_spill] sm:$0xff] %v11289_v37  ;;  %v1881_v4 = vadd.f32 %v16368_v51, %v1558_v41  ;;  %v1868_v14 = vadd.f32 %v16369_v13, %v1661_v63  ;;  %v1368_v34 = vadd.f32 %v1367_v59, %v1366_v45  ;;  %v16370_v11 = vld [vmem:[#allocation32_spill] sm:$0xff]  ;;  %v16371_v41 = vld [vmem:[#allocation186_spill] sm:$0xff] }
 0x371   :  { %16344 = vst [vmem:[#allocation92_spill] sm:$0xff] %v11293_v61  ;;  %16345 = vst [vmem:[#allocation179_spill] sm:$0xff] %v11297_v26  ;;  %v1388_v1 = vrot.slane %v1387_v46, 4  ;;  %v1848_v27 = vrot.slane %v1847_v25, 4  ;;  %v1401_v6 = vadd.f32 %v1400_v39, %v16370_v11  ;;  %v1571_v36 = vmul.f32 %v16370_v11, %v16370_v11  ;;  %v16372_v13 = vld [vmem:[#allocation83_spill] sm:$0xff]  ;;  %v16373_v23 = vld [vmem:[#allocation188_spill] sm:$0xff] }
 0x372   :  { %16347 = vst [vmem:[#allocation281_spill] sm:$0xff] %v11301_v57  ;;  %16350 = vst [vmem:[#allocation282_spill] sm:$0xff] %v11305_v28  ;;  %v1869_v38 = vrot.slane %v1868_v14, 4  ;;  %v1902_v18 = vadd.f32 %v1901_v35, %v1559_v12  ;;  %v1422_v51 = vadd.f32 %v1421_v7, %v16371_v41  ;;  %v1495_v54 = vmul.f32 %v16372_v13, %v16372_v13  ;;  %v16379_v8 = vld [vmem:[#allocation195_spill] sm:$0xff]  ;;  %v11398_v61 = vld [vmem:[#allocation9 + $0x8] sm:$0x1f] }
 0x373   :  { %16353 = vst [vmem:[#allocation283_spill] sm:$0xff] %v11309_v53  ;;  %16356 = vst [vmem:[#allocation284_spill] sm:$0xff] %v11313_v0  ;;  %v1389_v32 = vadd.f32 %v1388_v1, %v1387_v46  ;;  %v1369_v53 = vrot.slane %v1368_v34, 2  ;;  %v1849_v40 = vadd.f32 %v1848_v27, %v1847_v25  ;;  %v1882_v0 = vadd.f32 %v1881_v4, %v1571_v36  ;;  %v16374_v1 = vld [vmem:[#allocation187_spill] sm:$0xff]  ;;  %v16391_v47 = vld [vmem:[#allocation208_spill] sm:$0xff] }
 0x374   :  { %v1870_v63 = vadd.f32 %v1869_v38, %v1868_v14  ;;  %v1572_v45 = vmul.f32 %v16371_v41, %v16371_v41  ;;  %v1402_v5 = vadd.f32 %v1401_v6, %v16373_v23  ;;  %v1584_v35 = vmul.f32 %v16373_v23, %v16373_v23  ;;  %v16375_v36 = vld [vmem:[#allocation191_spill] sm:$0xff]  ;;  %v16393_v52 = vld [vmem:[#allocation40_spill] sm:$0xff]  ;;  %v16397_v37 = vld [vmem:[#allocation213_spill] sm:$0xff] }
 0x375   :  { %v1390_v60 = vrot.slane %v1389_v32, 2  ;;  %v1370_v39 = vadd.f32 %v1369_v53, %v1368_v34  ;;  %v1850_v59 = vrot.slane %v1849_v40, 2  ;;  %v1469_v7 = vmul.f32 %v16374_v1, %v16374_v1  ;;  %v16376_v34 = vld [vmem:[#allocation192_spill] sm:$0xff]  ;;  %v16399_v49 = vld [vmem:[#allocation215_spill] sm:$0xff]  ;;  %v16401_v62 = vld [vmem:[#allocation230_spill] sm:$0xff] }
 0x376   :  { %v1871_v25 = vrot.slane %v1870_v63, 2  ;;  %v1903_v4 = vadd.f32 %v1902_v18, %v1572_v45  ;;  %v1883_v27 = vadd.f32 %v1882_v0, %v1584_v35  ;;  %v1423_v38 = vadd.f32 %v1422_v51, %v16375_v36  ;;  %v16377_v18 = vld [vmem:[#allocation193_spill] sm:$0xff] }
 0x377   :  { %v1391_v46 = vadd.f32 %v1390_v60, %v1389_v32  ;;  %v1371_v14 = vrot.slane %v1370_v39, 1  ;;  %v1851_v12 = vadd.f32 %v1850_v59, %v1849_v40  ;;  %v1585_v53 = vmul.f32 %v16375_v36, %v16375_v36 }
 0x378   :  { %v1872_v48 = vadd.f32 %v1871_v25, %v1870_v63  ;;  %v1436_v6 = vadd.f32 %v16376_v34, %v16374_v1  ;;  %v1482_v32 = vmul.f32 %v16376_v34, %v16376_v34  ;;  %v1403_v45 = vadd.f32 %v1402_v5, %v16377_v18 }
 0x379   :  { %v1392_v15 = vrot.slane %v1391_v46, 1  ;;  %v1372_v57 = vadd.f32 %v1371_v14, %v1370_v39  ;;  %v1852_v60 = vrot.slane %v1851_v12, 1  ;;  %v1904_v0 = vadd.f32 %v1903_v4, %v1585_v53  ;;  %v16378_v14 = vld [vmem:[#allocation189_spill] sm:$0xff] }
 0x37a   :  { %v1873_v40 = vrot.slane %v1872_v48, 1  ;;  %v1437_v51 = vadd.f32 %v16372_v13, %v1436_v6  ;;  %v1917_v35 = vadd.f32 %v1482_v32, %v1469_v7  ;;  %v1597_v25 = vmul.f32 %v16377_v18, %v16377_v18  ;;  %v16380_v6 = vld [vmem:[#allocation196_spill] sm:$0xff]  ;;  %v16381_v32 = vld [vmem:[#allocation197_spill] sm:$0xff] }
 0x37b   :  { %v1393_v28 = vadd.f32 %v1392_v15, %v1391_v46  ;;  %v1853_v59 = vadd.f32 %v1852_v60, %v1851_v12  ;;  %v11358_v63 = vmul.f32 0.0078125, %v1372_v57  ;;  %v1508_v17 = vmul.f32 %v16378_v14, %v16378_v14 }
 0x37c   :  { %v1874_v43 = vadd.f32 %v1873_v40, %v1872_v48  ;;  %v1424_v5 = vadd.f32 %v1423_v38, %v16379_v8  ;;  %v1918_v4 = vadd.f32 %v1917_v35, %v1495_v54  ;;  %v1884_v12 = vadd.f32 %v1883_v27, %v1597_v25  ;;  %v16382_v25 = vld [vmem:[#allocation199_spill] sm:$0xff] }
 0x37d   :  { %v11362_v39 = vmul.f32 0.0078125, %v1393_v28  ;;  %v1959_v15 = vmul.f32 0.0078125, %v1853_v59  ;;  %v1972_v46 = vmul.f32 %v11358_v63, %v11358_v63  ;;  %v1598_v48 = vmul.f32 %v16379_v8, %v16379_v8 }
 0x37e   :  { %v1960_v57 = vmul.f32 0.0078125, %v1874_v43  ;;  %v1438_v28 = vadd.f32 %v16378_v14, %v1437_v51  ;;  %v1521_v60 = vmul.f32 %v16380_v6, %v16380_v6  ;;  %v1919_v38 = vadd.f32 %v1918_v4, %v1508_v17 }
 0x37f   :  { %v1973_v7 = vmul.f32 %v11362_v39, %v11362_v39  ;;  %v1985_v53 = vsub.f32 %v1959_v15, %v1972_v46  ;;  %v1404_v40 = vadd.f32 %v1403_v45, %v16381_v32  ;;  %v1905_v16 = vadd.f32 %v1904_v0, %v1598_v48  ;;  %v16383_v46 = vld [vmem:[#allocation200_spill] sm:$0xff]  ;;  %v16384_v0 = vld [vmem:[#allocation201_spill] sm:$0xff] }
 0x380   :  { %v1439_v54 = vadd.f32 %v1438_v28, %v16380_v6  ;;  %v1610_v43 = vmul.f32 %v16381_v32, %v16381_v32  ;;  %v1920_v35 = vadd.f32 %v1919_v38, %v1521_v60  ;;  %v1425_v50 = vadd.f32 %v1424_v5, %v16382_v25  ;;  %v16385_v28 = vld [vmem:[#allocation194_spill] sm:$0xff] }
 0x381   :  { %v1986_v59 = vsub.f32 %v1960_v57, %v1973_v7  ;;  %v1998_v27 = vmax.f32 %v1985_v53, 0.0  ;;  %v1611_v15 = vmul.f32 %v16382_v25, %v16382_v25  ;;  %v1534_v45 = vmul.f32 %v16383_v46, %v16383_v46 }
 0x382   :  { %v1885_v51 = vadd.f32 %v1884_v12, %v1610_v43  ;;  %v1440_v17 = vadd.f32 %v1439_v54, %v16383_v46  ;;  %v1405_v57 = vadd.f32 %v1404_v40, %v16384_v0  ;;  %v1623_v7 = vmul.f32 %v16384_v0, %v16384_v0  ;;  %v16387_v43 = vld [vmem:[#allocation198_spill] sm:$0xff] }
 0x383   :  { %v1999_v44 = vmax.f32 %v1986_v59, 0.0  ;;  %v2011_v4 = vadd.f32 1e-05, %v1998_v27  ;;  %v1547_v5 = vmul.f32 %v16385_v28, %v16385_v28  ;;  %v1906_v53 = vadd.f32 %v1905_v16, %v1611_v15  ;;  %v16386_v59 = vld [vmem:[#allocation203_spill] sm:$0xff]  ;;  %v16388_v16 = vld [vmem:[#allocation204_spill] sm:$0xff] }
 0x384   :  { %v1441_v12 = vadd.f32 %v16385_v28, %v1440_v17  ;;  %v1921_v60 = vadd.f32 %v1920_v35, %v1534_v45  ;;  %v1886_v38 = vadd.f32 %v1885_v51, %v1623_v7  ;;  %v1426_v54 = vadd.f32 %v1425_v50, %v16386_v59  ;;  %v16389_v17 = vld [vmem:[#allocation205_spill] sm:$0xff]  ;;  %v16390_v45 = vld [vmem:[#allocation207_spill] sm:$0xff] }
 0x385   :  { %v2012_v48 = vadd.f32 1e-05, %v1999_v44  ;;  %7034 = vrsqrt.f32 %v2011_v4  ;;  %v1560_v27 = vmul.f32 %v16387_v43, %v16387_v43  ;;  %v1624_v40 = vmul.f32 %v16386_v59, %v16386_v59 }
 0x386   :  { %v1442_v44 = vadd.f32 %v16387_v43, %v1441_v12  ;;  %v1922_v26 = vadd.f32 %v1921_v60, %v1547_v5  ;;  %v1573_v15 = vmul.f32 %v16388_v16, %v16388_v16  ;;  %v1406_v35 = vadd.f32 %v1405_v57, %v16389_v17  ;;  %v16392_v60 = vld [vmem:[#allocation209_spill] sm:$0xff] }
 0x387   :  { %7036 = vrsqrt.f32 %v2012_v48  ;;  %v1636_v50 = vmul.f32 %v16389_v17, %v16389_v17  ;;  %v1907_v51 = vadd.f32 %v1906_v53, %v1624_v40  ;;  %v1427_v7 = vadd.f32 %v1426_v54, %v16390_v45  ;;  %v16394_v54 = vld [vmem:[#allocation41_spill] sm:$0xff] }
 0x388   :  { %v1443_v4 = vadd.f32 %v1442_v44, %v16388_v16  ;;  %v1637_v48 = vmul.f32 %v16390_v45, %v16390_v45  ;;  %v1923_v12 = vadd.f32 %v1922_v26, %v1560_v27  ;;  %v1586_v5 = vmul.f32 %v16391_v47, %v16391_v47  ;;  %v16395_v26 = vld [vmem:[#allocation211_spill] sm:$0xff] }
 0x389   :  { %v1887_v20 = vadd.f32 %v1886_v38, %v1636_v50  ;;  %v1407_v24 = vadd.f32 %v1406_v35, %v16392_v60  ;;  %v2066_v57 = vrot.slane %v11398_v61, %v16393_v52  ;;  %v1649_v40 = vmul.f32 %v16392_v60, %v16392_v60  ;;  %v16396_v50 = vld [vmem:[#allocation202_spill] sm:$0xff] }
 0x38a   :  { %v1908_v29 = vadd.f32 %v1907_v51, %v1637_v48  ;;  %v1444_v53 = vadd.f32 %v1443_v4, %v16391_v47  ;;  %v2070_v44 = vrot.slane %v11398_v61, %v16394_v54  ;;  %v1924_v2 = vadd.f32 %v1923_v12, %v1573_v15  ;;  %v16398_v48 = vld [vmem:[#allocation206_spill] sm:$0xff] }
 0x38b   :  { %v1428_v38 = vadd.f32 %v1427_v7, %v16395_v26  ;;  %v1650_v27 = vmul.f32 %v16395_v26, %v16395_v26  ;;  %v1888_v33 = vadd.f32 %v1887_v20, %v1649_v40  ;;  %v1408_v19 = vadd.f32 %v1407_v24, %v16397_v37  ;;  %v16400_v24 = vld [vmem:[#allocation212_spill] sm:$0xff] }
 0x38c   :  { %v1445_v35 = vadd.f32 %v16396_v50, %v1444_v53  ;;  %v1662_v51 = vmul.f32 %v16397_v37, %v16397_v37  ;;  %v1599_v4 = vmul.f32 %v16396_v50, %v16396_v50  ;;  %v1612_v3 = vmul.f32 %v16398_v48, %v16398_v48 }
 0x38d   :  { %v1925_v15 = vadd.f32 %v1924_v2, %v1586_v5  ;;  %v1909_v12 = vadd.f32 %v1908_v29, %v1650_v27  ;;  %v1409_v30 = vrot.slane %v1408_v19, 4  ;;  %v1429_v53 = vadd.f32 %v1428_v38, %v16399_v49 }
 0x38e   :  { %v1446_v7 = vadd.f32 %v16398_v48, %v1445_v35  ;;  %v1889_v21 = vadd.f32 %v1888_v33, %v1662_v51  ;;  %v1625_v58 = vmul.f32 %v16400_v24, %v16400_v24  ;;  %v1663_v42 = vmul.f32 %v16399_v49, %v16399_v49 }
 0x38f   :  { %v7035_v20 = vpop.eup %7034  ;;  %v1926_v40 = vadd.f32 %v1925_v15, %v1599_v4  ;;  %v1638_v55 = vmul.f32 %v16401_v62, %v16401_v62  ;;  %v1410_v5 = vadd.f32 %v1409_v30, %v1408_v19  ;;  %v1430_v38 = vrot.slane %v1429_v53, 4  ;;  %v16402_v30 = vld [vmem:[#allocation144_spill] sm:$0xff] }
 0x390   :  { %v2104_v2 = vmul.f32 %v7035_v20, %v2066_v57  ;;  %v1447_v29 = vadd.f32 %v1446_v7, %v16400_v24  ;;  %v1890_v27 = vrot.slane %v1889_v21, 4  ;;  %v1910_v51 = vadd.f32 %v1909_v12, %v1663_v42  ;;  %v16406_v42 = vld [vmem:[#allocation149_spill] sm:$0xff] }
 0x391   :  { %v7037_v22 = vpop.eup %7036  ;;  %v1927_v35 = vadd.f32 %v1926_v40, %v1612_v3  ;;  %v1411_v54 = vrot.slane %v1410_v5, 2  ;;  %v1431_v7 = vadd.f32 %v1430_v38, %v1429_v53 }
 0x392   :  { %v2105_v33 = vmul.f32 %v7037_v22, %v2070_v44  ;;  %v11440_v4 = vmul.f32 %v2104_v2, %v11358_v63  ;;  %v2262_v15 = vrot.slane %v2104_v2, %v16393_v52  ;;  %v1891_v48 = vadd.f32 %v1890_v27, %v1889_v21  ;;  %v16404_v22 = vld [vmem:[#allocation147_spill] sm:$0xff]  ;;  %v16410_v21 = vld [vmem:[#allocation153_spill] sm:$0xff]  ;;  %v16416_v27 = vld [vmem:[#allocation162_spill] sm:$0xff] }
 0x393   :  { %v1928_v20 = vadd.f32 %v1927_v35, %v1625_v58  ;;  %v16408_v44 = vld [vmem:[#allocation151_spill] sm:$0xff]  ;;  %v16414_v58 = vld [vmem:[#allocation160_spill] sm:$0xff]  ;;  %v16418_v35 = vld [vmem:[#allocation109_spill] sm:$0xff] }
 0x394   :  { %v11444_v50 = vmul.f32 %v2105_v33, %v11362_v39  ;;  %v2266_v57 = vrot.slane %v2105_v33, %v16393_v52  ;;  %v11448_v19 = vmul.f32 %v2262_v15, %v16402_v30  ;;  %v11451_v3 = vmul.f32 %v2262_v15, %v16404_v22  ;;  %v16412_v39 = vld [vmem:[#allocation157_spill] sm:$0xff] }
 0x395   :  { %v11454_v63 = vmul.f32 %v2262_v15, %v16406_v42  ;;  %v11457_v12 = vmul.f32 %v2262_v15, %v16408_v44  ;;  %v11460_v40 = vmul.f32 %v2262_v15, %v16410_v21  ;;  %v11463_v2 = vmul.f32 %v2262_v15, %v16412_v39  ;;  %v16420_v30 = vld [vmem:[#allocation141_spill] sm:$0xff]  ;;  %v16422_v42 = vld [vmem:[#allocation166_spill] sm:$0xff] }
 0x396   :  { %16403 = vst [vmem:[#allocation118_spill] sm:$0xff] %v11448_v19  ;;  %16405 = vst [vmem:[#allocation33_spill] sm:$0xff] %v11451_v3  ;;  %v11466_v53 = vmul.f32 %v2262_v15, %v16414_v58  ;;  %v11469_v33 = vmul.f32 %v2262_v15, %v16416_v27  ;;  %v11472_v38 = vmul.f32 %v2262_v15, %v16418_v35  ;;  %v16424_v21 = vld [vmem:[#allocation170_spill] sm:$0xff]  ;;  %v16428_v58 = vld [vmem:[#allocation123_spill] sm:$0xff] }
 0x397   :  { %16407 = vst [vmem:[#allocation87_spill] sm:$0xff] %v11454_v63  ;;  %16409 = vst [vmem:[#allocation89_spill] sm:$0xff] %v11457_v12  ;;  %v11475_v22 = vmul.f32 %v2262_v15, %v16420_v30  ;;  %v11478_v44 = vmul.f32 %v2262_v15, %v16422_v42  ;;  %v16426_v39 = vld [vmem:[#allocation134_spill] sm:$0xff]  ;;  %v16430_v27 = vld [vmem:[#allocation181_spill] sm:$0xff]  ;;  %v11493_v35 = vmul.f32 %v2262_v15, %v16359_v31  ;;  %v1432_v63 = vrot.slane %v1431_v7, 2 }
 0x398   :  { %16411 = vst [vmem:[#allocation285_spill] sm:$0xff] %v11460_v40  ;;  %16413 = vst [vmem:[#allocation286_spill] sm:$0xff] %v11463_v2  ;;  %v11481_v40 = vmul.f32 %v2262_v15, %v16424_v21  ;;  %v11484_v2 = vmul.f32 %v2262_v15, %v16426_v39  ;;  %v16433_v42 = vld [vmem:[#allocation146_spill] sm:$0xff]  ;;  %v16435_v21 = vld [vmem:[#allocation148_spill] sm:$0xff] }
 0x399   :  { %16415 = vst [vmem:[#allocation287_spill] sm:$0xff] %v11466_v53  ;;  %16417 = vst [vmem:[#allocation136_spill] sm:$0xff] %v11469_v33  ;;  %v11487_v53 = vmul.f32 %v2262_v15, %v16428_v58  ;;  %v11490_v33 = vmul.f32 %v2262_v15, %v16430_v27  ;;  %v16437_v39 = vld [vmem:[#allocation150_spill] sm:$0xff]  ;;  %v16439_v58 = vld [vmem:[#allocation152_spill] sm:$0xff] }
 0x39a   :  { %16419 = vst [vmem:[#allocation135_spill] sm:$0xff] %v11472_v38  ;;  %16421 = vst [vmem:[#allocation95_spill] sm:$0xff] %v11475_v22  ;;  %v16441_v27 = vld [vmem:[#allocation155_spill] sm:$0xff]  ;;  %v16443_v31 = vld [vmem:[#allocation158_spill] sm:$0xff] }
 0x39b   :  { %16423 = vst [vmem:[#allocation180_spill] sm:$0xff] %v11478_v44  ;;  %16425 = vst [vmem:[#allocation190_spill] sm:$0xff] %v11481_v40  ;;  %v11498_v44 = vmul.f32 %v2266_v57, %v16433_v42  ;;  %v11501_v40 = vmul.f32 %v2266_v57, %v16435_v21  ;;  %v11513_v15 = vmul.f32 %v2266_v57, %v16443_v31  ;;  %v16447_v42 = vld [vmem:[#allocation98_spill] sm:$0xff]  ;;  %v16449_v21 = vld [vmem:[#allocation132_spill] sm:$0xff] }
 0x39c   :  { %16427 = vst [vmem:[#allocation52_spill] sm:$0xff] %v11484_v2  ;;  %16429 = vst [vmem:[#allocation65_spill] sm:$0xff] %v11487_v53  ;;  %v11504_v2 = vmul.f32 %v2266_v57, %v16437_v39  ;;  %v11507_v53 = vmul.f32 %v2266_v57, %v16439_v58  ;;  %v11519_v22 = vmul.f32 %v2266_v57, %v16447_v42  ;;  %v16451_v39 = vld [vmem:[#allocation164_spill] sm:$0xff]  ;;  %v16453_v58 = vld [vmem:[#allocation210_spill] sm:$0xff] }
 0x39d   :  { %16431 = vst [vmem:[#allocation288_spill] sm:$0xff] %v11490_v33  ;;  %16432 = vst [vmem:[#allocation289_spill] sm:$0xff] %v11493_v35  ;;  %v11510_v33 = vmul.f32 %v2266_v57, %v16441_v27  ;;  %v16445_v35 = vld [vmem:[#allocation161_spill] sm:$0xff]  ;;  %v11522_v38 = vmul.f32 %v2266_v57, %v16449_v21  ;;  %v11525_v12 = vmul.f32 %v2266_v57, %v16451_v39  ;;  %v16454_v27 = vld [vmem:[#allocation168_spill] sm:$0xff] }
 0x39e   :  { %16434 = vst [vmem:[#allocation75_spill] sm:$0xff] %v11498_v44  ;;  %16436 = vst [vmem:[#allocation290_spill] sm:$0xff] %v11501_v40  ;;  %v11516_v30 = vmul.f32 %v2266_v57, %v16445_v35  ;;  %v16456_v31 = vld [vmem:[#allocation172_spill] sm:$0xff]  ;;  %v16458_v35 = vld [vmem:[#allocation91_spill] sm:$0xff]  ;;  %v11545_v39 = vmul.f32 %v2266_v57, %v16363_v9 }
 0x39f   :  { %16438 = vst [vmem:[#allocation291_spill] sm:$0xff] %v11504_v2  ;;  %16440 = vst [vmem:[#allocation292_spill] sm:$0xff] %v11507_v53  ;;  %v1651_v53 = vmul.f32 %v16453_v58, %v16453_v58  ;;  %v16460_v42 = vld [vmem:[#allocation175_spill] sm:$0xff]  ;;  %v16462_v21 = vld [vmem:[#allocation93_spill] sm:$0xff]  ;;  %v1892_v2 = vrot.slane %v1891_v48, 2 }
 0x3a0   :  { %16442 = vst [vmem:[#allocation293_spill] sm:$0xff] %v11510_v33  ;;  %16444 = vst [vmem:[#allocation294_spill] sm:$0xff] %v11513_v15  ;;  %v11530_v33 = vmul.f32 %v2266_v57, %v16454_v27  ;;  %v11533_v15 = vmul.f32 %v2266_v57, %v16456_v31  ;;  %v1911_v27 = vrot.slane %v1910_v51, 4  ;;  %v1929_v31 = vadd.f32 %v1928_v20, %v1638_v55 }
 0x3a1   :  { %16446 = vst [vmem:[#allocation295_spill] sm:$0xff] %v11516_v30  ;;  %16448 = vst [vmem:[#allocation296_spill] sm:$0xff] %v11519_v22  ;;  %v11536_v30 = vmul.f32 %v2266_v57, %v16458_v35  ;;  %v11539_v22 = vmul.f32 %v2266_v57, %v16460_v42  ;;  %v1893_v40 = vadd.f32 %v1892_v2, %v1891_v48  ;;  %v16465_v35 = vld [vmem:[#allocation214_spill] sm:$0xff] }
 0x3a2   :  { %16450 = vst [vmem:[#allocation297_spill] sm:$0xff] %v11522_v38  ;;  %16452 = vst [vmem:[#allocation298_spill] sm:$0xff] %v11525_v12  ;;  %v11542_v38 = vmul.f32 %v2266_v57, %v16462_v21  ;;  %v1412_v12 = vadd.f32 %v1411_v54, %v1410_v5  ;;  %v1433_v42 = vadd.f32 %v1432_v63, %v1431_v7 }
 0x3a3   :  { %16455 = vst [vmem:[#allocation299_spill] sm:$0xff] %v11530_v33  ;;  %16457 = vst [vmem:[#allocation300_spill] sm:$0xff] %v11533_v15  ;;  %v1448_v33 = vadd.f32 %v1447_v29, %v16401_v62  ;;  %v1894_v9 = vrot.slane %v1893_v40, 1 }
 0x3a4   :  { %16459 = vst [vmem:[#allocation301_spill] sm:$0xff] %v11536_v30  ;;  %16461 = vst [vmem:[#allocation302_spill] sm:$0xff] %v11539_v22  ;;  %v1413_v15 = vrot.slane %v1412_v12, 1  ;;  %v1664_v30 = vmul.f32 %v16465_v35, %v16465_v35  ;;  %v1912_v22 = vadd.f32 %v1911_v27, %v1910_v51  ;;  %v1434_v57 = vrot.slane %v1433_v42, 1 }
 0x3a5   :  { %16463 = vst [vmem:[#allocation303_spill] sm:$0xff] %v11542_v38  ;;  %16464 = vst [vmem:[#allocation304_spill] sm:$0xff] %v11545_v39  ;;  %v1449_v21 = vadd.f32 %v16453_v58, %v1448_v33  ;;  %v1930_v38 = vadd.f32 %v1929_v31, %v1651_v53  ;;  %v1895_v44 = vadd.f32 %v1894_v9, %v1893_v40 }
 0x3a6   :  { %v1414_v3 = vadd.f32 %v1413_v15, %v1412_v12  ;;  %v1913_v54 = vrot.slane %v1912_v22, 2  ;;  %v1435_v55 = vadd.f32 %v1434_v57, %v1433_v42 }
 0x3a7   :  { %v1450_v5 = vadd.f32 %v16465_v35, %v1449_v21  ;;  %v1931_v39 = vadd.f32 %v1930_v38, %v1664_v30  ;;  %v1961_v19 = vmul.f32 0.0078125, %v1895_v44 }
 0x3a8   :  { %v1948_v29 = vmul.f32 0.0078125, %v1414_v3  ;;  %v1914_v20 = vadd.f32 %v1913_v54, %v1912_v22  ;;  %v11552_v51 = vmul.f32 0.0078125, %v1435_v55 }
 0x3a9   :  { %v1451_v48 = vrot.slane %v1450_v5, 4  ;;  %v1932_v2 = vrot.slane %v1931_v39, 4 }
 0x3aa   :  { %v1974_v62 = vmul.f32 %v1948_v29, %v1948_v29  ;;  %v1915_v7 = vrot.slane %v1914_v20, 1  ;;  %v1975_v15 = vmul.f32 %v11552_v51, %v11552_v51 }
 0x3ab   :  { %v1452_v63 = vadd.f32 %v1451_v48, %v1450_v5  ;;  %v1933_v53 = vadd.f32 %v1932_v2, %v1931_v39 }
 0x3ac   :  { %v1987_v12 = vsub.f32 %v1961_v19, %v1974_v62  ;;  %v1916_v33 = vadd.f32 %v1915_v7, %v1914_v20 }
 0x3ad   :  { %v1453_v27 = vrot.slane %v1452_v63, 2  ;;  %v1934_v38 = vrot.slane %v1933_v53, 2 }
 0x3ae   :  { %v2000_v40 = vmax.f32 %v1987_v12, 0.0  ;;  %v1962_v3 = vmul.f32 0.0078125, %v1916_v33 }
 0x3af   :  { %v1454_v30 = vadd.f32 %v1453_v27, %v1452_v63  ;;  %v1935_v22 = vadd.f32 %v1934_v38, %v1933_v53 }
 0x3b0   :  { %v2013_v31 = vadd.f32 1e-05, %v2000_v40  ;;  %v1988_v42 = vsub.f32 %v1962_v3, %v1975_v15 }
 0x3b1   :  { %v1455_v44 = vrot.slane %v1454_v30, 1  ;;  %v1936_v21 = vrot.slane %v1935_v22, 1 }
 0x3b2   :  { %7038 = vrsqrt.f32 %v2013_v31  ;;  %v2001_v9 = vmax.f32 %v1988_v42, 0.0 }
 0x3b3   :  { %v1456_v39 = vadd.f32 %v1455_v44, %v1454_v30  ;;  %v1937_v62 = vadd.f32 %v1936_v21, %v1935_v22 }
 0x3b4   :  { %7202 = shalt.err (!%p7199_p11)  }
 0x3b5   :  { %s7203_s21 = scalar_lea.vmem %s159_s17, 3072  ;;  %p7208_p13 = scmp.lt.s32.totalorder %s159_s17, %s159_s17 }
 0x3b6   :  { %p7204_p12 = scmp.ne.s32.totalorder %s159_s17, %s7203_s21  ;;  %p7209_p0 = scmp.lt.s32.totalorder %s7203_s21, %s7203_s21 }
 0x3b8   :  { %p7210_p1 = por %p7209_p0, %p7208_p13 }
 0x3ba   :  { %p7211_p2 = pnand %p7210_p1, %p7204_p12 }
 0x3bc   :  { %7214 = shalt.err (!%p7211_p2)  }
 0x3bd   :  { %161 = dma.hbm_to_vmem [thread:$0]  %s14574_s8, 3072, %s159_s17, [#allocation4 + $0x1]  ;;  %v2014_v19 = vadd.f32 1e-05, %v2001_v9  ;;  %v1950_v57 = vmul.f32 0.0078125, %v1456_v39  ;;  %v1963_v54 = vmul.f32 0.0078125, %v1937_v62  ;;  %v7039_v7 = vpop.eup %7038 }
 0x3be   :  { %v16466_v55 = vld [vmem:[#allocation46_spill] sm:$0xff]  ;;  %v16467_v15 = vld [vmem:[#allocation47_spill] sm:$0xff]  ;;  %v16468_v38 = vld [vmem:[#allocation128_spill] sm:$0xff] }
 0x3bf   :  { %v1976_v5 = vmul.f32 %v1950_v57, %v1950_v57  ;;  %7040 = vrsqrt.f32 %v2014_v19  ;;  %v2074_v20 = vrot.slane %v11398_v61, %v16466_v55  ;;  %v2078_v27 = vrot.slane %v11398_v61, %v16467_v15  ;;  %v16469_v3 = vld [vmem:[#allocation163_spill] sm:$0xff]  ;;  %v16474_v19 = vld [vmem:[#allocation182_spill] sm:$0xff] }
 0x3c0   :  { %v16470_v22 = vld [vmem:[#allocation167_spill] sm:$0xff] }
 0x3c1   :  { %v1989_v48 = vsub.f32 %v1963_v54, %v1976_v5  ;;  %v2106_v63 = vmul.f32 %v7039_v7, %v2074_v20  ;;  %v16471_v42 = vld [vmem:[#allocation171_spill] sm:$0xff] }
 0x3c2   :  { %v16473_v39 = vld [vmem:[#allocation131_spill] sm:$0xff] }
 0x3c3   :  { %v2002_v2 = vmax.f32 %v1989_v48, 0.0  ;;  %v2119_v12 = vmul.f32 %v2106_v63, %v1948_v29  ;;  %v2270_v33 = vrot.slane %v2106_v63, %v16393_v52  ;;  %v16472_v29 = vld [vmem:[#allocation159_spill] sm:$0xff] }
 0x3c5   :  { %v2015_v53 = vadd.f32 1e-05, %v2002_v2  ;;  %v11574_v40 = vmul.f32 %v2270_v33, %v16468_v38  ;;  %v11577_v30 = vmul.f32 %v2270_v33, %v16469_v3  ;;  %v11580_v31 = vmul.f32 %v2270_v33, %v16470_v22  ;;  %v16477_v3 = vld [vmem:[#allocation48_spill] sm:$0xff]  ;;  %v16479_v22 = vld [vmem:[#allocation55_spill] sm:$0xff] }
 0x3c6   :  { %v11583_v44 = vmul.f32 %v2270_v33, %v16471_v42  ;;  %v11586_v9 = vmul.f32 %v2270_v33, %v16472_v29  ;;  %v11589_v62 = vmul.f32 %v2270_v33, %v16473_v39  ;;  %v11592_v54 = vmul.f32 %v2270_v33, %v16474_v19  ;;  %v16480_v29 = vld [vmem:[#allocation137_spill] sm:$0xff] }
 0x3c7   :  { %7042 = vrsqrt.f32 %v2015_v53  ;;  %v11595_v5 = vmul.f32 %v2270_v33, %v16361_v56  ;;  %v11598_v20 = vmul.f32 %v2270_v33, %v16370_v11  ;;  %v11601_v48 = vmul.f32 %v2270_v33, %v16373_v23  ;;  %v16481_v39 = vld [vmem:[#allocation165_spill] sm:$0xff] }
 0x3c8   :  { %v11604_v2 = vmul.f32 %v2270_v33, %v16377_v18  ;;  %v11607_v7 = vmul.f32 %v2270_v33, %v16381_v32  ;;  %v11610_v63 = vmul.f32 %v2270_v33, %v16384_v0  ;;  %v11613_v53 = vmul.f32 %v2270_v33, %v16389_v17 }
 0x3c9   :  { %v7041_v21 = vpop.eup %7040  ;;  %v11616_v56 = vmul.f32 %v2270_v33, %v16392_v60  ;;  %v11619_v11 = vmul.f32 %v2270_v33, %v16397_v37  ;;  %v16478_v32 = vcombine.low %v11440_v4, %v11444_v50  ;;  %v2082_v17 = vrot.slane %v11398_v61, %v16479_v22  ;;  %v16482_v37 = vld [vmem:[#allocation169_spill] sm:$0xff]  ;;  %v16486_v4 = vld [vmem:[#allocation96_spill] sm:$0xff] }
 0x3ca   :  { %v2107_v23 = vmul.f32 %v7041_v21, %v2078_v27  ;;  %v16483_v21 = vld [vmem:[#allocation173_spill] sm:$0xff] }
 0x3cb   :  { %16475 = vst [vmem:[#allocation115_spill] sm:$0xff] %v11616_v56  ;;  %16476 = vst [vmem:[#allocation305_spill] sm:$0xff] %v11619_v11  ;;  %v2192_v0 = vrot.slane %v16478_v32, %v16477_v3  ;;  %v16485_v56 = vld [vmem:[#allocation176_spill] sm:$0xff] }
 0x3cc   :  { %v2120_v38 = vmul.f32 %v2107_v23, %v11552_v51  ;;  %v2274_v18 = vrot.slane %v2107_v23, %v16393_v52  ;;  %v16484_v23 = vld [vmem:[#allocation94_spill] sm:$0xff] }
 0x3ce   :  { %v2185_v42 = vcombine.low %v2119_v12, %v2120_v38  ;;  %v2290_v60 = vmul.f32 %v2274_v18, %v16480_v29  ;;  %v2303_v19 = vmul.f32 %v2274_v18, %v16481_v39  ;;  %v2316_v33 = vmul.f32 %v2274_v18, %v16482_v37 }
 0x3cf   :  { %v11633_v51 = vmul.f32 %v2274_v18, %v16483_v21  ;;  %v11636_v11 = vmul.f32 %v2274_v18, %v16484_v23  ;;  %v11639_v50 = vmul.f32 %v2274_v18, %v16485_v56  ;;  %v11642_v32 = vmul.f32 %v2274_v18, %v16486_v4 }
 0x3d0   :  { %v2199_v61 = vrot.slane %v2185_v42, %v16477_v3  ;;  %v11646_v12 = vmul.f32 %v2274_v18, %v16366_v10  ;;  %v11649_v38 = vmul.f32 %v2274_v18, %v16371_v41  ;;  %v11652_v29 = vmul.f32 %v2274_v18, %v16375_v36 }
 0x3d1   :  { %v7043_v27 = vpop.eup %7042  ;;  %v11655_v39 = vmul.f32 %v2274_v18, %v16379_v8  ;;  %v11658_v56 = vmul.f32 %v2274_v18, %v16382_v25  ;;  %v11661_v37 = vmul.f32 %v2274_v18, %v16386_v59  ;;  %v11664_v42 = vmul.f32 %v2274_v18, %v16390_v45 }
 0x3d2   :  { %v2207_v10 = vcombine.low %v2192_v0, %v2199_v61  ;;  %v11667_v21 = vmul.f32 %v2274_v18, %v16395_v26  ;;  %v11670_v41 = vmul.f32 %v2274_v18, %v16399_v49  ;;  %v2108_v36 = vmul.f32 %v7043_v27, %v2082_v17 }
 0x3d4   :  { %v2121_v23 = vmul.f32 %v2108_v36, %v1950_v57  ;;  %v2278_v8 = vrot.slane %v2108_v36, %v16393_v52  ;;  %v2214_v25 = vrot.slane %v2207_v10, %v16477_v3  ;;  %v16487_v10 = vld [vmem:[#allocation202_spill] sm:$0xff] }
 0x3d6   :  { %v2206_v4 = vrot.slane %v2121_v23, %v16477_v3  ;;  %v2291_v59 = vmul.f32 %v2278_v8, %v16374_v1  ;;  %v2304_v45 = vmul.f32 %v2278_v8, %v16376_v34  ;;  %v2317_v0 = vmul.f32 %v16372_v13, %v2278_v8  ;;  %v1183_v34 = vld [vmem:[#allocation11 + $0x8] sm:$0x1f] }
 0x3d7   :  { %v2330_v26 = vmul.f32 %v16378_v14, %v2278_v8  ;;  %v2343_v61 = vmul.f32 %v2278_v8, %v16380_v6  ;;  %v2356_v49 = vmul.f32 %v2278_v8, %v16383_v46  ;;  %v2369_v57 = vmul.f32 %v16385_v28, %v2278_v8  ;;  %v16488_v14 = vld [vmem:[#allocation206_spill] sm:$0xff] }
 0x3d8   :  { %v2221_v18 = vrot.slane %v2206_v4, %v16477_v3  ;;  %v2382_v17 = vmul.f32 %v16387_v43, %v2278_v8  ;;  %v2395_v27 = vmul.f32 %v2278_v8, %v16388_v16  ;;  %v11686_v1 = vmul.f32 %v2278_v8, %v16391_v47  ;;  %v16489_v46 = vld [vmem:[#allocation230_spill] sm:$0xff] }
 0x3d9   :  { %v11689_v13 = vmul.f32 %v16487_v10, %v2278_v8  ;;  %v11692_v36 = vmul.f32 %v16488_v14, %v2278_v8  ;;  %v11695_v6 = vmul.f32 %v2278_v8, %v16400_v24  ;;  %v11698_v28 = vmul.f32 %v2278_v8, %v16489_v46  ;;  %v16490_v10 = vld [vmem:[#allocation41_spill] sm:$0xff] }
 0x3da   :  { %v2222_v23 = vcombine.low %v2214_v25, %v2221_v18  ;;  %v11701_v43 = vmul.f32 %v16453_v58, %v2278_v8  ;;  %v11704_v47 = vmul.f32 %v16465_v35, %v2278_v8  ;;  %v16491_v58 = vld [vmem:[#allocation118_spill] sm:$0xff]  ;;  %v16492_v8 = vld [vmem:[#allocation75_spill] sm:$0xff] }
 0x3dc   :  { %v2226_v16 = vsub.f32 %v1183_v34, %v2222_v23 }
 0x3de   :  { %v11707_v4 = vrot.slane %v2226_v16, %v16393_v52  ;;  %v11710_v14 = vrot.slane %v2226_v16, %v16490_v10  ;;  %v11713_v24 = vrot.slane %v2226_v16, %v16466_v55  ;;  %v11716_v46 = vrot.slane %v2226_v16, %v16467_v15 }
 0x3df   :  { %v11719_v25 = vrot.slane %v2226_v16, %v16479_v22  ;;  %v16493_v22 = vld [vmem:[#allocation33_spill] sm:$0xff] }
 0x3e0   :  { %v11723_v35 = vadd.f32 %v11707_v4, %v16491_v58  ;;  %v11727_v18 = vadd.f32 %v11710_v14, %v16492_v8  ;;  %v11731_v34 = vadd.f32 %v11713_v24, %v11574_v40  ;;  %v11734_v23 = vadd.f32 %v11716_v46, %v2290_v60  ;;  %v16494_v58 = vld [vmem:[#allocation290_spill] sm:$0xff] }
 0x3e1   :  { %v11737_v15 = vadd.f32 %v11719_v25, %v2291_v59  ;;  %v11741_v16 = vadd.f32 %v11707_v4, %v16493_v22  ;;  %v11745_v3 = vadd.f32 %v11710_v14, %v16494_v58  ;;  %v11749_v8 = vadd.f32 %v11713_v24, %v11577_v30  ;;  %v16496_v59 = vld [vmem:[#allocation87_spill] sm:$0xff] }
 0x3e2   :  { %v11752_v40 = vadd.f32 %v11716_v46, %v2303_v19  ;;  %v11755_v60 = vadd.f32 %v11719_v25, %v2304_v45  ;;  %v11759_v10 = vadd.f32 %v11707_v4, %v16496_v59  ;;  %v16498_v22 = vld [vmem:[#allocation291_spill] sm:$0xff]  ;;  %v11767_v58 = vadd.f32 %v11713_v24, %v11580_v31  ;;  %v16501_v45 = vld [vmem:[#allocation89_spill] sm:$0xff]  ;;  %v16503_v59 = vld [vmem:[#allocation292_spill] sm:$0xff] }
 0x3e3   :  { %16495 = vst [vmem:[#allocation306_spill] sm:$0xff] %v11749_v8  ;;  %v11763_v52 = vadd.f32 %v11710_v14, %v16498_v22  ;;  %v11770_v30 = vadd.f32 %v11716_v46, %v2316_v33  ;;  %v11773_v19 = vadd.f32 %v11719_v25, %v2317_v0  ;;  %v11777_v55 = vadd.f32 %v11707_v4, %v16501_v45  ;;  %v16506_v0 = vld [vmem:[#allocation285_spill] sm:$0xff] }
 0x3e4   :  { %16497 = vst [vmem:[#allocation307_spill] sm:$0xff] %v11759_v10  ;;  %v11781_v10 = vadd.f32 %v11710_v14, %v16503_v59  ;;  %v11785_v22 = vadd.f32 %v11713_v24, %v11583_v44  ;;  %v11789_v31 = vadd.f32 %v11716_v46, %v11633_v51  ;;  %v11792_v33 = vadd.f32 %v11719_v25, %v2330_v26  ;;  %v16508_v45 = vld [vmem:[#allocation293_spill] sm:$0xff]  ;;  %v16511_v26 = vld [vmem:[#allocation286_spill] sm:$0xff] }
 0x3e5   :  { %16499 = vst [vmem:[#allocation308_spill] sm:$0xff] %v11763_v52  ;;  %16500 = vst [vmem:[#allocation309_spill] sm:$0xff] %v11773_v19  ;;  %v11796_v19 = vadd.f32 %v11707_v4, %v16506_v0  ;;  %v11804_v59 = vadd.f32 %v11713_v24, %v11586_v9  ;;  %v11808_v44 = vadd.f32 %v11716_v46, %v11636_v11  ;;  %v16513_v0 = vld [vmem:[#allocation294_spill] sm:$0xff]  ;;  %vm2770_vm0 = vcmp.ge.f32.partialorder %v11723_v35, 0.0 }
 0x3e6   :  { %16502 = vst [vmem:[#allocation310_spill] sm:$0xff] %v11777_v55  ;;  %16504 = vst [vmem:[#allocation311_spill] sm:$0xff] %v11781_v10  ;;  %v11800_v55 = vadd.f32 %v11710_v14, %v16508_v45  ;;  %v11811_v51 = vadd.f32 %v11719_v25, %v2343_v61  ;;  %v11823_v45 = vadd.f32 %v11713_v24, %v11589_v62  ;;  %v16517_v61 = vld [vmem:[#allocation287_spill] sm:$0xff]  ;;  %vm2771_vm3 = vcmp.ge.f32.partialorder %v11727_v18, 0.0 }
 0x3e7   :  { %16505 = vst [vmem:[#allocation312_spill] sm:$0xff] %v11792_v33  ;;  %16507 = vst [vmem:[#allocation313_spill] sm:$0xff] %v11796_v19  ;;  %v11815_v33 = vadd.f32 %v11707_v4, %v16511_v26  ;;  %v11819_v19 = vadd.f32 %v11710_v14, %v16513_v0  ;;  %v11827_v9 = vadd.f32 %v11716_v46, %v11639_v50  ;;  %v16519_v26 = vld [vmem:[#allocation295_spill] sm:$0xff]  ;;  %vm2772_vm2 = vcmp.ge.f32.partialorder %v11731_v34, 0.0 }
 0x3e8   :  { %16509 = vst [vmem:[#allocation314_spill] sm:$0xff] %v11808_v44  ;;  %16510 = vst [vmem:[#allocation315_spill] sm:$0xff] %v11811_v51  ;;  %v11830_v11 = vadd.f32 %v11719_v25, %v2356_v49  ;;  %v11834_v51 = vadd.f32 %v11707_v4, %v16517_v61  ;;  %v11842_v0 = vadd.f32 %v11713_v24, %v11592_v54  ;;  %v16524_v49 = vld [vmem:[#allocation136_spill] sm:$0xff]  ;;  %vm2773_vm9 = vcmp.ge.f32.partialorder %v11734_v23, 0.0 }
 0x3e9   :  { %16512 = vst [vmem:[#allocation316_spill] sm:$0xff] %v11815_v33  ;;  %16514 = vst [vmem:[#allocation317_spill] sm:$0xff] %v11819_v19  ;;  %v11838_v33 = vadd.f32 %v11710_v14, %v16519_v26  ;;  %v11846_v62 = vadd.f32 %v11716_v46, %v11642_v32  ;;  %v11849_v50 = vadd.f32 %v11719_v25, %v2369_v57  ;;  %v16526_v61 = vld [vmem:[#allocation296_spill] sm:$0xff]  ;;  %v16531_v57 = vld [vmem:[#allocation135_spill] sm:$0xff]  ;;  %vm2774_vm7 = vcmp.ge.f32.partialorder %v11737_v15, 0.0 }
 0x3ea   :  { %16515 = vst [vmem:[#allocation318_spill] sm:$0xff] %v11823_v45  ;;  %16516 = vst [vmem:[#allocation319_spill] sm:$0xff] %v11830_v11  ;;  %v11853_v11 = vadd.f32 %v11707_v4, %v16524_v49  ;;  %v11861_v26 = vadd.f32 %v11713_v24, %v11595_v5  ;;  %v11865_v54 = vadd.f32 %v11716_v46, %v11646_v12  ;;  %v16533_v49 = vld [vmem:[#allocation297_spill] sm:$0xff]  ;;  %vm2783_vm12 = vcmp.ge.f32.partialorder %v11741_v16, 0.0 }
 0x3eb   :  { %16518 = vst [vmem:[#allocation320_spill] sm:$0xff] %v11834_v51  ;;  %16520 = vst [vmem:[#allocation321_spill] sm:$0xff] %v11838_v33  ;;  %v11857_v51 = vadd.f32 %v11710_v14, %v16526_v61  ;;  %v11868_v32 = vadd.f32 %v11719_v25, %v2382_v17  ;;  %v11880_v61 = vadd.f32 %v11713_v24, %v11598_v20  ;;  %v16535_v17 = vld [vmem:[#allocation95_spill] sm:$0xff]  ;;  %vm2784_vm13 = vcmp.ge.f32.partialorder %v11745_v3, 0.0 }
 0x3ec   :  { %16521 = vst [vmem:[#allocation322_spill] sm:$0xff] %v11842_v0  ;;  %16522 = vst [vmem:[#allocation323_spill] sm:$0xff] %v11846_v62  ;;  %v11884_v5 = vadd.f32 %v11716_v46, %v11649_v38  ;;  %v11887_v12 = vadd.f32 %v11719_v25, %v2395_v27  ;;  %v11903_v20 = vadd.f32 %v11716_v46, %v11652_v29  ;;  %v16541_v27 = vld [vmem:[#allocation180_spill] sm:$0xff]  ;;  %vm2785_vm14 = vcmp.ge.f32.partialorder %v11749_v8, 0.0 }
 0x3ed   :  { %16523 = vst [vmem:[#allocation324_spill] sm:$0xff] %v11849_v50  ;;  %16525 = vst [vmem:[#allocation325_spill] sm:$0xff] %v11853_v11  ;;  %v11872_v50 = vadd.f32 %v11707_v4, %v16531_v57  ;;  %v11876_v11 = vadd.f32 %v11710_v14, %v16533_v49  ;;  %v16537_v57 = vld [vmem:[#allocation298_spill] sm:$0xff]  ;;  %v11899_v49 = vadd.f32 %v11713_v24, %v11601_v48  ;;  %vm2786_vm1 = vcmp.ge.f32.partialorder %v11752_v40, 0.0 }
 0x3ee   :  { %16527 = vst [vmem:[#allocation326_spill] sm:$0xff] %v11857_v51  ;;  %16528 = vst [vmem:[#allocation327_spill] sm:$0xff] %v11861_v26  ;;  %v11907_v38 = vadd.f32 %v11719_v25, %v11686_v1  ;;  %v11919_v48 = vadd.f32 %v11713_v24, %v11604_v2  ;;  %v11923_v29 = vadd.f32 %v11716_v46, %v11655_v39  ;;  %vm2787_vm11 = vcmp.ge.f32.partialorder %v11755_v60, 0.0 }
 0x3ef   :  { %16529 = vst [vmem:[#allocation37_spill] sm:$0xff] %v11865_v54  ;;  %16530 = vst [vmem:[#allocation38_spill] sm:$0xff] %v11868_v32  ;;  %v11891_v32 = vadd.f32 %v11707_v4, %v16535_v17  ;;  %v11911_v17 = vadd.f32 %v11707_v4, %v16541_v27  ;;  %v11927_v1 = vadd.f32 %v11719_v25, %v11689_v13  ;;  %vm2797_vm5 = vcmp.ge.f32.partialorder %v11763_v52, 0.0 }
 0x3f0   :  { %16532 = vst [vmem:[#allocation102_spill] sm:$0xff] %v11872_v50  ;;  %16534 = vst [vmem:[#allocation328_spill] sm:$0xff] %v11884_v5  ;;  %v11895_v50 = vadd.f32 %v11710_v14, %v16537_v57  ;;  %v11939_v2 = vadd.f32 %v11713_v24, %v11607_v7  ;;  %v11943_v39 = vadd.f32 %v11716_v46, %v11658_v56  ;;  %vm2878_vm4 = vcmp.ge.f32.partialorder %v11887_v12, 0.0 }
 0x3f1   :  { %16536 = vst [vmem:[#allocation39_spill] sm:$0xff] %v11891_v32  ;;  %16539 = vst [vmem:[#allocation43_spill] sm:$0xff] %v11899_v49  ;;  %v16543_v32 = vld [vmem:[#allocation299_spill] sm:$0xff]  ;;  %v11947_v13 = vadd.f32 %v11719_v25, %v11692_v36  ;;  %v11959_v7 = vadd.f32 %v11713_v24, %v11610_v63  ;;  %v11963_v56 = vadd.f32 %v11716_v46, %v11661_v37 }
 0x3f2   :  { %16538 = vst [vmem:[#allocation42_spill] sm:$0xff] %v11895_v50  ;;  %16540 = vst [vmem:[#allocation103_spill] sm:$0xff] %v11907_v38  ;;  %v11915_v57 = vadd.f32 %v11710_v14, %v16543_v32  ;;  %v16545_v38 = vld [vmem:[#allocation190_spill] sm:$0xff]  ;;  %v11967_v36 = vadd.f32 %v11719_v25, %v11695_v6  ;;  %v11979_v63 = vadd.f32 %v11713_v24, %v11613_v53 }
 0x3f3   :  { %16542 = vst [vmem:[#allocation44_spill] sm:$0xff] %v11911_v17  ;;  %16544 = vst [vmem:[#allocation218_spill] sm:$0xff] %v11927_v1  ;;  %v11931_v27 = vadd.f32 %v11707_v4, %v16545_v38  ;;  %v16547_v17 = vld [vmem:[#allocation300_spill] sm:$0xff]  ;;  %v11983_v37 = vadd.f32 %v11716_v46, %v11664_v42  ;;  %v11987_v6 = vadd.f32 %v11719_v25, %v11698_v28 }
 0x3f4   :  { %v11935_v32 = vadd.f32 %v11710_v14, %v16547_v17  ;;  %16548 = vst [vmem:[#allocation219_spill] sm:$0xff] %v11947_v13  ;;  %v16549_v1 = vld [vmem:[#allocation52_spill] sm:$0xff]  ;;  %16552 = vst [vmem:[#allocation222_spill] sm:$0xff] %v11967_v36  ;;  %v16553_v13 = vld [vmem:[#allocation65_spill] sm:$0xff]  ;;  %v12003_v42 = vadd.f32 %v11716_v46, %v11667_v21  ;;  %v12007_v28 = vadd.f32 %v11719_v25, %v11701_v43 }
 0x3f5   :  { %16546 = vst [vmem:[#allocation105_spill] sm:$0xff] %v11931_v27  ;;  %v11951_v38 = vadd.f32 %v11707_v4, %v16549_v1  ;;  %v16551_v27 = vld [vmem:[#allocation301_spill] sm:$0xff]  ;;  %v11971_v1 = vadd.f32 %v11707_v4, %v16553_v13  ;;  %16557 = vst [vmem:[#allocation122_spill] sm:$0xff] %v11987_v6  ;;  %v16558_v36 = vld [vmem:[#allocation288_spill] sm:$0xff]  ;;  %v12023_v21 = vadd.f32 %v11716_v46, %v11670_v41 }
 0x3f6   :  { %v11955_v17 = vadd.f32 %v11710_v14, %v16551_v27  ;;  %v11991_v13 = vadd.f32 %v11707_v4, %v16558_v36  ;;  %16564 = vst [vmem:[#allocation125_spill] sm:$0xff] %v12003_v42  ;;  %16565 = vst [vmem:[#allocation50_spill] sm:$0xff] %v12007_v28  ;;  %v16566_v6 = vld [vmem:[#allocation289_spill] sm:$0xff]  ;;  %v12027_v43 = vadd.f32 %v11719_v25, %v11704_v47  ;;  %v16574_v28 = vld [vmem:[#allocation216_spill] sm:$0xff] }
 0x3f7   :  { %16550 = vst [vmem:[#allocation220_spill] sm:$0xff] %v11951_v38  ;;  %16554 = vst [vmem:[#allocation221_spill] sm:$0xff] %v11971_v1  ;;  %v16555_v38 = vld [vmem:[#allocation302_spill] sm:$0xff]  ;;  %v16560_v1 = vld [vmem:[#allocation303_spill] sm:$0xff]  ;;  %v12011_v36 = vadd.f32 %v11707_v4, %v16566_v6  ;;  %v12031_v4 = vmul.f32 %v16574_v28, %v11723_v35  ;;  %v12043_v41 = vmul.f32 %v16574_v28, %v11734_v23 }
 0x3f8   :  { %v11975_v27 = vadd.f32 %v11710_v14, %v16555_v38  ;;  %16559 = vst [vmem:[#allocation224_spill] sm:$0xff] %v11991_v13  ;;  %v11995_v38 = vadd.f32 %v11710_v14, %v16560_v1  ;;  %v16568_v13 = vld [vmem:[#allocation304_spill] sm:$0xff]  ;;  %16572 = vst [vmem:[#allocation226_spill] sm:$0xff] %v12023_v21  ;;  %v12047_v47 = vmul.f32 %v16574_v28, %v11737_v15 }
 0x3f9   :  { %16567 = vst [vmem:[#allocation51_spill] sm:$0xff] %v12011_v36  ;;  %v12015_v1 = vadd.f32 %v11710_v14, %v16568_v13  ;;  %16573 = vst [vmem:[#allocation36_spill] sm:$0xff] %v12027_v43  ;;  %v12035_v14 = vmul.f32 %v16574_v28, %v11727_v18  ;;  %v12051_v46 = vmul.f32 %v16574_v28, %v11741_v16 }
 0x3fa   :  { %16556 = vst [vmem:[#allocation223_spill] sm:$0xff] %v11975_v27  ;;  %16561 = vst [vmem:[#allocation225_spill] sm:$0xff] %v11995_v38  ;;  %v16562_v27 = vld [vmem:[#allocation115_spill] sm:$0xff]  ;;  %v16570_v38 = vld [vmem:[#allocation305_spill] sm:$0xff]  ;;  %v12055_v25 = vmul.f32 %v16574_v28, %v11745_v3  ;;  %v12059_v6 = vmul.f32 %v16574_v28, %v11749_v8  ;;  %v12063_v13 = vmul.f32 %v16574_v28, %v11752_v40 }
 0x3fb   :  { %v11999_v53 = vadd.f32 %v11713_v24, %v16562_v27  ;;  %16569 = vst [vmem:[#allocation106_spill] sm:$0xff] %v12015_v1  ;;  %v12019_v27 = vadd.f32 %v11713_v24, %v16570_v38  ;;  %16575 = vst [vmem:[#allocation227_spill] sm:$0xff] %v12031_v4  ;;  %v12039_v24 = vmul.f32 %v16574_v28, %v11731_v34 }
 0x3fc   :  { %16576 = vst [vmem:[#allocation228_spill] sm:$0xff] %v12035_v14  ;;  %16578 = vst [vmem:[#allocation229_spill] sm:$0xff] %v12043_v41  ;;  %v12067_v38 = vmul.f32 %v16574_v28, %v11755_v60 }
 0x3fd   :  { %16563 = vst [vmem:[#allocation124_spill] sm:$0xff] %v11999_v53  ;;  %16571 = vst [vmem:[#allocation53_spill] sm:$0xff] %v12019_v27 }
 0x3fe   :  { %16577 = vst [vmem:[#allocation231_spill] sm:$0xff] %v12039_v24  ;;  %16579 = vst [vmem:[#allocation232_spill] sm:$0xff] %v12047_v47  ;;  %v16585_v47 = vld [vmem:[#allocation307_spill] sm:$0xff] }
 0x3ff   :  { %16580 = vst [vmem:[#allocation236_spill] sm:$0xff] %v12051_v46  ;;  %16581 = vst [vmem:[#allocation233_spill] sm:$0xff] %v12055_v25  ;;  %v12071_v41 = vmul.f32 %v16574_v28, %v16585_v47  ;;  %v12075_v46 = vmul.f32 %v16574_v28, %v11763_v52  ;;  %v12079_v25 = vmul.f32 %v16574_v28, %v11767_v58  ;;  %vm2796_vm10 = vcmp.ge.f32.partialorder %v16585_v47, 0.0 }
 0x400   :  { %16582 = vst [vmem:[#allocation237_spill] sm:$0xff] %v12059_v6  ;;  %16583 = vst [vmem:[#allocation234_spill] sm:$0xff] %v12063_v13  ;;  %v12083_v6 = vmul.f32 %v16574_v28, %v11770_v30  ;;  %v16590_v13 = vld [vmem:[#allocation309_spill] sm:$0xff] }
 0x401   :  { %16584 = vst [vmem:[#allocation238_spill] sm:$0xff] %v12067_v38  ;;  %16586 = vst [vmem:[#allocation126_spill] sm:$0xff] %v12071_v41  ;;  %v12087_v24 = vmul.f32 %v16574_v28, %v16590_v13  ;;  %v16592_v38 = vld [vmem:[#allocation310_spill] sm:$0xff]  ;;  %v12095_v41 = vmul.f32 %v16574_v28, %v11781_v10 }
 0x402   :  { %16587 = vst [vmem:[#allocation62_spill] sm:$0xff] %v12075_v46  ;;  %16588 = vst [vmem:[#allocation54_spill] sm:$0xff] %v12079_v25  ;;  %v12091_v14 = vmul.f32 %v16574_v28, %v16592_v38  ;;  %v12099_v46 = vmul.f32 %v16574_v28, %v11785_v22  ;;  %v12103_v25 = vmul.f32 %v16574_v28, %v11789_v31 }
 0x403   :  { %16589 = vst [vmem:[#allocation64_spill] sm:$0xff] %v12083_v6  ;;  %16591 = vst [vmem:[#allocation57_spill] sm:$0xff] %v12087_v24  ;;  %v16597_v6 = vld [vmem:[#allocation312_spill] sm:$0xff]  ;;  %v16599_v24 = vld [vmem:[#allocation313_spill] sm:$0xff] }
 0x404   :  { %16593 = vst [vmem:[#allocation97_spill] sm:$0xff] %v12091_v14  ;;  %16594 = vst [vmem:[#allocation235_spill] sm:$0xff] %v12095_v41  ;;  %v12107_v4 = vmul.f32 %v16574_v28, %v16597_v6  ;;  %v12111_v43 = vmul.f32 %v16574_v28, %v16599_v24  ;;  %v12115_v14 = vmul.f32 %v16574_v28, %v11800_v55 }
 0x405   :  { %16595 = vst [vmem:[#allocation108_spill] sm:$0xff] %v12099_v46  ;;  %16596 = vst [vmem:[#allocation239_spill] sm:$0xff] %v12103_v25  ;;  %v12119_v41 = vmul.f32 %v16574_v28, %v11804_v59  ;;  %v12123_v46 = vmul.f32 %v16574_v28, %v11808_v44  ;;  %v16604_v25 = vld [vmem:[#allocation315_spill] sm:$0xff] }
 0x406   :  { %16598 = vst [vmem:[#allocation240_spill] sm:$0xff] %v12107_v4  ;;  %16600 = vst [vmem:[#allocation244_spill] sm:$0xff] %v12111_v43  ;;  %v12127_v21 = vmul.f32 %v16574_v28, %v16604_v25  ;;  %v16606_v4 = vld [vmem:[#allocation316_spill] sm:$0xff]  ;;  %v12135_v43 = vmul.f32 %v16574_v28, %v11819_v19 }
 0x407   :  { %16601 = vst [vmem:[#allocation241_spill] sm:$0xff] %v12115_v14  ;;  %16602 = vst [vmem:[#allocation245_spill] sm:$0xff] %v12119_v41  ;;  %v12131_v27 = vmul.f32 %v16574_v28, %v16606_v4  ;;  %v12139_v14 = vmul.f32 %v16574_v28, %v11823_v45  ;;  %v12143_v41 = vmul.f32 %v16574_v28, %v11827_v9 }
 0x408   :  { %16603 = vst [vmem:[#allocation242_spill] sm:$0xff] %v12123_v46  ;;  %16605 = vst [vmem:[#allocation246_spill] sm:$0xff] %v12127_v21  ;;  %v16611_v46 = vld [vmem:[#allocation319_spill] sm:$0xff]  ;;  %v16613_v21 = vld [vmem:[#allocation320_spill] sm:$0xff] }
 0x409   :  { %16607 = vst [vmem:[#allocation127_spill] sm:$0xff] %v12131_v27  ;;  %16608 = vst [vmem:[#allocation68_spill] sm:$0xff] %v12135_v43  ;;  %v12147_v1 = vmul.f32 %v16574_v28, %v16611_v46  ;;  %v12151_v36 = vmul.f32 %v16574_v28, %v16613_v21  ;;  %v12155_v27 = vmul.f32 %v16574_v28, %v11838_v33 }
 0x40a   :  { %16609 = vst [vmem:[#allocation60_spill] sm:$0xff] %v12139_v14  ;;  %16610 = vst [vmem:[#allocation104_spill] sm:$0xff] %v12143_v41  ;;  %v12159_v43 = vmul.f32 %v16574_v28, %v11842_v0  ;;  %v12163_v14 = vmul.f32 %v16574_v28, %v11846_v62  ;;  %v16618_v41 = vld [vmem:[#allocation324_spill] sm:$0xff] }
 0x40b   :  { %16612 = vst [vmem:[#allocation66_spill] sm:$0xff] %v12147_v1  ;;  %16614 = vst [vmem:[#allocation111_spill] sm:$0xff] %v12151_v36  ;;  %v12167_v42 = vmul.f32 %v16574_v28, %v16618_v41  ;;  %v16620_v1 = vld [vmem:[#allocation325_spill] sm:$0xff] }
 0x40c   :  { %16615 = vst [vmem:[#allocation243_spill] sm:$0xff] %v12155_v27  ;;  %16616 = vst [vmem:[#allocation49_spill] sm:$0xff] %v12159_v43  ;;  %v12171_v53 = vmul.f32 %v16574_v28, %v16620_v1  ;;  %v12179_v43 = vmul.f32 %v16574_v28, %v11857_v51 }
 0x40d   :  { %16617 = vst [vmem:[#allocation247_spill] sm:$0xff] %v12163_v14  ;;  %16619 = vst [vmem:[#allocation252_spill] sm:$0xff] %v12167_v42  ;;  %v12183_v14 = vmul.f32 %v16574_v28, %v11861_v26  ;;  %v12187_v42 = vmul.f32 %v16574_v28, %v11865_v54 }
 0x40e   :  { %16621 = vst [vmem:[#allocation248_spill] sm:$0xff] %v12171_v53  ;;  %16622 = vst [vmem:[#allocation100_spill] sm:$0xff] %v12179_v43  ;;  %v16625_v53 = vld [vmem:[#allocation38_spill] sm:$0xff] }
 0x40f   :  { %16623 = vst [vmem:[#allocation249_spill] sm:$0xff] %v12183_v14  ;;  %16624 = vst [vmem:[#allocation119_spill] sm:$0xff] %v12187_v42  ;;  %v12191_v27 = vmul.f32 %v16574_v28, %v16625_v53  ;;  %v16627_v43 = vld [vmem:[#allocation102_spill] sm:$0xff]  ;;  %v12203_v14 = vmul.f32 %v16574_v28, %v11876_v11  ;;  %v12207_v42 = vmul.f32 %v16574_v28, %v11880_v61 }
 0x410   :  { %v12199_v36 = vmul.f32 %v16574_v28, %v16627_v43 }
 0x411   :  { %16626 = vst [vmem:[#allocation250_spill] sm:$0xff] %v12191_v27  ;;  %16629 = vst [vmem:[#allocation63_spill] sm:$0xff] %v12203_v14  ;;  %v12211_v27 = vmul.f32 %v16574_v28, %v11884_v5  ;;  %v16633_v14 = vld [vmem:[#allocation39_spill] sm:$0xff]  ;;  %v16690_v5 = vld [vmem:[#allocation228_spill] sm:$0xff] }
 0x412   :  { %16628 = vst [vmem:[#allocation67_spill] sm:$0xff] %v12199_v36  ;;  %16630 = vst [vmem:[#allocation73_spill] sm:$0xff] %v12207_v42  ;;  %v12219_v36 = vmul.f32 %v16574_v28, %v11887_v12  ;;  %v12223_v8 = vmul.f32 %v16574_v28, %v16633_v14  ;;  %v12227_v42 = vmul.f32 %v16574_v28, %v11895_v50  ;;  %vm2887_vm6 = vcmp.ge.f32.partialorder %v16633_v14, 0.0  ;;  %v16692_v50 = vld [vmem:[#allocation229_spill] sm:$0xff] }
 0x413   :  { %16631 = vst [vmem:[#allocation70_spill] sm:$0xff] %v12211_v27  ;;  %v12231_v27 = vmul.f32 %v16574_v28, %v11899_v49  ;;  %v12419_v49 = vsel %vm2773_vm9, %v11734_v23, %v16692_v50  ;;  %v16697_v50 = vld [vmem:[#allocation233_spill] sm:$0xff]  ;;  %vm2903_vm9 = vcmp.ge.f32.partialorder %v11923_v29, 0.0 }
 0x414   :  { %16632 = vst [vmem:[#allocation34_spill] sm:$0xff] %v12219_v36  ;;  %16634 = vst [vmem:[#allocation72_spill] sm:$0xff] %v12223_v8  ;;  %v12239_v36 = vmul.f32 %v16574_v28, %v11903_v20  ;;  %v16638_v8 = vld [vmem:[#allocation103_spill] sm:$0xff] }
 0x415   :  { %16635 = vst [vmem:[#allocation35_spill] sm:$0xff] %v12227_v42  ;;  %16636 = vst [vmem:[#allocation251_spill] sm:$0xff] %v12231_v27  ;;  %v12243_v52 = vmul.f32 %v16574_v28, %v16638_v8  ;;  %v16640_v42 = vld [vmem:[#allocation44_spill] sm:$0xff]  ;;  %v12251_v27 = vmul.f32 %v16574_v28, %v11915_v57  ;;  %vm2891_vm8 = vcmp.ge.f32.partialorder %v16638_v8, 0.0 }
 0x416   :  { %16637 = vst [vmem:[#allocation101_spill] sm:$0xff] %v12239_v36  ;;  %v12247_v47 = vmul.f32 %v16574_v28, %v16640_v42  ;;  %v12259_v36 = vmul.f32 %v16574_v28, %v11919_v48  ;;  %16693 = vst [vmem:[#allocation197_spill] sm:$0xff] %v12419_v49  ;;  %vm2900_vm15 = vcmp.ge.f32.partialorder %v16640_v42, 0.0 }
 0x417   :  { %16639 = vst [vmem:[#allocation56_spill] sm:$0xff] %v12243_v52  ;;  %16642 = vst [vmem:[#allocation253_spill] sm:$0xff] %v12251_v27  ;;  %v12263_v52 = vmul.f32 %v16574_v28, %v11923_v29  ;;  %v16647_v27 = vld [vmem:[#allocation105_spill] sm:$0xff] }
 0x418   :  { %16641 = vst [vmem:[#allocation120_spill] sm:$0xff] %v12247_v47  ;;  %16643 = vst [vmem:[#allocation140_spill] sm:$0xff] %v12259_v36  ;;  %v16645_v47 = vld [vmem:[#allocation218_spill] sm:$0xff]  ;;  %v12271_v10 = vmul.f32 %v16574_v28, %v16647_v27  ;;  %v12279_v36 = vmul.f32 %v16574_v28, %v11935_v32 }
 0x419   :  { %16644 = vst [vmem:[#allocation254_spill] sm:$0xff] %v12263_v52  ;;  %v12267_v38 = vmul.f32 %v16574_v28, %v16645_v47  ;;  %v12283_v52 = vmul.f32 %v16574_v28, %v11939_v2 }
 0x41a   :  { %16648 = vst [vmem:[#allocation255_spill] sm:$0xff] %v12271_v10  ;;  %16649 = vst [vmem:[#allocation217_spill] sm:$0xff] %v12279_v36  ;;  %v16652_v10 = vld [vmem:[#allocation219_spill] sm:$0xff]  ;;  %v16654_v36 = vld [vmem:[#allocation220_spill] sm:$0xff] }
 0x41b   :  { %16646 = vst [vmem:[#allocation113_spill] sm:$0xff] %v12267_v38  ;;  %16650 = vst [vmem:[#allocation138_spill] sm:$0xff] %v12283_v52  ;;  %v12287_v38 = vmul.f32 %v16574_v28, %v11943_v39  ;;  %v12291_v24 = vmul.f32 %v16574_v28, %v16652_v10  ;;  %v12299_v44 = vmul.f32 %v16574_v28, %v16654_v36 }
 0x41c   :  { %v12303_v52 = vmul.f32 %v16574_v28, %v11955_v17 }
 0x41d   :  { %16651 = vst [vmem:[#allocation139_spill] sm:$0xff] %v12287_v38  ;;  %16653 = vst [vmem:[#allocation129_spill] sm:$0xff] %v12291_v24  ;;  %v12307_v38 = vmul.f32 %v16574_v28, %v11959_v7  ;;  %v12311_v24 = vmul.f32 %v16574_v28, %v11963_v56 }
 0x41e   :  { %16655 = vst [vmem:[#allocation61_spill] sm:$0xff] %v12299_v44  ;;  %16656 = vst [vmem:[#allocation133_spill] sm:$0xff] %v12303_v52  ;;  %v16659_v44 = vld [vmem:[#allocation222_spill] sm:$0xff]  ;;  %v16661_v52 = vld [vmem:[#allocation221_spill] sm:$0xff] }
 0x41f   :  { %16657 = vst [vmem:[#allocation112_spill] sm:$0xff] %v12307_v38  ;;  %16658 = vst [vmem:[#allocation145_spill] sm:$0xff] %v12311_v24  ;;  %v12319_v45 = vmul.f32 %v16574_v28, %v16659_v44  ;;  %v12323_v19 = vmul.f32 %v16574_v28, %v16661_v52  ;;  %v16663_v38 = vld [vmem:[#allocation223_spill] sm:$0xff]  ;;  %v12331_v24 = vmul.f32 %v16574_v28, %v11979_v63 }
 0x420   :  { %v12327_v4 = vmul.f32 %v16574_v28, %v16663_v38 }
 0x421   :  { %16660 = vst [vmem:[#allocation142_spill] sm:$0xff] %v12319_v45  ;;  %16662 = vst [vmem:[#allocation154_spill] sm:$0xff] %v12323_v19  ;;  %v12339_v45 = vmul.f32 %v16574_v28, %v11983_v37  ;;  %v16667_v19 = vld [vmem:[#allocation122_spill] sm:$0xff] }
 0x422   :  { %16664 = vst [vmem:[#allocation183_spill] sm:$0xff] %v12327_v4  ;;  %16665 = vst [vmem:[#allocation184_spill] sm:$0xff] %v12331_v24  ;;  %v12343_v33 = vmul.f32 %v16574_v28, %v16667_v19  ;;  %v16669_v4 = vld [vmem:[#allocation224_spill] sm:$0xff]  ;;  %v16671_v24 = vld [vmem:[#allocation225_spill] sm:$0xff] }
 0x423   :  { %16666 = vst [vmem:[#allocation185_spill] sm:$0xff] %v12339_v45  ;;  %v12347_v21 = vmul.f32 %v16574_v28, %v16669_v4  ;;  %v12351_v0 = vmul.f32 %v16574_v28, %v16671_v24  ;;  %v16673_v45 = vld [vmem:[#allocation124_spill] sm:$0xff] }
 0x424   :  { %16668 = vst [vmem:[#allocation32_spill] sm:$0xff] %v12343_v33  ;;  %v12359_v1 = vmul.f32 %v16574_v28, %v16673_v45  ;;  %v16675_v33 = vld [vmem:[#allocation125_spill] sm:$0xff] }
 0x425   :  { %16670 = vst [vmem:[#allocation186_spill] sm:$0xff] %v12347_v21  ;;  %16672 = vst [vmem:[#allocation83_spill] sm:$0xff] %v12351_v0  ;;  %v12363_v41 = vmul.f32 %v16574_v28, %v16675_v33  ;;  %v16677_v21 = vld [vmem:[#allocation50_spill] sm:$0xff]  ;;  %v16679_v0 = vld [vmem:[#allocation51_spill] sm:$0xff] }
 0x426   :  { %16674 = vst [vmem:[#allocation188_spill] sm:$0xff] %v12359_v1  ;;  %v12367_v62 = vmul.f32 %v16574_v28, %v16677_v21  ;;  %v12371_v51 = vmul.f32 %v16574_v28, %v16679_v0  ;;  %v16681_v1 = vld [vmem:[#allocation106_spill] sm:$0xff] }
 0x427   :  { %16676 = vst [vmem:[#allocation187_spill] sm:$0xff] %v12363_v41  ;;  %v12379_v53 = vmul.f32 %v16574_v28, %v16681_v1  ;;  %v16683_v41 = vld [vmem:[#allocation53_spill] sm:$0xff] }
 0x428   :  { %16678 = vst [vmem:[#allocation191_spill] sm:$0xff] %v12367_v62  ;;  %16680 = vst [vmem:[#allocation192_spill] sm:$0xff] %v12371_v51  ;;  %v12383_v54 = vmul.f32 %v16574_v28, %v16683_v41  ;;  %v16685_v62 = vld [vmem:[#allocation226_spill] sm:$0xff]  ;;  %v16687_v51 = vld [vmem:[#allocation36_spill] sm:$0xff] }
 0x429   :  { %16682 = vst [vmem:[#allocation193_spill] sm:$0xff] %v12379_v53  ;;  %v12387_v26 = vmul.f32 %v16574_v28, %v16685_v62  ;;  %v12391_v43 = vmul.f32 %v16574_v28, %v16687_v51  ;;  %v16689_v53 = vld [vmem:[#allocation227_spill] sm:$0xff]  ;;  %v12407_v28 = vsel %vm2771_vm3, %v11727_v18, %v16690_v5  ;;  %vm2901_vm3 = vcmp.ge.f32.partialorder %v11915_v57, 0.0 }
 0x42a   :  { %16684 = vst [vmem:[#allocation189_spill] sm:$0xff] %v12383_v54  ;;  %v12401_v54 = vsel %vm2770_vm0, %v11723_v35, %v16689_v53  ;;  %vm2890_vm0 = vcmp.ge.f32.partialorder %v11903_v20, 0.0  ;;  %v16694_v35 = vld [vmem:[#allocation232_spill] sm:$0xff]  ;;  %v12441_v5 = vsel %vm2784_vm13, %v11745_v3, %v16697_v50  ;;  %v16698_v53 = vld [vmem:[#allocation237_spill] sm:$0xff]  ;;  %v16704_v50 = vld [vmem:[#allocation307_spill] sm:$0xff] }
 0x42b   :  { %16686 = vst [vmem:[#allocation195_spill] sm:$0xff] %v12387_v26  ;;  %16688 = vst [vmem:[#allocation196_spill] sm:$0xff] %v12391_v43  ;;  %v16691_v43 = vld [vmem:[#allocation231_spill] sm:$0xff]  ;;  %v12429_v18 = vsel %vm2774_vm7, %v11737_v15, %v16694_v35  ;;  %vm2904_vm7 = vcmp.ge.f32.partialorder %v16645_v47, 0.0  ;;  %v16701_v15 = vld [vmem:[#allocation234_spill] sm:$0xff] }
 0x42c   :  { %v12413_v26 = vsel %vm2772_vm2, %v11731_v34, %v16691_v43  ;;  %16695 = vst [vmem:[#allocation199_spill] sm:$0xff] %v12429_v18  ;;  %v16696_v34 = vld [vmem:[#allocation236_spill] sm:$0xff]  ;;  %v16699_v43 = vld [vmem:[#allocation306_spill] sm:$0xff]  ;;  %vm2902_vm2 = vcmp.ge.f32.partialorder %v11919_v48, 0.0  ;;  %v12457_v3 = vsel %vm2786_vm1, %v11752_v40, %v16701_v15  ;;  %vm2967_vm1 = vcmp.ge.f32.partialorder %v16683_v41, 0.0 }
 0x42d   :  { %v12435_v23 = vsel %vm2783_vm12, %v11741_v16, %v16696_v34  ;;  %v12447_v49 = vsel %vm2785_vm14, %v16699_v43, %v16698_v53  ;;  %v16702_v16 = vld [vmem:[#allocation238_spill] sm:$0xff]  ;;  %v16706_v18 = vld [vmem:[#allocation308_spill] sm:$0xff]  ;;  %vm16709_vm12 = vcmp.ge.f32.partialorder %v11767_v58, 0.0 }
 0x42e   :  { %16700 = vst [vmem:[#allocation200_spill] sm:$0xff] %v12447_v49  ;;  %v12463_v35 = vsel %vm2787_vm11, %v11755_v60, %v16702_v16  ;;  %v16703_v34 = vld [vmem:[#allocation126_spill] sm:$0xff]  ;;  %v16711_v15 = vld [vmem:[#allocation64_spill] sm:$0xff]  ;;  %v16714_v16 = vld [vmem:[#allocation57_spill] sm:$0xff] }
 0x42f   :  { %v12469_v53 = vsel %vm2796_vm10, %v16704_v50, %v16703_v34  ;;  %v16705_v43 = vld [vmem:[#allocation62_spill] sm:$0xff]  ;;  %vm16712_vm10 = vcmp.ge.f32.partialorder %v11770_v30, 0.0  ;;  %v16717_v50 = vld [vmem:[#allocation97_spill] sm:$0xff] }
 0x430   :  { %v12475_v49 = vsel %vm2797_vm5, %v16706_v18, %v16705_v43  ;;  %v16708_v40 = vld [vmem:[#allocation54_spill] sm:$0xff]  ;;  %v12491_v18 = vsel %vm16712_vm10, %v11770_v30, %v16711_v15  ;;  %vm16715_vm5 = vcmp.ge.f32.partialorder %v16590_v13, 0.0  ;;  %v16721_v30 = vld [vmem:[#allocation311_spill] sm:$0xff]  ;;  %vm16731_vm10 = vcmp.ge.f32.partialorder %v16597_v6, 0.0 }
 0x431   :  { %16707 = vst [vmem:[#allocation201_spill] sm:$0xff] %v12475_v49  ;;  %v12485_v60 = vsel %vm16709_vm12, %v11767_v58, %v16708_v40  ;;  %16713 = vst [vmem:[#allocation203_spill] sm:$0xff] %v12491_v18  ;;  %v12497_v34 = vsel %vm16715_vm5, %v16590_v13, %v16714_v16  ;;  %v16718_v43 = vld [vmem:[#allocation310_spill] sm:$0xff]  ;;  %v16720_v58 = vld [vmem:[#allocation235_spill] sm:$0xff]  ;;  %vm16722_vm13 = vcmp.ge.f32.partialorder %v16721_v30, 0.0  ;;  %vm16725_vm5 = vcmp.ge.f32.partialorder %v11785_v22, 0.0 }
 0x432   :  { %16710 = vst [vmem:[#allocation194_spill] sm:$0xff] %v12485_v60  ;;  %16716 = vst [vmem:[#allocation198_spill] sm:$0xff] %v12497_v34  ;;  %vm16719_vm11 = vcmp.ge.f32.partialorder %v16718_v43, 0.0  ;;  %v12513_v13 = vsel %vm16722_vm13, %v16721_v30, %v16720_v58  ;;  %v16724_v40 = vld [vmem:[#allocation108_spill] sm:$0xff]  ;;  %v16727_v16 = vld [vmem:[#allocation239_spill] sm:$0xff]  ;;  %vm16748_vm13 = vcmp.ge.f32.partialorder %v16604_v25, 0.0 }
 0x433   :  { %v12503_v49 = vsel %vm16719_vm11, %v16718_v43, %v16717_v50  ;;  %16723 = vst [vmem:[#allocation204_spill] sm:$0xff] %v12513_v13  ;;  %v12519_v15 = vsel %vm16725_vm5, %v11785_v22, %v16724_v40  ;;  %vm16728_vm11 = vcmp.ge.f32.partialorder %v11789_v31, 0.0  ;;  %v16730_v43 = vld [vmem:[#allocation240_spill] sm:$0xff]  ;;  %v16734_v58 = vld [vmem:[#allocation313_spill] sm:$0xff]  ;;  %v16819_v60 = vld [vmem:[#allocation43_spill] sm:$0xff] }
 0x434   :  { %16726 = vst [vmem:[#allocation205_spill] sm:$0xff] %v12519_v15  ;;  %v12525_v50 = vsel %vm16728_vm11, %v11789_v31, %v16727_v16  ;;  %v12531_v34 = vsel %vm16731_vm10, %v16597_v6, %v16730_v43  ;;  %v16733_v22 = vld [vmem:[#allocation244_spill] sm:$0xff]  ;;  %vm16735_vm12 = vcmp.ge.f32.partialorder %v16734_v58, 0.0  ;;  %v16737_v30 = vld [vmem:[#allocation241_spill] sm:$0xff]  ;;  %vm16738_vm11 = vcmp.ge.f32.partialorder %v11800_v55, 0.0  ;;  %v16743_v43 = vld [vmem:[#allocation242_spill] sm:$0xff] }
 0x435   :  { %16729 = vst [vmem:[#allocation207_spill] sm:$0xff] %v12525_v50  ;;  %16732 = vst [vmem:[#allocation208_spill] sm:$0xff] %v12531_v34  ;;  %v12541_v31 = vsel %vm16735_vm12, %v16734_v58, %v16733_v22  ;;  %v12547_v6 = vsel %vm16738_vm11, %v11800_v55, %v16737_v30  ;;  %v16740_v40 = vld [vmem:[#allocation245_spill] sm:$0xff]  ;;  %vm16741_vm10 = vcmp.ge.f32.partialorder %v11804_v59, 0.0  ;;  %v16744_v34 = vld [vmem:[#allocation314_spill] sm:$0xff]  ;;  %vm16763_vm12 = vcmp.ge.f32.partialorder %v11827_v9, 0.0 }
 0x436   :  { %16736 = vst [vmem:[#allocation209_spill] sm:$0xff] %v12541_v31  ;;  %16739 = vst [vmem:[#allocation211_spill] sm:$0xff] %v12547_v6  ;;  %v12553_v16 = vsel %vm16741_vm10, %v11804_v59, %v16740_v40  ;;  %vm16745_vm5 = vcmp.ge.f32.partialorder %v16744_v34, 0.0  ;;  %v16747_v55 = vld [vmem:[#allocation246_spill] sm:$0xff]  ;;  %v16750_v22 = vld [vmem:[#allocation127_spill] sm:$0xff] }
 0x437   :  { %16742 = vst [vmem:[#allocation213_spill] sm:$0xff] %v12553_v16  ;;  %v12559_v50 = vsel %vm16745_vm5, %v16744_v34, %v16743_v43  ;;  %v12569_v59 = vsel %vm16748_vm13, %v16604_v25, %v16747_v55  ;;  %v16751_v58 = vld [vmem:[#allocation316_spill] sm:$0xff]  ;;  %v16755_v40 = vld [vmem:[#allocation317_spill] sm:$0xff]  ;;  %v16759_v16 = vld [vmem:[#allocation318_spill] sm:$0xff] }
 0x438   :  { %16746 = vst [vmem:[#allocation215_spill] sm:$0xff] %v12559_v50  ;;  %16749 = vst [vmem:[#allocation212_spill] sm:$0xff] %v12569_v59  ;;  %vm16752_vm10 = vcmp.ge.f32.partialorder %v16751_v58, 0.0  ;;  %v16754_v30 = vld [vmem:[#allocation68_spill] sm:$0xff]  ;;  %vm16756_vm5 = vcmp.ge.f32.partialorder %v16755_v40, 0.0  ;;  %vm16760_vm11 = vcmp.ge.f32.partialorder %v16759_v16, 0.0 }
 0x439   :  { %v12575_v34 = vsel %vm16752_vm10, %v16751_v58, %v16750_v22  ;;  %v12581_v43 = vsel %vm16756_vm5, %v16755_v40, %v16754_v30  ;;  %v16758_v50 = vld [vmem:[#allocation60_spill] sm:$0xff]  ;;  %v16765_v22 = vld [vmem:[#allocation66_spill] sm:$0xff]  ;;  %vm16766_vm5 = vcmp.ge.f32.partialorder %v16611_v46, 0.0  ;;  %v16772_v40 = vld [vmem:[#allocation243_spill] sm:$0xff] }
 0x43a   :  { %16753 = vst [vmem:[#allocation144_spill] sm:$0xff] %v12575_v34  ;;  %16757 = vst [vmem:[#allocation147_spill] sm:$0xff] %v12581_v43  ;;  %v12587_v6 = vsel %vm16760_vm11, %v16759_v16, %v16758_v50  ;;  %v16762_v25 = vld [vmem:[#allocation104_spill] sm:$0xff]  ;;  %v12603_v50 = vsel %vm16766_vm5, %v16611_v46, %v16765_v22  ;;  %v16768_v16 = vld [vmem:[#allocation111_spill] sm:$0xff] }
 0x43b   :  { %16761 = vst [vmem:[#allocation149_spill] sm:$0xff] %v12587_v6  ;;  %v12597_v55 = vsel %vm16763_vm12, %v11827_v9, %v16762_v25  ;;  %16767 = vst [vmem:[#allocation153_spill] sm:$0xff] %v12603_v50  ;;  %v16769_v58 = vld [vmem:[#allocation320_spill] sm:$0xff]  ;;  %v16773_v59 = vld [vmem:[#allocation321_spill] sm:$0xff]  ;;  %vm2966_vm12 = vcmp.ge.f32.partialorder %v16681_v1, 0.0 }
 0x43c   :  { %16764 = vst [vmem:[#allocation151_spill] sm:$0xff] %v12597_v55  ;;  %vm16770_vm11 = vcmp.ge.f32.partialorder %v16769_v58, 0.0  ;;  %vm16774_vm10 = vcmp.ge.f32.partialorder %v16773_v59, 0.0  ;;  %v16776_v9 = vld [vmem:[#allocation49_spill] sm:$0xff]  ;;  %v16777_v46 = vld [vmem:[#allocation322_spill] sm:$0xff]  ;;  %v16780_v22 = vld [vmem:[#allocation247_spill] sm:$0xff] }
 0x43d   :  { %v12609_v30 = vsel %vm16770_vm11, %v16769_v58, %v16768_v16  ;;  %v12615_v6 = vsel %vm16774_vm10, %v16773_v59, %v16772_v40  ;;  %vm16778_vm13 = vcmp.ge.f32.partialorder %v16777_v46, 0.0  ;;  %v16781_v16 = vld [vmem:[#allocation323_spill] sm:$0xff]  ;;  %v16784_v58 = vld [vmem:[#allocation252_spill] sm:$0xff]  ;;  %v16789_v50 = vld [vmem:[#allocation325_spill] sm:$0xff] }
 0x43e   :  { %16771 = vst [vmem:[#allocation157_spill] sm:$0xff] %v12609_v30  ;;  %16775 = vst [vmem:[#allocation160_spill] sm:$0xff] %v12615_v6  ;;  %v12625_v25 = vsel %vm16778_vm13, %v16777_v46, %v16776_v9  ;;  %vm16782_vm11 = vcmp.ge.f32.partialorder %v16781_v16, 0.0  ;;  %v16785_v40 = vld [vmem:[#allocation324_spill] sm:$0xff]  ;;  %vm16790_vm5 = vcmp.ge.f32.partialorder %v16789_v50, 0.0  ;;  %v16792_v9 = vld [vmem:[#allocation326_spill] sm:$0xff] }
 0x43f   :  { %16779 = vst [vmem:[#allocation162_spill] sm:$0xff] %v12625_v25  ;;  %v12631_v59 = vsel %vm16782_vm11, %v16781_v16, %v16780_v22  ;;  %vm16786_vm10 = vcmp.ge.f32.partialorder %v16785_v40, 0.0  ;;  %v16788_v30 = vld [vmem:[#allocation248_spill] sm:$0xff]  ;;  %vm16793_vm13 = vcmp.ge.f32.partialorder %v16792_v9, 0.0  ;;  %v16794_v25 = vld [vmem:[#allocation249_spill] sm:$0xff]  ;;  %v16795_v34 = vld [vmem:[#allocation327_spill] sm:$0xff] }
 0x440   :  { %16783 = vst [vmem:[#allocation109_spill] sm:$0xff] %v12631_v59  ;;  %v12637_v6 = vsel %vm16786_vm10, %v16785_v40, %v16784_v58  ;;  %v3278_v55 = vsel %vm16790_vm5, %v16789_v50, %v16788_v30  ;;  %v16791_v43 = vld [vmem:[#allocation100_spill] sm:$0xff]  ;;  %vm16796_vm11 = vcmp.ge.f32.partialorder %v16795_v34, 0.0  ;;  %v16797_v16 = vld [vmem:[#allocation119_spill] sm:$0xff]  ;;  %v16798_v59 = vld [vmem:[#allocation37_spill] sm:$0xff] }
 0x441   :  { %16787 = vst [vmem:[#allocation141_spill] sm:$0xff] %v12637_v6  ;;  %v3279_v46 = vsel %vm16793_vm13, %v16792_v9, %v16791_v43  ;;  %v3280_v22 = vsel %vm16796_vm11, %v16795_v34, %v16794_v25  ;;  %vm16799_vm10 = vcmp.ge.f32.partialorder %v16798_v59, 0.0  ;;  %v16800_v40 = vld [vmem:[#allocation250_spill] sm:$0xff]  ;;  %v16803_v30 = vld [vmem:[#allocation67_spill] sm:$0xff]  ;;  %vm16807_vm13 = vcmp.ge.f32.partialorder %v11876_v11, 0.0  ;;  %v16808_v25 = vld [vmem:[#allocation73_spill] sm:$0xff] }
 0x442   :  { %v3281_v58 = vsel %vm16799_vm10, %v16798_v59, %v16797_v16  ;;  %v16801_v6 = vld [vmem:[#allocation38_spill] sm:$0xff]  ;;  %v16806_v9 = vld [vmem:[#allocation63_spill] sm:$0xff]  ;;  %vm16809_vm11 = vcmp.ge.f32.partialorder %v11880_v61, 0.0  ;;  %v16811_v18 = vld [vmem:[#allocation328_spill] sm:$0xff] }
 0x443   :  { %vm16802_vm14 = vcmp.ge.f32.partialorder %v16801_v6, 0.0  ;;  %v16804_v31 = vld [vmem:[#allocation102_spill] sm:$0xff]  ;;  %v3292_v34 = vsel %vm16807_vm13, %v11876_v11, %v16806_v9  ;;  %v3293_v59 = vsel %vm16809_vm11, %v11880_v61, %v16808_v25  ;;  %vm16812_vm10 = vcmp.ge.f32.partialorder %v16811_v18, 0.0  ;;  %v16815_v9 = vld [vmem:[#allocation35_spill] sm:$0xff] }
 0x444   :  { %v3282_v50 = vsel %vm16802_vm14, %v16801_v6, %v16800_v40  ;;  %vm16805_vm5 = vcmp.ge.f32.partialorder %v16804_v31, 0.0  ;;  %v16810_v16 = vld [vmem:[#allocation70_spill] sm:$0xff]  ;;  %v16818_v25 = vld [vmem:[#allocation251_spill] sm:$0xff]  ;;  %vm16847_vm13 = vcmp.ge.f32.partialorder %v16659_v44, 0.0  ;;  %vm16849_vm11 = vcmp.ge.f32.partialorder %v16661_v52, 0.0 }
 0x445   :  { %v3291_v43 = vsel %vm16805_vm5, %v16804_v31, %v16803_v30  ;;  %v3294_v6 = vsel %vm16812_vm10, %v16811_v18, %v16810_v16  ;;  %v16813_v40 = vld [vmem:[#allocation34_spill] sm:$0xff]  ;;  %v16814_v30 = vld [vmem:[#allocation72_spill] sm:$0xff]  ;;  %vm16820_vm5 = vcmp.ge.f32.partialorder %v16819_v60, 0.0  ;;  %v16821_v16 = vld [vmem:[#allocation101_spill] sm:$0xff]  ;;  %vm16851_vm10 = vcmp.ge.f32.partialorder %v16663_v38, 0.0 }
 0x446   :  { %v3295_v31 = vsel %vm2878_vm4, %v11887_v12, %v16813_v40  ;;  %v3304_v11 = vsel %vm2887_vm6, %v16633_v14, %v16814_v30  ;;  %v16816_v15 = vld [vmem:[#allocation42_spill] sm:$0xff]  ;;  %v3306_v18 = vsel %vm16820_vm5, %v16819_v60, %v16818_v25  ;;  %v3307_v12 = vsel %vm2890_vm0, %v11903_v20, %v16821_v16  ;;  %v16822_v40 = vld [vmem:[#allocation56_spill] sm:$0xff] }
 0x447   :  { %vm16817_vm14 = vcmp.ge.f32.partialorder %v16816_v15, 0.0  ;;  %v3308_v14 = vsel %vm2891_vm8, %v16638_v8, %v16822_v40  ;;  %v16823_v30 = vld [vmem:[#allocation120_spill] sm:$0xff]  ;;  %v16826_v16 = vld [vmem:[#allocation254_spill] sm:$0xff]  ;;  %v16827_v40 = vld [vmem:[#allocation113_spill] sm:$0xff]  ;;  %vm16829_vm4 = vcmp.ge.f32.partialorder %v16647_v27, 0.0  ;;  %vm16831_vm6 = vcmp.ge.f32.partialorder %v11935_v32, 0.0 }
 0x448   :  { %v3305_v61 = vsel %vm16817_vm14, %v16816_v15, %v16815_v9  ;;  %v3317_v15 = vsel %vm2900_vm15, %v16640_v42, %v16823_v30  ;;  %v16824_v9 = vld [vmem:[#allocation253_spill] sm:$0xff]  ;;  %v16825_v25 = vld [vmem:[#allocation140_spill] sm:$0xff]  ;;  %v3320_v8 = vsel %vm2903_vm9, %v11923_v29, %v16826_v16  ;;  %v3321_v42 = vsel %vm2904_vm7, %v16645_v47, %v16827_v40  ;;  %v16828_v30 = vld [vmem:[#allocation255_spill] sm:$0xff] }
 0x449   :  { %v3318_v60 = vsel %vm2901_vm3, %v11915_v57, %v16824_v9  ;;  %v3319_v20 = vsel %vm2902_vm2, %v11919_v48, %v16825_v25  ;;  %v3330_v57 = vsel %vm16829_vm4, %v16647_v27, %v16828_v30  ;;  %v16830_v9 = vld [vmem:[#allocation217_spill] sm:$0xff]  ;;  %v16832_v25 = vld [vmem:[#allocation138_spill] sm:$0xff]  ;;  %vm16833_vm15 = vcmp.ge.f32.partialorder %v11939_v2, 0.0  ;;  %v16834_v16 = vld [vmem:[#allocation139_spill] sm:$0xff] }
 0x44a   :  { %v3331_v48 = vsel %vm16831_vm6, %v11935_v32, %v16830_v9  ;;  %v3332_v29 = vsel %vm16833_vm15, %v11939_v2, %v16832_v25  ;;  %vm16835_vm8 = vcmp.ge.f32.partialorder %v11943_v39, 0.0  ;;  %v16836_v40 = vld [vmem:[#allocation129_spill] sm:$0xff]  ;;  %vm16837_vm0 = vcmp.ge.f32.partialorder %v16652_v10, 0.0  ;;  %v16842_v25 = vld [vmem:[#allocation112_spill] sm:$0xff] }
 0x44b   :  { %v3333_v47 = vsel %vm16835_vm8, %v11943_v39, %v16834_v16  ;;  %v3334_v27 = vsel %vm16837_vm0, %v16652_v10, %v16836_v40  ;;  %v16838_v30 = vld [vmem:[#allocation61_spill] sm:$0xff]  ;;  %vm16839_vm3 = vcmp.ge.f32.partialorder %v16654_v36, 0.0  ;;  %vm16841_vm2 = vcmp.ge.f32.partialorder %v11955_v17, 0.0  ;;  %v16846_v40 = vld [vmem:[#allocation142_spill] sm:$0xff] }
 0x44c   :  { %v3343_v32 = vsel %vm16839_vm3, %v16654_v36, %v16838_v30  ;;  %v16840_v9 = vld [vmem:[#allocation133_spill] sm:$0xff]  ;;  %vm16843_vm9 = vcmp.ge.f32.partialorder %v11959_v7, 0.0  ;;  %vm16845_vm7 = vcmp.ge.f32.partialorder %v11963_v56, 0.0  ;;  %v3347_v36 = vsel %vm16847_vm13, %v16659_v44, %v16846_v40  ;;  %v16848_v30 = vld [vmem:[#allocation154_spill] sm:$0xff]  ;;  %v16856_v40 = vld [vmem:[#allocation32_spill] sm:$0xff] }
 0x44d   :  { %v3344_v2 = vsel %vm16841_vm2, %v11955_v17, %v16840_v9  ;;  %v3345_v39 = vsel %vm16843_vm9, %v11959_v7, %v16842_v25  ;;  %v16844_v16 = vld [vmem:[#allocation145_spill] sm:$0xff]  ;;  %v3356_v17 = vsel %vm16849_vm11, %v16661_v52, %v16848_v30  ;;  %v16850_v9 = vld [vmem:[#allocation183_spill] sm:$0xff]  ;;  %v16852_v25 = vld [vmem:[#allocation184_spill] sm:$0xff]  ;;  %vm16853_vm14 = vcmp.ge.f32.partialorder %v11979_v63, 0.0 }
 0x44e   :  { %v3346_v10 = vsel %vm16845_vm7, %v11963_v56, %v16844_v16  ;;  %v3357_v7 = vsel %vm16851_vm10, %v16663_v38, %v16850_v9  ;;  %v3358_v56 = vsel %vm16853_vm14, %v11979_v63, %v16852_v25  ;;  %v16854_v16 = vld [vmem:[#allocation185_spill] sm:$0xff]  ;;  %vm16855_vm5 = vcmp.ge.f32.partialorder %v11983_v37, 0.0  ;;  %v16858_v30 = vld [vmem:[#allocation186_spill] sm:$0xff]  ;;  %v16860_v9 = vld [vmem:[#allocation83_spill] sm:$0xff] }
 0x44f   :  { %v3359_v44 = vsel %vm16855_vm5, %v11983_v37, %v16854_v16  ;;  %vm16857_vm4 = vcmp.ge.f32.partialorder %v16667_v19, 0.0  ;;  %vm16859_vm6 = vcmp.ge.f32.partialorder %v16669_v4, 0.0  ;;  %vm16861_vm15 = vcmp.ge.f32.partialorder %v16671_v24, 0.0  ;;  %v16862_v25 = vld [vmem:[#allocation188_spill] sm:$0xff]  ;;  %v16864_v16 = vld [vmem:[#allocation187_spill] sm:$0xff] }
 0x450   :  { %v3360_v52 = vsel %vm16857_vm4, %v16667_v19, %v16856_v40  ;;  %v3369_v38 = vsel %vm16859_vm6, %v16669_v4, %v16858_v30  ;;  %v3370_v63 = vsel %vm16861_vm15, %v16671_v24, %v16860_v9  ;;  %vm16863_vm8 = vcmp.ge.f32.partialorder %v16673_v45, 0.0  ;;  %v16866_v40 = vld [vmem:[#allocation191_spill] sm:$0xff]  ;;  %v16868_v30 = vld [vmem:[#allocation192_spill] sm:$0xff]  ;;  %v16870_v9 = vld [vmem:[#allocation193_spill] sm:$0xff] }
 0x451   :  { %v3371_v37 = vsel %vm16863_vm8, %v16673_v45, %v16862_v25  ;;  %vm16865_vm0 = vcmp.ge.f32.partialorder %v16675_v33, 0.0  ;;  %vm16867_vm3 = vcmp.ge.f32.partialorder %v16677_v21, 0.0  ;;  %vm16869_vm2 = vcmp.ge.f32.partialorder %v16679_v0, 0.0  ;;  %v16871_v25 = vld [vmem:[#allocation189_spill] sm:$0xff] }
 0x452   :  { %v3372_v19 = vsel %vm16865_vm0, %v16675_v33, %v16864_v16  ;;  %v3373_v4 = vsel %vm16867_vm3, %v16677_v21, %v16866_v40  ;;  %v3382_v24 = vsel %vm16869_vm2, %v16679_v0, %v16868_v30  ;;  %v3383_v45 = vsel %vm2966_vm12, %v16681_v1, %v16870_v9  ;;  %v16872_v16 = vld [vmem:[#allocation195_spill] sm:$0xff]  ;;  %v16874_v40 = vld [vmem:[#allocation196_spill] sm:$0xff] }
 0x453   :  { %v3384_v33 = vsel %vm2967_vm1, %v16683_v41, %v16871_v25  ;;  %vm16873_vm9 = vcmp.ge.f32.partialorder %v16685_v62, 0.0  ;;  %vm16875_vm7 = vcmp.ge.f32.partialorder %v16687_v51, 0.0  ;;  %v12821_v30 = vpack.c.bf16 %v12435_v23, %v12401_v54  ;;  %v16876_v41 = vld [vmem:[#allocation200_spill] sm:$0xff]  ;;  %v16878_v25 = vld [vmem:[#allocation197_spill] sm:$0xff] }
 0x454   :  { %v3385_v21 = vsel %vm16873_vm9, %v16685_v62, %v16872_v16  ;;  %v3386_v0 = vsel %vm16875_vm7, %v16687_v51, %v16874_v40  ;;  %v12825_v1 = vpack.c.bf16 %v12441_v5, %v12407_v28  ;;  %v12829_v9 = vpack.c.bf16 %v16876_v41, %v12413_v26  ;;  %v16880_v16 = vld [vmem:[#allocation199_spill] sm:$0xff]  ;;  %v16883_v54 = vld [vmem:[#allocation201_spill] sm:$0xff]  ;;  %v16884_v23 = vld [vmem:[#allocation204_spill] sm:$0xff] }
 0x455   :  { %v12833_v62 = vpack.c.bf16 %v12457_v3, %v16878_v25  ;;  %v12837_v13 = vpack.c.bf16 %v12463_v35, %v16880_v16  ;;  %v12841_v51 = vpack.c.bf16 %v12503_v49, %v12469_v53  ;;  %v12845_v28 = vpack.c.bf16 %v16884_v23, %v16883_v54  ;;  %v16886_v5 = vld [vmem:[#allocation194_spill] sm:$0xff]  ;;  %v16887_v40 = vld [vmem:[#allocation205_spill] sm:$0xff]  ;;  %v16889_v41 = vld [vmem:[#allocation203_spill] sm:$0xff] }
 0x456   :  { %16877 = vst [vmem:[#allocation166_spill] sm:$0xff] %v12829_v9  ;;  %v12849_v26 = vpack.c.bf16 %v16887_v40, %v16886_v5  ;;  %v16890_v9 = vld [vmem:[#allocation207_spill] sm:$0xff]  ;;  %v16892_v25 = vld [vmem:[#allocation198_spill] sm:$0xff]  ;;  %v16895_v16 = vld [vmem:[#allocation209_spill] sm:$0xff] }
 0x457   :  { %16879 = vst [vmem:[#allocation170_spill] sm:$0xff] %v12833_v62  ;;  %16881 = vst [vmem:[#allocation134_spill] sm:$0xff] %v12837_v13  ;;  %v12853_v3 = vpack.c.bf16 %v16890_v9, %v16889_v41  ;;  %v16893_v62 = vld [vmem:[#allocation208_spill] sm:$0xff]  ;;  %v16898_v53 = vld [vmem:[#allocation211_spill] sm:$0xff] }
 0x458   :  { %16882 = vst [vmem:[#allocation123_spill] sm:$0xff] %v12841_v51  ;;  %16885 = vst [vmem:[#allocation181_spill] sm:$0xff] %v12845_v28  ;;  %v12857_v35 = vpack.c.bf16 %v16893_v62, %v16892_v25  ;;  %v16896_v13 = vld [vmem:[#allocation144_spill] sm:$0xff]  ;;  %v16899_v51 = vld [vmem:[#allocation147_spill] sm:$0xff] }
 0x459   :  { %16888 = vst [vmem:[#allocation146_spill] sm:$0xff] %v12849_v26  ;;  %16891 = vst [vmem:[#allocation148_spill] sm:$0xff] %v12853_v3  ;;  %v12861_v49 = vpack.c.bf16 %v16896_v13, %v16895_v16  ;;  %v12865_v54 = vpack.c.bf16 %v16899_v51, %v16898_v53  ;;  %v16900_v23 = vld [vmem:[#allocation213_spill] sm:$0xff]  ;;  %v16903_v40 = vld [vmem:[#allocation215_spill] sm:$0xff] }
 0x45a   :  { %16894 = vst [vmem:[#allocation150_spill] sm:$0xff] %v12857_v35  ;;  %v16901_v28 = vld [vmem:[#allocation149_spill] sm:$0xff]  ;;  %v16904_v26 = vld [vmem:[#allocation151_spill] sm:$0xff]  ;;  %v16905_v41 = vld [vmem:[#allocation212_spill] sm:$0xff] }
 0x45b   :  { %16897 = vst [vmem:[#allocation152_spill] sm:$0xff] %v12861_v49  ;;  %v12869_v5 = vpack.c.bf16 %v16901_v28, %v16900_v23  ;;  %v12873_v9 = vpack.c.bf16 %v16904_v26, %v16903_v40  ;;  %v16906_v3 = vld [vmem:[#allocation153_spill] sm:$0xff]  ;;  %v16908_v13 = vld [vmem:[#allocation160_spill] sm:$0xff]  ;;  %v16909_v51 = vld [vmem:[#allocation162_spill] sm:$0xff]  ;;  %v12894_v26 = vpack.c.bf16 %v3304_v11, %v3291_v43  ;;  %v12896_v40 = vpack.c.bf16 %v3305_v61, %v3292_v34 }
 0x45c   :  { %v12877_v62 = vpack.c.bf16 %v16906_v3, %v16905_v41  ;;  %v16907_v25 = vld [vmem:[#allocation157_spill] sm:$0xff]  ;;  %v12883_v16 = vpack.c.bf16 %v3279_v46, %v16908_v13  ;;  %v12886_v53 = vpack.c.bf16 %v3280_v22, %v16909_v51  ;;  %v12898_v3 = vpack.c.bf16 %v3306_v18, %v3293_v59 }
 0x45d   :  { %16902 = vst [vmem:[#allocation155_spill] sm:$0xff] %v12869_v5  ;;  %v12880_v35 = vpack.c.bf16 %v3278_v55, %v16907_v25  ;;  %v16910_v49 = vld [vmem:[#allocation109_spill] sm:$0xff]  ;;  %v12900_v55 = vpack.c.bf16 %v3307_v12, %v3294_v6  ;;  %v12902_v41 = vpack.c.bf16 %v3308_v14, %v3295_v31  ;;  %v12904_v46 = vpack.c.bf16 %v3330_v57, %v3317_v15 }
 0x45e   :  { %v12889_v28 = vpack.c.bf16 %v3281_v58, %v16910_v49  ;;  %v16911_v23 = vld [vmem:[#allocation141_spill] sm:$0xff]  ;;  %v12906_v22 = vpack.c.bf16 %v3331_v48, %v3318_v60  ;;  %v12908_v25 = vpack.c.bf16 %v3332_v29, %v3319_v20  ;;  %v12910_v58 = vpack.c.bf16 %v3333_v47, %v3320_v8 }
 0x45f   :  { %v12892_v5 = vpack.c.bf16 %v3282_v50, %v16911_v23  ;;  %v12912_v50 = vpack.c.bf16 %v3334_v27, %v3321_v42  ;;  %v12914_v43 = vpack.c.bf16 %v3356_v17, %v3343_v32  ;;  %v12916_v34 = vpack.c.bf16 %v3357_v7, %v3344_v2 }
 0x460   :  { %v12918_v59 = vpack.c.bf16 %v3358_v56, %v3345_v39  ;;  %v12920_v6 = vpack.c.bf16 %v3359_v44, %v3346_v10  ;;  %v12922_v31 = vpack.c.bf16 %v3360_v52, %v3347_v36  ;;  %v12924_v11 = vpack.c.bf16 %v3382_v24, %v3369_v38 }
 0x461   :  { %v12926_v61 = vpack.c.bf16 %v3383_v45, %v3370_v63  ;;  %v12928_v18 = vpack.c.bf16 %v3384_v33, %v3371_v37  ;;  %v12930_v12 = vpack.c.bf16 %v3385_v21, %v3372_v19  ;;  %v12932_v14 = vpack.c.bf16 %v3386_v0, %v3373_v4 }
 0x462   :  { %7225 = dma.done.wait [#allocation4], 39936 }
 0x463   :  { %7226 = vsyncadd [#allocation4], 4294927360  ;;  %v16912_v15 = vld [vmem:[#allocation69_spill] sm:$0xff]  ;;  %v3495_v8 = vld [vmem:[#allocation2] sm:$0xff] }
 0x464   :  { %4630 = vmatprep.mubr.bf16.mxu0 %v16912_v15  ;;  %3839 = vmatprep.mubr.bf16.mxu1 %v16912_v15  ;;  %v3496_v60 = vld [vmem:[#allocation2 + $0x8] sm:$0xff]  ;;  %v3521_v20 = vld [vmem:[#allocation2 + $0xd0] sm:$0xff]  ;;  %v3499_v57 = vld [vmem:[#allocation2 + $0x20] sm:$0xff] }
 0x465   :  { %3807 = vmatprep.subr.bf16.mxu1 %v3496_v60  ;;  %6190 = vmatprep.subr.bf16.mxu0 %v3521_v20  ;;  %v3497_v42 = vld [vmem:[#allocation2 + $0x10] sm:$0xff]  ;;  %v3524_v48 = vld [vmem:[#allocation2 + $0xe8] sm:$0xff]  ;;  %v3498_v29 = vld [vmem:[#allocation2 + $0x18] sm:$0xff] }
 0x466   :  { %3808 = vmatpush1.bf16.msra.mxu1 %v3495_v8  ;;  %6191 = vmatpush3.bf16.msra.mxu0 %v3497_v42  ;;  %v3500_v47 = vld [vmem:[#allocation2 + $0x28] sm:$0xff]  ;;  %v3502_v27 = vld [vmem:[#allocation2 + $0x38] sm:$0xff]  ;;  %v3527_v32 = vld [vmem:[#allocation2 + $0x100] sm:$0xff] }
 0x467   :  { %3809 = vmatprep.subr.bf16.mxu1 %v3499_v57  ;;  %6192 = vmatprep.subr.bf16.mxu0 %v3524_v48  ;;  %v3501_v2 = vld [vmem:[#allocation2 + $0x30] sm:$0xff]  ;;  %v3503_v39 = vld [vmem:[#allocation2 + $0x40] sm:$0xff]  ;;  %v3530_v36 = vld [vmem:[#allocation2 + $0x118] sm:$0xff] }
 0x468   :  { %v3505_v10 = vld [vmem:[#allocation2 + $0x50] sm:$0xff]  ;;  %v3504_v17 = vld [vmem:[#allocation2 + $0x48] sm:$0xff]  ;;  %v3506_v7 = vld [vmem:[#allocation2 + $0x58] sm:$0xff] }
 0x469   :  { %v3508_v56 = vld [vmem:[#allocation2 + $0x68] sm:$0xff]  ;;  %v3533_v44 = vld [vmem:[#allocation2 + $0x130] sm:$0xff]  ;;  %v3507_v52 = vld [vmem:[#allocation2 + $0x60] sm:$0xff] }
 0x46a   :  { %3810 = vmatpush1.bf16.msra.mxu1 %v3498_v29  ;;  %6193 = vmatpush3.bf16.msra.mxu0 %v3500_v47  ;;  %v3509_v38 = vld [vmem:[#allocation2 + $0x70] sm:$0xff]  ;;  %v3511_v63 = vld [vmem:[#allocation2 + $0x80] sm:$0xff]  ;;  %v3536_v37 = vld [vmem:[#allocation2 + $0x148] sm:$0xff] }
 0x46b   :  { %3811 = vmatprep.subr.bf16.mxu1 %v3502_v27  ;;  %6194 = vmatprep.subr.bf16.mxu0 %v3527_v32  ;;  %v3510_v19 = vld [vmem:[#allocation2 + $0x78] sm:$0xff]  ;;  %v3512_v4 = vld [vmem:[#allocation2 + $0x88] sm:$0xff]  ;;  %v3539_v45 = vld [vmem:[#allocation2 + $0x160] sm:$0xff] }
 0x46c   :  { %v3514_v24 = vld [vmem:[#allocation2 + $0x98] sm:$0xff]  ;;  %v3513_v33 = vld [vmem:[#allocation2 + $0x90] sm:$0xff]  ;;  %v3515_v21 = vld [vmem:[#allocation2 + $0xa0] sm:$0xff] }
 0x46d   :  { %v3517_v0 = vld [vmem:[#allocation2 + $0xb0] sm:$0xff]  ;;  %v3542_v49 = vld [vmem:[#allocation2 + $0x178] sm:$0xff]  ;;  %v3516_v13 = vld [vmem:[#allocation2 + $0xa8] sm:$0xff] }
 0x46e   :  { %3812 = vmatpush1.bf16.msra.mxu1 %v3501_v2  ;;  %6195 = vmatpush3.bf16.msra.mxu0 %v3503_v39  ;;  %v3518_v51 = vld [vmem:[#allocation2 + $0xb8] sm:$0xff]  ;;  %v3520_v23 = vld [vmem:[#allocation2 + $0xc8] sm:$0xff]  ;;  %v3569_v15 = vld [vmem:[#allocation2 + $0x250] sm:$0xff] }
 0x46f   :  { %3813 = vmatprep.subr.bf16.mxu1 %v3505_v10  ;;  %6196 = vmatprep.subr.bf16.mxu0 %v3530_v36  ;;  %v3519_v60 = vld [vmem:[#allocation2 + $0xc0] sm:$0xff]  ;;  %v3545_v8 = vld [vmem:[#allocation2 + $0x190] sm:$0xff]  ;;  %v3572_v57 = vld [vmem:[#allocation2 + $0x268] sm:$0xff] }
 0x470   :  { %v3523_v20 = vld [vmem:[#allocation2 + $0xe0] sm:$0xff]  ;;  %v3522_v29 = vld [vmem:[#allocation2 + $0xd8] sm:$0xff]  ;;  %v3548_v27 = vld [vmem:[#allocation2 + $0x1a8] sm:$0xff] }
 0x471   :  { %v16913_v42 = vld [vmem:[#allocation256_spill] sm:$0xff]  ;;  %v16914_v48 = vld [vmem:[#allocation143_spill] sm:$0xff]  ;;  %v3525_v2 = vld [vmem:[#allocation2 + $0xf0] sm:$0xff] }
 0x472   :  { %3814 = vmatpush1.bf16.msra.mxu1 %v3504_v17  ;;  %6197 = vmatpush3.bf16.msra.mxu0 %v3506_v7  ;;  %v3526_v47 = vld [vmem:[#allocation2 + $0xf8] sm:$0xff]  ;;  %v3575_v32 = vld [vmem:[#allocation2 + $0x280] sm:$0xff]  ;;  %v3529_v39 = vld [vmem:[#allocation2 + $0x110] sm:$0xff] }
 0x473   :  { %3815 = vmatprep.subr.bf16.mxu1 %v3508_v56  ;;  %6198 = vmatprep.subr.bf16.mxu0 %v3533_v44  ;;  %v3551_v10 = vld [vmem:[#allocation2 + $0x1c0] sm:$0xff]  ;;  %v3578_v17 = vld [vmem:[#allocation2 + $0x298] sm:$0xff]  ;;  %v3528_v56 = vld [vmem:[#allocation2 + $0x108] sm:$0xff] }
 0x474   :  { %v16915_v36 = vld [vmem:[#allocation259_spill] sm:$0xff]  ;;  %v16916_v7 = vld [vmem:[#allocation74_spill] sm:$0xff]  ;;  %v3532_v44 = vld [vmem:[#allocation2 + $0x128] sm:$0xff] }
 0x476   :  { %3816 = vmatpush1.bf16.msra.mxu1 %v3507_v52  ;;  %6199 = vmatpush3.bf16.msra.mxu0 %v3509_v38  ;;  %v3554_v52 = vld [vmem:[#allocation2 + $0x1d8] sm:$0xff]  ;;  %v3581_v38 = vld [vmem:[#allocation2 + $0x2b0] sm:$0xff] }
 0x477   :  { %3817 = vmatprep.subr.bf16.mxu1 %v3511_v63  ;;  %6200 = vmatprep.subr.bf16.mxu0 %v3536_v37  ;;  %v3531_v63 = vld [vmem:[#allocation2 + $0x120] sm:$0xff] }
 0x478   :  { %v3535_v37 = vld [vmem:[#allocation2 + $0x140] sm:$0xff] }
 0x47a   :  { %3818 = vmatpush1.bf16.msra.mxu1 %v3510_v19  ;;  %6201 = vmatpush3.bf16.msra.mxu0 %v3512_v4  ;;  %v3557_v19 = vld [vmem:[#allocation2 + $0x1f0] sm:$0xff]  ;;  %v16917_v4 = vld [vmem:[#allocation263_spill] sm:$0xff] }
 0x47b   :  { %3819 = vmatprep.subr.bf16.mxu1 %v3514_v24  ;;  %6202 = vmatprep.subr.bf16.mxu0 %v3539_v45  ;;  %v3584_v24 = vld [vmem:[#allocation2 + $0x2c8] sm:$0xff]  ;;  %v16918_v45 = vld [vmem:[#allocation30_spill] sm:$0xff] }
 0x47e   :  { %3820 = vmatpush1.bf16.msra.mxu1 %v3513_v33  ;;  %6203 = vmatpush3.bf16.msra.mxu0 %v3515_v21  ;;  %v3534_v33 = vld [vmem:[#allocation2 + $0x138] sm:$0xff] }
 0x47f   :  { %3821 = vmatprep.subr.bf16.mxu1 %v3517_v0  ;;  %6204 = vmatprep.subr.bf16.mxu0 %v3542_v49  ;;  %v3538_v21 = vld [vmem:[#allocation2 + $0x158] sm:$0xff]  ;;  %v3560_v0 = vld [vmem:[#allocation2 + $0x208] sm:$0xff]  ;;  %v3587_v49 = vld [vmem:[#allocation2 + $0x2e0] sm:$0xff] }
 0x482   :  { %3822 = vmatpush1.bf16.msra.mxu1 %v3516_v13  ;;  %6205 = vmatpush3.bf16.msra.mxu0 %v3518_v51  ;;  %v3537_v13 = vld [vmem:[#allocation2 + $0x150] sm:$0xff] }
 0x483   :  { %3823 = vmatprep.subr.bf16.mxu1 %v3520_v23  ;;  %6254 = vmatprep.subr.bf16.mxu0 %v3569_v15  ;;  %v3541_v51 = vld [vmem:[#allocation2 + $0x170] sm:$0xff]  ;;  %v3563_v23 = vld [vmem:[#allocation2 + $0x220] sm:$0xff] }
 0x484   :  { %v16919_v15 = vld [vmem:[#allocation266_spill] sm:$0xff] }
 0x485   :  { %4631 = vmatmul.mubr.bf16.vlgmr.msra.gmra.mrb[104].mxu0 %v16913_v42 }
 0x486   :  { %3824 = vmatpush1.bf16.msra.mxu1 %v3519_v60  ;;  %4638 = vmatprep.mubr.bf16.mxu0 %v16914_v48  ;;  %v3590_v60 = vld [vmem:[#allocation2 + $0x2f8] sm:$0xff] }
 0x487   :  { %3825 = vmatprep.subr.bf16.mxu1 %v3523_v20  ;;  %6255 = vmatpush3.bf16.msra.mxu0 %v3545_v8  ;;  %v16920_v20 = vld [vmem:[#allocation86_spill] sm:$0xff]  ;;  %v3540_v8 = vld [vmem:[#allocation2 + $0x168] sm:$0xff] }
 0x488   :  { %6256 = vmatprep.subr.bf16.mxu0 %v3572_v57  ;;  %v3544_v57 = vld [vmem:[#allocation2 + $0x188] sm:$0xff] }
 0x48a   :  { %3826 = vmatpush1.bf16.msra.mxu1 %v3522_v29  ;;  %v3566_v29 = vld [vmem:[#allocation2 + $0x238] sm:$0xff] }
 0x48b   :  { %3827 = vmatprep.subr.bf16.mxu1 %v3526_v47  ;;  %6257 = vmatpush3.bf16.msra.mxu0 %v3548_v27  ;;  %v3617_v47 = vld [vmem:[#allocation2 + $0x3d0] sm:$0xff]  ;;  %v3543_v27 = vld [vmem:[#allocation2 + $0x180] sm:$0xff] }
 0x48c   :  { %6258 = vmatprep.subr.bf16.mxu0 %v3575_v32  ;;  %v3547_v32 = vld [vmem:[#allocation2 + $0x1a0] sm:$0xff] }
 0x48d   :  { %4639 = vmatmul.mubr.bf16.gmra.mrb[108].mxu0 %v16915_v36 }
 0x48e   :  { %3828 = vmatpush1.bf16.msra.mxu1 %v3525_v2  ;;  %4646 = vmatprep.mubr.bf16.mxu0 %v16916_v7  ;;  %v16921_v2 = vld [vmem:[#allocation84_spill] sm:$0xff] }
 0x48f   :  { %3829 = vmatprep.subr.bf16.mxu1 %v3529_v39  ;;  %6259 = vmatpush3.bf16.msra.mxu0 %v3551_v10  ;;  %v3546_v39 = vld [vmem:[#allocation2 + $0x198] sm:$0xff] }
 0x490   :  { %6260 = vmatprep.subr.bf16.mxu0 %v3578_v17  ;;  %v16922_v10 = vld [vmem:[#allocation31_spill] sm:$0xff] }
 0x491   :  { %v3550_v17 = vld [vmem:[#allocation2 + $0x1b8] sm:$0xff] }
 0x492   :  { %3830 = vmatpush1.bf16.msra.mxu1 %v3528_v56  ;;  %v3549_v56 = vld [vmem:[#allocation2 + $0x1b0] sm:$0xff] }
 0x493   :  { %3831 = vmatprep.subr.bf16.mxu1 %v3532_v44  ;;  %6261 = vmatpush3.bf16.msra.mxu0 %v3554_v52  ;;  %v3553_v44 = vld [vmem:[#allocation2 + $0x1d0] sm:$0xff]  ;;  %v16923_v52 = vld [vmem:[#allocation116_spill] sm:$0xff] }
 0x494   :  { %6262 = vmatprep.subr.bf16.mxu0 %v3581_v38  ;;  %v16924_v38 = vld [vmem:[#allocation90_spill] sm:$0xff] }
 0x495   :  { %4647 = vmatmul.mubr.bf16.gmra.mrb[112].mxu0 %v16917_v4 }
 0x496   :  { %3832 = vmatpush1.bf16.msra.mxu1 %v3531_v63  ;;  %4654 = vmatprep.mubr.bf16.mxu0 %v16918_v45  ;;  %v3555_v63 = vld [vmem:[#allocation2 + $0x1e0] sm:$0xff] }
 0x497   :  { %3833 = vmatprep.subr.bf16.mxu1 %v3535_v37  ;;  %6263 = vmatpush3.bf16.msra.mxu0 %v3557_v19  ;;  %v3559_v37 = vld [vmem:[#allocation2 + $0x200] sm:$0xff] }
 0x498   :  { %6264 = vmatprep.subr.bf16.mxu0 %v3584_v24  ;;  %v16925_v19 = vld [vmem:[#allocation88_spill] sm:$0xff]  ;;  %v16926_v24 = vld [vmem:[#allocation130_spill] sm:$0xff] }
 0x49a   :  { %3834 = vmatpush1.bf16.msra.mxu1 %v3534_v33  ;;  %v3561_v33 = vld [vmem:[#allocation2 + $0x210] sm:$0xff] }
 0x49b   :  { %3835 = vmatprep.subr.bf16.mxu1 %v3538_v21  ;;  %6265 = vmatpush3.bf16.msra.mxu0 %v3560_v0  ;;  %v3565_v21 = vld [vmem:[#allocation2 + $0x230] sm:$0xff] }
 0x49c   :  { %6266 = vmatprep.subr.bf16.mxu0 %v3587_v49  ;;  %v16927_v0 = vld [vmem:[#allocation85_spill] sm:$0xff]  ;;  %v16928_v49 = vld [vmem:[#allocation76_spill] sm:$0xff] }
 0x49d   :  { %4655 = vmatmul.mubr.bf16.gmra.mrb[116].mxu0 %v16919_v15 }
 0x49e   :  { %3836 = vmatpush1.bf16.msra.mxu1 %v3537_v13  ;;  %4662 = vmatprep.mubr.bf16.mxu0 %v16920_v20  ;;  %v3567_v13 = vld [vmem:[#allocation2 + $0x240] sm:$0xff] }
 0x49f   :  { %3837 = vmatprep.subr.bf16.mxu1 %v3541_v51  ;;  %6267 = vmatpush3.bf16.msra.mxu0 %v3563_v23  ;;  %v3571_v51 = vld [vmem:[#allocation2 + $0x260] sm:$0xff] }
 0x4a0   :  { %6268 = vmatprep.subr.bf16.mxu0 %v3590_v60  ;;  %v16929_v23 = vld [vmem:[#allocation71_spill] sm:$0xff]  ;;  %v3593_v60 = vld [vmem:[#allocation2 + $0x310] sm:$0xff] }
 0x4a2   :  { %3838 = vmatpush1.bf16.msra.mxu1 %v3540_v8  ;;  %v16930_v8 = vld [vmem:[#allocation114_spill] sm:$0xff] }
 0x4a3   :  { %3920 = vmatprep.subr.bf16.mxu1 %v3544_v57  ;;  %6269 = vmatpush3.bf16.msra.mxu0 %v3566_v29  ;;  %v3574_v57 = vld [vmem:[#allocation2 + $0x278] sm:$0xff]  ;;  %v3596_v29 = vld [vmem:[#allocation2 + $0x328] sm:$0xff] }
 0x4a4   :  { %6318 = vmatprep.subr.bf16.mxu0 %v3617_v47  ;;  %v3573_v47 = vld [vmem:[#allocation2 + $0x270] sm:$0xff] }
 0x4a5   :  { %3840 = vmatmul.mubr.bf16.vlgmr.msra.gmra.mrb[104].mxu1 %v16913_v42  ;;  %4663 = vmatmul.mubr.bf16.gmra.mrb[120].mxu0 %v16921_v2  ;;  %v3552_v42 = vld [vmem:[#allocation2 + $0x1c8] sm:$0xff] }
 0x4a6   :  { %3921 = vmatpush1.bf16.msra.mxu1 %v3543_v27  ;;  %3849 = vmatprep.mubr.bf16.mxu1 %v16914_v48  ;;  %v3556_v48 = vld [vmem:[#allocation2 + $0x1e8] sm:$0xff]  ;;  %v3577_v27 = vld [vmem:[#allocation2 + $0x290] sm:$0xff] }
 0x4a7   :  { %3922 = vmatprep.subr.bf16.mxu1 %v3547_v32  ;;  %4670 = vmatprep.mubr.bf16.mxu0 %v16922_v10  ;;  %v16931_v32 = vld [vmem:[#allocation99_spill] sm:$0xff] }
 0x4aa   :  { %3923 = vmatpush1.bf16.msra.mxu1 %v3546_v39  ;;  %v3599_v39 = vld [vmem:[#allocation2 + $0x340] sm:$0xff] }
 0x4ab   :  { %3924 = vmatprep.subr.bf16.mxu1 %v3550_v17  ;;  %v16932_v17 = vld [vmem:[#allocation82_spill] sm:$0xff] }
 0x4ad   :  { %3850 = vmatmul.mubr.bf16.gmra.mrb[108].mxu1 %v16915_v36  ;;  %4671 = vmatmul.mubr.bf16.gmra.mrb[124].mxu0 %v16923_v52  ;;  %v3558_v36 = vld [vmem:[#allocation2 + $0x1f8] sm:$0xff] }
 0x4ae   :  { %3925 = vmatpush1.bf16.msra.mxu1 %v3549_v56  ;;  %3859 = vmatprep.mubr.bf16.mxu1 %v16916_v7  ;;  %v3562_v7 = vld [vmem:[#allocation2 + $0x218] sm:$0xff] }
 0x4af   :  { %3926 = vmatprep.subr.bf16.mxu1 %v3553_v44  ;;  %4678 = vmatprep.mubr.bf16.mxu0 %v16924_v38  ;;  %v3626_v56 = vld [vmem:[#allocation2 + $0x418] sm:$0xff]  ;;  %v3580_v44 = vld [vmem:[#allocation2 + $0x2a8] sm:$0xff] }
 0x4b2   :  { %3927 = vmatpush1.bf16.msra.mxu1 %v3552_v42  ;;  %v3579_v42 = vld [vmem:[#allocation2 + $0x2a0] sm:$0xff] }
 0x4b3   :  { %3928 = vmatprep.subr.bf16.mxu1 %v3556_v48  ;;  %v16933_v48 = vld [vmem:[#allocation80_spill] sm:$0xff] }
 0x4b5   :  { %3860 = vmatmul.mubr.bf16.gmra.mrb[112].mxu1 %v16917_v4  ;;  %4679 = vmatmul.mubr.bf16.gmra.mrb[128].mxu0 %v16925_v19  ;;  %v3564_v4 = vld [vmem:[#allocation2 + $0x228] sm:$0xff] }
 0x4b6   :  { %3929 = vmatpush1.bf16.msra.mxu1 %v3555_v63  ;;  %3869 = vmatprep.mubr.bf16.mxu1 %v16918_v45  ;;  %v3568_v45 = vld [vmem:[#allocation2 + $0x248] sm:$0xff]  ;;  %v3602_v63 = vld [vmem:[#allocation2 + $0x358] sm:$0xff] }
 0x4b7   :  { %3930 = vmatprep.subr.bf16.mxu1 %v3559_v37  ;;  %4686 = vmatprep.mubr.bf16.mxu0 %v16926_v24  ;;  %v3582_v37 = vld [vmem:[#allocation2 + $0x2b8] sm:$0xff] }
 0x4ba   :  { %3931 = vmatpush1.bf16.msra.mxu1 %v3558_v36  ;;  %v16934_v36 = vld [vmem:[#allocation77_spill] sm:$0xff] }
 0x4bb   :  { %3932 = vmatprep.subr.bf16.mxu1 %v3562_v7  ;;  %v3586_v7 = vld [vmem:[#allocation2 + $0x2d8] sm:$0xff] }
 0x4bd   :  { %3870 = vmatmul.mubr.bf16.gmra.mrb[116].mxu1 %v16919_v15  ;;  %4687 = vmatmul.mubr.bf16.gmra.mrb[132].mxu0 %v16927_v0  ;;  %v3620_v15 = vld [vmem:[#allocation2 + $0x3e8] sm:$0xff] }
 0x4be   :  { %3933 = vmatpush1.bf16.msra.mxu1 %v3561_v33  ;;  %3879 = vmatprep.mubr.bf16.mxu1 %v16920_v20  ;;  %v3570_v20 = vld [vmem:[#allocation2 + $0x258] sm:$0xff]  ;;  %v3605_v33 = vld [vmem:[#allocation2 + $0x370] sm:$0xff] }
 0x4bf   :  { %3934 = vmatprep.subr.bf16.mxu1 %v3565_v21  ;;  %4727 = vmatprep.mubr.bf16.mxu0 %v16928_v49  ;;  %v3585_v21 = vld [vmem:[#allocation2 + $0x2d0] sm:$0xff] }
 0x4c2   :  { %3935 = vmatpush1.bf16.msra.mxu1 %v3564_v4  ;;  %v3589_v4 = vld [vmem:[#allocation2 + $0x2f0] sm:$0xff] }
 0x4c3   :  { %3936 = vmatprep.subr.bf16.mxu1 %v3568_v45  ;;  %v3632_v45 = vld [vmem:[#allocation2 + $0x448] sm:$0xff] }
 0x4c5   :  { %3880 = vmatmul.mubr.bf16.gmra.mrb[120].mxu1 %v16921_v2  ;;  %4728 = vmatmul.mubr.bf16.vlgmr.msra.gmra.mrb[136].mxu0 %v16929_v23  ;;  %v3623_v2 = vld [vmem:[#allocation2 + $0x400] sm:$0xff] }
 0x4c6   :  { %3937 = vmatpush1.bf16.msra.mxu1 %v3567_v13  ;;  %3889 = vmatprep.mubr.bf16.mxu1 %v16922_v10  ;;  %v3576_v10 = vld [vmem:[#allocation2 + $0x288] sm:$0xff] }
 0x4c7   :  { %3938 = vmatprep.subr.bf16.mxu1 %v3571_v51  ;;  %4735 = vmatprep.mubr.bf16.mxu0 %v16930_v8  ;;  %v3588_v13 = vld [vmem:[#allocation2 + $0x2e8] sm:$0xff]  ;;  %v16936_v51 = vld [vmem:[#allocation110_spill] sm:$0xff] }
 0x4c8   :  { %6319 = vmatpush3.bf16.msra.mxu0 %v3593_v60  ;;  %v3635_v60 = vld [vmem:[#allocation2 + $0x460] sm:$0xff] }
 0x4c9   :  { %6320 = vmatprep.subr.bf16.mxu0 %v3620_v15  ;;  %v3592_v15 = vld [vmem:[#allocation2 + $0x308] sm:$0xff] }
 0x4ca   :  { %3939 = vmatpush1.bf16.msra.mxu1 %v3570_v20  ;;  %v3591_v20 = vld [vmem:[#allocation2 + $0x300] sm:$0xff] }
 0x4cb   :  { %3940 = vmatprep.subr.bf16.mxu1 %v3574_v57  ;;  %v16937_v57 = vld [vmem:[#allocation177_spill] sm:$0xff] }
 0x4cc   :  { %6321 = vmatpush3.bf16.msra.mxu0 %v3596_v29  ;;  %v3611_v29 = vld [vmem:[#allocation2 + $0x3a0] sm:$0xff] }
 0x4cd   :  { %3890 = vmatmul.mubr.bf16.gmra.mrb[124].mxu1 %v16923_v52  ;;  %4736 = vmatmul.mubr.bf16.gmra.mrb[140].mxu0 %v16931_v32  ;;  %v3583_v52 = vld [vmem:[#allocation2 + $0x2c0] sm:$0xff] }
 0x4ce   :  { %3941 = vmatpush1.bf16.msra.mxu1 %v3573_v47  ;;  %3899 = vmatprep.mubr.bf16.mxu1 %v16924_v38  ;;  %v3629_v38 = vld [vmem:[#allocation2 + $0x430] sm:$0xff]  ;;  %v3594_v47 = vld [vmem:[#allocation2 + $0x318] sm:$0xff] }
 0x4cf   :  { %3942 = vmatprep.subr.bf16.mxu1 %v3577_v27  ;;  %4743 = vmatprep.mubr.bf16.mxu0 %v16932_v17  ;;  %v16938_v27 = vld [vmem:[#allocation81_spill] sm:$0xff] }
 0x4d0   :  { %6322 = vmatprep.subr.bf16.mxu0 %v3623_v2  ;;  %v3598_v2 = vld [vmem:[#allocation2 + $0x338] sm:$0xff] }
 0x4d1   :  { %6323 = vmatpush3.bf16.msra.mxu0 %v3599_v39  ;;  %v3614_v39 = vld [vmem:[#allocation2 + $0x3b8] sm:$0xff] }
 0x4d2   :  { %3943 = vmatpush1.bf16.msra.mxu1 %v3576_v10  ;;  %6324 = vmatprep.subr.bf16.mxu0 %v3626_v56  ;;  %v3597_v10 = vld [vmem:[#allocation2 + $0x330] sm:$0xff] }
 0x4d3   :  { %3944 = vmatprep.subr.bf16.mxu1 %v3580_v44  ;;  %v3601_v56 = vld [vmem:[#allocation2 + $0x350] sm:$0xff] }
 0x4d4   :  { %v3665_v44 = vld [vmem:[#allocation2 + $0x550] sm:$0xff] }
 0x4d5   :  { %3900 = vmatmul.mubr.bf16.gmra.mrb[128].mxu1 %v16925_v19  ;;  %4744 = vmatmul.mubr.bf16.gmra.mrb[144].mxu0 %v16933_v48  ;;  %v16935_v19 = vld [vmem:[#allocation156_spill] sm:$0xff] }
 0x4d6   :  { %3945 = vmatpush1.bf16.msra.mxu1 %v3579_v42  ;;  %3909 = vmatprep.mubr.bf16.mxu1 %v16926_v24  ;;  %v3608_v24 = vld [vmem:[#allocation2 + $0x388] sm:$0xff] }
 0x4d7   :  { %3946 = vmatprep.subr.bf16.mxu1 %v3583_v52  ;;  %4751 = vmatprep.mubr.bf16.mxu0 %v16934_v36  ;;  %v16940_v42 = vld [vmem:[#allocation117_spill] sm:$0xff] }
 0x4d8   :  { %6325 = vmatpush3.bf16.msra.mxu0 %v3602_v63  ;;  %v3604_v52 = vld [vmem:[#allocation2 + $0x368] sm:$0xff]  ;;  %v3603_v63 = vld [vmem:[#allocation2 + $0x360] sm:$0xff] }
 0x4d9   :  { %6326 = vmatprep.subr.bf16.mxu0 %v3629_v38  ;;  %v3607_v38 = vld [vmem:[#allocation2 + $0x380] sm:$0xff] }
 0x4da   :  { %3947 = vmatpush1.bf16.msra.mxu1 %v3582_v37  ;;  %v16941_v37 = vld [vmem:[#allocation178_spill] sm:$0xff] }
 0x4db   :  { %3948 = vmatprep.subr.bf16.mxu1 %v3586_v7  ;;  %v3610_v7 = vld [vmem:[#allocation2 + $0x398] sm:$0xff] }
 0x4dc   :  { %6327 = vmatpush3.bf16.msra.mxu0 %v3605_v33  ;;  %v3609_v33 = vld [vmem:[#allocation2 + $0x390] sm:$0xff] }
 0x4dd   :  { %3910 = vmatmul.mubr.bf16.gmra.mrb[132].mxu1 %v16927_v0  ;;  %4752 = vmatmul.mubr.bf16.gmra.mrb[148].mxu0 %v16935_v19  ;;  %v3595_v0 = vld [vmem:[#allocation2 + $0x320] sm:$0xff] }
 0x4de   :  { %3949 = vmatpush1.bf16.msra.mxu1 %v3585_v21  ;;  %3952 = vmatprep.mubr.bf16.mxu1 %v16928_v49  ;;  %v3638_v49 = vld [vmem:[#allocation2 + $0x478] sm:$0xff]  ;;  %v3613_v21 = vld [vmem:[#allocation2 + $0x3b0] sm:$0xff] }
 0x4df   :  { %3950 = vmatprep.subr.bf16.mxu1 %v3589_v4  ;;  %4759 = vmatprep.mubr.bf16.mxu0 %v16936_v51  ;;  %v16943_v4 = vld [vmem:[#allocation92_spill] sm:$0xff] }
 0x4e0   :  { %6328 = vmatprep.subr.bf16.mxu0 %v3632_v45  ;;  %v16944_v45 = vld [vmem:[#allocation121_spill] sm:$0xff] }
 0x4e1   :  { %6329 = vmatpush3.bf16.msra.mxu0 %v3608_v24  ;;  %v3615_v24 = vld [vmem:[#allocation2 + $0x3c0] sm:$0xff] }
 0x4e2   :  { %3951 = vmatpush1.bf16.msra.mxu1 %v3588_v13  ;;  %6330 = vmatprep.subr.bf16.mxu0 %v3635_v60  ;;  %v3619_v13 = vld [vmem:[#allocation2 + $0x3e0] sm:$0xff]  ;;  %v16945_v60 = vld [vmem:[#allocation78_spill] sm:$0xff] }
 0x4e3   :  { %4033 = vmatprep.subr.bf16.mxu1 %v3592_v15  ;;  %v3641_v15 = vld [vmem:[#allocation2 + $0x490] sm:$0xff] }
 0x4e5   :  { %3953 = vmatmul.mubr.bf16.vlgmr.msra.gmra.mrb[104].mxu1 %v16929_v23  ;;  %4760 = vmatmul.mubr.bf16.gmra.mrb[152].mxu0 %v16937_v57  ;;  %v16939_v23 = vld [vmem:[#allocation79_spill] sm:$0xff] }
 0x4e6   :  { %4034 = vmatpush1.bf16.msra.mxu1 %v3591_v20  ;;  %3962 = vmatprep.mubr.bf16.mxu1 %v16930_v8  ;;  %v3600_v8 = vld [vmem:[#allocation2 + $0x348] sm:$0xff] }
 0x4e7   :  { %4035 = vmatprep.subr.bf16.mxu1 %v3595_v0  ;;  %4767 = vmatprep.mubr.bf16.mxu0 %v16938_v27  ;;  %v16946_v20 = vld [vmem:[#allocation260_spill] sm:$0xff]  ;;  %v3622_v0 = vld [vmem:[#allocation2 + $0x3f8] sm:$0xff] }
 0x4e8   :  { %6331 = vmatpush3.bf16.msra.mxu0 %v3611_v29  ;;  %v3644_v29 = vld [vmem:[#allocation2 + $0x4a8] sm:$0xff] }
 0x4e9   :  { %6332 = vmatprep.subr.bf16.mxu0 %v3638_v49  ;;  %v3621_v49 = vld [vmem:[#allocation2 + $0x3f0] sm:$0xff] }
 0x4ea   :  { %4036 = vmatpush1.bf16.msra.mxu1 %v3594_v47  ;;  %v3625_v47 = vld [vmem:[#allocation2 + $0x410] sm:$0xff] }
 0x4eb   :  { %4037 = vmatprep.subr.bf16.mxu1 %v3598_v2  ;;  %v3671_v2 = vld [vmem:[#allocation2 + $0x580] sm:$0xff] }
 0x4ec   :  { %6333 = vmatpush3.bf16.msra.mxu0 %v3614_v39  ;;  %v3624_v39 = vld [vmem:[#allocation2 + $0x408] sm:$0xff] }
 0x4ed   :  { %3963 = vmatmul.mubr.bf16.gmra.mrb[108].mxu1 %v16931_v32  ;;  %4768 = vmatmul.mubr.bf16.gmra.mrb[156].mxu0 %v16939_v23  ;;  %v3606_v32 = vld [vmem:[#allocation2 + $0x378] sm:$0xff] }
 0x4ee   :  { %4038 = vmatpush1.bf16.msra.mxu1 %v3597_v10  ;;  %3972 = vmatprep.mubr.bf16.mxu1 %v16932_v17  ;;  %v16942_v17 = vld [vmem:[#allocation179_spill] sm:$0xff]  ;;  %v16948_v10 = vld [vmem:[#allocation264_spill] sm:$0xff] }
 0x4ef   :  { %4039 = vmatprep.subr.bf16.mxu1 %v3601_v56  ;;  %4775 = vmatprep.mubr.bf16.mxu0 %v16940_v42  ;;  %v3674_v56 = vld [vmem:[#allocation2 + $0x598] sm:$0xff] }
 0x4f0   :  { %6382 = vmatprep.subr.bf16.mxu0 %v3665_v44  ;;  %v3628_v44 = vld [vmem:[#allocation2 + $0x428] sm:$0xff] }
 0x4f2   :  { %4040 = vmatpush1.bf16.msra.mxu1 %v3600_v8  ;;  %v3627_v8 = vld [vmem:[#allocation2 + $0x420] sm:$0xff] }
 0x4f3   :  { %4041 = vmatprep.subr.bf16.mxu1 %v3604_v52  ;;  %v16949_v52 = vld [vmem:[#allocation174_spill] sm:$0xff] }
 0x4f5   :  { %3973 = vmatmul.mubr.bf16.gmra.mrb[112].mxu1 %v16933_v48  ;;  %4776 = vmatmul.mubr.bf16.gmra.mrb[160].mxu0 %v16941_v37  ;;  %v3612_v48 = vld [vmem:[#allocation2 + $0x3a8] sm:$0xff] }
 0x4f6   :  { %4042 = vmatpush1.bf16.msra.mxu1 %v3603_v63  ;;  %3982 = vmatprep.mubr.bf16.mxu1 %v16934_v36  ;;  %v3616_v36 = vld [vmem:[#allocation2 + $0x3c8] sm:$0xff]  ;;  %v3650_v63 = vld [vmem:[#allocation2 + $0x4d8] sm:$0xff] }
 0x4f7   :  { %4043 = vmatprep.subr.bf16.mxu1 %v3607_v38  ;;  %4783 = vmatprep.mubr.bf16.mxu0 %v16942_v17  ;;  %v3630_v38 = vld [vmem:[#allocation2 + $0x438] sm:$0xff] }
 0x4fa   :  { %4044 = vmatpush1.bf16.msra.mxu1 %v3606_v32  ;;  %v16950_v32 = vld [vmem:[#allocation268_spill] sm:$0xff] }
 0x4fb   :  { %4045 = vmatprep.subr.bf16.mxu1 %v3610_v7  ;;  %v3634_v7 = vld [vmem:[#allocation2 + $0x458] sm:$0xff] }
 0x4fd   :  { %3983 = vmatmul.mubr.bf16.gmra.mrb[116].mxu1 %v16935_v19  ;;  %4784 = vmatmul.mubr.bf16.gmra.mrb[164].mxu0 %v16943_v4  ;;  %v3668_v19 = vld [vmem:[#allocation2 + $0x568] sm:$0xff] }
 0x4fe   :  { %4046 = vmatpush1.bf16.msra.mxu1 %v3609_v33  ;;  %3992 = vmatprep.mubr.bf16.mxu1 %v16936_v51  ;;  %v3618_v51 = vld [vmem:[#allocation2 + $0x3d8] sm:$0xff]  ;;  %v3653_v33 = vld [vmem:[#allocation2 + $0x4f0] sm:$0xff] }
 0x4ff   :  { %4047 = vmatprep.subr.bf16.mxu1 %v3613_v21  ;;  %4824 = vmatprep.mubr.bf16.mxu0 %v16944_v45  ;;  %v3633_v21 = vld [vmem:[#allocation2 + $0x450] sm:$0xff] }
 0x502   :  { %4048 = vmatpush1.bf16.msra.mxu1 %v3612_v48  ;;  %v3637_v48 = vld [vmem:[#allocation2 + $0x470] sm:$0xff] }
 0x503   :  { %4049 = vmatprep.subr.bf16.mxu1 %v3616_v36  ;;  %v3680_v36 = vld [vmem:[#allocation2 + $0x5c8] sm:$0xff] }
 0x505   :  { %3993 = vmatmul.mubr.bf16.gmra.mrb[120].mxu1 %v16937_v57  ;;  %4825 = vmatmul.mubr.bf16.vlgmr.msra.gmra.mrb[168].mxu0 %v16945_v60  ;;  %v16947_v57 = vld [vmem:[#allocation59_spill] sm:$0xff] }
 0x506   :  { %4050 = vmatpush1.bf16.msra.mxu1 %v3615_v24  ;;  %4002 = vmatprep.mubr.bf16.mxu1 %v16938_v27  ;;  %v3647_v27 = vld [vmem:[#allocation2 + $0x4c0] sm:$0xff]  ;;  %v3636_v24 = vld [vmem:[#allocation2 + $0x468] sm:$0xff] }
 0x507   :  { %4051 = vmatprep.subr.bf16.mxu1 %v3619_v13  ;;  %4832 = vmatprep.mubr.bf16.mxu0 %v16946_v20  ;;  %v16952_v13 = vld [vmem:[#allocation271_spill] sm:$0xff] }
 0x508   :  { %6383 = vmatpush3.bf16.msra.mxu0 %v3641_v15  ;;  %v3683_v15 = vld [vmem:[#allocation2 + $0x5e0] sm:$0xff] }
 0x509   :  { %6384 = vmatprep.subr.bf16.mxu0 %v3668_v19  ;;  %v3640_v19 = vld [vmem:[#allocation2 + $0x488] sm:$0xff] }
 0x50a   :  { %4052 = vmatpush1.bf16.msra.mxu1 %v3618_v51  ;;  %v3639_v51 = vld [vmem:[#allocation2 + $0x480] sm:$0xff] }
 0x50b   :  { %4053 = vmatprep.subr.bf16.mxu1 %v3622_v0  ;;  %v16953_v0 = vld [vmem:[#allocation107_spill] sm:$0xff] }
 0x50c   :  { %6385 = vmatpush3.bf16.msra.mxu0 %v3644_v29  ;;  %v3659_v29 = vld [vmem:[#allocation2 + $0x520] sm:$0xff] }
 0x50d   :  { %4003 = vmatmul.mubr.bf16.gmra.mrb[124].mxu1 %v16939_v23  ;;  %4833 = vmatmul.mubr.bf16.gmra.mrb[172].mxu0 %v16947_v57  ;;  %v3631_v23 = vld [vmem:[#allocation2 + $0x440] sm:$0xff] }
 0x50e   :  { %4054 = vmatpush1.bf16.msra.mxu1 %v3621_v49  ;;  %4012 = vmatprep.mubr.bf16.mxu1 %v16940_v42  ;;  %v3677_v42 = vld [vmem:[#allocation2 + $0x5b0] sm:$0xff]  ;;  %v3642_v49 = vld [vmem:[#allocation2 + $0x498] sm:$0xff] }
 0x50f   :  { %4055 = vmatprep.subr.bf16.mxu1 %v3625_v47  ;;  %4840 = vmatprep.mubr.bf16.mxu0 %v16948_v10  ;;  %v16954_v47 = vld [vmem:[#allocation275_spill] sm:$0xff] }
 0x510   :  { %6386 = vmatprep.subr.bf16.mxu0 %v3671_v2  ;;  %v3646_v2 = vld [vmem:[#allocation2 + $0x4b8] sm:$0xff] }
 0x511   :  { %6387 = vmatpush3.bf16.msra.mxu0 %v3647_v27  ;;  %v3662_v27 = vld [vmem:[#allocation2 + $0x538] sm:$0xff] }
 0x512   :  { %4056 = vmatpush1.bf16.msra.mxu1 %v3624_v39  ;;  %6388 = vmatprep.subr.bf16.mxu0 %v3674_v56  ;;  %v3645_v39 = vld [vmem:[#allocation2 + $0x4b0] sm:$0xff] }
 0x513   :  { %4057 = vmatprep.subr.bf16.mxu1 %v3628_v44  ;;  %v3649_v56 = vld [vmem:[#allocation2 + $0x4d0] sm:$0xff] }
 0x514   :  { %v3713_v44 = vld [vmem:[#allocation2 + $0x6d0] sm:$0xff] }
 0x515   :  { %4013 = vmatmul.mubr.bf16.gmra.mrb[128].mxu1 %v16941_v37  ;;  %4841 = vmatmul.mubr.bf16.gmra.mrb[176].mxu0 %v16949_v52  ;;  %v16951_v37 = vld [vmem:[#allocation267_spill] sm:$0xff] }
 0x516   :  { %4058 = vmatpush1.bf16.msra.mxu1 %v3627_v8  ;;  %4022 = vmatprep.mubr.bf16.mxu1 %v16942_v17  ;;  %v3656_v17 = vld [vmem:[#allocation2 + $0x508] sm:$0xff]  ;;  %v16956_v8 = vld [vmem:[#allocation58_spill] sm:$0xff] }
 0x517   :  { %4059 = vmatprep.subr.bf16.mxu1 %v3631_v23  ;;  %4848 = vmatprep.mubr.bf16.mxu0 %v16950_v32  ;;  %v3652_v23 = vld [vmem:[#allocation2 + $0x4e8] sm:$0xff] }
 0x518   :  { %6389 = vmatpush3.bf16.msra.mxu0 %v3650_v63  ;;  %v3651_v63 = vld [vmem:[#allocation2 + $0x4e0] sm:$0xff] }
 0x519   :  { %6390 = vmatprep.subr.bf16.mxu0 %v3677_v42  ;;  %v3655_v42 = vld [vmem:[#allocation2 + $0x500] sm:$0xff] }
 0x51a   :  { %4060 = vmatpush1.bf16.msra.mxu1 %v3630_v38  ;;  %v16957_v38 = vld [vmem:[#allocation278_spill] sm:$0xff] }
 0x51b   :  { %4061 = vmatprep.subr.bf16.mxu1 %v3634_v7  ;;  %v3658_v7 = vld [vmem:[#allocation2 + $0x518] sm:$0xff] }
 0x51c   :  { %6391 = vmatpush3.bf16.msra.mxu0 %v3653_v33  ;;  %v3657_v33 = vld [vmem:[#allocation2 + $0x510] sm:$0xff] }
 0x51d   :  { %4023 = vmatmul.mubr.bf16.gmra.mrb[132].mxu1 %v16943_v4  ;;  %4849 = vmatmul.mubr.bf16.gmra.mrb[180].mxu0 %v16951_v37  ;;  %v3643_v4 = vld [vmem:[#allocation2 + $0x4a0] sm:$0xff] }
 0x51e   :  { %4062 = vmatpush1.bf16.msra.mxu1 %v3633_v21  ;;  %4065 = vmatprep.mubr.bf16.mxu1 %v16944_v45  ;;  %v3686_v45 = vld [vmem:[#allocation2 + $0x5f8] sm:$0xff]  ;;  %v3661_v21 = vld [vmem:[#allocation2 + $0x530] sm:$0xff] }
 0x51f   :  { %4063 = vmatprep.subr.bf16.mxu1 %v3637_v48  ;;  %4856 = vmatprep.mubr.bf16.mxu0 %v16952_v13  ;;  %v16959_v48 = vld [vmem:[#allocation281_spill] sm:$0xff] }
 0x520   :  { %6392 = vmatprep.subr.bf16.mxu0 %v3680_v36  ;;  %v16960_v36 = vld [vmem:[#allocation258_spill] sm:$0xff] }
 0x521   :  { %6393 = vmatpush3.bf16.msra.mxu0 %v3656_v17  ;;  %v3663_v17 = vld [vmem:[#allocation2 + $0x540] sm:$0xff] }
 0x522   :  { %4064 = vmatpush1.bf16.msra.mxu1 %v3636_v24  ;;  %6394 = vmatprep.subr.bf16.mxu0 %v3683_v15  ;;  %v3667_v24 = vld [vmem:[#allocation2 + $0x560] sm:$0xff]  ;;  %v16961_v15 = vld [vmem:[#allocation257_spill] sm:$0xff] }
 0x523   :  { %4146 = vmatprep.subr.bf16.mxu1 %v3640_v19  ;;  %v3689_v19 = vld [vmem:[#allocation2 + $0x610] sm:$0xff] }
 0x525   :  { %4066 = vmatmul.mubr.bf16.vlgmr.msra.gmra.mrb[104].mxu1 %v16945_v60  ;;  %4857 = vmatmul.mubr.bf16.gmra.mrb[184].mxu0 %v16953_v0  ;;  %v16955_v60 = vld [vmem:[#allocation274_spill] sm:$0xff] }
 0x526   :  { %4147 = vmatpush1.bf16.msra.mxu1 %v3639_v51  ;;  %4075 = vmatprep.mubr.bf16.mxu1 %v16946_v20  ;;  %v3648_v20 = vld [vmem:[#allocation2 + $0x4c8] sm:$0xff]  ;;  %v16962_v51 = vld [vmem:[#allocation262_spill] sm:$0xff] }
 0x527   :  { %4148 = vmatprep.subr.bf16.mxu1 %v3643_v4  ;;  %4864 = vmatprep.mubr.bf16.mxu0 %v16954_v47  ;;  %v3670_v4 = vld [vmem:[#allocation2 + $0x578] sm:$0xff] }
 0x528   :  { %6395 = vmatpush3.bf16.msra.mxu0 %v3659_v29  ;;  %v3692_v29 = vld [vmem:[#allocation2 + $0x628] sm:$0xff] }
 0x529   :  { %6396 = vmatprep.subr.bf16.mxu0 %v3686_v45  ;;  %v3669_v45 = vld [vmem:[#allocation2 + $0x570] sm:$0xff] }
 0x52a   :  { %4149 = vmatpush1.bf16.msra.mxu1 %v3642_v49  ;;  %v3673_v49 = vld [vmem:[#allocation2 + $0x590] sm:$0xff] }
 0x52b   :  { %4150 = vmatprep.subr.bf16.mxu1 %v3646_v2  ;;  %v3719_v2 = vld [vmem:[#allocation2 + $0x700] sm:$0xff] }
 0x52c   :  { %6397 = vmatpush3.bf16.msra.mxu0 %v3662_v27  ;;  %v3672_v27 = vld [vmem:[#allocation2 + $0x588] sm:$0xff] }
 0x52d   :  { %4076 = vmatmul.mubr.bf16.gmra.mrb[108].mxu1 %v16947_v57  ;;  %4865 = vmatmul.mubr.bf16.gmra.mrb[188].mxu0 %v16955_v60  ;;  %v3654_v57 = vld [vmem:[#allocation2 + $0x4f8] sm:$0xff] }
 0x52e   :  { %4151 = vmatpush1.bf16.msra.mxu1 %v3645_v39  ;;  %4085 = vmatprep.mubr.bf16.mxu1 %v16948_v10  ;;  %v16958_v10 = vld [vmem:[#allocation282_spill] sm:$0xff]  ;;  %v16964_v39 = vld [vmem:[#allocation265_spill] sm:$0xff] }
 0x52f   :  { %4152 = vmatprep.subr.bf16.mxu1 %v3649_v56  ;;  %4872 = vmatprep.mubr.bf16.mxu0 %v16956_v8  ;;  %v3722_v56 = vld [vmem:[#allocation2 + $0x718] sm:$0xff] }
 0x530   :  { %6446 = vmatprep.subr.bf16.mxu0 %v3713_v44  ;;  %v3676_v44 = vld [vmem:[#allocation2 + $0x5a8] sm:$0xff] }
 0x532   :  { %4153 = vmatpush1.bf16.msra.mxu1 %v3648_v20  ;;  %v3675_v20 = vld [vmem:[#allocation2 + $0x5a0] sm:$0xff] }
 0x533   :  { %4154 = vmatprep.subr.bf16.mxu1 %v3652_v23  ;;  %v16965_v23 = vld [vmem:[#allocation45_spill] sm:$0xff] }
 0x535   :  { %4086 = vmatmul.mubr.bf16.gmra.mrb[112].mxu1 %v16949_v52  ;;  %4873 = vmatmul.mubr.bf16.gmra.mrb[192].mxu0 %v16957_v38  ;;  %v3660_v52 = vld [vmem:[#allocation2 + $0x528] sm:$0xff] }
 0x536   :  { %4155 = vmatpush1.bf16.msra.mxu1 %v3651_v63  ;;  %4095 = vmatprep.mubr.bf16.mxu1 %v16950_v32  ;;  %v3664_v32 = vld [vmem:[#allocation2 + $0x548] sm:$0xff]  ;;  %v3698_v63 = vld [vmem:[#allocation2 + $0x658] sm:$0xff] }
 0x537   :  { %4156 = vmatprep.subr.bf16.mxu1 %v3655_v42  ;;  %4880 = vmatprep.mubr.bf16.mxu0 %v16958_v10  ;;  %v3678_v42 = vld [vmem:[#allocation2 + $0x5b8] sm:$0xff] }
 0x53a   :  { %4157 = vmatpush1.bf16.msra.mxu1 %v3654_v57  ;;  %v16966_v57 = vld [vmem:[#allocation270_spill] sm:$0xff] }
 0x53b   :  { %4158 = vmatprep.subr.bf16.mxu1 %v3658_v7  ;;  %v3682_v7 = vld [vmem:[#allocation2 + $0x5d8] sm:$0xff] }
 0x53d   :  { %4096 = vmatmul.mubr.bf16.gmra.mrb[116].mxu1 %v16951_v37  ;;  %4881 = vmatmul.mubr.bf16.gmra.mrb[196].mxu0 %v16959_v48  ;;  %v3716_v37 = vld [vmem:[#allocation2 + $0x6e8] sm:$0xff] }
 0x53e   :  { %4159 = vmatpush1.bf16.msra.mxu1 %v3657_v33  ;;  %4105 = vmatprep.mubr.bf16.mxu1 %v16952_v13  ;;  %v3666_v13 = vld [vmem:[#allocation2 + $0x558] sm:$0xff] }
 0x53f   :  { %4160 = vmatprep.subr.bf16.mxu1 %v3661_v21  ;;  %4921 = vmatprep.mubr.bf16.mxu0 %v16960_v36  ;;  %v3701_v21 = vld [vmem:[#allocation2 + $0x670] sm:$0xff] }
 0x542   :  { %4161 = vmatpush1.bf16.msra.mxu1 %v3660_v52 }
 0x543   :  { %4162 = vmatprep.subr.bf16.mxu1 %v3664_v32 }
 0x545   :  { %4106 = vmatmul.mubr.bf16.gmra.mrb[120].mxu1 %v16953_v0  ;;  %4922 = vmatmul.mubr.bf16.vlgmr.msra.gmra.mrb[200].mxu0 %v16961_v15  ;;  %v16963_v0 = vld [vmem:[#allocation261_spill] sm:$0xff] }
 0x546   :  { %4163 = vmatpush1.bf16.msra.mxu1 %v3663_v17  ;;  %4115 = vmatprep.mubr.bf16.mxu1 %v16954_v47  ;;  %v3695_v47 = vld [vmem:[#allocation2 + $0x640] sm:$0xff]  ;;  %v3681_v17 = vld [vmem:[#allocation2 + $0x5d0] sm:$0xff] }
 0x547   :  { %4164 = vmatprep.subr.bf16.mxu1 %v3667_v24  ;;  %4929 = vmatprep.mubr.bf16.mxu0 %v16962_v51 }
 0x548   :  { %6447 = vmatpush3.bf16.msra.mxu0 %v3689_v19  ;;  %v3685_v19 = vld [vmem:[#allocation2 + $0x5f0] sm:$0xff] }
 0x549   :  { %6448 = vmatprep.subr.bf16.mxu0 %v3716_v37  ;;  %v16967_v37 = vld [vmem:[#allocation269_spill] sm:$0xff] }
 0x54a   :  { %4165 = vmatpush1.bf16.msra.mxu1 %v3666_v13  ;;  %v3728_v13 = vld [vmem:[#allocation2 + $0x748] sm:$0xff] }
 0x54b   :  { %4166 = vmatprep.subr.bf16.mxu1 %v3670_v4  ;;  %v3704_v4 = vld [vmem:[#allocation2 + $0x688] sm:$0xff] }
 0x54c   :  { %6449 = vmatpush3.bf16.msra.mxu0 %v3692_v29  ;;  %v3684_v29 = vld [vmem:[#allocation2 + $0x5e8] sm:$0xff] }
 0x54d   :  { %4116 = vmatmul.mubr.bf16.gmra.mrb[124].mxu1 %v16955_v60  ;;  %4930 = vmatmul.mubr.bf16.gmra.mrb[204].mxu0 %v16963_v0  ;;  %v3679_v60 = vld [vmem:[#allocation2 + $0x5c0] sm:$0xff] }
 0x54e   :  { %4167 = vmatpush1.bf16.msra.mxu1 %v3669_v45  ;;  %4125 = vmatprep.mubr.bf16.mxu1 %v16956_v8  ;;  %v3725_v8 = vld [vmem:[#allocation2 + $0x730] sm:$0xff] }
 0x54f   :  { %4168 = vmatprep.subr.bf16.mxu1 %v3673_v49  ;;  %4937 = vmatprep.mubr.bf16.mxu0 %v16964_v39  ;;  %v16968_v45 = vld [vmem:[#allocation273_spill] sm:$0xff]  ;;  %v3731_v49 = vld [vmem:[#allocation2 + $0x760] sm:$0xff] }
 0x550   :  { %6450 = vmatprep.subr.bf16.mxu0 %v3719_v2  ;;  %v3688_v2 = vld [vmem:[#allocation2 + $0x608] sm:$0xff] }
 0x551   :  { %6451 = vmatpush3.bf16.msra.mxu0 %v3695_v47 }
 0x552   :  { %4169 = vmatpush1.bf16.msra.mxu1 %v3672_v27  ;;  %6452 = vmatprep.subr.bf16.mxu0 %v3722_v56 }
 0x553   :  { %4170 = vmatprep.subr.bf16.mxu1 %v3676_v44  ;;  %v3687_v44 = vld [vmem:[#allocation2 + $0x600] sm:$0xff] }
 0x555   :  { %4126 = vmatmul.mubr.bf16.gmra.mrb[128].mxu1 %v16957_v38  ;;  %4938 = vmatmul.mubr.bf16.gmra.mrb[208].mxu0 %v16965_v23 }
 0x556   :  { %4171 = vmatpush1.bf16.msra.mxu1 %v3675_v20  ;;  %4135 = vmatprep.mubr.bf16.mxu1 %v16958_v10 }
 0x557   :  { %4172 = vmatprep.subr.bf16.mxu1 %v3679_v60  ;;  %4945 = vmatprep.mubr.bf16.mxu0 %v16966_v57 }
 0x558   :  { %6453 = vmatpush3.bf16.msra.mxu0 %v3698_v63  ;;  %v6206_v33 = vpop.f32.mrb[104].mxu0  ;;  %v16969_v63 = vld [vmem:[#allocation272_spill] sm:$0xff] }
 0x559   :  { %6454 = vmatprep.subr.bf16.mxu0 %v3725_v8  ;;  %v6207_v52 = vpop.f32.mrb[105].mxu0  ;;  %v3707_v8 = vld [vmem:[#allocation2 + $0x6a0] sm:$0xff] }
 0x55a   :  { %4173 = vmatpush1.bf16.msra.mxu1 %v3678_v42  ;;  %v13036_v32 = vadd.f32 %v6207_v52, %v6206_v33  ;;  %v6209_v38 = vpop.f32.mrb[106].mxu0  ;;  %v3734_v42 = vld [vmem:[#allocation2 + $0x778] sm:$0xff]  ;;  %v16970_v33 = vld [vmem:[#allocation277_spill] sm:$0xff] }
 0x55b   :  { %4174 = vmatprep.subr.bf16.mxu1 %v3682_v7  ;;  %v6210_v24 = vpop.f32.mrb[107].mxu0  ;;  %v3690_v7 = vld [vmem:[#allocation2 + $0x618] sm:$0xff] }
 0x55c   :  { %6455 = vmatpush3.bf16.msra.mxu0 %v3701_v21  ;;  %v13038_v10 = vadd.f32 %v6210_v24, %v6209_v38  ;;  %v3694_v21 = vld [vmem:[#allocation2 + $0x638] sm:$0xff] }
 0x55d   :  { %4136 = vmatmul.mubr.bf16.gmra.mrb[132].mxu1 %v16959_v48  ;;  %4946 = vmatmul.mubr.bf16.gmra.mrb[212].mxu0 %v16967_v37 }
 0x55e   :  { %4175 = vmatpush1.bf16.msra.mxu1 %v3681_v17  ;;  %4178 = vmatprep.mubr.bf16.mxu1 %v16960_v36  ;;  %v3691_v36 = vld [vmem:[#allocation2 + $0x620] sm:$0xff]  ;;  %v3710_v17 = vld [vmem:[#allocation2 + $0x6b8] sm:$0xff] }
 0x55f   :  { %4176 = vmatprep.subr.bf16.mxu1 %v3685_v19  ;;  %4953 = vmatprep.mubr.bf16.mxu0 %v16968_v45  ;;  %v3693_v19 = vld [vmem:[#allocation2 + $0x630] sm:$0xff] }
 0x560   :  { %6456 = vmatprep.subr.bf16.mxu0 %v3728_v13  ;;  %v6212_v47 = vpop.f32.mrb[108].mxu0 }
 0x561   :  { %6457 = vmatpush3.bf16.msra.mxu0 %v3704_v4  ;;  %v6213_v27 = vpop.f32.mrb[109].mxu0  ;;  %v3697_v4 = vld [vmem:[#allocation2 + $0x650] sm:$0xff] }
 0x562   :  { %4177 = vmatpush1.bf16.msra.mxu1 %v3684_v29  ;;  %v13044_v56 = vadd.f32 %v6213_v27, %v6212_v47  ;;  %6458 = vmatprep.subr.bf16.mxu0 %v3731_v49  ;;  %v6215_v48 = vpop.f32.mrb[110].mxu0  ;;  %v16971_v29 = vld [vmem:[#allocation276_spill] sm:$0xff]  ;;  %v3761_v49 = vld [vmem:[#allocation2 + $0x850] sm:$0xff] }
 0x563   :  { %4259 = vmatprep.subr.bf16.mxu1 %v3688_v2  ;;  %v6216_v20 = vpop.f32.mrb[111].mxu0  ;;  %v3696_v2 = vld [vmem:[#allocation2 + $0x648] sm:$0xff] }
 0x564   :  { %v13046_v60 = vadd.f32 %v6216_v20, %v6215_v48  ;;  %v16972_v47 = vld [vmem:[#allocation280_spill] sm:$0xff] }
 0x565   :  { %4179 = vmatmul.mubr.bf16.vlgmr.msra.gmra.mrb[104].mxu1 %v16961_v15  ;;  %4954 = vmatmul.mubr.bf16.gmra.mrb[216].mxu0 %v16969_v63  ;;  %v3700_v27 = vld [vmem:[#allocation2 + $0x668] sm:$0xff] }
 0x566   :  { %4260 = vmatpush1.bf16.msra.mxu1 %v3687_v44  ;;  %4188 = vmatprep.mubr.bf16.mxu1 %v16962_v51 }
 0x567   :  { %4261 = vmatprep.subr.bf16.mxu1 %v3691_v36  ;;  %4961 = vmatprep.mubr.bf16.mxu0 %v16970_v33 }
 0x568   :  { %6459 = vmatpush3.bf16.msra.mxu0 %v3707_v8  ;;  %v6218_v52 = vpop.f32.mrb[112].mxu0 }
 0x569   :  { %v6219_v38 = vpop.f32.mrb[113].mxu0  ;;  %6460 = vmatprep.subr.bf16.mxu0 %v3734_v42  ;;  %v3703_v42 = vld [vmem:[#allocation2 + $0x680] sm:$0xff] }
 0x56a   :  { %4262 = vmatpush1.bf16.msra.mxu1 %v3690_v7  ;;  %v13052_v24 = vadd.f32 %v6219_v38, %v6218_v52  ;;  %v6221_v15 = vpop.f32.mrb[114].mxu0  ;;  %v16974_v52 = vld [vmem:[#allocation284_spill] sm:$0xff]  ;;  %v3706_v38 = vld [vmem:[#allocation2 + $0x698] sm:$0xff] }
 0x56b   :  { %4263 = vmatprep.subr.bf16.mxu1 %v3694_v21  ;;  %v6222_v13 = vpop.f32.mrb[115].mxu0  ;;  %v3702_v21 = vld [vmem:[#allocation2 + $0x678] sm:$0xff] }
 0x56c   :  { %6461 = vmatpush3.bf16.msra.mxu0 %v3710_v17  ;;  %v13054_v51 = vadd.f32 %v6222_v13, %v6221_v15 }
 0x56d   :  { %4189 = vmatmul.mubr.bf16.gmra.mrb[108].mxu1 %v16963_v0  ;;  %4962 = vmatmul.mubr.bf16.gmra.mrb[220].mxu0 %v16971_v29  ;;  %v3699_v0 = vld [vmem:[#allocation2 + $0x660] sm:$0xff] }
 0x56e   :  { %4264 = vmatpush1.bf16.msra.mxu1 %v3693_v19  ;;  %4198 = vmatprep.mubr.bf16.mxu1 %v16964_v39  ;;  %v16973_v39 = vld [vmem:[#allocation279_spill] sm:$0xff] }
 0x56f   :  { %4265 = vmatprep.subr.bf16.mxu1 %v3697_v4  ;;  %4969 = vmatprep.mubr.bf16.mxu0 %v16972_v47  ;;  %v3705_v4 = vld [vmem:[#allocation2 + $0x690] sm:$0xff] }
 0x570   :  { %v6224_v48 = vpop.f32.mrb[116].mxu0  ;;  %6510 = vmatprep.subr.bf16.mxu0 %v3761_v49 }
 0x571   :  { %v6225_v44 = vpop.f32.mrb[117].mxu0 }
 0x572   :  { %4266 = vmatpush1.bf16.msra.mxu1 %v3696_v2  ;;  %v13060_v20 = vadd.f32 %v6225_v44, %v6224_v48  ;;  %v6227_v36 = vpop.f32.mrb[118].mxu0  ;;  %v3712_v48 = vld [vmem:[#allocation2 + $0x6c8] sm:$0xff] }
 0x573   :  { %4267 = vmatprep.subr.bf16.mxu1 %v3700_v27  ;;  %v6228_v8 = vpop.f32.mrb[119].mxu0  ;;  %v3708_v27 = vld [vmem:[#allocation2 + $0x6a8] sm:$0xff] }
 0x574   :  { %v13062_v7 = vadd.f32 %v6228_v8, %v6227_v36 }
 0x575   :  { %4199 = vmatmul.mubr.bf16.gmra.mrb[112].mxu1 %v16965_v23  ;;  %4970 = vmatmul.mubr.bf16.gmra.mrb[224].mxu0 %v16973_v39  ;;  %v3709_v23 = vld [vmem:[#allocation2 + $0x6b0] sm:$0xff] }
 0x576   :  { %4268 = vmatpush1.bf16.msra.mxu1 %v3699_v0  ;;  %4208 = vmatprep.mubr.bf16.mxu1 %v16966_v57  ;;  %v16975_v57 = vld [vmem:[#allocation283_spill] sm:$0xff] }
 0x577   :  { %4269 = vmatprep.subr.bf16.mxu1 %v3703_v42  ;;  %4977 = vmatprep.mubr.bf16.mxu0 %v16974_v52  ;;  %v3711_v42 = vld [vmem:[#allocation2 + $0x6c0] sm:$0xff] }
 0x578   :  { %v6230_v17 = vpop.f32.mrb[120].mxu0 }
 0x579   :  { %v6231_v15 = vpop.f32.mrb[121].mxu0 }
 0x57a   :  { %4270 = vmatpush1.bf16.msra.mxu1 %v3702_v21  ;;  %v13068_v19 = vadd.f32 %v6231_v15, %v6230_v17  ;;  %v6233_v13 = vpop.f32.mrb[122].mxu0  ;;  %v3764_v17 = vld [vmem:[#allocation2 + $0x868] sm:$0xff]  ;;  %v3714_v15 = vld [vmem:[#allocation2 + $0x6d8] sm:$0xff] }
 0x57b   :  { %4271 = vmatprep.subr.bf16.mxu1 %v3706_v38  ;;  %v6234_v49 = vpop.f32.mrb[123].mxu0 }
 0x57c   :  { %v13070_v2 = vadd.f32 %v6234_v49, %v6233_v13  ;;  %v16976_v13 = vld [vmem:[#allocation181_spill] sm:$0xff] }
 0x57d   :  { %4209 = vmatmul.mubr.bf16.gmra.mrb[116].mxu1 %v16967_v37  ;;  %4978 = vmatmul.mubr.bf16.gmra.mrb[228].mxu0 %v16975_v57  ;;  %v3715_v37 = vld [vmem:[#allocation2 + $0x6e0] sm:$0xff] }
 0x57e   :  { %4272 = vmatpush1.bf16.msra.mxu1 %v3705_v4  ;;  %4218 = vmatprep.mubr.bf16.mxu1 %v16968_v45  ;;  %v3737_v45 = vld [vmem:[#allocation2 + $0x790] sm:$0xff]  ;;  %v3718_v4 = vld [vmem:[#allocation2 + $0x6f8] sm:$0xff] }
 0x57f   :  { %4273 = vmatprep.subr.bf16.mxu1 %v3709_v23  ;;  %5018 = vmatprep.mubr.bf16.mxu0 %v12825_v1 }
 0x580   :  { %v6236_v44 = vpop.f32.mrb[124].mxu0 }
 0x581   :  { %v6237_v36 = vpop.f32.mrb[125].mxu0 }
 0x582   :  { %4274 = vmatpush1.bf16.msra.mxu1 %v3708_v27  ;;  %v13076_v0 = vadd.f32 %v6237_v36, %v6236_v44  ;;  %v6239_v8 = vpop.f32.mrb[126].mxu0  ;;  %v3740_v27 = vld [vmem:[#allocation2 + $0x7a8] sm:$0xff]  ;;  %v3717_v44 = vld [vmem:[#allocation2 + $0x6f0] sm:$0xff] }
 0x583   :  { %4275 = vmatprep.subr.bf16.mxu1 %v3712_v48  ;;  %v6240_v21 = vpop.f32.mrb[127].mxu0 }
 0x584   :  { %v13078_v38 = vadd.f32 %v6240_v21, %v6239_v8  ;;  %v3721_v8 = vld [vmem:[#allocation2 + $0x710] sm:$0xff]  ;;  %v3767_v21 = vld [vmem:[#allocation2 + $0x880] sm:$0xff] }
 0x585   :  { %4219 = vmatmul.mubr.bf16.gmra.mrb[120].mxu1 %v16969_v63  ;;  %5019 = vmatmul.mubr.bf16.vlgmr.msra.gmra.mrb[232].mxu0 %v12821_v30 }
 0x586   :  { %4276 = vmatpush1.bf16.msra.mxu1 %v3711_v42  ;;  %4228 = vmatprep.mubr.bf16.mxu1 %v16970_v33  ;;  %v16977_v42 = vld [vmem:[#allocation123_spill] sm:$0xff] }
 0x587   :  { %4277 = vmatprep.subr.bf16.mxu1 %v3715_v37  ;;  %5026 = vmatprep.mubr.bf16.mxu0 %v16976_v13  ;;  %v3743_v37 = vld [vmem:[#allocation2 + $0x7c0] sm:$0xff] }
 0x588   :  { %v6242_v49 = vpop.f32.mrb[128].mxu0  ;;  %6511 = vmatpush3.bf16.msra.mxu0 %v3737_v45  ;;  %v3720_v45 = vld [vmem:[#allocation2 + $0x708] sm:$0xff] }
 0x589   :  { %v6243_v23 = vpop.f32.mrb[129].mxu0  ;;  %6512 = vmatprep.subr.bf16.mxu0 %v3764_v17  ;;  %v3770_v17 = vld [vmem:[#allocation2 + $0x898] sm:$0xff] }
 0x58a   :  { %4278 = vmatpush1.bf16.msra.mxu1 %v3714_v15  ;;  %v13084_v48 = vadd.f32 %v6243_v23, %v6242_v49  ;;  %v6245_v63 = vpop.f32.mrb[130].mxu0 }
 0x58b   :  { %4279 = vmatprep.subr.bf16.mxu1 %v3718_v4  ;;  %v6246_v36 = vpop.f32.mrb[131].mxu0  ;;  %v3724_v4 = vld [vmem:[#allocation2 + $0x728] sm:$0xff] }
 0x58c   :  { %v13086_v33 = vadd.f32 %v6246_v36, %v6245_v63  ;;  %6513 = vmatpush3.bf16.msra.mxu0 %v3740_v27  ;;  %v3723_v27 = vld [vmem:[#allocation2 + $0x720] sm:$0xff] }
 0x58d   :  { %4229 = vmatmul.mubr.bf16.gmra.mrb[124].mxu1 %v16971_v29  ;;  %5027 = vmatmul.mubr.bf16.gmra.mrb[236].mxu0 %v16977_v42  ;;  %v16978_v36 = vld [vmem:[#allocation152_spill] sm:$0xff] }
 0x58e   :  { %4280 = vmatpush1.bf16.msra.mxu1 %v3717_v44  ;;  %4238 = vmatprep.mubr.bf16.mxu1 %v16972_v47  ;;  %v3727_v44 = vld [vmem:[#allocation2 + $0x740] sm:$0xff] }
 0x58f   :  { %4281 = vmatprep.subr.bf16.mxu1 %v3721_v8  ;;  %5034 = vmatprep.mubr.bf16.mxu0 %v12865_v54  ;;  %v3746_v8 = vld [vmem:[#allocation2 + $0x7d8] sm:$0xff] }
 0x590   :  { %v6248_v15 = vpop.f32.mrb[132].mxu0  ;;  %6514 = vmatprep.subr.bf16.mxu0 %v3767_v21  ;;  %v3773_v21 = vld [vmem:[#allocation2 + $0x8b0] sm:$0xff] }
 0x591   :  { %v6249_v49 = vpop.f32.mrb[133].mxu0  ;;  %6515 = vmatpush3.bf16.msra.mxu0 %v3743_v37  ;;  %v3726_v37 = vld [vmem:[#allocation2 + $0x738] sm:$0xff] }
 0x592   :  { %4282 = vmatpush1.bf16.msra.mxu1 %v3720_v45  ;;  %v13092_v23 = vadd.f32 %v6249_v49, %v6248_v15  ;;  %v6251_v29 = vpop.f32.mrb[134].mxu0  ;;  %6516 = vmatprep.subr.bf16.mxu0 %v3770_v17  ;;  %v3730_v17 = vld [vmem:[#allocation2 + $0x758] sm:$0xff] }
 0x593   :  { %4283 = vmatprep.subr.bf16.mxu1 %v3724_v4  ;;  %v6252_v63 = vpop.f32.mrb[135].mxu0  ;;  %v3749_v4 = vld [vmem:[#allocation2 + $0x7f0] sm:$0xff] }
 0x594   :  { %v13094_v47 = vadd.f32 %v6252_v63, %v6251_v29  ;;  %v3729_v63 = vld [vmem:[#allocation2 + $0x750] sm:$0xff] }
 0x595   :  { %4239 = vmatmul.mubr.bf16.gmra.mrb[128].mxu1 %v16973_v39  ;;  %5035 = vmatmul.mubr.bf16.gmra.mrb[240].mxu0 %v16978_v36 }
 0x596   :  { %4284 = vmatpush1.bf16.msra.mxu1 %v3723_v27  ;;  %4248 = vmatprep.mubr.bf16.mxu1 %v16974_v52 }
 0x597   :  { %4285 = vmatprep.subr.bf16.mxu1 %v3727_v44  ;;  %5042 = vmatprep.mubr.bf16.mxu0 %v12883_v16  ;;  %v3733_v44 = vld [vmem:[#allocation2 + $0x770] sm:$0xff] }
 0x598   :  { %v6270_v45 = vpop.f32.mrb[136].mxu0  ;;  %6517 = vmatpush3.bf16.msra.mxu0 %v3746_v8  ;;  %v3776_v8 = vld [vmem:[#allocation2 + $0x8c8] sm:$0xff] }
 0x599   :  { %v6271_v15 = vpop.f32.mrb[137].mxu0  ;;  %6518 = vmatprep.subr.bf16.mxu0 %v3773_v21 }
 0x59a   :  { %v6272_v49 = vadd.f32 %v6271_v15, %v6270_v45  ;;  %4286 = vmatpush1.bf16.msra.mxu1 %v3726_v37  ;;  %v6273_v39 = vpop.f32.mrb[138].mxu0  ;;  %v3752_v37 = vld [vmem:[#allocation2 + $0x808] sm:$0xff] }
 0x59b   :  { %v6274_v29 = vpop.f32.mrb[139].mxu0  ;;  %4287 = vmatprep.subr.bf16.mxu1 %v3730_v17  ;;  %v3732_v45 = vld [vmem:[#allocation2 + $0x768] sm:$0xff] }
 0x59c   :  { %v13101_v27 = vadd.f32 %v6272_v49, %v13036_v32  ;;  %v6275_v52 = vadd.f32 %v6274_v29, %v6273_v39  ;;  %6519 = vmatpush3.bf16.msra.mxu0 %v3749_v4  ;;  %v3779_v32 = vld [vmem:[#allocation2 + $0x8e0] sm:$0xff]  ;;  %v3736_v15 = vld [vmem:[#allocation2 + $0x788] sm:$0xff] }
 0x59d   :  { %4249 = vmatmul.mubr.bf16.gmra.mrb[132].mxu1 %v16975_v57  ;;  %5043 = vmatmul.mubr.bf16.gmra.mrb[244].mxu0 %v12880_v35  ;;  %v3735_v39 = vld [vmem:[#allocation2 + $0x780] sm:$0xff] }
 0x59e   :  { %v13106_v21 = vadd.f32 %v6275_v52, %v13038_v10  ;;  %4288 = vmatpush1.bf16.msra.mxu1 %v3729_v63  ;;  %4291 = vmatprep.mubr.bf16.mxu1 %v12825_v1  ;;  %v3739_v63 = vld [vmem:[#allocation2 + $0x7a0] sm:$0xff] }
 0x59f   :  { %4289 = vmatprep.subr.bf16.mxu1 %v3733_v44  ;;  %5050 = vmatprep.mubr.bf16.mxu0 %v12896_v40  ;;  %v3755_v52 = vld [vmem:[#allocation2 + $0x820] sm:$0xff] }
 0x5a0   :  { %v6276_v17 = vpop.f32.mrb[140].mxu0  ;;  %6520 = vmatprep.subr.bf16.mxu0 %v3776_v8  ;;  %v3782_v8 = vld [vmem:[#allocation2 + $0x8f8] sm:$0xff] }
 0x5a1   :  { %v6277_v4 = vpop.f32.mrb[141].mxu0  ;;  %6521 = vmatpush3.bf16.msra.mxu0 %v3752_v37  ;;  %v3738_v37 = vld [vmem:[#allocation2 + $0x798] sm:$0xff] }
 0x5a2   :  { %v6278_v57 = vadd.f32 %v6277_v4, %v6276_v17  ;;  %4290 = vmatpush1.bf16.msra.mxu1 %v3732_v45  ;;  %v6279_v49 = vpop.f32.mrb[142].mxu0  ;;  %6522 = vmatprep.subr.bf16.mxu0 %v3779_v32  ;;  %v3742_v45 = vld [vmem:[#allocation2 + $0x7b8] sm:$0xff] }
 0x5a3   :  { %v6280_v10 = vpop.f32.mrb[143].mxu0  ;;  %4372 = vmatprep.subr.bf16.mxu1 %v3736_v15 }
 0x5a4   :  { %v13111_v1 = vadd.f32 %v6278_v57, %v13044_v56  ;;  %v6281_v29 = vadd.f32 %v6280_v10, %v6279_v49  ;;  %v3745_v49 = vld [vmem:[#allocation2 + $0x7d0] sm:$0xff] }
 0x5a5   :  { %4292 = vmatmul.mubr.bf16.vlgmr.msra.gmra.mrb[104].mxu1 %v12821_v30  ;;  %5051 = vmatmul.mubr.bf16.gmra.mrb[248].mxu0 %v12894_v26  ;;  %v3758_v30 = vld [vmem:[#allocation2 + $0x838] sm:$0xff]  ;;  %v13125_v10 = vld [vmem:[#allocation2 + $0x910] sm:$0xff] }
 0x5a6   :  { %v13116_v44 = vadd.f32 %v6281_v29, %v13046_v60  ;;  %4373 = vmatpush1.bf16.msra.mxu1 %v3735_v39  ;;  %4301 = vmatprep.mubr.bf16.mxu1 %v16976_v13  ;;  %v3741_v60 = vld [vmem:[#allocation2 + $0x7b0] sm:$0xff]  ;;  %v3744_v29 = vld [vmem:[#allocation2 + $0x7c8] sm:$0xff] }
 0x5a7   :  { %4374 = vmatprep.subr.bf16.mxu1 %v3739_v63  ;;  %5058 = vmatprep.mubr.bf16.mxu0 %v12906_v22  ;;  %v3748_v63 = vld [vmem:[#allocation2 + $0x7e8] sm:$0xff] }
 0x5a8   :  { %v6282_v56 = vpop.f32.mrb[144].mxu0  ;;  %6523 = vmatpush3.bf16.msra.mxu0 %v3755_v52 }
 0x5a9   :  { %v6283_v32 = vpop.f32.mrb[145].mxu0  ;;  %6524 = vmatprep.subr.bf16.mxu0 %v3782_v8 }
 0x5aa   :  { %v6284_v17 = vadd.f32 %v6283_v32, %v6282_v56  ;;  %4375 = vmatpush1.bf16.msra.mxu1 %v3738_v37  ;;  %v6285_v15 = vpop.f32.mrb[146].mxu0  ;;  %v3747_v56 = vld [vmem:[#allocation2 + $0x7e0] sm:$0xff] }
 0x5ab   :  { %v6286_v4 = vpop.f32.mrb[147].mxu0  ;;  %4376 = vmatprep.subr.bf16.mxu1 %v3742_v45 }
 0x5ac   :  { %v13121_v57 = vadd.f32 %v6284_v17, %v13052_v24  ;;  %v6287_v13 = vadd.f32 %v6286_v4, %v6285_v15  ;;  %6525 = vmatpush3.bf16.msra.mxu0 %v3758_v30  ;;  %v3750_v30 = vld [vmem:[#allocation2 + $0x7f8] sm:$0xff] }
 0x5ad   :  { %4302 = vmatmul.mubr.bf16.gmra.mrb[108].mxu1 %v16977_v42  ;;  %5059 = vmatmul.mubr.bf16.gmra.mrb[252].mxu0 %v12904_v46  ;;  %v3754_v15 = vld [vmem:[#allocation2 + $0x818] sm:$0xff] }
 0x5ae   :  { %v13128_v39 = vadd.f32 %v6287_v13, %v13054_v51  ;;  %4377 = vmatpush1.bf16.msra.mxu1 %v3741_v60  ;;  %4311 = vmatprep.mubr.bf16.mxu1 %v12865_v54  ;;  %v3751_v54 = vld [vmem:[#allocation2 + $0x800] sm:$0xff] }
 0x5af   :  { %4378 = vmatprep.subr.bf16.mxu1 %v3745_v49  ;;  %5066 = vmatprep.mubr.bf16.mxu0 %v12916_v34 }
 0x5b0   :  { %v6288_v24 = vpop.f32.mrb[148].mxu0  ;;  %6690 = vmatprep.subr.bf16.mxu0 %v13125_v10 }
 0x5b1   :  { %v6289_v52 = vpop.f32.mrb[149].mxu0 }
 0x5b2   :  { %v6290_v42 = vadd.f32 %v6289_v52, %v6288_v24  ;;  %4379 = vmatpush1.bf16.msra.mxu1 %v3744_v29  ;;  %v6291_v8 = vpop.f32.mrb[150].mxu0  ;;  %v3757_v29 = vld [vmem:[#allocation2 + $0x830] sm:$0xff]  ;;  %v3756_v24 = vld [vmem:[#allocation2 + $0x828] sm:$0xff] }
 0x5b3   :  { %v6292_v37 = vpop.f32.mrb[151].mxu0  ;;  %4380 = vmatprep.subr.bf16.mxu1 %v3748_v63  ;;  %v16979_v63 = vld [vmem:[#allocation170_spill] sm:$0xff] }
 0x5b4   :  { %v13134_v51 = vadd.f32 %v6290_v42, %v13060_v20  ;;  %v6293_v45 = vadd.f32 %v6292_v37, %v6291_v8  ;;  %v3760_v42 = vld [vmem:[#allocation2 + $0x848] sm:$0xff] }
 0x5b5   :  { %4312 = vmatmul.mubr.bf16.gmra.mrb[112].mxu1 %v16978_v36  ;;  %5067 = vmatmul.mubr.bf16.gmra.mrb[0].mxu0 %v12914_v43  ;;  %v3753_v36 = vld [vmem:[#allocation2 + $0x810] sm:$0xff] }
 0x5b6   :  { %v13139_v32 = vadd.f32 %v6293_v45, %v13062_v7  ;;  %4381 = vmatpush1.bf16.msra.mxu1 %v3747_v56  ;;  %4321 = vmatprep.mubr.bf16.mxu1 %v12883_v16 }
 0x5b7   :  { %4382 = vmatprep.subr.bf16.mxu1 %v3751_v54  ;;  %5074 = vmatprep.mubr.bf16.mxu0 %v12926_v61  ;;  %v3763_v54 = vld [vmem:[#allocation2 + $0x860] sm:$0xff] }
 0x5b8   :  { %v6294_v17 = vpop.f32.mrb[152].mxu0 }
 0x5b9   :  { %v6295_v20 = vpop.f32.mrb[153].mxu0 }
 0x5ba   :  { %v6296_v4 = vadd.f32 %v6295_v20, %v6294_v17  ;;  %4383 = vmatpush1.bf16.msra.mxu1 %v3750_v30  ;;  %v6297_v60 = vpop.f32.mrb[154].mxu0  ;;  %v3788_v17 = vld [vmem:[#allocation2 + $0x928] sm:$0xff] }
 0x5bb   :  { %v6298_v13 = vpop.f32.mrb[155].mxu0  ;;  %4384 = vmatprep.subr.bf16.mxu1 %v3754_v15  ;;  %v3762_v15 = vld [vmem:[#allocation2 + $0x858] sm:$0xff]  ;;  %v16981_v20 = vld [vmem:[#allocation148_spill] sm:$0xff] }
 0x5bc   :  { %v13144_v49 = vadd.f32 %v6296_v4, %v13068_v19  ;;  %v6299_v7 = vadd.f32 %v6298_v13, %v6297_v60 }
 0x5bd   :  { %4322 = vmatmul.mubr.bf16.gmra.mrb[116].mxu1 %v12880_v35  ;;  %5075 = vmatmul.mubr.bf16.gmra.mrb[4].mxu0 %v12924_v11  ;;  %v3759_v35 = vld [vmem:[#allocation2 + $0x840] sm:$0xff] }
 0x5be   :  { %v13149_v16 = vadd.f32 %v6299_v7, %v13070_v2  ;;  %4385 = vmatpush1.bf16.msra.mxu1 %v3753_v36  ;;  %4331 = vmatprep.mubr.bf16.mxu1 %v12896_v40  ;;  %v16980_v40 = vld [vmem:[#allocation166_spill] sm:$0xff] }
 0x5bf   :  { %4386 = vmatprep.subr.bf16.mxu1 %v3757_v29  ;;  %5115 = vmatprep.mubr.bf16.mxu0 %v16979_v63  ;;  %v3769_v29 = vld [vmem:[#allocation2 + $0x890] sm:$0xff] }
 0x5c0   :  { %v6300_v52 = vpop.f32.mrb[156].mxu0 }
 0x5c1   :  { %v6301_v19 = vpop.f32.mrb[157].mxu0 }
 0x5c2   :  { %v6302_v8 = vadd.f32 %v6301_v19, %v6300_v52  ;;  %4387 = vmatpush1.bf16.msra.mxu1 %v3756_v24  ;;  %v6303_v37 = vpop.f32.mrb[158].mxu0  ;;  %v16982_v24 = vld [vmem:[#allocation146_spill] sm:$0xff]  ;;  %v3791_v52 = vld [vmem:[#allocation2 + $0x940] sm:$0xff] }
 0x5c3   :  { %v6304_v56 = vpop.f32.mrb[159].mxu0  ;;  %4388 = vmatprep.subr.bf16.mxu1 %v3760_v42  ;;  %v3768_v42 = vld [vmem:[#allocation2 + $0x888] sm:$0xff] }
 0x5c4   :  { %v13154_v45 = vadd.f32 %v6302_v8, %v13076_v0  ;;  %v6305_v2 = vadd.f32 %v6304_v56, %v6303_v37  ;;  %v3766_v0 = vld [vmem:[#allocation2 + $0x878] sm:$0xff]  ;;  %v3772_v8 = vld [vmem:[#allocation2 + $0x8a8] sm:$0xff] }
 0x5c5   :  { %4332 = vmatmul.mubr.bf16.gmra.mrb[120].mxu1 %v12894_v26  ;;  %5116 = vmatmul.mubr.bf16.vlgmr.msra.gmra.mrb[8].mxu0 %v16980_v40 }
 0x5c6   :  { %v13159_v30 = vadd.f32 %v6305_v2, %v13078_v38  ;;  %4389 = vmatpush1.bf16.msra.mxu1 %v3759_v35  ;;  %4341 = vmatprep.mubr.bf16.mxu1 %v12906_v22  ;;  %v3765_v38 = vld [vmem:[#allocation2 + $0x870] sm:$0xff] }
 0x5c7   :  { %4390 = vmatprep.subr.bf16.mxu1 %v3763_v54  ;;  %5123 = vmatprep.mubr.bf16.mxu0 %v16981_v20  ;;  %v3775_v54 = vld [vmem:[#allocation2 + $0x8c0] sm:$0xff] }
 0x5c8   :  { %v6306_v4 = vpop.f32.mrb[160].mxu0  ;;  %6691 = vmatpush3.bf16.msra.mxu0 %v13125_v10 }
 0x5c9   :  { %v6307_v60 = vpop.f32.mrb[161].mxu0  ;;  %6692 = vmatprep.subr.bf16.mxu0 %v3788_v17 }
 0x5ca   :  { %v6308_v26 = vadd.f32 %v6307_v60, %v6306_v4  ;;  %4391 = vmatpush1.bf16.msra.mxu1 %v3762_v15  ;;  %v6309_v13 = vpop.f32.mrb[162].mxu0  ;;  %v3797_v4 = vld [vmem:[#allocation2 + $0x970] sm:$0xff] }
 0x5cb   :  { %v6310_v36 = vpop.f32.mrb[163].mxu0  ;;  %4392 = vmatprep.subr.bf16.mxu1 %v3766_v0  ;;  %v3774_v0 = vld [vmem:[#allocation2 + $0x8b8] sm:$0xff] }
 0x5cc   :  { %v13165_v7 = vadd.f32 %v6308_v26, %v13084_v48  ;;  %v6311_v22 = vadd.f32 %v6310_v36, %v6309_v13  ;;  %6693 = vmatpush3.bf16.msra.mxu0 %v3788_v17  ;;  %v3794_v48 = vld [vmem:[#allocation2 + $0x958] sm:$0xff] }
 0x5cd   :  { %4342 = vmatmul.mubr.bf16.gmra.mrb[124].mxu1 %v12904_v46  ;;  %5124 = vmatmul.mubr.bf16.gmra.mrb[12].mxu0 %v16982_v24  ;;  %v16983_v17 = vld [vmem:[#allocation155_spill] sm:$0xff] }
 0x5ce   :  { %v13170_v10 = vadd.f32 %v6311_v22, %v13086_v33  ;;  %4393 = vmatpush1.bf16.msra.mxu1 %v3765_v38  ;;  %4351 = vmatprep.mubr.bf16.mxu1 %v12916_v34  ;;  %v3771_v33 = vld [vmem:[#allocation2 + $0x8a0] sm:$0xff]  ;;  %v3781_v22 = vld [vmem:[#allocation2 + $0x8f0] sm:$0xff] }
 0x5cf   :  { %4394 = vmatprep.subr.bf16.mxu1 %v3769_v29  ;;  %5131 = vmatprep.mubr.bf16.mxu0 %v12873_v9  ;;  %v3800_v29 = vld [vmem:[#allocation2 + $0x988] sm:$0xff] }
 0x5d0   :  { %v6312_v19 = vpop.f32.mrb[164].mxu0  ;;  %6694 = vmatprep.subr.bf16.mxu0 %v3791_v52 }
 0x5d1   :  { %v6313_v37 = vpop.f32.mrb[165].mxu0  ;;  %6695 = vmatpush3.bf16.msra.mxu0 %v3791_v52 }
 0x5d2   :  { %v6314_v46 = vadd.f32 %v6313_v37, %v6312_v19  ;;  %4395 = vmatpush1.bf16.msra.mxu1 %v3768_v42  ;;  %v6315_v56 = vpop.f32.mrb[166].mxu0  ;;  %6696 = vmatprep.subr.bf16.mxu0 %v3794_v48  ;;  %v3780_v42 = vld [vmem:[#allocation2 + $0x8e8] sm:$0xff] }
 0x5d3   :  { %v6316_v35 = vpop.f32.mrb[167].mxu0  ;;  %4396 = vmatprep.subr.bf16.mxu1 %v3772_v8  ;;  %v3784_v19 = vld [vmem:[#allocation2 + $0x908] sm:$0xff] }
 0x5d4   :  { %v13175_v2 = vadd.f32 %v6314_v46, %v13092_v23  ;;  %v6317_v34 = vadd.f32 %v6316_v35, %v6315_v56  ;;  %v3778_v23 = vld [vmem:[#allocation2 + $0x8d8] sm:$0xff]  ;;  %v3787_v35 = vld [vmem:[#allocation2 + $0x920] sm:$0xff] }
 0x5d5   :  { %4352 = vmatmul.mubr.bf16.gmra.mrb[128].mxu1 %v12914_v43  ;;  %5132 = vmatmul.mubr.bf16.gmra.mrb[16].mxu0 %v16983_v17 }
 0x5d6   :  { %v13180_v15 = vadd.f32 %v6317_v34, %v13094_v47  ;;  %4397 = vmatpush1.bf16.msra.mxu1 %v3771_v33  ;;  %4361 = vmatprep.mubr.bf16.mxu1 %v12926_v61  ;;  %v3777_v47 = vld [vmem:[#allocation2 + $0x8d0] sm:$0xff]  ;;  %v3806_v34 = vld [vmem:[#allocation2 + $0x9b8] sm:$0xff] }
 0x5d7   :  { %4398 = vmatprep.subr.bf16.mxu1 %v3775_v54  ;;  %5139 = vmatprep.mubr.bf16.mxu0 %v12889_v28  ;;  %v3786_v54 = vld [vmem:[#allocation2 + $0x918] sm:$0xff] }
 0x5d8   :  { %v6334_v60 = vpop.f32.mrb[168].mxu0  ;;  %6697 = vmatpush3.bf16.msra.mxu0 %v3794_v48 }
 0x5d9   :  { %v6335_v26 = vpop.f32.mrb[169].mxu0  ;;  %6698 = vmatprep.subr.bf16.mxu0 %v3797_v4 }
 0x5da   :  { %v6336_v13 = vadd.f32 %v6335_v26, %v6334_v60  ;;  %4399 = vmatpush1.bf16.msra.mxu1 %v3774_v0  ;;  %v6337_v43 = vpop.f32.mrb[170].mxu0 }
 0x5db   :  { %v6338_v36 = vpop.f32.mrb[171].mxu0  ;;  %4400 = vmatprep.subr.bf16.mxu1 %v3778_v23 }
 0x5dc   :  { %v13185_v38 = vadd.f32 %v6336_v13, %v13101_v27  ;;  %v6339_v61 = vadd.f32 %v6338_v36, %v6337_v43  ;;  %6699 = vmatpush3.bf16.msra.mxu0 %v3797_v4  ;;  %v3803_v27 = vld [vmem:[#allocation2 + $0x9a0] sm:$0xff]  ;;  %v3793_v13 = vld [vmem:[#allocation2 + $0x950] sm:$0xff] }
 0x5dd   :  { %4362 = vmatmul.mubr.bf16.gmra.mrb[132].mxu1 %v12924_v11  ;;  %5140 = vmatmul.mubr.bf16.gmra.mrb[20].mxu0 %v12886_v53 }
 0x5de   :  { %v13190_v52 = vadd.f32 %v6339_v61, %v13106_v21  ;;  %4401 = vmatpush1.bf16.msra.mxu1 %v3777_v47  ;;  %4404 = vmatprep.mubr.bf16.mxu1 %v16979_v63  ;;  %v3783_v21 = vld [vmem:[#allocation2 + $0x900] sm:$0xff]  ;;  %v3796_v61 = vld [vmem:[#allocation2 + $0x968] sm:$0xff] }
 0x5df   :  { %4402 = vmatprep.subr.bf16.mxu1 %v3781_v22  ;;  %5147 = vmatprep.mubr.bf16.mxu0 %v12900_v55 }
 0x5e0   :  { %v6340_v48 = vpop.f32.mrb[172].mxu0  ;;  %6700 = vmatprep.subr.bf16.mxu0 %v3800_v29 }
 0x5e1   :  { %v6341_v8 = vpop.f32.mrb[173].mxu0  ;;  %6701 = vmatpush3.bf16.msra.mxu0 %v3800_v29 }
 0x5e2   :  { %v6342_v11 = vadd.f32 %v6341_v8, %v6340_v48  ;;  %4403 = vmatpush1.bf16.msra.mxu1 %v3780_v42  ;;  %v6343_v37 = vpop.f32.mrb[174].mxu0  ;;  %6702 = vmatprep.subr.bf16.mxu0 %v3803_v27 }
 0x5e3   :  { %v6344_v46 = vpop.f32.mrb[175].mxu0  ;;  %4485 = vmatprep.subr.bf16.mxu1 %v3784_v19 }
 0x5e4   :  { %v13195_v56 = vadd.f32 %v6342_v11, %v13111_v1  ;;  %v6345_v63 = vadd.f32 %v6344_v46, %v6343_v37  ;;  %v3790_v1 = vld [vmem:[#allocation2 + $0x938] sm:$0xff] }
 0x5e5   :  { %4405 = vmatmul.mubr.bf16.vlgmr.msra.gmra.mrb[104].mxu1 %v16980_v40  ;;  %5148 = vmatmul.mubr.bf16.gmra.mrb[24].mxu0 %v12898_v3  ;;  %v3802_v11 = vld [vmem:[#allocation2 + $0x998] sm:$0xff] }
 0x5e6   :  { %v13200_v33 = vadd.f32 %v6345_v63, %v13116_v44  ;;  %4486 = vmatpush1.bf16.msra.mxu1 %v3783_v21  ;;  %4414 = vmatprep.mubr.bf16.mxu1 %v16981_v20  ;;  %v3789_v20 = vld [vmem:[#allocation2 + $0x930] sm:$0xff] }
 0x5e7   :  { %5155 = vmatprep.mubr.bf16.mxu0 %v12910_v58  ;;  %4487 = vmatprep.subr.bf16.mxu1 %v3787_v35 }
 0x5e8   :  { %v6346_v4 = vpop.f32.mrb[176].mxu0  ;;  %6703 = vmatpush3.bf16.msra.mxu0 %v3803_v27 }
 0x5e9   :  { %v6347_v0 = vpop.f32.mrb[177].mxu0  ;;  %6704 = vmatprep.subr.bf16.mxu0 %v3806_v34 }
 0x5ea   :  { %v6348_v60 = vadd.f32 %v6347_v0, %v6346_v4  ;;  %v6349_v40 = vpop.f32.mrb[178].mxu0  ;;  %4488 = vmatpush1.bf16.msra.mxu1 %v3786_v54 }
 0x5eb   :  { %v6350_v23 = vpop.f32.mrb[179].mxu0  ;;  %4489 = vmatprep.subr.bf16.mxu1 %v3790_v1 }
 0x5ec   :  { %v13205_v44 = vadd.f32 %v6348_v60, %v13121_v57  ;;  %v6351_v26 = vadd.f32 %v6350_v23, %v6349_v40  ;;  %6705 = vmatpush3.bf16.msra.mxu0 %v3806_v34  ;;  %v3792_v57 = vld [vmem:[#allocation2 + $0x948] sm:$0xff]  ;;  %v16984_v34 = vld [vmem:[#allocation134_spill] sm:$0xff] }
 0x5ed   :  { %4415 = vmatmul.mubr.bf16.gmra.mrb[108].mxu1 %v16982_v24  ;;  %5156 = vmatmul.mubr.bf16.gmra.mrb[28].mxu0 %v12908_v25 }
 0x5ee   :  { %v13210_v43 = vadd.f32 %v6351_v26, %v13128_v39  ;;  %4424 = vmatprep.mubr.bf16.mxu1 %v12873_v9  ;;  %5163 = vmatprep.mubr.bf16.mxu0 %v12920_v6  ;;  %v3795_v39 = vld [vmem:[#allocation2 + $0x960] sm:$0xff] }
 0x5ef   :  { %4490 = vmatpush1.bf16.msra.mxu1 %v3789_v20  ;;  %v3799_v9 = vld [vmem:[#allocation2 + $0x980] sm:$0xff] }
 0x5f0   :  { %v6352_v36 = vpop.f32.mrb[180].mxu0  ;;  %4491 = vmatprep.subr.bf16.mxu1 %v3793_v13 }
 0x5f1   :  { %v6353_v47 = vpop.f32.mrb[181].mxu0 }
 0x5f2   :  { %v6354_v22 = vadd.f32 %v6353_v47, %v6352_v36  ;;  %v6355_v29 = vpop.f32.mrb[182].mxu0 }
 0x5f3   :  { %v6356_v42 = vpop.f32.mrb[183].mxu0  ;;  %4492 = vmatpush1.bf16.msra.mxu1 %v3792_v57 }
 0x5f4   :  { %v13215_v24 = vadd.f32 %v6354_v22, %v13134_v51  ;;  %v6357_v27 = vadd.f32 %v6356_v42, %v6355_v29  ;;  %4493 = vmatprep.subr.bf16.mxu1 %v3796_v61  ;;  %v3798_v51 = vld [vmem:[#allocation2 + $0x978] sm:$0xff] }
 0x5f5   :  { %4425 = vmatmul.mubr.bf16.gmra.mrb[112].mxu1 %v16983_v17  ;;  %5164 = vmatmul.mubr.bf16.gmra.mrb[32].mxu0 %v12918_v59 }
 0x5f6   :  { %v13220_v48 = vadd.f32 %v6357_v27, %v13139_v32  ;;  %4434 = vmatprep.mubr.bf16.mxu1 %v12889_v28  ;;  %5171 = vmatprep.mubr.bf16.mxu0 %v12930_v12  ;;  %v3801_v32 = vld [vmem:[#allocation2 + $0x990] sm:$0xff] }
 0x5f7   :  { %4494 = vmatpush1.bf16.msra.mxu1 %v3795_v39  ;;  %v3805_v28 = vld [vmem:[#allocation2 + $0x9b0] sm:$0xff] }
 0x5f8   :  { %v6358_v19 = vpop.f32.mrb[184].mxu0  ;;  %4495 = vmatprep.subr.bf16.mxu1 %v3799_v9 }
 0x5f9   :  { %v6359_v8 = vpop.f32.mrb[185].mxu0 }
 0x5fa   :  { %v6360_v37 = vadd.f32 %v6359_v8, %v6358_v19  ;;  %v6361_v46 = vpop.f32.mrb[186].mxu0 }
 0x5fb   :  { %v6362_v21 = vpop.f32.mrb[187].mxu0  ;;  %4496 = vmatpush1.bf16.msra.mxu1 %v3798_v51 }
 0x5fc   :  { %v13225_v17 = vadd.f32 %v6360_v37, %v13144_v49  ;;  %v6363_v63 = vadd.f32 %v6362_v21, %v6361_v46  ;;  %4497 = vmatprep.subr.bf16.mxu1 %v3802_v11  ;;  %v3804_v49 = vld [vmem:[#allocation2 + $0x9a8] sm:$0xff] }
 0x5fd   :  { %4435 = vmatmul.mubr.bf16.gmra.mrb[116].mxu1 %v12886_v53  ;;  %5172 = vmatmul.mubr.bf16.gmra.mrb[36].mxu0 %v12928_v18 }
 0x5fe   :  { %v13230_v35 = vadd.f32 %v6363_v63, %v13149_v16  ;;  %4444 = vmatprep.mubr.bf16.mxu1 %v12900_v55  ;;  %6706 = vmatprep.mubr.bf16.mxu0 %v16984_v34  ;;  %v16985_v16 = vld [vmem:[#allocation150_spill] sm:$0xff] }
 0x5ff   :  { %4498 = vmatpush1.bf16.msra.mxu1 %v3801_v32 }
 0x600   :  { %v6364_v54 = vpop.f32.mrb[188].mxu0  ;;  %4499 = vmatprep.subr.bf16.mxu1 %v3805_v28 }
 0x601   :  { %v6365_v4 = vpop.f32.mrb[189].mxu0 }
 0x602   :  { %v6366_v1 = vadd.f32 %v6365_v4, %v6364_v54  ;;  %v6367_v0 = vpop.f32.mrb[190].mxu0 }
 0x603   :  { %v6368_v60 = vpop.f32.mrb[191].mxu0  ;;  %4500 = vmatpush1.bf16.msra.mxu1 %v3804_v49 }
 0x604   :  { %v13235_v53 = vadd.f32 %v6366_v1, %v13154_v45  ;;  %v6369_v40 = vadd.f32 %v6368_v60, %v6367_v0 }
 0x605   :  { %4445 = vmatmul.mubr.bf16.gmra.mrb[120].mxu1 %v12898_v3  ;;  %6707 = vmatmul.mubr.bf16.vlgmr.msra.gmra.mrb[40].mxu0 %v16985_v16 }
 0x606   :  { %v13240_v55 = vadd.f32 %v6369_v40, %v13159_v30  ;;  %4454 = vmatprep.mubr.bf16.mxu1 %v12910_v58  ;;  %6710 = vmatprep.mubr.bf16.mxu0 %v12877_v62 }
 0x608   :  { %v6370_v23 = vpop.f32.mrb[192].mxu0 }
 0x609   :  { %v6371_v26 = vpop.f32.mrb[193].mxu0 }
 0x60a   :  { %v6372_v20 = vadd.f32 %v6371_v26, %v6370_v23  ;;  %v6373_v13 = vpop.f32.mrb[194].mxu0 }
 0x60b   :  { %v6374_v36 = vpop.f32.mrb[195].mxu0 }
 0x60c   :  { %v13245_v45 = vadd.f32 %v6372_v20, %v13165_v7  ;;  %v6375_v57 = vadd.f32 %v6374_v36, %v6373_v13 }
 0x60d   :  { %4455 = vmatmul.mubr.bf16.gmra.mrb[124].mxu1 %v12908_v25  ;;  %6711 = vmatmul.mubr.bf16.gmra.mrb[44].mxu0 %v12892_v5 }
 0x60e   :  { %v13250_v3 = vadd.f32 %v6375_v57, %v13170_v10  ;;  %4464 = vmatprep.mubr.bf16.mxu1 %v12920_v6  ;;  %6714 = vmatprep.mubr.bf16.mxu0 %v12902_v41 }
 0x610   :  { %v6376_v58 = vpop.f32.mrb[196].mxu0 }
 0x611   :  { %v6377_v30 = vpop.f32.mrb[197].mxu0 }
 0x612   :  { %v6378_v47 = vadd.f32 %v6377_v30, %v6376_v58  ;;  %v6379_v61 = vpop.f32.mrb[198].mxu0 }
 0x613   :  { %v6380_v22 = vpop.f32.mrb[199].mxu0 }
 0x614   :  { %v13255_v7 = vadd.f32 %v6378_v47, %v13175_v2  ;;  %v6381_v29 = vadd.f32 %v6380_v22, %v6379_v61 }
 0x615   :  { %4465 = vmatmul.mubr.bf16.gmra.mrb[128].mxu1 %v12918_v59  ;;  %6715 = vmatmul.mubr.bf16.gmra.mrb[48].mxu0 %v12912_v50 }
 0x616   :  { %v13260_v25 = vadd.f32 %v6381_v29, %v13180_v15  ;;  %4474 = vmatprep.mubr.bf16.mxu1 %v12930_v12  ;;  %6718 = vmatprep.mubr.bf16.mxu0 %v12922_v31  ;;  %v16986_v15 = vmov 0  }
 0x618   :  { %v6398_v6 = vpop.f32.mrb[200].mxu0 }
 0x619   :  { %v6399_v10 = vpop.f32.mrb[201].mxu0 }
 0x61a   :  { %v6400_v42 = vadd.f32 %v6399_v10, %v6398_v6  ;;  %v6401_v27 = vpop.f32.mrb[202].mxu0 }
 0x61b   :  { %v6402_v39 = vpop.f32.mrb[203].mxu0 }
 0x61c   :  { %v13265_v2 = vadd.f32 %v6400_v42, %v13185_v38  ;;  %v6403_v9 = vadd.f32 %v6402_v39, %v6401_v27 }
 0x61d   :  { %4475 = vmatmul.mubr.bf16.gmra.mrb[132].mxu1 %v12928_v18  ;;  %6719 = vmatmul.mubr.bf16.gmra.mrb[52].mxu0 %v12932_v14 }
 0x61e   :  { %v13270_v59 = vadd.f32 %v6403_v9, %v13190_v52  ;;  %4517 = vmatprep.mubr.bf16.mxu1 %v16986_v15 }
 0x620   :  { %v6404_v12 = vpop.f32.mrb[204].mxu0 }
 0x621   :  { %v6405_v19 = vpop.f32.mrb[205].mxu0 }
 0x622   :  { %v6406_v51 = vadd.f32 %v6405_v19, %v6404_v12  ;;  %v6407_v8 = vpop.f32.mrb[206].mxu0 }
 0x623   :  { %v6408_v11 = vpop.f32.mrb[207].mxu0 }
 0x624   :  { %v13274_v37 = vadd.f32 %v6406_v51, %v13195_v56  ;;  %v6409_v38 = vadd.f32 %v6408_v11, %v6407_v8 }
 0x625   :  { %4518 = vmatmul.mubr.bf16.vlgmr.msra.gmra.mrb[104].mxu1 %v16984_v34 }
 0x626   :  { %v13278_v18 = vadd.f32 %v6409_v38, %v13200_v33  ;;  %4527 = vmatprep.mubr.bf16.mxu1 %v16986_v15 }
 0x628   :  { %v6410_v52 = vpop.f32.mrb[208].mxu0 }
 0x629   :  { %v6411_v46 = vpop.f32.mrb[209].mxu0 }
 0x62a   :  { %v6412_v21 = vadd.f32 %v6411_v46, %v6410_v52  ;;  %v6413_v63 = vpop.f32.mrb[210].mxu0 }
 0x62b   :  { %v6414_v32 = vpop.f32.mrb[211].mxu0 }
 0x62c   :  { %v13282_v28 = vadd.f32 %v6412_v21, %v13205_v44  ;;  %v6415_v54 = vadd.f32 %v6414_v32, %v6413_v63 }
 0x62d   :  { %4528 = vmatmul.mubr.bf16.gmra.mrb[108].mxu1 %v16985_v16 }
 0x62e   :  { %v13286_v56 = vadd.f32 %v6415_v54, %v13210_v43  ;;  %4537 = vmatprep.mubr.bf16.mxu1 %v16986_v15 }
 0x630   :  { %v6416_v33 = vpop.f32.mrb[212].mxu0 }
 0x631   :  { %v6417_v34 = vpop.f32.mrb[213].mxu0 }
 0x632   :  { %v6418_v49 = vadd.f32 %v6417_v34, %v6416_v33  ;;  %v6419_v4 = vpop.f32.mrb[214].mxu0 }
 0x633   :  { %v6420_v1 = vpop.f32.mrb[215].mxu0 }
 0x634   :  { %v13290_v0 = vadd.f32 %v6418_v49, %v13215_v24  ;;  %v6421_v60 = vadd.f32 %v6420_v1, %v6419_v4 }
 0x635   :  { %4538 = vmatmul.mubr.bf16.gmra.mrb[112].mxu1 %v12877_v62 }
 0x636   :  { %v13294_v44 = vadd.f32 %v6421_v60, %v13220_v48  ;;  %4547 = vmatprep.mubr.bf16.mxu1 %v16986_v15 }
 0x638   :  { %v6422_v43 = vpop.f32.mrb[216].mxu0 }
 0x639   :  { %v6423_v40 = vpop.f32.mrb[217].mxu0 }
 0x63a   :  { %v6424_v16 = vadd.f32 %v6423_v40, %v6422_v43  ;;  %v6425_v23 = vpop.f32.mrb[218].mxu0 }
 0x63b   :  { %v6426_v26 = vpop.f32.mrb[219].mxu0 }
 0x63c   :  { %v13298_v20 = vadd.f32 %v6424_v16, %v13225_v17  ;;  %v6427_v13 = vadd.f32 %v6426_v26, %v6425_v23 }
 0x63d   :  { %4548 = vmatmul.mubr.bf16.gmra.mrb[116].mxu1 %v12892_v5 }
 0x63e   :  { %v13302_v24 = vadd.f32 %v6427_v13, %v13230_v35  ;;  %4557 = vmatprep.mubr.bf16.mxu1 %v16986_v15 }
 0x640   :  { %v6428_v62 = vpop.f32.mrb[220].mxu0 }
 0x641   :  { %v6429_v48 = vpop.f32.mrb[221].mxu0 }
 0x642   :  { %v6430_v36 = vadd.f32 %v6429_v48, %v6428_v62  ;;  %v6431_v57 = vpop.f32.mrb[222].mxu0 }
 0x643   :  { %v6432_v58 = vpop.f32.mrb[223].mxu0 }
 0x644   :  { %v13306_v30 = vadd.f32 %v6430_v36, %v13235_v53  ;;  %v6433_v47 = vadd.f32 %v6432_v58, %v6431_v57 }
 0x645   :  { %4558 = vmatmul.mubr.bf16.gmra.mrb[120].mxu1 %v12902_v41 }
 0x646   :  { %v13310_v17 = vadd.f32 %v6433_v47, %v13240_v55  ;;  %4567 = vmatprep.mubr.bf16.mxu1 %v16986_v15 }
 0x648   :  { %v6434_v5 = vpop.f32.mrb[224].mxu0 }
 0x649   :  { %v6435_v35 = vpop.f32.mrb[225].mxu0 }
 0x64a   :  { %v6436_v61 = vadd.f32 %v6435_v35, %v6434_v5  ;;  %v6437_v22 = vpop.f32.mrb[226].mxu0 }
 0x64b   :  { %v6438_v29 = vpop.f32.mrb[227].mxu0 }
 0x64c   :  { %v13314_v6 = vadd.f32 %v6436_v61, %v13245_v45  ;;  %v6439_v10 = vadd.f32 %v6438_v29, %v6437_v22 }
 0x64d   :  { %4568 = vmatmul.mubr.bf16.gmra.mrb[124].mxu1 %v12912_v50 }
 0x64e   :  { %v13318_v53 = vadd.f32 %v6439_v10, %v13250_v3  ;;  %4577 = vmatprep.mubr.bf16.mxu1 %v16986_v15 }
 0x650   :  { %v6440_v41 = vpop.f32.mrb[228].mxu0 }
 0x651   :  { %v6441_v55 = vpop.f32.mrb[229].mxu0 }
 0x652   :  { %v6442_v42 = vadd.f32 %v6441_v55, %v6440_v41  ;;  %v6443_v27 = vpop.f32.mrb[230].mxu0 }
 0x653   :  { %v6444_v39 = vpop.f32.mrb[231].mxu0 }
 0x654   :  { %v13322_v9 = vadd.f32 %v6442_v42, %v13255_v7  ;;  %v6445_v12 = vadd.f32 %v6444_v39, %v6443_v27 }
 0x655   :  { %4578 = vmatmul.mubr.bf16.gmra.mrb[128].mxu1 %v12922_v31 }
 0x656   :  { %v13326_v45 = vadd.f32 %v6445_v12, %v13260_v25  ;;  %4587 = vmatprep.mubr.bf16.mxu1 %v16986_v15 }
 0x658   :  { %v6462_v50 = vpop.f32.mrb[232].mxu0 }
 0x659   :  { %v6463_v3 = vpop.f32.mrb[233].mxu0 }
 0x65a   :  { %v6464_v19 = vadd.f32 %v6463_v3, %v6462_v50  ;;  %v6465_v51 = vpop.f32.mrb[234].mxu0 }
 0x65b   :  { %v6466_v8 = vpop.f32.mrb[235].mxu0 }
 0x65c   :  { %v13330_v11 = vadd.f32 %v6464_v19, %v13265_v2  ;;  %v6467_v38 = vadd.f32 %v6466_v8, %v6465_v51 }
 0x65d   :  { %4588 = vmatmul.mubr.bf16.gmra.mrb[132].mxu1 %v12932_v14 }
 0x65e   :  { %v13334_v7 = vadd.f32 %v6467_v38, %v13270_v59 }
 0x660   :  { %v6468_v31 = vpop.f32.mrb[236].mxu0 }
 0x661   :  { %v6469_v52 = vpop.f32.mrb[237].mxu0 }
 0x662   :  { %v6470_v25 = vadd.f32 %v6469_v52, %v6468_v31  ;;  %v6471_v46 = vpop.f32.mrb[238].mxu0 }
 0x663   :  { %v6472_v21 = vpop.f32.mrb[239].mxu0 }
 0x664   :  { %v13337_v15 = vadd.f32 %v6470_v25, %v13274_v37  ;;  %v6473_v63 = vadd.f32 %v6472_v21, %v6471_v46 }
 0x666   :  { %v13340_v32 = vadd.f32 %v6473_v63, %v13278_v18 }
 0x668   :  { %v6474_v2 = vpop.f32.mrb[240].mxu0 }
 0x669   :  { %v6475_v54 = vpop.f32.mrb[241].mxu0 }
 0x66a   :  { %v6476_v33 = vadd.f32 %v6475_v54, %v6474_v2  ;;  %v6477_v34 = vpop.f32.mrb[242].mxu0 }
 0x66b   :  { %v6478_v14 = vpop.f32.mrb[243].mxu0 }
 0x66c   :  { %v13343_v59 = vadd.f32 %v6476_v33, %v13282_v28  ;;  %v6479_v49 = vadd.f32 %v6478_v14, %v6477_v34 }
 0x66e   :  { %v13346_v4 = vadd.f32 %v6479_v49, %v13286_v56 }
 0x670   :  { %v6480_v1 = vpop.f32.mrb[244].mxu0 }
 0x671   :  { %v6481_v60 = vpop.f32.mrb[245].mxu0 }
 0x672   :  { %v6482_v37 = vadd.f32 %v6481_v60, %v6480_v1  ;;  %v6483_v43 = vpop.f32.mrb[246].mxu0 }
 0x673   :  { %v6484_v40 = vpop.f32.mrb[247].mxu0 }
 0x674   :  { %v13349_v18 = vadd.f32 %v6482_v37, %v13290_v0  ;;  %v6485_v16 = vadd.f32 %v6484_v40, %v6483_v43 }
 0x676   :  { %v13352_v23 = vadd.f32 %v6485_v16, %v13294_v44 }
 0x678   :  { %v6486_v26 = vpop.f32.mrb[248].mxu0 }
 0x679   :  { %v6487_v13 = vpop.f32.mrb[249].mxu0 }
 0x67a   :  { %v6488_v28 = vadd.f32 %v6487_v13, %v6486_v26  ;;  %v6489_v62 = vpop.f32.mrb[250].mxu0 }
 0x67b   :  { %v6490_v48 = vpop.f32.mrb[251].mxu0 }
 0x67c   :  { %v13355_v56 = vadd.f32 %v6488_v28, %v13298_v20  ;;  %v6491_v36 = vadd.f32 %v6490_v48, %v6489_v62 }
 0x67e   :  { %v13358_v57 = vadd.f32 %v6491_v36, %v13302_v24 }
 0x680   :  { %v6492_v58 = vpop.f32.mrb[252].mxu0 }
 0x681   :  { %v6493_v47 = vpop.f32.mrb[253].mxu0 }
 0x682   :  { %v6494_v0 = vadd.f32 %v6493_v47, %v6492_v58  ;;  %v6495_v5 = vpop.f32.mrb[254].mxu0 }
 0x683   :  { %v6496_v35 = vpop.f32.mrb[255].mxu0 }
 0x684   :  { %v13361_v44 = vadd.f32 %v6494_v0, %v13306_v30  ;;  %v6497_v61 = vadd.f32 %v6496_v35, %v6495_v5 }
 0x686   :  { %v13364_v22 = vadd.f32 %v6497_v61, %v13310_v17 }
 0x688   :  { %v6498_v29 = vpop.f32.mrb[0].mxu0 }
 0x689   :  { %v6499_v10 = vpop.f32.mrb[1].mxu0 }
 0x68a   :  { %v6500_v20 = vadd.f32 %v6499_v10, %v6498_v29  ;;  %v6501_v41 = vpop.f32.mrb[2].mxu0 }
 0x68b   :  { %v6502_v55 = vpop.f32.mrb[3].mxu0 }
 0x68c   :  { %v13367_v24 = vadd.f32 %v6500_v20, %v13314_v6  ;;  %v6503_v42 = vadd.f32 %v6502_v55, %v6501_v41 }
 0x68e   :  { %v13370_v27 = vadd.f32 %v6503_v42, %v13318_v53 }
 0x690   :  { %v6504_v39 = vpop.f32.mrb[4].mxu0 }
 0x691   :  { %v6505_v12 = vpop.f32.mrb[5].mxu0 }
 0x692   :  { %v6506_v30 = vadd.f32 %v6505_v12, %v6504_v39  ;;  %v6507_v50 = vpop.f32.mrb[6].mxu0 }
 0x693   :  { %v6508_v3 = vpop.f32.mrb[7].mxu0 }
 0x694   :  { %v13373_v17 = vadd.f32 %v6506_v30, %v13322_v9  ;;  %v6509_v19 = vadd.f32 %v6508_v3, %v6507_v50 }
 0x696   :  { %v13376_v51 = vadd.f32 %v6509_v19, %v13326_v45 }
 0x698   :  { %v6526_v8 = vpop.f32.mrb[8].mxu0 }
 0x699   :  { %v6527_v38 = vpop.f32.mrb[9].mxu0 }
 0x69a   :  { %v6528_v6 = vadd.f32 %v6527_v38, %v6526_v8  ;;  %v6529_v31 = vpop.f32.mrb[10].mxu0 }
 0x69b   :  { %v6530_v52 = vpop.f32.mrb[11].mxu0 }
 0x69c   :  { %v6531_v25 = vadd.f32 %v6530_v52, %v6529_v31  ;;  %v5118_v53 = vadd.f32 %v6528_v6, %v13330_v11 }
 0x69e   :  { %v13380_v46 = vadd.f32 %v6531_v25, %v13334_v7 }
 0x6a0   :  { %v6532_v21 = vpop.f32.mrb[12].mxu0 }
 0x6a1   :  { %v6533_v63 = vpop.f32.mrb[13].mxu0 }
 0x6a2   :  { %v6534_v2 = vadd.f32 %v6533_v63, %v6532_v21  ;;  %v6535_v9 = vpop.f32.mrb[14].mxu0 }
 0x6a3   :  { %v6536_v54 = vpop.f32.mrb[15].mxu0 }
 0x6a4   :  { %v6537_v33 = vadd.f32 %v6536_v54, %v6535_v9  ;;  %v5126_v45 = vadd.f32 %v6534_v2, %v13337_v15 }
 0x6a6   :  { %v5129_v34 = vadd.f32 %v6537_v33, %v13340_v32 }
 0x6a8   :  { %v6538_v14 = vpop.f32.mrb[16].mxu0 }
 0x6a9   :  { %v6539_v49 = vpop.f32.mrb[17].mxu0 }
 0x6aa   :  { %v6540_v1 = vadd.f32 %v6539_v49, %v6538_v14  ;;  %v6541_v60 = vpop.f32.mrb[18].mxu0 }
 0x6ab   :  { %v6542_v37 = vpop.f32.mrb[19].mxu0 }
 0x6ac   :  { %v6543_v43 = vadd.f32 %v6542_v37, %v6541_v60  ;;  %v5134_v11 = vadd.f32 %v6540_v1, %v13343_v59 }
 0x6ae   :  { %v13386_v7 = vadd.f32 %v6543_v43, %v13346_v4 }
 0x6b0   :  { %v6544_v40 = vpop.f32.mrb[20].mxu0 }
 0x6b1   :  { %v6545_v16 = vpop.f32.mrb[21].mxu0 }
 0x6b2   :  { %v6546_v26 = vadd.f32 %v6545_v16, %v6544_v40  ;;  %v6547_v13 = vpop.f32.mrb[22].mxu0 }
 0x6b3   :  { %v6548_v28 = vpop.f32.mrb[23].mxu0 }
 0x6b4   :  { %v6549_v62 = vadd.f32 %v6548_v28, %v6547_v13  ;;  %v5142_v15 = vadd.f32 %v6546_v26, %v13349_v18 }
 0x6b6   :  { %v5145_v32 = vadd.f32 %v6549_v62, %v13352_v23 }
 0x6b8   :  { %v6550_v48 = vpop.f32.mrb[24].mxu0 }
 0x6b9   :  { %v6551_v36 = vpop.f32.mrb[25].mxu0 }
 0x6ba   :  { %v6552_v58 = vadd.f32 %v6551_v36, %v6550_v48  ;;  %v6553_v47 = vpop.f32.mrb[26].mxu0 }
 0x6bb   :  { %v6554_v0 = vpop.f32.mrb[27].mxu0 }
 0x6bc   :  { %v6555_v5 = vadd.f32 %v6554_v0, %v6553_v47  ;;  %v13391_v59 = vadd.f32 %v6552_v58, %v13355_v56 }
 0x6be   :  { %v13394_v4 = vadd.f32 %v6555_v5, %v13358_v57 }
 0x6c0   :  { %v6556_v35 = vpop.f32.mrb[28].mxu0 }
 0x6c1   :  { %v6557_v61 = vpop.f32.mrb[29].mxu0 }
 0x6c2   :  { %v6558_v29 = vadd.f32 %v6557_v61, %v6556_v35  ;;  %v6559_v10 = vpop.f32.mrb[30].mxu0 }
 0x6c3   :  { %v6560_v20 = vpop.f32.mrb[31].mxu0 }
 0x6c4   :  { %v6561_v18 = vadd.f32 %v6560_v20, %v6559_v10  ;;  %v5158_v23 = vadd.f32 %v6558_v29, %v13361_v44 }
 0x6c6   :  { %v5161_v41 = vadd.f32 %v6561_v18, %v13364_v22 }
 0x6c8   :  { %v6562_v55 = vpop.f32.mrb[32].mxu0 }
 0x6c9   :  { %v6563_v42 = vpop.f32.mrb[33].mxu0 }
 0x6ca   :  { %v6564_v39 = vadd.f32 %v6563_v42, %v6562_v55  ;;  %v6565_v12 = vpop.f32.mrb[34].mxu0 }
 0x6cb   :  { %v6566_v30 = vpop.f32.mrb[35].mxu0 }
 0x6cc   :  { %v6567_v56 = vadd.f32 %v6566_v30, %v6565_v12  ;;  %v13399_v50 = vadd.f32 %v6564_v39, %v13367_v24 }
 0x6ce   :  { %v13402_v57 = vadd.f32 %v6567_v56, %v13370_v27 }
 0x6d0   :  { %v6568_v3 = vpop.f32.mrb[36].mxu0 }
 0x6d1   :  { %v6569_v19 = vpop.f32.mrb[37].mxu0 }
 0x6d2   :  { %v6570_v8 = vadd.f32 %v6569_v19, %v6568_v3  ;;  %v6571_v38 = vpop.f32.mrb[38].mxu0 }
 0x6d3   :  { %v6572_v6 = vpop.f32.mrb[39].mxu0 }
 0x6d4   :  { %v6573_v44 = vadd.f32 %v6572_v6, %v6571_v38  ;;  %v5174_v22 = vadd.f32 %v6570_v8, %v13373_v17 }
 0x6d6   :  { %v13406_v31 = vadd.f32 %v6573_v44, %v13376_v51 }
 0x6d8   :  { %v6708_v52 = vpop.f32.mrb[40].mxu0 }
 0x6d9   :  { %v13408_v25 = vadd.f32 %v6708_v52, %v5126_v45  ;;  %v5214_v21 = vpop.f32.mrb[41].mxu0 }
 0x6da   :  { %v13410_v24 = vadd.f32 %v5214_v21, %v5118_v53  ;;  %v6709_v63 = vpop.f32.mrb[42].mxu0 }
 0x6db   :  { %16987 = vst [vmem:[#allocation158_spill] sm:$0xff] %v13408_v25  ;;  %v13412_v27 = vadd.f32 %v6709_v63, %v5129_v34  ;;  %v5217_v2 = vpop.f32.mrb[43].mxu0  ;;  %v5350_v53 = vmul.f32 %v13408_v25, %v13408_v25 }
 0x6dc   :  { %v13415_v9 = vadd.f32 %v5217_v2, %v13380_v46  ;;  %v5344_v54 = vmul.f32 %v13410_v24, %v13410_v24 }
 0x6dd   :  { %16988 = vst [vmem:[#allocation161_spill] sm:$0xff] %v13412_v27  ;;  %v5353_v49 = vmul.f32 %v13412_v27, %v13412_v27 }
 0x6de   :  { %16989 = vst [vmem:[#allocation98_spill] sm:$0xff] %v13415_v9  ;;  %v5321_v17 = vadd.f32 %v13415_v9, %v13410_v24  ;;  %v5347_v51 = vmul.f32 %v13415_v9, %v13415_v9 }
 0x6e0   :  { %v5322_v33 = vadd.f32 %v5321_v17, %v13408_v25  ;;  %v5432_v45 = vadd.f32 %v5347_v51, %v5344_v54  ;;  %v6712_v34 = vpop.f32.mrb[44].mxu0 }
 0x6e1   :  { %v13426_v14 = vadd.f32 %v6712_v34, %v5142_v15  ;;  %v5230_v46 = vpop.f32.mrb[45].mxu0 }
 0x6e2   :  { %v5433_v1 = vadd.f32 %v5432_v45, %v5350_v53  ;;  %v13430_v60 = vadd.f32 %v5230_v46, %v5134_v11  ;;  %v5323_v37 = vadd.f32 %v5322_v33, %v13412_v27  ;;  %v6713_v43 = vpop.f32.mrb[46].mxu0 }
 0x6e3   :  { %16990 = vst [vmem:[#allocation132_spill] sm:$0xff] %v13426_v14  ;;  %v13433_v40 = vadd.f32 %v6713_v43, %v5145_v32  ;;  %v5233_v16 = vpop.f32.mrb[47].mxu0  ;;  %v5362_v32 = vmul.f32 %v13426_v14, %v13426_v14 }
 0x6e4   :  { %16991 = vst [vmem:[#allocation164_spill] sm:$0xff] %v13430_v60  ;;  %v5324_v26 = vadd.f32 %v5323_v37, %v13430_v60  ;;  %v5356_v13 = vmul.f32 %v13430_v60, %v13430_v60  ;;  %v5434_v28 = vadd.f32 %v5433_v1, %v5353_v49  ;;  %v13439_v62 = vadd.f32 %v5233_v16, %v13386_v7 }
 0x6e5   :  { %v5365_v7 = vmul.f32 %v13433_v40, %v13433_v40 }
 0x6e6   :  { %v5435_v15 = vadd.f32 %v5434_v28, %v5356_v13  ;;  %v5325_v48 = vadd.f32 %v5324_v26, %v13439_v62  ;;  %v5359_v11 = vmul.f32 %v13439_v62, %v13439_v62 }
 0x6e8   :  { %v5326_v36 = vadd.f32 %v5325_v48, %v13426_v14  ;;  %v5436_v58 = vadd.f32 %v5435_v15, %v5359_v11  ;;  %v6716_v47 = vpop.f32.mrb[48].mxu0 }
 0x6e9   :  { %v13447_v0 = vadd.f32 %v6716_v47, %v5158_v23  ;;  %v5246_v5 = vpop.f32.mrb[49].mxu0 }
 0x6ea   :  { %v5437_v35 = vadd.f32 %v5436_v58, %v5362_v32  ;;  %v13452_v61 = vadd.f32 %v5246_v5, %v13391_v59  ;;  %v5327_v29 = vadd.f32 %v5326_v36, %v13433_v40  ;;  %v6717_v10 = vpop.f32.mrb[50].mxu0 }
 0x6eb   :  { %v13455_v20 = vadd.f32 %v6717_v10, %v5161_v41  ;;  %v5249_v18 = vpop.f32.mrb[51].mxu0  ;;  %v5374_v41 = vmul.f32 %v13447_v0, %v13447_v0 }
 0x6ec   :  { %v5328_v55 = vadd.f32 %v5327_v29, %v13452_v61  ;;  %v5368_v23 = vmul.f32 %v13452_v61, %v13452_v61  ;;  %v5438_v42 = vadd.f32 %v5437_v35, %v5365_v7  ;;  %v13461_v39 = vadd.f32 %v5249_v18, %v13394_v4 }
 0x6ed   :  { %v5377_v4 = vmul.f32 %v13455_v20, %v13455_v20 }
 0x6ee   :  { %v5439_v12 = vadd.f32 %v5438_v42, %v5368_v23  ;;  %v5329_v30 = vadd.f32 %v5328_v55, %v13461_v39  ;;  %v5371_v59 = vmul.f32 %v13461_v39, %v13461_v39 }
 0x6f0   :  { %v5330_v56 = vadd.f32 %v5329_v30, %v13447_v0  ;;  %v5440_v3 = vadd.f32 %v5439_v12, %v5371_v59  ;;  %v6720_v19 = vpop.f32.mrb[52].mxu0 }
 0x6f1   :  { %v13469_v8 = vadd.f32 %v6720_v19, %v5174_v22  ;;  %v5262_v38 = vpop.f32.mrb[53].mxu0 }
 0x6f2   :  { %v5441_v6 = vadd.f32 %v5440_v3, %v5374_v41  ;;  %v13474_v44 = vadd.f32 %v5262_v38, %v13399_v50  ;;  %v5331_v52 = vadd.f32 %v5330_v56, %v13455_v20  ;;  %v6721_v21 = vpop.f32.mrb[54].mxu0 }
 0x6f3   :  { %v13478_v63 = vadd.f32 %v6721_v21, %v13406_v31  ;;  %v5265_v2 = vpop.f32.mrb[55].mxu0  ;;  %v5386_v31 = vmul.f32 %v13469_v8, %v13469_v8 }
 0x6f4   :  { %v5332_v54 = vadd.f32 %v5331_v52, %v13474_v44  ;;  %v5380_v22 = vmul.f32 %v13474_v44, %v13474_v44  ;;  %v5442_v17 = vadd.f32 %v5441_v6, %v5377_v4  ;;  %v13484_v51 = vadd.f32 %v5265_v2, %v13402_v57 }
 0x6f5   :  { %v5389_v57 = vmul.f32 %v13478_v63, %v13478_v63 }
 0x6f6   :  { %v5443_v53 = vadd.f32 %v5442_v17, %v5380_v22  ;;  %v5333_v50 = vadd.f32 %v5332_v54, %v13484_v51  ;;  %v5383_v33 = vmul.f32 %v13484_v51, %v13484_v51 }
 0x6f8   :  { %v5334_v45 = vadd.f32 %v5333_v50, %v13469_v8  ;;  %v5444_v34 = vadd.f32 %v5443_v53, %v5383_v33  ;;  %v13492_v46 = vpop.f32.mrb[104].mxu1 }
 0x6f9   :  { %v13494_v49 = vpop.f32.mrb[105].mxu1  ;;  %v5342_v16 = vmul.f32 %v13492_v46, %v13492_v46 }
 0x6fa   :  { %v5335_v1 = vadd.f32 %v5334_v45, %v13478_v63  ;;  %v5445_v37 = vadd.f32 %v5444_v34, %v5386_v31  ;;  %v13499_v43 = vpop.f32.mrb[106].mxu1  ;;  %v5343_v26 = vmul.f32 %v13494_v49, %v13494_v49 }
 0x6fb   :  { %v5279_v13 = vadd.f32 %v13499_v43, %v13492_v46  ;;  %v5345_v28 = vmul.f32 %v13499_v43, %v13499_v43  ;;  %v13509_v15 = vpop.f32.mrb[107].mxu1 }
 0x6fc   :  { %v5336_v48 = vrot.slane %v5335_v1, 4  ;;  %v5446_v11 = vadd.f32 %v5445_v37, %v5389_v57  ;;  %v5300_v32 = vadd.f32 %v13509_v15, %v13494_v49  ;;  %v5346_v36 = vmul.f32 %v13509_v15, %v13509_v15 }
 0x6fd   :  { %v5390_v58 = vadd.f32 %v5345_v28, %v5342_v16 }
 0x6fe   :  { %v5337_v47 = vadd.f32 %v5336_v48, %v5335_v1  ;;  %v5447_v5 = vrot.slane %v5446_v11, 4  ;;  %v5411_v7 = vadd.f32 %v5346_v36, %v5343_v26 }
 0x700   :  { %v5338_v35 = vrot.slane %v5337_v47, 2  ;;  %v5448_v29 = vadd.f32 %v5447_v5, %v5446_v11  ;;  %v13515_v10 = vpop.f32.mrb[108].mxu1 }
 0x701   :  { %v5280_v18 = vadd.f32 %v5279_v13, %v13515_v10  ;;  %v5348_v55 = vmul.f32 %v13515_v10, %v13515_v10  ;;  %v13520_v23 = vpop.f32.mrb[109].mxu1 }
 0x702   :  { %v5339_v42 = vadd.f32 %v5338_v35, %v5337_v47  ;;  %v5449_v12 = vrot.slane %v5448_v29, 2  ;;  %v5301_v30 = vadd.f32 %v5300_v32, %v13520_v23  ;;  %v5349_v59 = vmul.f32 %v13520_v23, %v13520_v23  ;;  %v13525_v41 = vpop.f32.mrb[110].mxu1 }
 0x703   :  { %v5391_v56 = vadd.f32 %v5390_v58, %v5348_v55  ;;  %v5281_v3 = vadd.f32 %v5280_v18, %v13525_v41  ;;  %v5351_v19 = vmul.f32 %v13525_v41, %v13525_v41  ;;  %v13530_v38 = vpop.f32.mrb[111].mxu1 }
 0x704   :  { %v5340_v4 = vrot.slane %v5339_v42, 1  ;;  %v5450_v6 = vadd.f32 %v5449_v12, %v5448_v29  ;;  %v5412_v52 = vadd.f32 %v5411_v7, %v5349_v59  ;;  %v5302_v21 = vadd.f32 %v5301_v30, %v13530_v38 }
 0x705   :  { %v5392_v2 = vadd.f32 %v5391_v56, %v5351_v19  ;;  %v5352_v54 = vmul.f32 %v13530_v38, %v13530_v38 }
 0x706   :  { %v5341_v22 = vadd.f32 %v5340_v4, %v5339_v42  ;;  %v5451_v17 = vrot.slane %v5450_v6, 1 }
 0x707   :  { %v5413_v53 = vadd.f32 %v5412_v52, %v5352_v54 }
 0x708   :  { %v5452_v50 = vadd.f32 %v5451_v17, %v5450_v6  ;;  %v5455_v33 = vmul.f32 0.0078125, %v5341_v22  ;;  %v13535_v31 = vpop.f32.mrb[112].mxu1  ;;  %v13575_v17 = vld [vmem:[#allocation12] sm:$0x7] }
 0x709   :  { %v5282_v45 = vadd.f32 %v5281_v3, %v13535_v31  ;;  %v5354_v34 = vmul.f32 %v13535_v31, %v13535_v31  ;;  %v13540_v57 = vpop.f32.mrb[113].mxu1 }
 0x70a   :  { %v5458_v1 = vmul.f32 0.0078125, %v5452_v50  ;;  %v5461_v37 = vmul.f32 %v5455_v33, %v5455_v33  ;;  %v5303_v16 = vadd.f32 %v5302_v21, %v13540_v57  ;;  %v5355_v26 = vmul.f32 %v13540_v57, %v13540_v57  ;;  %v13545_v13 = vpop.f32.mrb[114].mxu1 }
 0x70b   :  { %v5393_v28 = vadd.f32 %v5392_v2, %v5354_v34  ;;  %v5283_v48 = vadd.f32 %v5282_v45, %v13545_v13  ;;  %v5357_v11 = vmul.f32 %v13545_v13, %v13545_v13  ;;  %v13550_v32 = vpop.f32.mrb[115].mxu1  ;;  %v16992_v45 = vld [vmem:[#allocation46_spill] sm:$0xff] }
 0x70c   :  { %v5464_v36 = vsub.f32 %v5458_v1, %v5461_v37  ;;  %v5414_v58 = vadd.f32 %v5413_v53, %v5355_v26  ;;  %v5304_v47 = vadd.f32 %v5303_v16, %v13550_v32  ;;  %v5358_v5 = vmul.f32 %v13550_v32, %v13550_v32 }
 0x70d   :  { %v5394_v7 = vadd.f32 %v5393_v28, %v5357_v11  ;;  %v5486_v34 = vrot.slane %v13575_v17, %v16992_v45 }
 0x70e   :  { %v5467_v35 = vmax.f32 %v5464_v36, 0.0  ;;  %v5415_v29 = vadd.f32 %v5414_v58, %v5358_v5 }
 0x710   :  { %v5470_v18 = vadd.f32 1e-05, %v5467_v35  ;;  %v13555_v55 = vpop.f32.mrb[116].mxu1 }
 0x711   :  { %v5284_v42 = vadd.f32 %v5283_v48, %v13555_v55  ;;  %v5360_v12 = vmul.f32 %v13555_v55, %v13555_v55  ;;  %v13560_v30 = vpop.f32.mrb[117].mxu1 }
 0x712   :  { %7045 = vrsqrt.f32 %v5470_v18  ;;  %v5305_v59 = vadd.f32 %v5304_v47, %v13560_v30  ;;  %v5361_v56 = vmul.f32 %v13560_v30, %v13560_v30  ;;  %v13565_v3 = vpop.f32.mrb[118].mxu1 }
 0x713   :  { %v5395_v19 = vadd.f32 %v5394_v7, %v5360_v12  ;;  %v5285_v4 = vadd.f32 %v5284_v42, %v13565_v3  ;;  %v5363_v6 = vmul.f32 %v13565_v3, %v13565_v3  ;;  %v13570_v52 = vpop.f32.mrb[119].mxu1 }
 0x714   :  { %v5416_v21 = vadd.f32 %v5415_v29, %v5361_v56  ;;  %v5306_v2 = vadd.f32 %v5305_v59, %v13570_v52  ;;  %v5364_v54 = vmul.f32 %v13570_v52, %v13570_v52  ;;  %v16993_v59 = vld [vmem:[#allocation40_spill] sm:$0xff] }
 0x715   :  { %v5396_v22 = vadd.f32 %v5395_v19, %v5363_v6 }
 0x716   :  { %v5417_v53 = vadd.f32 %v5416_v21, %v5364_v54 }
 0x718   :  { %v13577_v50 = vpop.f32.mrb[120].mxu1 }
 0x719   :  { %v5286_v1 = vadd.f32 %v5285_v4, %v13577_v50  ;;  %v5366_v37 = vmul.f32 %v13577_v50, %v13577_v50  ;;  %v13584_v16 = vpop.f32.mrb[121].mxu1 }
 0x71a   :  { %v5307_v26 = vadd.f32 %v5306_v2, %v13584_v16  ;;  %v5367_v28 = vmul.f32 %v13584_v16, %v13584_v16  ;;  %v13589_v48 = vpop.f32.mrb[122].mxu1 }
 0x71b   :  { %v5397_v11 = vadd.f32 %v5396_v22, %v5366_v37  ;;  %v5287_v36 = vadd.f32 %v5286_v1, %v13589_v48  ;;  %v5369_v58 = vmul.f32 %v13589_v48, %v13589_v48  ;;  %v13594_v47 = vpop.f32.mrb[123].mxu1 }
 0x71c   :  { %v7046_v5 = vpop.eup %7045  ;;  %v5418_v7 = vadd.f32 %v5417_v53, %v5367_v28  ;;  %v5308_v35 = vadd.f32 %v5307_v26, %v13594_v47  ;;  %v5370_v29 = vmul.f32 %v13594_v47, %v13594_v47 }
 0x71d   :  { %v5492_v18 = vmul.f32 %v7046_v5, %v5486_v34  ;;  %v5398_v42 = vadd.f32 %v5397_v11, %v5369_v58 }
 0x71e   :  { %v5419_v12 = vadd.f32 %v5418_v7, %v5370_v29 }
 0x71f   :  { %v13600_v56 = vrot.slane %v5492_v18, %v16993_v59  ;;  %v13602_v19 = vmul.f32 %v5492_v18, %v5455_v33 }
 0x720   :  { %v13604_v4 = vpop.f32.mrb[124].mxu1 }
 0x721   :  { %v13608_v6 = vmul.f32 %v13600_v56, %v13484_v51  ;;  %v5288_v21 = vadd.f32 %v5287_v36, %v13604_v4  ;;  %v5372_v2 = vmul.f32 %v13604_v4, %v13604_v4  ;;  %v13613_v54 = vpop.f32.mrb[125].mxu1  ;;  %v13630_v58 = vmul.f32 %v13600_v56, %v13439_v62 }
 0x722   :  { %v5309_v22 = vadd.f32 %v5308_v35, %v13613_v54  ;;  %v5373_v53 = vmul.f32 %v13613_v54, %v13613_v54  ;;  %v13618_v33 = vpop.f32.mrb[126].mxu1  ;;  %v13634_v7 = vmul.f32 %v13600_v56, %v13433_v40  ;;  %v13638_v35 = vmul.f32 %v13600_v56, %v13452_v61 }
 0x723   :  { %16994 = vst [vmem:[#allocation210_spill] sm:$0xff] %v13608_v6  ;;  %v5399_v34 = vadd.f32 %v5398_v42, %v5372_v2  ;;  %v5289_v1 = vadd.f32 %v5288_v21, %v13618_v33  ;;  %v5375_v51 = vmul.f32 %v13618_v33, %v13618_v33  ;;  %v13623_v37 = vpop.f32.mrb[127].mxu1  ;;  %16995 = vst [vmem:[#allocation168_spill] sm:$0xff] %v13630_v58 }
 0x724   :  { %v5420_v26 = vadd.f32 %v5419_v12, %v5373_v53  ;;  %v5310_v28 = vadd.f32 %v5309_v22, %v13623_v37  ;;  %v5376_v11 = vmul.f32 %v13623_v37, %v13623_v37  ;;  %16996 = vst [vmem:[#allocation172_spill] sm:$0xff] %v13634_v7  ;;  %16997 = vst [vmem:[#allocation91_spill] sm:$0xff] %v13638_v35 }
 0x725   :  { %v5400_v36 = vadd.f32 %v5399_v34, %v5375_v51  ;;  %v13642_v29 = vmul.f32 %v13600_v56, %v13461_v39  ;;  %v13646_v18 = vmul.f32 %v13600_v56, %v13447_v0  ;;  %v13650_v62 = vmul.f32 %v13600_v56, %v13455_v20 }
 0x726   :  { %v5421_v5 = vadd.f32 %v5420_v26, %v5376_v11  ;;  %v13654_v40 = vmul.f32 %v13600_v56, %v13474_v44  ;;  %v13658_v61 = vmul.f32 %v13600_v56, %v13469_v8  ;;  %v13664_v39 = vmul.f32 %v13600_v56, %v13478_v63 }
 0x727   :  { %16998 = vst [vmem:[#allocation175_spill] sm:$0xff] %v13642_v29  ;;  %16999 = vst [vmem:[#allocation93_spill] sm:$0xff] %v13646_v18 }
 0x728   :  { %17000 = vst [vmem:[#allocation214_spill] sm:$0xff] %v13650_v62  ;;  %17001 = vst [vmem:[#allocation47_spill] sm:$0xff] %v13654_v40  ;;  %v13660_v42 = vpop.f32.mrb[128].mxu1 }
 0x729   :  { %17002 = vst [vmem:[#allocation128_spill] sm:$0xff] %v13658_v61  ;;  %17003 = vst [vmem:[#allocation163_spill] sm:$0xff] %v13664_v39  ;;  %v5290_v0 = vadd.f32 %v5289_v1, %v13660_v42  ;;  %v5378_v20 = vmul.f32 %v13660_v42, %v13660_v42  ;;  %v13669_v12 = vpop.f32.mrb[129].mxu1 }
 0x72a   :  { %v5311_v44 = vadd.f32 %v5310_v28, %v13669_v12  ;;  %v5379_v21 = vmul.f32 %v13669_v12, %v13669_v12  ;;  %v13674_v8 = vpop.f32.mrb[130].mxu1 }
 0x72b   :  { %v5401_v2 = vadd.f32 %v5400_v36, %v5378_v20  ;;  %v5291_v22 = vadd.f32 %v5290_v0, %v13674_v8  ;;  %v5381_v63 = vmul.f32 %v13674_v8, %v13674_v8  ;;  %v13679_v53 = vpop.f32.mrb[131].mxu1 }
 0x72c   :  { %v5422_v34 = vadd.f32 %v5421_v5, %v5379_v21  ;;  %v5312_v1 = vadd.f32 %v5311_v44, %v13679_v53  ;;  %v5382_v51 = vmul.f32 %v13679_v53, %v13679_v53 }
 0x72d   :  { %v5402_v26 = vadd.f32 %v5401_v2, %v5381_v63 }
 0x72e   :  { %v5423_v28 = vadd.f32 %v5422_v34, %v5382_v51 }
 0x730   :  { %v13684_v11 = vpop.f32.mrb[132].mxu1 }
 0x731   :  { %v5292_v39 = vadd.f32 %v5291_v22, %v13684_v11  ;;  %v5384_v36 = vmul.f32 %v13684_v11, %v13684_v11  ;;  %v13689_v0 = vpop.f32.mrb[133].mxu1 }
 0x732   :  { %v5313_v20 = vadd.f32 %v5312_v1, %v13689_v0  ;;  %v5385_v5 = vmul.f32 %v13689_v0, %v13689_v0  ;;  %v13694_v44 = vpop.f32.mrb[134].mxu1 }
 0x733   :  { %v5403_v21 = vadd.f32 %v5402_v26, %v5384_v36  ;;  %v5293_v2 = vadd.f32 %v5292_v39, %v13694_v44  ;;  %v5387_v63 = vmul.f32 %v13694_v44, %v13694_v44  ;;  %v13699_v34 = vpop.f32.mrb[135].mxu1 }
 0x734   :  { %v5424_v22 = vadd.f32 %v5423_v28, %v5385_v5  ;;  %v5314_v51 = vadd.f32 %v5313_v20, %v13699_v34  ;;  %v5388_v61 = vmul.f32 %v13699_v34, %v13699_v34 }
 0x735   :  { %v5294_v1 = vrot.slane %v5293_v2, 4  ;;  %v5404_v6 = vadd.f32 %v5403_v21, %v5387_v63 }
 0x736   :  { %v5315_v40 = vrot.slane %v5314_v51, 4  ;;  %v5425_v62 = vadd.f32 %v5424_v22, %v5388_v61 }
 0x737   :  { %v5295_v18 = vadd.f32 %v5294_v1, %v5293_v2  ;;  %v5405_v29 = vrot.slane %v5404_v6, 4 }
 0x738   :  { %v5316_v26 = vadd.f32 %v5315_v40, %v5314_v51  ;;  %v5426_v36 = vrot.slane %v5425_v62, 4 }
 0x739   :  { %v5296_v39 = vrot.slane %v5295_v18, 2  ;;  %v5406_v35 = vadd.f32 %v5405_v29, %v5404_v6 }
 0x73a   :  { %v5317_v7 = vrot.slane %v5316_v26, 2  ;;  %v5427_v58 = vadd.f32 %v5426_v36, %v5425_v62 }
 0x73b   :  { %v5297_v14 = vadd.f32 %v5296_v39, %v5295_v18  ;;  %v5407_v60 = vrot.slane %v5406_v35, 2 }
 0x73c   :  { %v5318_v28 = vadd.f32 %v5317_v7, %v5316_v26  ;;  %v5428_v5 = vrot.slane %v5427_v58, 2 }
 0x73d   :  { %v5298_v20 = vrot.slane %v5297_v14, 1  ;;  %v5408_v27 = vadd.f32 %v5407_v60, %v5406_v35 }
 0x73e   :  { %v5319_v25 = vrot.slane %v5318_v28, 1  ;;  %v5429_v45 = vadd.f32 %v5428_v5, %v5427_v58 }
 0x73f   :  { %v5299_v9 = vadd.f32 %v5298_v20, %v5297_v14  ;;  %v5409_v21 = vrot.slane %v5408_v27, 1  ;;  %v17004_v14 = vld [vmem:[#allocation41_spill] sm:$0xff] }
 0x740   :  { %v5320_v63 = vadd.f32 %v5319_v25, %v5318_v28  ;;  %v5430_v61 = vrot.slane %v5429_v45, 1  ;;  %v5478_v25 = vrot.slane %v13575_v17, %v16993_v59 }
 0x741   :  { %v5410_v2 = vadd.f32 %v5409_v21, %v5408_v27  ;;  %v5453_v22 = vmul.f32 0.0078125, %v5299_v9  ;;  %v5482_v27 = vrot.slane %v13575_v17, %v17004_v14  ;;  %v17005_v21 = vld [vmem:[#allocation48_spill] sm:$0xff] }
 0x742   :  { %v5431_v40 = vadd.f32 %v5430_v61, %v5429_v45  ;;  %v5454_v51 = vmul.f32 0.0078125, %v5320_v63  ;;  %v5513_v63 = vrot.slane %v13602_v19, %v17005_v21 }
 0x743   :  { %v5456_v1 = vmul.f32 0.0078125, %v5410_v2  ;;  %v5459_v6 = vmul.f32 %v5453_v22, %v5453_v22 }
 0x744   :  { %v5457_v29 = vmul.f32 0.0078125, %v5431_v40  ;;  %v5460_v62 = vmul.f32 %v5454_v51, %v5454_v51 }
 0x745   :  { %v5462_v18 = vsub.f32 %v5456_v1, %v5459_v6 }
 0x746   :  { %v5463_v36 = vsub.f32 %v5457_v29, %v5460_v62 }
 0x747   :  { %v5465_v7 = vmax.f32 %v5462_v18, 0.0 }
 0x748   :  { %v5466_v26 = vmax.f32 %v5463_v36, 0.0 }
 0x749   :  { %v5468_v39 = vadd.f32 1e-05, %v5465_v7  ;;  %v5278_v7 = vld [vmem:[#allocation14] sm:$0x7] }
 0x74a   :  { %v5469_v60 = vadd.f32 1e-05, %v5466_v26 }
 0x74b   :  { %7047 = vrsqrt.f32 %v5468_v39 }
 0x74c   :  { %7049 = vrsqrt.f32 %v5469_v60  ;;  %v17008_v60 = vld [vmem:[#allocation158_spill] sm:$0xff] }
 0x755   :  { %v7048_v9 = vpop.eup %7047 }
 0x756   :  { %v7050_v45 = vpop.eup %7049  ;;  %v5490_v58 = vmul.f32 %v7048_v9, %v5478_v25 }
 0x757   :  { %v5491_v35 = vmul.f32 %v7050_v45, %v5482_v27  ;;  %v17010_v27 = vld [vmem:[#allocation164_spill] sm:$0xff] }
 0x758   :  { %v5493_v28 = vmul.f32 %v5490_v58, %v5453_v22  ;;  %v5527_v5 = vrot.slane %v5490_v58, %v16993_v59  ;;  %v5550_v9 = vmul.f32 %v13600_v56, %v17010_v27  ;;  %v17011_v45 = vld [vmem:[#allocation132_spill] sm:$0xff] }
 0x759   :  { %v5494_v20 = vmul.f32 %v5491_v35, %v5454_v51  ;;  %v5531_v61 = vrot.slane %v5491_v35, %v16993_v59 }
 0x75a   :  { %v5536_v2 = vmul.f32 %v5527_v5, %v13492_v46  ;;  %v5539_v40 = vmul.f32 %v5527_v5, %v13499_v43  ;;  %v5542_v1 = vmul.f32 %v5527_v5, %v13515_v10  ;;  %v5545_v17 = vmul.f32 %v5527_v5, %v13525_v41 }
 0x75b   :  { %v5548_v6 = vmul.f32 %v5527_v5, %v13535_v31  ;;  %v5551_v22 = vmul.f32 %v5527_v5, %v13545_v13  ;;  %v5554_v29 = vmul.f32 %v5527_v5, %v13555_v55  ;;  %v5557_v51 = vmul.f32 %v5527_v5, %v13565_v3 }
 0x75c   :  { %v13721_v19 = vmul.f32 %v5527_v5, %v13577_v50  ;;  %v13724_v62 = vmul.f32 %v5527_v5, %v13589_v48  ;;  %v13727_v46 = vmul.f32 %v5527_v5, %v13604_v4  ;;  %v13730_v43 = vmul.f32 %v5527_v5, %v13618_v33 }
 0x75d   :  { %v13733_v10 = vmul.f32 %v5527_v5, %v13660_v42  ;;  %v13736_v41 = vmul.f32 %v5527_v5, %v13674_v8  ;;  %v13739_v31 = vmul.f32 %v5527_v5, %v13684_v11  ;;  %v13742_v13 = vmul.f32 %v5527_v5, %v13694_v44 }
 0x75e   :  { %v5499_v55 = vcombine.low %v5493_v28, %v5494_v20  ;;  %v5537_v3 = vmul.f32 %v5531_v61, %v13494_v49  ;;  %v5540_v50 = vmul.f32 %v5531_v61, %v13509_v15  ;;  %v5543_v48 = vmul.f32 %v5531_v61, %v13520_v23 }
 0x75f   :  { %v5546_v4 = vmul.f32 %v5531_v61, %v13530_v38  ;;  %v5549_v33 = vmul.f32 %v5531_v61, %v13540_v57  ;;  %v5552_v42 = vmul.f32 %v5531_v61, %v13550_v32  ;;  %v5555_v8 = vmul.f32 %v5531_v61, %v13560_v30 }
 0x760   :  { %v5506_v11 = vrot.slane %v5499_v55, %v17005_v21  ;;  %v5558_v44 = vmul.f32 %v5531_v61, %v13570_v52  ;;  %v5561_v18 = vmul.f32 %v5531_v61, %v13584_v16  ;;  %v5564_v49 = vmul.f32 %v5531_v61, %v13594_v47  ;;  %v17006_v47 = vld [vmem:[#allocation98_spill] sm:$0xff] }
 0x761   :  { %v5567_v15 = vmul.f32 %v5531_v61, %v13613_v54  ;;  %v5570_v23 = vmul.f32 %v5531_v61, %v13623_v37  ;;  %v5573_v38 = vmul.f32 %v5531_v61, %v13669_v12  ;;  %v5576_v57 = vmul.f32 %v5531_v61, %v13679_v53  ;;  %v17007_v53 = vld [vmem:[#allocation46_spill] sm:$0xff] }
 0x762   :  { %v5514_v36 = vcombine.low %v5506_v11, %v5513_v63  ;;  %v5579_v32 = vmul.f32 %v5531_v61, %v13689_v0  ;;  %v5582_v30 = vmul.f32 %v5531_v61, %v13699_v34  ;;  %v5538_v16 = vmul.f32 %v13600_v56, %v13410_v24  ;;  %v17009_v34 = vld [vmem:[#allocation161_spill] sm:$0xff] }
 0x763   :  { %v5541_v54 = vmul.f32 %v13600_v56, %v17006_v47  ;;  %v5544_v0 = vmul.f32 %v13600_v56, %v17008_v60  ;;  %v5547_v25 = vmul.f32 %v13600_v56, %v17009_v34  ;;  %v5556_v24 = vmul.f32 %v13600_v56, %v17011_v45 }
 0x764   :  { %v5521_v52 = vrot.slane %v5514_v36, %v17005_v21 }
 0x766   :  { %v5523_v26 = vsub.f32 %v5278_v7, %v5521_v52 }
 0x768   :  { %v5588_v37 = vrot.slane %v5523_v26, %v16993_v59  ;;  %v5592_v12 = vrot.slane %v5523_v26, %v17004_v14  ;;  %v5596_v39 = vrot.slane %v5523_v26, %v17007_v53  ;;  %v17014_v26 = vld [vmem:[#allocation91_spill] sm:$0xff] }
 0x76a   :  { %v13777_v58 = vadd.f32 %v5588_v37, %v5536_v2  ;;  %v13779_v35 = vadd.f32 %v5592_v12, %v5537_v3  ;;  %v13781_v59 = vadd.f32 %v5596_v39, %v5538_v16  ;;  %v13783_v14 = vadd.f32 %v5588_v37, %v5539_v40 }
 0x76b   :  { %v13785_v28 = vadd.f32 %v5592_v12, %v5540_v50  ;;  %v13787_v5 = vadd.f32 %v5596_v39, %v5541_v54  ;;  %v13789_v20 = vadd.f32 %v5588_v37, %v5542_v1  ;;  %v13791_v21 = vadd.f32 %v5592_v12, %v5543_v48  ;;  %v17012_v48 = vld [vmem:[#allocation168_spill] sm:$0xff] }
 0x76c   :  { %v13793_v63 = vadd.f32 %v5596_v39, %v5544_v0  ;;  %v13795_v61 = vadd.f32 %v5588_v37, %v5545_v17  ;;  %v13797_v56 = vadd.f32 %v5592_v12, %v5546_v4  ;;  %v13799_v2 = vadd.f32 %v5596_v39, %v5547_v25 }
 0x76d   :  { %v13801_v55 = vadd.f32 %v5588_v37, %v5548_v6  ;;  %v13803_v40 = vadd.f32 %v5592_v12, %v5549_v33  ;;  %v13805_v3 = vadd.f32 %v5596_v39, %v5550_v9  ;;  %v13807_v50 = vadd.f32 %v5588_v37, %v5551_v22  ;;  %v17013_v33 = vld [vmem:[#allocation172_spill] sm:$0xff] }
 0x76e   :  { %v13809_v1 = vadd.f32 %v5592_v12, %v5552_v42  ;;  %v13812_v11 = vadd.f32 %v5596_v39, %v17012_v48  ;;  %v13814_v36 = vadd.f32 %v5588_v37, %v5554_v29  ;;  %v13816_v17 = vadd.f32 %v5592_v12, %v5555_v8 }
 0x76f   :  { %v13818_v4 = vadd.f32 %v5596_v39, %v5556_v24  ;;  %v13820_v7 = vadd.f32 %v5588_v37, %v5557_v51  ;;  %v13822_v6 = vadd.f32 %v5592_v12, %v5558_v44  ;;  %v13825_v52 = vadd.f32 %v5596_v39, %v17013_v33  ;;  %v17015_v51 = vld [vmem:[#allocation175_spill] sm:$0xff] }
 0x770   :  { %v13828_v22 = vadd.f32 %v5588_v37, %v13721_v19  ;;  %v13830_v42 = vadd.f32 %v5592_v12, %v5561_v18  ;;  %v13833_v16 = vadd.f32 %v5596_v39, %v17014_v26  ;;  %v13836_v29 = vadd.f32 %v5588_v37, %v13724_v62  ;;  %v17016_v19 = vld [vmem:[#allocation93_spill] sm:$0xff]  ;;  %v17020_v62 = vld [vmem:[#allocation214_spill] sm:$0xff] }
 0x771   :  { %v13838_v8 = vadd.f32 %v5592_v12, %v5564_v49  ;;  %v13841_v47 = vadd.f32 %v5596_v39, %v17015_v51  ;;  %v13844_v44 = vadd.f32 %v5588_v37, %v13727_v46  ;;  %v13846_v54 = vadd.f32 %v5592_v12, %v5567_v15  ;;  %v17024_v46 = vld [vmem:[#allocation47_spill] sm:$0xff] }
 0x772   :  { %v13849_v53 = vadd.f32 %v5596_v39, %v17016_v19  ;;  %v13852_v18 = vadd.f32 %v5588_v37, %v13730_v43  ;;  %v13854_v60 = vadd.f32 %v5592_v12, %v5570_v23  ;;  %v13857_v49 = vadd.f32 %v5596_v39, %v17020_v62  ;;  %v17027_v43 = vld [vmem:[#allocation210_spill] sm:$0xff] }
 0x773   :  { %v13860_v0 = vadd.f32 %v5588_v37, %v13733_v10  ;;  %v13862_v34 = vadd.f32 %v5592_v12, %v5573_v38  ;;  %v13865_v15 = vadd.f32 %v5596_v39, %v17024_v46  ;;  %v13868_v25 = vadd.f32 %v5588_v37, %v13736_v41  ;;  %v17030_v10 = vld [vmem:[#allocation128_spill] sm:$0xff]  ;;  %v17031_v41 = vld [vmem:[#allocation163_spill] sm:$0xff] }
 0x774   :  { %17017 = vst [vmem:[#allocation167_spill] sm:$0xff] %v13849_v53  ;;  %17018 = vst [vmem:[#allocation171_spill] sm:$0xff] %v13852_v18  ;;  %v13870_v27 = vadd.f32 %v5592_v12, %v5576_v57  ;;  %v13873_v9 = vadd.f32 %v5596_v39, %v17027_v43  ;;  %v13876_v23 = vadd.f32 %v5588_v37, %v13739_v31  ;;  %v13892_v57 = vstv %s7398_s24 }
 0x775   :  { %17019 = vst [vmem:[#allocation159_spill] sm:$0xff] %v13854_v60  ;;  %17021 = vst [vmem:[#allocation131_spill] sm:$0xff] %v13857_v49  ;;  %v13878_v45 = vadd.f32 %v5592_v12, %v5579_v32  ;;  %v13881_v24 = vadd.f32 %v5596_v39, %v17030_v10  ;;  %v13884_v38 = vadd.f32 %v5588_v37, %v13742_v13  ;;  %vm5648_vm1 = vcmp.ge.f32.partialorder %v13777_v58, 0.0 }
 0x776   :  { %17022 = vst [vmem:[#allocation182_spill] sm:$0xff] %v13860_v0  ;;  %17023 = vst [vmem:[#allocation55_spill] sm:$0xff] %v13862_v34  ;;  %v13886_v48 = vadd.f32 %v5592_v12, %v5582_v30  ;;  %v13889_v33 = vadd.f32 %v5596_v39, %v17031_v41  ;;  %v13896_v26 = vmul.f32 %v13892_v57, %v13777_v58  ;;  %vm5649_vm12 = vcmp.ge.f32.partialorder %v13779_v35, 0.0 }
 0x777   :  { %17025 = vst [vmem:[#allocation137_spill] sm:$0xff] %v13865_v15  ;;  %17026 = vst [vmem:[#allocation165_spill] sm:$0xff] %v13868_v25  ;;  %v13900_v31 = vmul.f32 %v13892_v57, %v13779_v35  ;;  %v13904_v32 = vmul.f32 %v13892_v57, %v13781_v59  ;;  %v13908_v13 = vmul.f32 %v13892_v57, %v13783_v14  ;;  %vm5650_vm13 = vcmp.ge.f32.partialorder %v13781_v59, 0.0 }
 0x778   :  { %17028 = vst [vmem:[#allocation169_spill] sm:$0xff] %v13876_v23  ;;  %17029 = vst [vmem:[#allocation173_spill] sm:$0xff] %v13878_v45  ;;  %vm5651_vm11 = vcmp.ge.f32.partialorder %v13783_v14, 0.0  ;;  %v13916_v30 = vmul.f32 %v13892_v57, %v13785_v28  ;;  %v13920_v37 = vmul.f32 %v13892_v57, %v13787_v5  ;;  %v13924_v12 = vmul.f32 %v13892_v57, %v13789_v20 }
 0x779   :  { %17032 = vst [vmem:[#allocation94_spill] sm:$0xff] %v13889_v33  ;;  %v13928_v39 = vmul.f32 %v13892_v57, %v13791_v21  ;;  %vm5652_vm10 = vcmp.ge.f32.partialorder %v13785_v28, 0.0  ;;  %vm5653_vm14 = vcmp.ge.f32.partialorder %v13787_v5, 0.0  ;;  %vm5654_vm5 = vcmp.ge.f32.partialorder %v13789_v20, 0.0 }
 0x77a   :  { %vm5655_vm4 = vcmp.ge.f32.partialorder %v13791_v21, 0.0  ;;  %v13936_v51 = vmul.f32 %v13892_v57, %v13793_v63  ;;  %v13940_v19 = vmul.f32 %v13892_v57, %v13795_v61  ;;  %v13944_v62 = vmul.f32 %v13892_v57, %v13797_v56 }
 0x77b   :  { %v13948_v46 = vmul.f32 %v13892_v57, %v13799_v2  ;;  %vm5656_vm6 = vcmp.ge.f32.partialorder %v13793_v63, 0.0  ;;  %vm5657_vm15 = vcmp.ge.f32.partialorder %v13795_v61, 0.0  ;;  %vm5658_vm8 = vcmp.ge.f32.partialorder %v13797_v56, 0.0 }
 0x77c   :  { %vm5659_vm0 = vcmp.ge.f32.partialorder %v13799_v2, 0.0  ;;  %v13956_v43 = vmul.f32 %v13892_v57, %v13801_v55  ;;  %v13960_v10 = vmul.f32 %v13892_v57, %v13803_v40  ;;  %v13964_v41 = vmul.f32 %v13892_v57, %v13805_v3 }
 0x77d   :  { %17033 = vst [vmem:[#allocation176_spill] sm:$0xff] %v13948_v46  ;;  %v13968_v46 = vmul.f32 %v13892_v57, %v13807_v50  ;;  %vm5692_vm9 = vcmp.ge.f32.partialorder %v13881_v24, 0.0  ;;  %vm5693_vm7 = vcmp.ge.f32.partialorder %v13884_v38, 0.0  ;;  %vm5694_vm2 = vcmp.ge.f32.partialorder %v13886_v48, 0.0 }
 0x77e   :  { %17034 = vst [vmem:[#allocation96_spill] sm:$0xff] %v13956_v43  ;;  %17035 = vst [vmem:[#allocation202_spill] sm:$0xff] %v13960_v10  ;;  %v13976_v43 = vmul.f32 %v13892_v57, %v13809_v1  ;;  %v13980_v10 = vmul.f32 %v13892_v57, %v13812_v11  ;;  %vm5695_vm3 = vcmp.ge.f32.partialorder %v13889_v33, 0.0 }
 0x77f   :  { %17036 = vst [vmem:[#allocation206_spill] sm:$0xff] %v13964_v41  ;;  %17037 = vst [vmem:[#allocation230_spill] sm:$0xff] %v13968_v46  ;;  %v13984_v41 = vmul.f32 %v13892_v57, %v13814_v36  ;;  %v13988_v46 = vmul.f32 %v13892_v57, %v13816_v17 }
 0x780   :  { %17038 = vst [vmem:[#allocation118_spill] sm:$0xff] %v13976_v43  ;;  %17039 = vst [vmem:[#allocation75_spill] sm:$0xff] %v13980_v10  ;;  %v13996_v43 = vmul.f32 %v13892_v57, %v13818_v4  ;;  %v14000_v10 = vmul.f32 %v13892_v57, %v13820_v7 }
 0x781   :  { %17040 = vst [vmem:[#allocation33_spill] sm:$0xff] %v13984_v41  ;;  %17041 = vst [vmem:[#allocation290_spill] sm:$0xff] %v13988_v46  ;;  %v14004_v41 = vmul.f32 %v13892_v57, %v13822_v6  ;;  %v14008_v46 = vmul.f32 %v13892_v57, %v13825_v52 }
 0x782   :  { %17042 = vst [vmem:[#allocation87_spill] sm:$0xff] %v13996_v43  ;;  %17043 = vst [vmem:[#allocation291_spill] sm:$0xff] %v14000_v10  ;;  %v14016_v43 = vmul.f32 %v13892_v57, %v13828_v22  ;;  %v14020_v10 = vmul.f32 %v13892_v57, %v13830_v42 }
 0x783   :  { %17044 = vst [vmem:[#allocation89_spill] sm:$0xff] %v14004_v41  ;;  %17045 = vst [vmem:[#allocation292_spill] sm:$0xff] %v14008_v46  ;;  %v14024_v41 = vmul.f32 %v13892_v57, %v13833_v16  ;;  %v14028_v46 = vmul.f32 %v13892_v57, %v13836_v29 }
 0x784   :  { %17046 = vst [vmem:[#allocation285_spill] sm:$0xff] %v14016_v43  ;;  %17047 = vst [vmem:[#allocation293_spill] sm:$0xff] %v14020_v10  ;;  %v14036_v43 = vmul.f32 %v13892_v57, %v13838_v8  ;;  %v14040_v10 = vmul.f32 %v13892_v57, %v13841_v47 }
 0x785   :  { %17048 = vst [vmem:[#allocation286_spill] sm:$0xff] %v14024_v41  ;;  %17049 = vst [vmem:[#allocation294_spill] sm:$0xff] %v14028_v46  ;;  %v14044_v41 = vmul.f32 %v13892_v57, %v13844_v44  ;;  %v14048_v46 = vmul.f32 %v13892_v57, %v13846_v54 }
 0x786   :  { %17050 = vst [vmem:[#allocation287_spill] sm:$0xff] %v14036_v43  ;;  %17051 = vst [vmem:[#allocation295_spill] sm:$0xff] %v14040_v10  ;;  %v14056_v43 = vmul.f32 %v13892_v57, %v13849_v53  ;;  %v14060_v10 = vmul.f32 %v13892_v57, %v13852_v18  ;;  %v5739_v18 = vmul.f32 %v13892_v57, %v13876_v23 }
 0x787   :  { %17052 = vst [vmem:[#allocation136_spill] sm:$0xff] %v14044_v41  ;;  %17053 = vst [vmem:[#allocation296_spill] sm:$0xff] %v14048_v46  ;;  %v14064_v41 = vmul.f32 %v13892_v57, %v13854_v60  ;;  %v14068_v46 = vmul.f32 %v13892_v57, %v13857_v49  ;;  %v5737_v49 = vmul.f32 %v13892_v57, %v13870_v27 }
 0x788   :  { %17054 = vst [vmem:[#allocation135_spill] sm:$0xff] %v14056_v43  ;;  %17055 = vst [vmem:[#allocation297_spill] sm:$0xff] %v14060_v10  ;;  %v5733_v43 = vmul.f32 %v13892_v57, %v13860_v0  ;;  %v5734_v10 = vmul.f32 %v13892_v57, %v13862_v34  ;;  %v5738_v60 = vmul.f32 %v13892_v57, %v13873_v9 }
 0x789   :  { %17056 = vst [vmem:[#allocation95_spill] sm:$0xff] %v14064_v41  ;;  %17057 = vst [vmem:[#allocation298_spill] sm:$0xff] %v14068_v46  ;;  %v5735_v41 = vmul.f32 %v13892_v57, %v13865_v15  ;;  %v5736_v46 = vmul.f32 %v13892_v57, %v13868_v25  ;;  %v5740_v53 = vmul.f32 %v13892_v57, %v13878_v45 }
 0x78a   :  { %v5741_v25 = vmul.f32 %v13892_v57, %v13881_v24  ;;  %v5742_v15 = vmul.f32 %v13892_v57, %v13884_v38  ;;  %v5743_v34 = vmul.f32 %v13892_v57, %v13886_v48  ;;  %v5744_v0 = vmul.f32 %v13892_v57, %v13889_v33 }
 0x78b   :  { %v14114_v45 = vsel %vm5648_vm1, %v13777_v58, %v13896_v26  ;;  %v14120_v23 = vsel %vm5649_vm12, %v13779_v35, %v13900_v31  ;;  %v14126_v57 = vsel %vm5650_vm13, %v13781_v59, %v13904_v32  ;;  %v14132_v33 = vsel %vm5651_vm11, %v13783_v14, %v13908_v13 }
 0x78c   :  { %v14138_v58 = vsel %vm5652_vm10, %v13785_v28, %v13916_v30  ;;  %v14144_v35 = vsel %vm5653_vm14, %v13787_v5, %v13920_v37  ;;  %v14150_v59 = vsel %vm5654_vm5, %v13789_v20, %v13924_v12  ;;  %v14156_v14 = vsel %vm5655_vm4, %v13791_v21, %v13928_v39  ;;  %v17058_v21 = vld [vmem:[#allocation176_spill] sm:$0xff] }
 0x78d   :  { %v14162_v28 = vsel %vm5656_vm6, %v13793_v63, %v13936_v51  ;;  %v14168_v5 = vsel %vm5657_vm15, %v13795_v61, %v13940_v19  ;;  %v14174_v20 = vsel %vm5658_vm8, %v13797_v56, %v13944_v62  ;;  %v14180_v26 = vsel %vm5659_vm0, %v13799_v2, %v17058_v21  ;;  %v17059_v63 = vld [vmem:[#allocation96_spill] sm:$0xff]  ;;  %v17061_v61 = vld [vmem:[#allocation202_spill] sm:$0xff] }
 0x78e   :  { %vm17060_vm1 = vcmp.ge.f32.partialorder %v13801_v55, 0.0  ;;  %vm17062_vm12 = vcmp.ge.f32.partialorder %v13803_v40, 0.0  ;;  %v17063_v56 = vld [vmem:[#allocation206_spill] sm:$0xff]  ;;  %vm17064_vm13 = vcmp.ge.f32.partialorder %v13805_v3, 0.0  ;;  %vm17066_vm11 = vcmp.ge.f32.partialorder %v13807_v50, 0.0 }
 0x78f   :  { %v14186_v31 = vsel %vm17060_vm1, %v13801_v55, %v17059_v63  ;;  %v14192_v32 = vsel %vm17062_vm12, %v13803_v40, %v17061_v61  ;;  %v14198_v13 = vsel %vm17064_vm13, %v13805_v3, %v17063_v56  ;;  %v17065_v2 = vld [vmem:[#allocation230_spill] sm:$0xff]  ;;  %vm17068_vm10 = vcmp.ge.f32.partialorder %v13809_v1, 0.0  ;;  %v17069_v40 = vld [vmem:[#allocation75_spill] sm:$0xff]  ;;  %v17071_v3 = vld [vmem:[#allocation33_spill] sm:$0xff] }
 0x790   :  { %v14204_v30 = vsel %vm17066_vm11, %v13807_v50, %v17065_v2  ;;  %v17067_v55 = vld [vmem:[#allocation118_spill] sm:$0xff]  ;;  %vm17070_vm14 = vcmp.ge.f32.partialorder %v13812_v11, 0.0  ;;  %vm17072_vm5 = vcmp.ge.f32.partialorder %v13814_v36, 0.0  ;;  %vm17074_vm4 = vcmp.ge.f32.partialorder %v13816_v17, 0.0 }
 0x791   :  { %v14210_v37 = vsel %vm17068_vm10, %v13809_v1, %v17067_v55  ;;  %v14216_v12 = vsel %vm17070_vm14, %v13812_v11, %v17069_v40  ;;  %v14222_v39 = vsel %vm17072_vm5, %v13814_v36, %v17071_v3  ;;  %v17073_v50 = vld [vmem:[#allocation290_spill] sm:$0xff]  ;;  %v17075_v1 = vld [vmem:[#allocation87_spill] sm:$0xff]  ;;  %vm17076_vm6 = vcmp.ge.f32.partialorder %v13818_v4, 0.0  ;;  %v17079_v36 = vld [vmem:[#allocation89_spill] sm:$0xff] }
 0x792   :  { %v14228_v51 = vsel %vm17074_vm4, %v13816_v17, %v17073_v50  ;;  %v14234_v19 = vsel %vm17076_vm6, %v13818_v4, %v17075_v1  ;;  %v17077_v11 = vld [vmem:[#allocation291_spill] sm:$0xff]  ;;  %vm17078_vm15 = vcmp.ge.f32.partialorder %v13820_v7, 0.0  ;;  %vm17080_vm8 = vcmp.ge.f32.partialorder %v13822_v6, 0.0  ;;  %v17081_v17 = vld [vmem:[#allocation292_spill] sm:$0xff]  ;;  %v17083_v4 = vld [vmem:[#allocation285_spill] sm:$0xff] }
 0x793   :  { %v14240_v62 = vsel %vm17078_vm15, %v13820_v7, %v17077_v11  ;;  %v14246_v21 = vsel %vm17080_vm8, %v13822_v6, %v17079_v36  ;;  %vm17082_vm0 = vcmp.ge.f32.partialorder %v13825_v52, 0.0  ;;  %vm17084_vm1 = vcmp.ge.f32.partialorder %v13828_v22, 0.0  ;;  %v17085_v7 = vld [vmem:[#allocation293_spill] sm:$0xff]  ;;  %v17087_v6 = vld [vmem:[#allocation286_spill] sm:$0xff]  ;;  %v17100_v11 = vld [vmem:[#allocation167_spill] sm:$0xff] }
 0x794   :  { %v14252_v63 = vsel %vm17082_vm0, %v13825_v52, %v17081_v17  ;;  %v14258_v61 = vsel %vm17084_vm1, %v13828_v22, %v17083_v4  ;;  %vm17086_vm12 = vcmp.ge.f32.partialorder %v13830_v42, 0.0  ;;  %vm17088_vm13 = vcmp.ge.f32.partialorder %v13833_v16, 0.0  ;;  %v17089_v52 = vld [vmem:[#allocation294_spill] sm:$0xff]  ;;  %v17091_v22 = vld [vmem:[#allocation287_spill] sm:$0xff] }
 0x795   :  { %v14264_v56 = vsel %vm17086_vm12, %v13830_v42, %v17085_v7  ;;  %v14270_v2 = vsel %vm17088_vm13, %v13833_v16, %v17087_v6  ;;  %vm17090_vm11 = vcmp.ge.f32.partialorder %v13836_v29, 0.0  ;;  %vm17092_vm10 = vcmp.ge.f32.partialorder %v13838_v8, 0.0  ;;  %v17093_v42 = vld [vmem:[#allocation295_spill] sm:$0xff]  ;;  %v17095_v16 = vld [vmem:[#allocation136_spill] sm:$0xff] }
 0x796   :  { %v14276_v55 = vsel %vm17090_vm11, %v13836_v29, %v17089_v52  ;;  %v14282_v40 = vsel %vm17092_vm10, %v13838_v8, %v17091_v22  ;;  %vm17094_vm14 = vcmp.ge.f32.partialorder %v13841_v47, 0.0  ;;  %vm17096_vm5 = vcmp.ge.f32.partialorder %v13844_v44, 0.0  ;;  %v17097_v29 = vld [vmem:[#allocation296_spill] sm:$0xff]  ;;  %v17099_v8 = vld [vmem:[#allocation135_spill] sm:$0xff] }
 0x797   :  { %v14288_v3 = vsel %vm17094_vm14, %v13841_v47, %v17093_v42  ;;  %v14294_v50 = vsel %vm17096_vm5, %v13844_v44, %v17095_v16  ;;  %vm17098_vm4 = vcmp.ge.f32.partialorder %v13846_v54, 0.0  ;;  %vm17101_vm6 = vcmp.ge.f32.partialorder %v17100_v11, 0.0  ;;  %v17102_v47 = vld [vmem:[#allocation297_spill] sm:$0xff]  ;;  %v17103_v17 = vld [vmem:[#allocation171_spill] sm:$0xff]  ;;  %v17111_v42 = vld [vmem:[#allocation182_spill] sm:$0xff] }
 0x798   :  { %v14300_v1 = vsel %vm17098_vm4, %v13846_v54, %v17097_v29  ;;  %v14306_v36 = vsel %vm17101_vm6, %v17100_v11, %v17099_v8  ;;  %vm17104_vm15 = vcmp.ge.f32.partialorder %v17103_v17, 0.0  ;;  %v17105_v44 = vld [vmem:[#allocation95_spill] sm:$0xff]  ;;  %v17108_v54 = vld [vmem:[#allocation298_spill] sm:$0xff]  ;;  %vm17112_vm1 = vcmp.ge.f32.partialorder %v17111_v42, 0.0  ;;  %v17115_v11 = vld [vmem:[#allocation137_spill] sm:$0xff] }
 0x799   :  { %v14312_v4 = vsel %vm17104_vm15, %v17103_v17, %v17102_v47  ;;  %v17106_v7 = vld [vmem:[#allocation159_spill] sm:$0xff]  ;;  %v14329_v16 = vsel %vm17112_vm1, %v17111_v42, %v5733_v43  ;;  %vm17116_vm13 = vcmp.ge.f32.partialorder %v17115_v11, 0.0  ;;  %v17117_v17 = vld [vmem:[#allocation165_spill] sm:$0xff]  ;;  %vm17119_vm10 = vcmp.ge.f32.partialorder %v13870_v27, 0.0 }
 0x79a   :  { %vm17107_vm8 = vcmp.ge.f32.partialorder %v17106_v7, 0.0  ;;  %v17109_v52 = vld [vmem:[#allocation131_spill] sm:$0xff]  ;;  %v14339_v47 = vsel %vm17116_vm13, %v17115_v11, %v5735_v41  ;;  %vm17118_vm11 = vcmp.ge.f32.partialorder %v17117_v17, 0.0  ;;  %v14349_v43 = vsel %vm17119_vm10, %v13870_v27, %v5737_v49  ;;  %v17125_v27 = vld [vmem:[#allocation94_spill] sm:$0xff] }
 0x79b   :  { %v14318_v6 = vsel %vm17107_vm8, %v17106_v7, %v17105_v44  ;;  %vm17110_vm0 = vcmp.ge.f32.partialorder %v17109_v52, 0.0  ;;  %v17113_v29 = vld [vmem:[#allocation55_spill] sm:$0xff]  ;;  %v14344_v44 = vsel %vm17118_vm11, %v17117_v17, %v5736_v46  ;;  %vm17120_vm14 = vcmp.ge.f32.partialorder %v13873_v9, 0.0  ;;  %v17121_v7 = vld [vmem:[#allocation169_spill] sm:$0xff] }
 0x79c   :  { %v14324_v22 = vsel %vm17110_vm0, %v17109_v52, %v17108_v54  ;;  %vm17114_vm12 = vcmp.ge.f32.partialorder %v17113_v29, 0.0  ;;  %vm17122_vm5 = vcmp.ge.f32.partialorder %v17121_v7, 0.0  ;;  %v17123_v54 = vld [vmem:[#allocation173_spill] sm:$0xff]  ;;  %v14369_v49 = vsel %vm5692_vm9, %v13881_v24, %v5741_v25 }
 0x79d   :  { %v14334_v8 = vsel %vm17114_vm12, %v17113_v29, %v5734_v10  ;;  %v14354_v10 = vsel %vm17120_vm14, %v13873_v9, %v5738_v60  ;;  %v14359_v41 = vsel %vm17122_vm5, %v17121_v7, %v5739_v18  ;;  %vm17124_vm4 = vcmp.ge.f32.partialorder %v17123_v54, 0.0 }
 0x79e   :  { %v14364_v46 = vsel %vm17124_vm4, %v17123_v54, %v5740_v53  ;;  %v14374_v60 = vsel %vm5693_vm7, %v13884_v38, %v5742_v15  ;;  %v14379_v18 = vsel %vm5694_vm2, %v13886_v48, %v5743_v34  ;;  %v14384_v53 = vsel %vm5695_vm3, %v17125_v27, %v5744_v0 }
 0x79f   :  { %v5793_v9 = vpack.c.bf16 %v14132_v33, %v14114_v45  ;;  %v5794_v25 = vpack.c.bf16 %v14138_v58, %v14120_v23  ;;  %v5795_v15 = vpack.c.bf16 %v14144_v35, %v14126_v57  ;;  %v5796_v24 = vpack.c.bf16 %v14168_v5, %v14150_v59 }
 0x7a0   :  { %v5797_v34 = vpack.c.bf16 %v14174_v20, %v14156_v14  ;;  %v5798_v38 = vpack.c.bf16 %v14180_v26, %v14162_v28  ;;  %v5800_v48 = vpack.c.bf16 %v14210_v37, %v14192_v32  ;;  %v5801_v23 = vpack.c.bf16 %v14216_v12, %v14198_v13 }
 0x7a1   :  { %v5804_v35 = vpack.c.bf16 %v14252_v63, %v14234_v19  ;;  %v5807_v29 = vpack.c.bf16 %v14288_v3, %v14270_v2 }
 0x7a2   :  { %7227 = dma.done.wait [#allocation4 + $0x1], 3072 }
 0x7a3   :  { %7228 = vsyncadd [#allocation4 + $0x1], 4294964224  ;;  %5884 = vmatprep.mubr.bf16.mxu0 %v5794_v25  ;;  %6738 = vmatprep.mubr.bf16.mxu1 %v5795_v15  ;;  %v5829_v54 = vld [vmem:[#allocation3 + $0x40] sm:$0xff]  ;;  %v5830_v7 = vld [vmem:[#allocation3 + $0x48] sm:$0xff]  ;;  %v17126_v45 = vpack.c.bf16 %v14204_v30, %v14186_v31  ;;  %v17127_v33 = vpack.c.bf16 %v14246_v21, %v14228_v51  ;;  %v17128_v59 = vpack.c.bf16 %v14324_v22, %v14306_v36 }
 0x7a4   :  { %v5821_v57 = vld [vmem:[#allocation3] sm:$0xff]  ;;  %6590 = vmatprep.subr.bf16.mxu0 %v5829_v54  ;;  %v5838_v52 = vld [vmem:[#allocation3 + $0x88] sm:$0xff]  ;;  %v5831_v58 = vld [vmem:[#allocation3 + $0x50] sm:$0xff]  ;;  %v17129_v14 = vpack.c.bf16 %v14354_v10, %v14339_v47  ;;  %v17130_v28 = vpack.c.bf16 %v14240_v62, %v14222_v39  ;;  %v17131_v5 = vpack.c.bf16 %v14282_v40, %v14264_v56  ;;  %v17132_v20 = vpack.c.bf16 %v14384_v53, %v14369_v49 }
 0x7a5   :  { %v5837_v27 = vld [vmem:[#allocation3 + $0x80] sm:$0xff]  ;;  %6591 = vmatpush3.bf16.msra.mxu0 %v5821_v57  ;;  %v5822_v42 = vld [vmem:[#allocation3 + $0x8] sm:$0xff]  ;;  %v5839_v11 = vld [vmem:[#allocation3 + $0x90] sm:$0xff]  ;;  %v17133_v26 = vpack.c.bf16 %v14276_v55, %v14258_v61  ;;  %v17134_v31 = vpack.c.bf16 %v14318_v6, %v14300_v1  ;;  %v17135_v32 = vpack.c.bf16 %v14312_v4, %v14294_v50  ;;  %v17136_v13 = vpack.c.bf16 %v14349_v43, %v14334_v8 }
 0x7a6   :  { %6722 = vmatprep.subr.bf16.mxu1 %v5837_v27  ;;  %6592 = vmatprep.subr.bf16.mxu0 %v5830_v7  ;;  %v5823_v17 = vld [vmem:[#allocation3 + $0x10] sm:$0xff]  ;;  %v5832_v25 = vld [vmem:[#allocation3 + $0x58] sm:$0xff]  ;;  %v5833_v57 = vld [vmem:[#allocation3 + $0x60] sm:$0xff]  ;;  %v17137_v30 = vpack.c.bf16 %v14344_v44, %v14329_v16  ;;  %v17138_v37 = vpack.c.bf16 %v14379_v18, %v14364_v46  ;;  %v17139_v12 = vpack.c.bf16 %v14374_v60, %v14359_v41 }
 0x7a7   :  { %6723 = vmatpush3.bf16.msra.mxu1 %v5837_v27  ;;  %v5840_v15 = vld [vmem:[#allocation3 + $0x98] sm:$0xff]  ;;  %v5841_v0 = vld [vmem:[#allocation3 + $0xa0] sm:$0xff]  ;;  %v5834_v27 = vld [vmem:[#allocation3 + $0x68] sm:$0xff] }
 0x7a8   :  { %6724 = vmatprep.subr.bf16.mxu1 %v5838_v52  ;;  %v5824_v54 = vld [vmem:[#allocation3 + $0x18] sm:$0xff]  ;;  %v5825_v7 = vld [vmem:[#allocation3 + $0x20] sm:$0xff]  ;;  %v14500_v62 = vld [vmem:[#allocation15] ss:$0 sm:$0xff] }
 0x7a9   :  { %6593 = vmatpush3.bf16.msra.mxu0 %v5822_v42  ;;  %v5842_v42 = vld [vmem:[#allocation3 + $0xa8] sm:$0xff] }
 0x7aa   :  { %6594 = vmatprep.subr.bf16.mxu0 %v5831_v58  ;;  %v5826_v58 = vld [vmem:[#allocation3 + $0x28] sm:$0xff] }
 0x7ab   :  { %6725 = vmatpush3.bf16.msra.mxu1 %v5838_v52  ;;  %v5835_v52 = vld [vmem:[#allocation3 + $0x70] sm:$0xff] }
 0x7ac   :  { %6726 = vmatprep.subr.bf16.mxu1 %v5839_v11 }
 0x7ad   :  { %6595 = vmatpush3.bf16.msra.mxu0 %v5823_v17  ;;  %v5843_v17 = vld [vmem:[#allocation3 + $0xb0] sm:$0xff] }
 0x7ae   :  { %6596 = vmatprep.subr.bf16.mxu0 %v5832_v25  ;;  %v5836_v25 = vld [vmem:[#allocation3 + $0x78] sm:$0xff] }
 0x7af   :  { %6727 = vmatpush3.bf16.msra.mxu1 %v5839_v11  ;;  %v5827_v11 = vld [vmem:[#allocation3 + $0x30] sm:$0xff] }
 0x7b0   :  { %6728 = vmatprep.subr.bf16.mxu1 %v5840_v15 }
 0x7b1   :  { %6597 = vmatpush3.bf16.msra.mxu0 %v5824_v54  ;;  %v5844_v54 = vld [vmem:[#allocation3 + $0xb8] sm:$0xff] }
 0x7b2   :  { %6598 = vmatprep.subr.bf16.mxu0 %v5833_v57 }
 0x7b3   :  { %6729 = vmatpush3.bf16.msra.mxu1 %v5840_v15  ;;  %v5828_v15 = vld [vmem:[#allocation3 + $0x38] sm:$0xff] }
 0x7b4   :  { %6730 = vmatprep.subr.bf16.mxu1 %v5841_v0 }
 0x7b5   :  { %6599 = vmatpush3.bf16.msra.mxu0 %v5825_v7 }
 0x7b6   :  { %6600 = vmatprep.subr.bf16.mxu0 %v5834_v27 }
 0x7b7   :  { %6731 = vmatpush3.bf16.msra.mxu1 %v5841_v0 }
 0x7b8   :  { %6732 = vmatprep.subr.bf16.mxu1 %v5842_v42 }
 0x7b9   :  { %6601 = vmatpush3.bf16.msra.mxu0 %v5826_v58 }
 0x7ba   :  { %6602 = vmatprep.subr.bf16.mxu0 %v5835_v52 }
 0x7bb   :  { %6733 = vmatpush3.bf16.msra.mxu1 %v5842_v42 }
 0x7bc   :  { %6734 = vmatprep.subr.bf16.mxu1 %v5843_v17 }
 0x7bd   :  { %6603 = vmatpush3.bf16.msra.mxu0 %v5827_v11 }
 0x7be   :  { %6604 = vmatprep.subr.bf16.mxu0 %v5836_v25 }
 0x7bf   :  { %6735 = vmatpush3.bf16.msra.mxu1 %v5843_v17 }
 0x7c0   :  { %6736 = vmatprep.subr.bf16.mxu1 %v5844_v54 }
 0x7c1   :  { %6605 = vmatpush3.bf16.msra.mxu0 %v5828_v15 }
 0x7c3   :  { %6737 = vmatpush3.bf16.msra.mxu1 %v5844_v54 }
 0x7c4   :  { %5885 = vmatmul.mubr.bf16.vlgmr.msra.gmra.mrb[56].mxu0 %v5793_v9 }
 0x7c5   :  { %5892 = vmatprep.mubr.bf16.mxu0 %v5797_v34 }
 0x7c6   :  { %6739 = vmatmul.mubr.bf16.vlgmr.msra.gmra.mrb[136].mxu1 %v5798_v38 }
 0x7c7   :  { %6742 = vmatprep.mubr.bf16.mxu1 %v5801_v23 }
 0x7cc   :  { %5893 = vmatmul.mubr.bf16.gmra.mrb[60].mxu0 %v5796_v24 }
 0x7cd   :  { %5900 = vmatprep.mubr.bf16.mxu0 %v5800_v48 }
 0x7ce   :  { %6743 = vmatmul.mubr.bf16.gmra.mrb[140].mxu1 %v5804_v35 }
 0x7cf   :  { %6746 = vmatprep.mubr.bf16.mxu1 %v5807_v29 }
 0x7d4   :  { %5901 = vmatmul.mubr.bf16.gmra.mrb[64].mxu0 %v17126_v45 }
 0x7d5   :  { %5908 = vmatprep.mubr.bf16.mxu0 %v17127_v33 }
 0x7d6   :  { %6747 = vmatmul.mubr.bf16.gmra.mrb[144].mxu1 %v17128_v59 }
 0x7d7   :  { %6750 = vmatprep.mubr.bf16.mxu1 %v17129_v14 }
 0x7dc   :  { %5909 = vmatmul.mubr.bf16.gmra.mrb[68].mxu0 %v17130_v28 }
 0x7dd   :  { %5916 = vmatprep.mubr.bf16.mxu0 %v17131_v5 }
 0x7de   :  { %6751 = vmatmul.mubr.bf16.gmra.mrb[148].mxu1 %v17132_v20 }
 0x7e4   :  { %5917 = vmatmul.mubr.bf16.gmra.mrb[72].mxu0 %v17133_v26 }
 0x7e5   :  { %5924 = vmatprep.mubr.bf16.mxu0 %v17134_v31 }
 0x7ec   :  { %5925 = vmatmul.mubr.bf16.gmra.mrb[76].mxu0 %v17135_v32 }
 0x7ed   :  { %5932 = vmatprep.mubr.bf16.mxu0 %v17136_v13 }
 0x7f4   :  { %5933 = vmatmul.mubr.bf16.gmra.mrb[80].mxu0 %v17137_v30 }
 0x7f5   :  { %5940 = vmatprep.mubr.bf16.mxu0 %v17138_v37 }
 0x7fc   :  { %5941 = vmatmul.mubr.bf16.gmra.mrb[84].mxu0 %v17139_v12 }
 0x897   :  { %v6606_v39 = vpop.f32.mrb[56].mxu0 }
 0x898   :  { %v6607_v51 = vpop.f32.mrb[57].mxu0 }
 0x899   :  { %v6740_v19 = vpop.f32.mrb[136].mxu1  ;;  %v6608_v21 = vadd.f32 %v6607_v51, %v6606_v39  ;;  %v6609_v63 = vpop.f32.mrb[58].mxu0 }
 0x89a   :  { %v5983_v61 = vpop.f32.mrb[137].mxu1  ;;  %v6610_v56 = vpop.f32.mrb[59].mxu0 }
 0x89b   :  { %v6741_v2 = vpop.f32.mrb[138].mxu1  ;;  %v6611_v55 = vadd.f32 %v6610_v56, %v6609_v63  ;;  %v5887_v40 = vadd.f32 %v6608_v21, %v14500_v62 }
 0x89c   :  { %v5986_v3 = vpop.f32.mrb[139].mxu1 }
 0x89d   :  { %v5984_v50 = vadd.f32 %v5983_v61, %v5887_v40  ;;  %v5890_v1 = vadd.f32 %v6611_v55, %v14500_v62 }
 0x89f   :  { %6046 = vst [vmem:[%s14576_s10] sm:$0xff] %v5984_v50  ;;  %v5987_v36 = vadd.f32 %v5986_v3, %v5890_v1  ;;  %v6612_v4 = vpop.f32.mrb[60].mxu0 }
 0x8a0   :  { %v6613_v6 = vpop.f32.mrb[61].mxu0 }
 0x8a1   :  { %v6744_v22 = vpop.f32.mrb[140].mxu1  ;;  %6047 = vst [vmem:[%s14576_s10 + $0x8] sm:$0xff] %v5987_v36  ;;  %v6614_v16 = vadd.f32 %v6613_v6, %v6612_v4  ;;  %v6615_v8 = vpop.f32.mrb[62].mxu0 }
 0x8a2   :  { %v5999_v47 = vpop.f32.mrb[141].mxu1  ;;  %v6616_v44 = vpop.f32.mrb[63].mxu0 }
 0x8a3   :  { %v6745_v43 = vpop.f32.mrb[142].mxu1  ;;  %v5895_v10 = vadd.f32 %v6614_v16, %v14500_v62  ;;  %v6617_v41 = vadd.f32 %v6616_v44, %v6615_v8 }
 0x8a4   :  { %v6002_v46 = vpop.f32.mrb[143].mxu1 }
 0x8a5   :  { %v5992_v49 = vadd.f32 %v6740_v19, %v5895_v10  ;;  %v5898_v60 = vadd.f32 %v6617_v41, %v14500_v62 }
 0x8a7   :  { %6048 = vst [vmem:[%s14576_s10 + $0x10] sm:$0xff] %v5992_v49  ;;  %v5995_v18 = vadd.f32 %v6741_v2, %v5898_v60  ;;  %v6618_v53 = vpop.f32.mrb[64].mxu0 }
 0x8a8   :  { %v6619_v9 = vpop.f32.mrb[65].mxu0 }
 0x8a9   :  { %v6748_v24 = vpop.f32.mrb[144].mxu1  ;;  %6049 = vst [vmem:[%s14576_s10 + $0x18] sm:$0xff] %v5995_v18  ;;  %v6620_v34 = vadd.f32 %v6619_v9, %v6618_v53  ;;  %v6621_v38 = vpop.f32.mrb[66].mxu0 }
 0x8aa   :  { %v6015_v0 = vpop.f32.mrb[145].mxu1  ;;  %v6622_v48 = vpop.f32.mrb[67].mxu0 }
 0x8ab   :  { %v6749_v23 = vpop.f32.mrb[146].mxu1  ;;  %v6623_v35 = vadd.f32 %v6622_v48, %v6621_v38  ;;  %v5903_v29 = vadd.f32 %v6620_v34, %v14500_v62 }
 0x8ac   :  { %v6018_v57 = vpop.f32.mrb[147].mxu1 }
 0x8ad   :  { %v6000_v7 = vadd.f32 %v5999_v47, %v5903_v29  ;;  %v5906_v27 = vadd.f32 %v6623_v35, %v14500_v62 }
 0x8af   :  { %6050 = vst [vmem:[%s14576_s10 + $0x20] sm:$0xff] %v6000_v7  ;;  %v6003_v42 = vadd.f32 %v6002_v46, %v5906_v27  ;;  %v6624_v58 = vpop.f32.mrb[68].mxu0 }
 0x8b0   :  { %v6625_v52 = vpop.f32.mrb[69].mxu0 }
 0x8b1   :  { %v6752_v17 = vpop.f32.mrb[148].mxu1  ;;  %6051 = vst [vmem:[%s14576_s10 + $0x28] sm:$0xff] %v6003_v42  ;;  %v6626_v11 = vadd.f32 %v6625_v52, %v6624_v58  ;;  %v6627_v25 = vpop.f32.mrb[70].mxu0 }
 0x8b2   :  { %v6031_v54 = vpop.f32.mrb[149].mxu1  ;;  %v6628_v15 = vpop.f32.mrb[71].mxu0 }
 0x8b3   :  { %v6753_v45 = vpop.f32.mrb[150].mxu1  ;;  %v5911_v33 = vadd.f32 %v6626_v11, %v14500_v62  ;;  %v6629_v59 = vadd.f32 %v6628_v15, %v6627_v25 }
 0x8b4   :  { %v6034_v14 = vpop.f32.mrb[151].mxu1 }
 0x8b5   :  { %v6008_v28 = vadd.f32 %v6744_v22, %v5911_v33  ;;  %v5914_v5 = vadd.f32 %v6629_v59, %v14500_v62 }
 0x8b7   :  { %6052 = vst [vmem:[%s14576_s10 + $0x30] sm:$0xff] %v6008_v28  ;;  %v6011_v20 = vadd.f32 %v6745_v43, %v5914_v5  ;;  %v6630_v26 = vpop.f32.mrb[72].mxu0 }
 0x8b8   :  { %v6631_v31 = vpop.f32.mrb[73].mxu0 }
 0x8b9   :  { %6053 = vst [vmem:[%s14576_s10 + $0x38] sm:$0xff] %v6011_v20  ;;  %v6632_v32 = vadd.f32 %v6631_v31, %v6630_v26  ;;  %v6633_v13 = vpop.f32.mrb[74].mxu0 }
 0x8ba   :  { %v6634_v30 = vpop.f32.mrb[75].mxu0 }
 0x8bb   :  { %v6635_v37 = vadd.f32 %v6634_v30, %v6633_v13  ;;  %v5919_v12 = vadd.f32 %v6632_v32, %v14500_v62 }
 0x8bd   :  { %v6016_v39 = vadd.f32 %v6015_v0, %v5919_v12  ;;  %v5922_v51 = vadd.f32 %v6635_v37, %v14500_v62 }
 0x8bf   :  { %6054 = vst [vmem:[%s14576_s10 + $0x40] sm:$0xff] %v6016_v39  ;;  %v6019_v19 = vadd.f32 %v6018_v57, %v5922_v51  ;;  %v6636_v21 = vpop.f32.mrb[76].mxu0 }
 0x8c0   :  { %v6637_v63 = vpop.f32.mrb[77].mxu0 }
 0x8c1   :  { %6055 = vst [vmem:[%s14576_s10 + $0x48] sm:$0xff] %v6019_v19  ;;  %v6638_v61 = vadd.f32 %v6637_v63, %v6636_v21  ;;  %v6639_v56 = vpop.f32.mrb[78].mxu0 }
 0x8c2   :  { %v6640_v2 = vpop.f32.mrb[79].mxu0 }
 0x8c3   :  { %v5927_v55 = vadd.f32 %v6638_v61, %v14500_v62  ;;  %v6641_v40 = vadd.f32 %v6640_v2, %v6639_v56 }
 0x8c5   :  { %v6024_v3 = vadd.f32 %v6748_v24, %v5927_v55  ;;  %v5930_v50 = vadd.f32 %v6641_v40, %v14500_v62 }
 0x8c7   :  { %6056 = vst [vmem:[%s14576_s10 + $0x50] sm:$0xff] %v6024_v3  ;;  %v6027_v1 = vadd.f32 %v6749_v23, %v5930_v50  ;;  %v6642_v36 = vpop.f32.mrb[80].mxu0 }
 0x8c8   :  { %v6643_v4 = vpop.f32.mrb[81].mxu0 }
 0x8c9   :  { %6057 = vst [vmem:[%s14576_s10 + $0x58] sm:$0xff] %v6027_v1  ;;  %v6644_v6 = vadd.f32 %v6643_v4, %v6642_v36  ;;  %v6645_v22 = vpop.f32.mrb[82].mxu0 }
 0x8ca   :  { %v6646_v16 = vpop.f32.mrb[83].mxu0 }
 0x8cb   :  { %v6647_v8 = vadd.f32 %v6646_v16, %v6645_v22  ;;  %v5935_v47 = vadd.f32 %v6644_v6, %v14500_v62 }
 0x8cd   :  { %v6032_v44 = vadd.f32 %v6031_v54, %v5935_v47  ;;  %v5938_v43 = vadd.f32 %v6647_v8, %v14500_v62 }
 0x8cf   :  { %6058 = vst [vmem:[%s14576_s10 + $0x60] sm:$0xff] %v6032_v44  ;;  %v6035_v10 = vadd.f32 %v6034_v14, %v5938_v43  ;;  %v6648_v41 = vpop.f32.mrb[84].mxu0 }
 0x8d0   :  { %v6649_v46 = vpop.f32.mrb[85].mxu0 }
 0x8d1   :  { %6059 = vst [vmem:[%s14576_s10 + $0x68] sm:$0xff] %v6035_v10  ;;  %v6650_v49 = vadd.f32 %v6649_v46, %v6648_v41  ;;  %v6651_v60 = vpop.f32.mrb[86].mxu0 }
 0x8d2   :  { %v6652_v18 = vpop.f32.mrb[87].mxu0 }
 0x8d3   :  { %v5943_v53 = vadd.f32 %v6650_v49, %v14500_v62  ;;  %v6653_v9 = vadd.f32 %v6652_v18, %v6651_v60 }
 0x8d5   :  { %v6040_v24 = vadd.f32 %v6752_v17, %v5943_v53  ;;  %v5946_v34 = vadd.f32 %v6653_v9, %v14500_v62 }
 0x8d7   :  { %6060 = vst [vmem:[%s14576_s10 + $0x70] sm:$0xff] %v6040_v24  ;;  %v6043_v38 = vadd.f32 %v6753_v45, %v5946_v34 }
 0x8d9   :  { %6061 = vst [vmem:[%s14576_s10 + $0x78] sm:$0xff] %v6043_v38 }
 0x8da   :  { %6066 = vsyncpa [#allocation6], 1 }
 0x8db   :  { %6067 = vsyncpa [#allocation10], 1 }
 0x8dc   :  { %6068 = vsyncpa [#allocation13], 1 }
 0x8dd   :  { %6069 = vsyncpa [#allocation16], 1 }
 0x8de   :  { %6070 = vsyncpa [#allocation7], 1 }
 0x8df   :  { %6071 = vsyncmov [#allocation4] }
 0x8e2   :  { %s6072_s26 = vpop.sfrf %6071 }
 0x8e3   :  { %p6178_p3 = scmp.ne.s32.totalorder %s6072_s26, 0 }
 0x8e5   :  { %6076 = shalt.err (%p6178_p3)  }
 0x8e6   :  { %6078 = vsyncmov [#allocation4 + $0x1] }
 0x8e9   :  { %s6079_s27 = vpop.sfrf %6078 }
 0x8ea   :  { %p6179_p4 = scmp.ne.s32.totalorder %s6079_s27, 0 }
 0x8ec   :  { %6083 = shalt.err (%p6179_p4)  }

</bundles_post_ra>
